<compile_context>
chip_gen: v7x
topology: tpu7x:2x2x1
jax: 0.10.0
libtpu: 0.0.40
codegen_flags: <defaults>
</compile_context>

<pallas_src>
import functools
import math

import jax
import jax.numpy as jnp
from jax import lax
from jax.experimental import pallas as pl
from jax.experimental.pallas import tpu as pltpu

MXU_DTYPE = jnp.bfloat16           # matmul operand dtype (f32 accumulation)
LN_EPS = 1e-5
VMEM_LIMIT_BYTES = 32 * 1024 * 1024   # >= every generation's scoped default


def _row_tile(n, target):
    """Row-tile size: full array if small, else `target` (multiple of 8)."""
    return n if n <= target else target


# ----------------------------------------------------------------------------
# Kernel 1: embedding projection + positional embedding add (fused)
# ----------------------------------------------------------------------------
def _embed_kernel(x_ref, w_ref, b_ref, p_ref, o_ref):
    x = x_ref[0].astype(MXU_DTYPE)                                   # (tl, Din)
    y = jnp.dot(x, w_ref[...], preferred_element_type=jnp.float32)
    y = y + b_ref[...] + p_ref[0].astype(jnp.float32)
    o_ref[0] = y.astype(o_ref.dtype)


def embed_pos(x, w, b, pos):
    """x: (B, L, Din); w: (Din, E); b: (E,); pos: (1, L, E) -> (B, L, E) f32."""
    B, L, Din = x.shape
    E = w.shape[1]
    tl = _row_tile(L, 512)
    return pl.pallas_call(
        _embed_kernel,
        out_shape=jax.ShapeDtypeStruct((B, L, E), jnp.float32),
        grid=(B, pl.cdiv(L, tl)),
        in_specs=[
            pl.BlockSpec((1, tl, Din), lambda bi, li: (bi, li, 0)),
            pl.BlockSpec((Din, E), lambda bi, li: (0, 0)),
            pl.BlockSpec((1, E), lambda bi, li: (0, 0)),
            pl.BlockSpec((1, tl, E), lambda bi, li: (0, li, 0)),
        ],
        out_specs=pl.BlockSpec((1, tl, E), lambda bi, li: (bi, li, 0)),
        compiler_params=pltpu.CompilerParams(
            dimension_semantics=("parallel", "parallel")),
    )(x, w, b.reshape(1, E), pos)


# ----------------------------------------------------------------------------
# Kernel 2: FUSED self-attention block
#   qkv projection (per 128-lane head group) + masked softmax attention +
#   out-projection (accumulated over head groups) + residual + LayerNorm1.
#   grid = (B, nhead//G); the head-group axis is a reduction ("arbitrary").
# ----------------------------------------------------------------------------
def _attn_block_kernel(h_ref, m_ref, wq_ref, wk_ref, wv_ref,
                       bq_ref, bk_ref, bv_ref, wo_ref,
                       ob_ref, g_ref, bt_ref, o_ref, acc_ref, *, G, Dh, eps):
    g_idx = pl.program_id(1)

    @pl.when(g_idx == 0)
    def _():
        acc_ref[...] = jnp.zeros_like(acc_ref)

    xm = h_ref[0].astype(MXU_DTYPE)                        # (L, E)
    mask = m_ref[0]                                        # (1, L) additive bias

    # q already carries the 1/sqrt(Dh) scale (folded into frozen weights).
    q = jnp.dot(xm, wq_ref[...], preferred_element_type=jnp.float32) + bq_ref[...]
    k = jnp.dot(xm, wk_ref[...], preferred_element_type=jnp.float32) + bk_ref[...]
    v = jnp.dot(xm, wv_ref[...], preferred_element_type=jnp.float32) + bv_ref[...]

    # TODO(synk): flash-style key tiling (online softmax) + fori_loop over heads
    # for L beyond ~1k so the (L, L) score tile stays bounded in VMEM; full-L
    # scores with a static G=4 head unroll are fine at these sequence lengths.
    # TODO(synk): a batched (G, L, Dh) dot_general would amortize MXU drains on
    # v6e/v7x; kept as per-head 2-D dots for lowering robustness.
    for h in range(G):                                     # static unroll, G heads
        sl = slice(h * Dh, (h + 1) * Dh)
        qh = q[:, sl].astype(MXU_DTYPE)
        kh = k[:, sl].astype(MXU_DTYPE)
        vh = v[:, sl].astype(MXU_DTYPE)
        s = lax.dot_general(qh, kh, (((1,), (1,)), ((), ())),
                            preferred_element_type=jnp.float32)
        s = s + mask
        s = s - jnp.max(s, axis=-1, keepdims=True)
        p = jnp.exp(s)
        p = p * pl.reciprocal(jnp.sum(p, axis=-1, keepdims=True), approx=True)
        oh = jnp.dot(p.astype(MXU_DTYPE), vh, preferred_element_type=jnp.float32)
        # Fold this head's rows of the out-projection straight into the
        # accumulator (no concatenation of head outputs).
        acc_ref[...] += jnp.dot(oh.astype(MXU_DTYPE), wo_ref[sl, :],
                                preferred_element_type=jnp.float32)

    @pl.when(g_idx == pl.num_programs(1) - 1)
    def _():
        hs = acc_ref[...] + ob_ref[...] + h_ref[0].astype(jnp.float32)  # residual
        mu = jnp.mean(hs, axis=-1, keepdims=True)
        var = jnp.mean(jnp.square(hs - mu), axis=-1, keepdims=True)
        hn = (hs - mu) * lax.rsqrt(var + eps)
        o_ref[0] = (hn * g_ref[...] + bt_ref[...]).astype(o_ref.dtype)


def attention_block(h, mask_add, qkv_w, qkv_b, out_w, out_b, ln_g, ln_b, nhead,
                    *, eps=LN_EPS):
    """h: (B, L, E) f32; mask_add: (B, 1, L); qkv_w: (E, 3E) (scale-folded q)."""
    B, L, E = h.shape
    Dh = E // nhead
    G = max(1, min(nhead, 128 // max(Dh, 1)))     # heads per block -> 128 lanes
    while nhead % G:
        G -= 1
    GD = G * Dh
    HG = nhead // G                               # head groups == column blocks / E

    qkv_b2 = qkv_b.reshape(1, 3 * E)

    def wcol(off):
        return pl.BlockSpec((E, GD), lambda b, g, off=off: (0, off + g))

    def bcol(off):
        return pl.BlockSpec((1, GD), lambda b, g, off=off: (0, off + g))

    return pl.pallas_call(
        functools.partial(_attn_block_kernel, G=G, Dh=Dh, eps=eps),
        out_shape=jax.ShapeDtypeStruct((B, L, E), jnp.float32),
        grid=(B, HG),
        in_specs=[
            pl.BlockSpec((1, L, E), lambda b, g: (b, 0, 0)),   # h (input + residual)
            pl.BlockSpec((1, 1, L), lambda b, g: (b, 0, 0)),   # additive key mask
            wcol(0), wcol(HG), wcol(2 * HG),                   # Wq / Wk / Wv slices
            bcol(0), bcol(HG), bcol(2 * HG),                   # bq / bk / bv slices
            pl.BlockSpec((GD, E), lambda b, g: (g, 0)),        # Wout row slice
            pl.BlockSpec((1, E), lambda b, g: (0, 0)),         # out bias
            pl.BlockSpec((1, E), lambda b, g: (0, 0)),         # LN1 gamma
            pl.BlockSpec((1, E), lambda b, g: (0, 0)),         # LN1 beta
        ],
        out_specs=pl.BlockSpec((1, L, E), lambda b, g: (b, 0, 0)),
        scratch_shapes=[pltpu.VMEM((L, E), jnp.float32)],
        compiler_params=pltpu.CompilerParams(
            dimension_semantics=("parallel", "arbitrary"),
            vmem_limit_bytes=VMEM_LIMIT_BYTES),
    )(h, mask_add, qkv_w, qkv_w, qkv_w, qkv_b2, qkv_b2, qkv_b2,
      out_w, out_b.reshape(1, E), ln_g.reshape(1, E), ln_b.reshape(1, E))


# ----------------------------------------------------------------------------
# Kernel 3: FUSED FFN block, chunked over ff_dim
#   relu(x@W1[:,f] + b1[f]) @ W2[f,:] accumulated over F-chunks, then
#   + b2 + residual + LayerNorm2 once on the last chunk.
# ----------------------------------------------------------------------------
def _ffn_block_kernel(x_ref, w1_ref, b1_ref, w2_ref, b2_ref, g_ref, bt_ref,
                      o_ref, acc_ref, *, eps):
    f = pl.program_id(1)

    @pl.when(f == 0)
    def _():
        acc_ref[...] = jnp.zeros_like(acc_ref)

    xm = x_ref[...].astype(MXU_DTYPE)
    h1 = jnp.dot(xm, w1_ref[...], preferred_element_type=jnp.float32) + b1_ref[...]
    h1 = jnp.maximum(h1, 0.0)                                        # ReLU
    acc_ref[...] += jnp.dot(h1.astype(MXU_DTYPE), w2_ref[...],
                            preferred_element_type=jnp.float32)

    @pl.when(f == pl.num_programs(1) - 1)
    def _():
        hs = acc_ref[...] + b2_ref[...] + x_ref[...].astype(jnp.float32)  # residual
        mu = jnp.mean(hs, axis=-1, keepdims=True)
        var = jnp.mean(jnp.square(hs - mu), axis=-1, keepdims=True)
        hn = (hs - mu) * lax.rsqrt(var + eps)
        o_ref[...] = (hn * g_ref[...] + bt_ref[...]).astype(o_ref.dtype)


def ffn_block(x2d, w1, b1, w2, b2, ln_g, ln_b, *, tm=512, tf=512, eps=LN_EPS):
    N, E = x2d.shape
    F = w1.shape[1]
    tm = _row_tile(N, tm)
    tf = min(F, tf)
    return pl.pallas_call(
        functools.partial(_ffn_block_kernel, eps=eps),
        out_shape=jax.ShapeDtypeStruct((N, E), jnp.float32),
        grid=(pl.cdiv(N, tm), pl.cdiv(F, tf)),
        in_specs=[
            pl.BlockSpec((tm, E), lambda i, f: (i, 0)),
            pl.BlockSpec((E, tf), lambda i, f: (0, f)),
            pl.BlockSpec((1, tf), lambda i, f: (0, f)),
            pl.BlockSpec((tf, E), lambda i, f: (f, 0)),
            pl.BlockSpec((1, E), lambda i, f: (0, 0)),
            pl.BlockSpec((1, E), lambda i, f: (0, 0)),
            pl.BlockSpec((1, E), lambda i, f: (0, 0)),
        ],
        out_specs=pl.BlockSpec((tm, E), lambda i, f: (i, 0)),
        scratch_shapes=[pltpu.VMEM((tm, E), jnp.float32)],
        compiler_params=pltpu.CompilerParams(
            dimension_semantics=("parallel", "arbitrary"),
            vmem_limit_bytes=VMEM_LIMIT_BYTES),
    )(x2d, w1, b1.reshape(1, F), w2, b2.reshape(1, E),
      ln_g.reshape(1, E), ln_b.reshape(1, E))


# ----------------------------------------------------------------------------
# Parameters (deterministic synthetic init; module __init__ gives the shapes)
# ----------------------------------------------------------------------------
def init_params(key, input_dim, embed_dim, nhead, ff_dim, num_layers, max_len):
    def dense(k, din, dout):
        kw, kb = jax.random.split(k)
        w = (jax.random.normal(kw, (din, dout), jnp.float32) /
             math.sqrt(din)).astype(MXU_DTYPE)            # frozen weights: bf16
        b = 0.02 * jax.random.normal(kb, (dout,), jnp.float32)
        return w, b

    keys = jax.random.split(key, 2 + num_layers)
    params = {}
    params["embed_w"], params["embed_b"] = dense(keys[0], input_dim, embed_dim)
    params["pos_embed"] = jax.random.normal(keys[1], (1, max_len, embed_dim),
                                            jnp.float32)
    layers = []
    for i in range(num_layers):
        lk = jax.random.split(keys[2 + i], 4)
        layer = {}
        layer["qkv_w"], layer["qkv_b"] = dense(lk[0], embed_dim, 3 * embed_dim)
        layer["out_w"], layer["out_b"] = dense(lk[1], embed_dim, embed_dim)
        layer["ff1_w"], layer["ff1_b"] = dense(lk[2], embed_dim, ff_dim)
        layer["ff2_w"], layer["ff2_b"] = dense(lk[3], ff_dim, embed_dim)
        layer["ln1_g"] = jnp.ones((embed_dim,), jnp.float32)
        layer["ln1_b"] = jnp.zeros((embed_dim,), jnp.float32)
        layer["ln2_g"] = jnp.ones((embed_dim,), jnp.float32)
        layer["ln2_b"] = jnp.zeros((embed_dim,), jnp.float32)
        layers.append(layer)
    params["layers"] = layers
    return params


def fold_attention_scale(params, nhead):
    """One-time frozen-weight prep: fold 1/sqrt(Dh) into the q projection."""
    E = params["embed_w"].shape[1]
    scale = 1.0 / math.sqrt(E // nhead)
    kparams = dict(params)
    layers = []
    for layer in params["layers"]:
        l = dict(layer)
        w = l["qkv_w"].astype(jnp.float32)
        l["qkv_w"] = w.at[:, :E].multiply(scale).astype(MXU_DTYPE)
        l["qkv_b"] = l["qkv_b"].at[:E].multiply(scale)
        layers.append(l)
    kparams["layers"] = layers
    return kparams
    # TODO(synk): optional fp8(e4m3) weight path with per-channel scales for v7x.


# ----------------------------------------------------------------------------
# Forward pass: 1 embed kernel + 2 fused kernels per layer.
# ----------------------------------------------------------------------------
def frozen_v2_encoder_forward(kparams, x, lengths, nhead):
    """x: (B, L, input_dim) f32, lengths: (B,) int32 -> (B, L, embed_dim) f32."""
    B, L, _ = x.shape
    E = kparams["embed_w"].shape[1]

    # embed(x) + pos_embed[:, :L]
    h = embed_pos(x, kparams["embed_w"], kparams["embed_b"],
                  kparams["pos_embed"][:, :L])

    # key padding mask -> additive large-negative bias on padded keys
    pad = jnp.arange(L, dtype=jnp.int32)[None, :] >= lengths[:, None]
    mask_add = jnp.where(pad, jnp.float32(-1e30), jnp.float32(0.0))[:, None, :]

    for layer in kparams["layers"]:
        # fused: qkv proj + attention + out-proj + residual + LN1
        h = attention_block(h, mask_add, layer["qkv_w"], layer["qkv_b"],
                            layer["out_w"], layer["out_b"],
                            layer["ln1_g"], layer["ln1_b"], nhead)
        # fused: ff1 + ReLU + ff2 (F-chunked) + residual + LN2
        h2d = ffn_block(h.reshape(B * L, E), layer["ff1_w"], layer["ff1_b"],
                        layer["ff2_w"], layer["ff2_b"],
                        layer["ln2_g"], layer["ln2_b"])
        h = h2d.reshape(B, L, E)

    return h


# ----------------------------------------------------------------------------
# Pure-JAX reference (f32, PyTorch-style unfolded scale) for a sanity check
# ----------------------------------------------------------------------------
def _ln(x, g, b, eps=LN_EPS):
    mu = x.mean(-1, keepdims=True)
    var = ((x - mu) ** 2).mean(-1, keepdims=True)
    return (x - mu) * lax.rsqrt(var + eps) * g + b


def _reference_forward(params, x, lengths, nhead):
    B, L, _ = x.shape
    E = params["embed_w"].shape[1]
    Dh = E // nhead
    f32 = lambda a: a.astype(jnp.float32)
    h = x @ f32(params["embed_w"]) + params["embed_b"] + params["pos_embed"][:, :L]
    pad = jnp.arange(L)[None, :] >= lengths[:, None]
    bias = jnp.where(pad, jnp.float32(-1e30), jnp.float32(0.0))[:, None, None, :]
    for layer in params["layers"]:
        qkv = h @ f32(layer["qkv_w"]) + layer["qkv_b"]
        q, k, v = jnp.split(qkv, 3, axis=-1)
        sh = lambda t: t.reshape(B, L, nhead, Dh).transpose(0, 2, 1, 3)
        q, k, v = sh(q), sh(k), sh(v)
        s = jnp.einsum("bhld,bhmd->bhlm", q, k) / math.sqrt(Dh) + bias
        p = jax.nn.softmax(s, axis=-1)
        o = jnp.einsum("bhlm,bhmd->bhld", p, v).transpose(0, 2, 1, 3).reshape(B, L, E)
        sa = o @ f32(layer["out_w"]) + layer["out_b"]
        h = _ln(h + sa, layer["ln1_g"], layer["ln1_b"])
        ff = jnp.maximum(h @ f32(layer["ff1_w"]) + layer["ff1_b"], 0.0)
        ff = ff @ f32(layer["ff2_w"]) + layer["ff2_b"]
        h = _ln(h + ff, layer["ln2_g"], layer["ln2_b"])
    return h


if __name__ == "__main__":
    # Module-defined dims (input_dim=960, embed_dim=512, nhead=16, ff_dim=2048,
    # num_layers=4, max_len=1502) with small batch/sequence for the demo.
    INPUT_DIM, EMBED_DIM, NHEAD, FF_DIM, NUM_LAYERS, MAX_LEN = 960, 512, 16, 2048, 4, 1502
    B, L = 2, 8

    key = jax.random.PRNGKey(0)
    kx, kp = jax.random.split(key)
    x = jax.random.normal(kx, (B, L, INPUT_DIM), jnp.float32)
    lengths = jnp.array([L, L - 3], dtype=jnp.int32)

    params = init_params(kp, INPUT_DIM, EMBED_DIM, NHEAD, FF_DIM, NUM_LAYERS, MAX_LEN)
    kparams = fold_attention_scale(params, NHEAD)   # one-time frozen-weight prep

    fwd = jax.jit(functools.partial(frozen_v2_encoder_forward, nhead=NHEAD))
    out = fwd(kparams, x, lengths)
    jax.block_until_ready(out)

    assert out.shape == (B, L, EMBED_DIM) and out.dtype == jnp.float32
    assert bool(jnp.all(jnp.isfinite(out)))

    ref = _reference_forward(params, x, lengths, NHEAD)
    err = float(jnp.max(jnp.abs(out - ref)))
    assert err < 0.25, f"mismatch vs reference: max abs err {err}"

    print("KERNEL_OK")
</pallas_src>

<mosaic_0001>
module attributes {stable_mosaic.version = 11 : i64} {
  func.func @_embed_kernel(%arg0: i32, %arg1: i32, %arg2: memref<1x8x960xf32, #tpu.memory_space<vmem>>, %arg3: memref<960x512xbf16, #tpu.memory_space<vmem>>, %arg4: memref<1x512xf32, #tpu.memory_space<vmem>>, %arg5: memref<1x8x512xf32, #tpu.memory_space<vmem>>, %arg6: memref<1x8x512xf32, #tpu.memory_space<vmem>>) attributes {dimension_semantics = [#tpu.dimension_semantics<parallel>, #tpu.dimension_semantics<parallel>], iteration_bounds = array<i64: 2, 1>, scalar_prefetch = 0 : i64, scratch_operands = 0 : i64, tpu.core_type = #tpu.core_type<tc>, window_params = [{transform_indices = @transform_0, window_bounds = array<i64: 1, 8, 960>}, {pipeline_mode = #tpu.pipeline_mode<synchronous>, transform_indices = @transform_1, window_bounds = array<i64: 960, 512>}, {pipeline_mode = #tpu.pipeline_mode<synchronous>, transform_indices = @transform_2, window_bounds = array<i64: 1, 512>}, {transform_indices = @transform_3, window_bounds = array<i64: 1, 8, 512>}, {transform_indices = @transform_4, window_bounds = array<i64: 1, 8, 512>}]} {
    %c0 = arith.constant 0 : index
    %c0_0 = arith.constant 0 : index
    %c0_1 = arith.constant 0 : index
    %0 = vector.load %arg2[%c0, %c0_0, %c0_1] : memref<1x8x960xf32, #tpu.memory_space<vmem>>, vector<1x8x960xf32>
    %1 = vector.shape_cast %0 : vector<1x8x960xf32> to vector<8x960xf32>
    %2 = arith.truncf %1 : vector<8x960xf32> to vector<8x960xbf16>
    %c0_2 = arith.constant 0 : index
    %c0_3 = arith.constant 0 : index
    %3 = vector.load %arg3[%c0_2, %c0_3] : memref<960x512xbf16, #tpu.memory_space<vmem>>, vector<960x512xbf16>
    %cst = arith.constant dense<0.000000e+00> : vector<8x512xf32>
    %4 = tpu.matmul %2, %3, %cst {dimension_numbers = #tpu.dot_dimension_numbers<[1], [0], [0], [1], [0, 0, 1, 1], [], []>} : vector<8x960xbf16>, vector<960x512xbf16>, vector<8x512xf32> -> vector<8x512xf32>
    %c0_4 = arith.constant 0 : index
    %c0_5 = arith.constant 0 : index
    %5 = vector.load %arg4[%c0_4, %c0_5] : memref<1x512xf32, #tpu.memory_space<vmem>>, vector<1x512xf32>
    %6 = vector.broadcast %5 : vector<1x512xf32> to vector<8x512xf32>
    %7 = arith.addf %4, %6 : vector<8x512xf32>
    %c0_6 = arith.constant 0 : index
    %c0_7 = arith.constant 0 : index
    %c0_8 = arith.constant 0 : index
    %8 = vector.load %arg5[%c0_6, %c0_7, %c0_8] : memref<1x8x512xf32, #tpu.memory_space<vmem>>, vector<1x8x512xf32>
    %9 = vector.shape_cast %8 : vector<1x8x512xf32> to vector<8x512xf32>
    %10 = arith.addf %7, %9 : vector<8x512xf32>
    %c0_9 = arith.constant 0 : index
    %c0_10 = arith.constant 0 : index
    %c0_11 = arith.constant 0 : index
    %11 = vector.load %arg6[%c0_9, %c0_10, %c0_11] : memref<1x8x512xf32, #tpu.memory_space<vmem>>, vector<1x8x512xf32>
    %12 = vector.shape_cast %11 : vector<1x8x512xf32> to vector<8x512xf32>
    %13 = vector.shape_cast %10 : vector<8x512xf32> to vector<1x8x512xf32>
    tpu.vector_store %arg6[%c0_9, %c0_10, %c0_11], %13 {strides = array<i32>} : memref<1x8x512xf32, #tpu.memory_space<vmem>>, vector<1x8x512xf32>,
    return
  }
  func.func @transform_0(%arg0: i32, %arg1: i32) -> (i32, i32, i32) {
    %c0_i32 = arith.constant 0 : i32
    %c0_i32_0 = arith.constant 0 : i32
    return %arg0, %arg1, %c0_i32 : i32, i32, i32
  }
  func.func @transform_1(%arg0: i32, %arg1: i32) -> (i32, i32) {
    %c0_i32 = arith.constant 0 : i32
    %c0_i32_0 = arith.constant 0 : i32
    %c0_i32_1 = arith.constant 0 : i32
    return %c0_i32, %c0_i32_0 : i32, i32
  }
  func.func @transform_2(%arg0: i32, %arg1: i32) -> (i32, i32) {
    %c0_i32 = arith.constant 0 : i32
    %c0_i32_0 = arith.constant 0 : i32
    %c0_i32_1 = arith.constant 0 : i32
    return %c0_i32, %c0_i32_0 : i32, i32
  }
  func.func @transform_3(%arg0: i32, %arg1: i32) -> (i32, i32, i32) {
    %c0_i32 = arith.constant 0 : i32
    %c0_i32_0 = arith.constant 0 : i32
    %c0_i32_1 = arith.constant 0 : i32
    return %c0_i32, %arg1, %c0_i32_0 : i32, i32, i32
  }
  func.func @transform_4(%arg0: i32, %arg1: i32) -> (i32, i32, i32) {
    %c0_i32 = arith.constant 0 : i32
    %c0_i32_0 = arith.constant 0 : i32
    return %arg0, %arg1, %c0_i32 : i32, i32, i32
  }
}

module attributes {stable_mosaic.version = 11 : i64} {
  func.func @_attn_block_kernel(%arg0: i32, %arg1: i32, %arg2: memref<1x8x512xf32, #tpu.memory_space<vmem>>, %arg3: memref<1x1x8xf32, #tpu.memory_space<vmem>>, %arg4: memref<512x128xbf16, #tpu.memory_space<vmem>>, %arg5: memref<512x128xbf16, #tpu.memory_space<vmem>>, %arg6: memref<512x128xbf16, #tpu.memory_space<vmem>>, %arg7: memref<1x128xf32, #tpu.memory_space<vmem>>, %arg8: memref<1x128xf32, #tpu.memory_space<vmem>>, %arg9: memref<1x128xf32, #tpu.memory_space<vmem>>, %arg10: memref<128x512xbf16, #tpu.memory_space<vmem>>, %arg11: memref<1x512xf32, #tpu.memory_space<vmem>>, %arg12: memref<1x512xf32, #tpu.memory_space<vmem>>, %arg13: memref<1x512xf32, #tpu.memory_space<vmem>>, %arg14: memref<1x8x512xf32, #tpu.memory_space<vmem>>, %arg15: memref<8x512xf32, #tpu.memory_space<vmem>>) attributes {dimension_semantics = [#tpu.dimension_semantics<parallel>, #tpu.dimension_semantics<arbitrary>], iteration_bounds = array<i64: 2, 4>, scalar_prefetch = 0 : i64, scratch_operands = 1 : i64, tpu.core_type = #tpu.core_type<tc>, window_params = [{transform_indices = @transform_0, window_bounds = array<i64: 1, 8, 512>}, {transform_indices = @transform_1, window_bounds = array<i64: 1, 1, 8>}, {transform_indices = @transform_2, window_bounds = array<i64: 512, 128>}, {transform_indices = @transform_3, window_bounds = array<i64: 512, 128>}, {transform_indices = @transform_4, window_bounds = array<i64: 512, 128>}, {transform_indices = @transform_5, window_bounds = array<i64: 1, 128>}, {transform_indices = @transform_6, window_bounds = array<i64: 1, 128>}, {transform_indices = @transform_7, window_bounds = array<i64: 1, 128>}, {transform_indices = @transform_8, window_bounds = array<i64: 128, 512>}, {pipeline_mode = #tpu.pipeline_mode<synchronous>, transform_indices = @transform_9, window_bounds = array<i64: 1, 512>}, {pipeline_mode = #tpu.pipeline_mode<synchronous>, transform_indices = @transform_10, window_bounds = array<i64: 1, 512>}, {pipeline_mode = #tpu.pipeline_mode<synchronous>, transform_indices = @transform_11, window_bounds = array<i64: 1, 512>}, {transform_indices = @transform_12, window_bounds = array<i64: 1, 8, 512>}]} {
    %c0_i32 = arith.constant 0 : i32
    %0 = arith.cmpi eq, %arg1, %c0_i32 : i32
    %1 = arith.extui %0 : i1 to i32
    %c0_i32_0 = arith.constant 0 : i32
    %2 = arith.cmpi ne, %1, %c0_i32_0 : i32
    scf.if %2 {
      %cst_62 = arith.constant 0.000000e+00 : f32
      %134 = vector.broadcast %cst_62 : f32 to vector<8x512xf32>
      %c0_63 = arith.constant 0 : index
      %c0_64 = arith.constant 0 : index
      %135 = vector.load %arg15[%c0_63, %c0_64] : memref<8x512xf32, #tpu.memory_space<vmem>>, vector<8x512xf32>
      tpu.vector_store %arg15[%c0_63, %c0_64], %134 {strides = array<i32>} : memref<8x512xf32, #tpu.memory_space<vmem>>, vector<8x512xf32>,
    } else {
    }
    %c0 = arith.constant 0 : index
    %c0_1 = arith.constant 0 : index
    %c0_2 = arith.constant 0 : index
    %3 = vector.load %arg2[%c0, %c0_1, %c0_2] : memref<1x8x512xf32, #tpu.memory_space<vmem>>, vector<1x8x512xf32>
    %4 = vector.shape_cast %3 : vector<1x8x512xf32> to vector<8x512xf32>
    %5 = arith.truncf %4 : vector<8x512xf32> to vector<8x512xbf16>
    %c0_3 = arith.constant 0 : index
    %c0_4 = arith.constant 0 : index
    %c0_5 = arith.constant 0 : index
    %6 = vector.load %arg3[%c0_3, %c0_4, %c0_5] : memref<1x1x8xf32, #tpu.memory_space<vmem>>, vector<1x1x8xf32>
    %7 = vector.shape_cast %6 : vector<1x1x8xf32> to vector<1x8xf32>
    %c0_6 = arith.constant 0 : index
    %c0_7 = arith.constant 0 : index
    %8 = vector.load %arg4[%c0_6, %c0_7] : memref<512x128xbf16, #tpu.memory_space<vmem>>, vector<512x128xbf16>
    %cst = arith.constant dense<0.000000e+00> : vector<8x128xf32>
    %9 = tpu.matmul %5, %8, %cst {dimension_numbers = #tpu.dot_dimension_numbers<[1], [0], [0], [1], [0, 0, 1, 1], [], []>} : vector<8x512xbf16>, vector<512x128xbf16>, vector<8x128xf32> -> vector<8x128xf32>
    %c0_8 = arith.constant 0 : index
    %c0_9 = arith.constant 0 : index
    %10 = vector.load %arg7[%c0_8, %c0_9] : memref<1x128xf32, #tpu.memory_space<vmem>>, vector<1x128xf32>
    %11 = vector.broadcast %10 : vector<1x128xf32> to vector<8x128xf32>
    %12 = arith.addf %9, %11 : vector<8x128xf32>
    %c0_10 = arith.constant 0 : index
    %c0_11 = arith.constant 0 : index
    %13 = vector.load %arg5[%c0_10, %c0_11] : memref<512x128xbf16, #tpu.memory_space<vmem>>, vector<512x128xbf16>
    %cst_12 = arith.constant dense<0.000000e+00> : vector<8x128xf32>
    %14 = tpu.matmul %5, %13, %cst_12 {dimension_numbers = #tpu.dot_dimension_numbers<[1], [0], [0], [1], [0, 0, 1, 1], [], []>} : vector<8x512xbf16>, vector<512x128xbf16>, vector<8x128xf32> -> vector<8x128xf32>
    %c0_13 = arith.constant 0 : index
    %c0_14 = arith.constant 0 : index
    %15 = vector.load %arg8[%c0_13, %c0_14] : memref<1x128xf32, #tpu.memory_space<vmem>>, vector<1x128xf32>
    %16 = vector.broadcast %15 : vector<1x128xf32> to vector<8x128xf32>
    %17 = arith.addf %14, %16 : vector<8x128xf32>
    %c0_15 = arith.constant 0 : index
    %c0_16 = arith.constant 0 : index
    %18 = vector.load %arg6[%c0_15, %c0_16] : memref<512x128xbf16, #tpu.memory_space<vmem>>, vector<512x128xbf16>
    %cst_17 = arith.constant dense<0.000000e+00> : vector<8x128xf32>
    %19 = tpu.matmul %5, %18, %cst_17 {dimension_numbers = #tpu.dot_dimension_numbers<[1], [0], [0], [1], [0, 0, 1, 1], [], []>} : vector<8x512xbf16>, vector<512x128xbf16>, vector<8x128xf32> -> vector<8x128xf32>
    %c0_18 = arith.constant 0 : index
    %c0_19 = arith.constant 0 : index
    %20 = vector.load %arg9[%c0_18, %c0_19] : memref<1x128xf32, #tpu.memory_space<vmem>>, vector<1x128xf32>
    %21 = vector.broadcast %20 : vector<1x128xf32> to vector<8x128xf32>
    %22 = arith.addf %19, %21 : vector<8x128xf32>
    %23 = vector.extract_strided_slice %12 {offsets = [0, 0], sizes = [8, 32], strides = [1, 1]} : vector<8x128xf32> to vector<8x32xf32>
    %24 = arith.truncf %23 : vector<8x32xf32> to vector<8x32xbf16>
    %25 = vector.extract_strided_slice %17 {offsets = [0, 0], sizes = [8, 32], strides = [1, 1]} : vector<8x128xf32> to vector<8x32xf32>
    %26 = arith.truncf %25 : vector<8x32xf32> to vector<8x32xbf16>
    %27 = vector.extract_strided_slice %22 {offsets = [0, 0], sizes = [8, 32], strides = [1, 1]} : vector<8x128xf32> to vector<8x32xf32>
    %28 = arith.truncf %27 : vector<8x32xf32> to vector<8x32xbf16>
    %cst_20 = arith.constant dense<0.000000e+00> : vector<8x8xf32>
    %29 = tpu.matmul %24, %26, %cst_20 {dimension_numbers = #tpu.dot_dimension_numbers<[1], [1], [0], [0], [0, 0, 1, 0], [], []>} : vector<8x32xbf16>, vector<8x32xbf16>, vector<8x8xf32> -> vector<8x8xf32>
    %30 = vector.broadcast %7 : vector<1x8xf32> to vector<8x8xf32>
    %31 = arith.addf %29, %30 : vector<8x8xf32>
    %cst_21 = arith.constant dense<0xFF800000> : vector<8xf32>
    %32 = vector.multi_reduction <maximumf>, %31, %cst_21 [1] : vector<8x8xf32> to vector<8xf32>
    %33 = vector.shape_cast %32 : vector<8xf32> to vector<8x1xf32>
    %34 = vector.broadcast %33 : vector<8x1xf32> to vector<8x8xf32>
    %35 = arith.subf %31, %34 : vector<8x8xf32>
    %36 = math.exp %35 : vector<8x8xf32>
    %cst_22 = arith.constant dense<0.000000e+00> : vector<8xf32>
    %37 = vector.multi_reduction <add>, %36, %cst_22 [1] : vector<8x8xf32> to vector<8xf32>
    %38 = vector.shape_cast %37 : vector<8xf32> to vector<8x1xf32>
    %39 = tpu.reciprocal %38 {approx = true} : vector<8x1xf32> -> vector<8x1xf32>
    %40 = vector.broadcast %39 : vector<8x1xf32> to vector<8x8xf32>
    %41 = arith.mulf %36, %40 : vector<8x8xf32>
    %42 = arith.truncf %41 : vector<8x8xf32> to vector<8x8xbf16>
    %cst_23 = arith.constant dense<0.000000e+00> : vector<8x32xf32>
    %43 = tpu.matmul %42, %28, %cst_23 {dimension_numbers = #tpu.dot_dimension_numbers<[1], [0], [0], [1], [0, 0, 1, 1], [], []>} : vector<8x8xbf16>, vector<8x32xbf16>, vector<8x32xf32> -> vector<8x32xf32>
    %c0_24 = arith.constant 0 : index
    %c0_25 = arith.constant 0 : index
    %44 = vector.load %arg15[%c0_24, %c0_25] : memref<8x512xf32, #tpu.memory_space<vmem>>, vector<8x512xf32>
    %45 = arith.truncf %43 : vector<8x32xf32> to vector<8x32xbf16>
    %c0_26 = arith.constant 0 : index
    %c0_27 = arith.constant 0 : index
    %46 = vector.load %arg10[%c0_26, %c0_27] : memref<128x512xbf16, #tpu.memory_space<vmem>>, vector<32x512xbf16>
    %cst_28 = arith.constant dense<0.000000e+00> : vector<8x512xf32>
    %47 = tpu.matmul %45, %46, %cst_28 {dimension_numbers = #tpu.dot_dimension_numbers<[1], [0], [0], [1], [0, 0, 1, 1], [], []>} : vector<8x32xbf16>, vector<32x512xbf16>, vector<8x512xf32> -> vector<8x512xf32>
    %48 = arith.addf %44, %47 : vector<8x512xf32>
    %c0_29 = arith.constant 0 : index
    %c0_30 = arith.constant 0 : index
    %49 = vector.load %arg15[%c0_29, %c0_30] : memref<8x512xf32, #tpu.memory_space<vmem>>, vector<8x512xf32>
    tpu.vector_store %arg15[%c0_29, %c0_30], %48 {strides = array<i32>} : memref<8x512xf32, #tpu.memory_space<vmem>>, vector<8x512xf32>,
    %50 = vector.extract_strided_slice %12 {offsets = [0, 32], sizes = [8, 32], strides = [1, 1]} : vector<8x128xf32> to vector<8x32xf32>
    %51 = arith.truncf %50 : vector<8x32xf32> to vector<8x32xbf16>
    %52 = vector.extract_strided_slice %17 {offsets = [0, 32], sizes = [8, 32], strides = [1, 1]} : vector<8x128xf32> to vector<8x32xf32>
    %53 = arith.truncf %52 : vector<8x32xf32> to vector<8x32xbf16>
    %54 = vector.extract_strided_slice %22 {offsets = [0, 32], sizes = [8, 32], strides = [1, 1]} : vector<8x128xf32> to vector<8x32xf32>
    %55 = arith.truncf %54 : vector<8x32xf32> to vector<8x32xbf16>
    %cst_31 = arith.constant dense<0.000000e+00> : vector<8x8xf32>
    %56 = tpu.matmul %51, %53, %cst_31 {dimension_numbers = #tpu.dot_dimension_numbers<[1], [1], [0], [0], [0, 0, 1, 0], [], []>} : vector<8x32xbf16>, vector<8x32xbf16>, vector<8x8xf32> -> vector<8x8xf32>
    %57 = vector.broadcast %7 : vector<1x8xf32> to vector<8x8xf32>
    %58 = arith.addf %56, %57 : vector<8x8xf32>
    %cst_32 = arith.constant dense<0xFF800000> : vector<8xf32>
    %59 = vector.multi_reduction <maximumf>, %58, %cst_32 [1] : vector<8x8xf32> to vector<8xf32>
    %60 = vector.shape_cast %59 : vector<8xf32> to vector<8x1xf32>
    %61 = vector.broadcast %60 : vector<8x1xf32> to vector<8x8xf32>
    %62 = arith.subf %58, %61 : vector<8x8xf32>
    %63 = math.exp %62 : vector<8x8xf32>
    %cst_33 = arith.constant dense<0.000000e+00> : vector<8xf32>
    %64 = vector.multi_reduction <add>, %63, %cst_33 [1] : vector<8x8xf32> to vector<8xf32>
    %65 = vector.shape_cast %64 : vector<8xf32> to vector<8x1xf32>
    %66 = tpu.reciprocal %65 {approx = true} : vector<8x1xf32> -> vector<8x1xf32>
    %67 = vector.broadcast %66 : vector<8x1xf32> to vector<8x8xf32>
    %68 = arith.mulf %63, %67 : vector<8x8xf32>
    %69 = arith.truncf %68 : vector<8x8xf32> to vector<8x8xbf16>
    %cst_34 = arith.constant dense<0.000000e+00> : vector<8x32xf32>
    %70 = tpu.matmul %69, %55, %cst_34 {dimension_numbers = #tpu.dot_dimension_numbers<[1], [0], [0], [1], [0, 0, 1, 1], [], []>} : vector<8x8xbf16>, vector<8x32xbf16>, vector<8x32xf32> -> vector<8x32xf32>
    %c0_35 = arith.constant 0 : index
    %c0_36 = arith.constant 0 : index
    %71 = vector.load %arg15[%c0_35, %c0_36] : memref<8x512xf32, #tpu.memory_space<vmem>>, vector<8x512xf32>
    %72 = arith.truncf %70 : vector<8x32xf32> to vector<8x32xbf16>
    %c32 = arith.constant 32 : index
    %c0_37 = arith.constant 0 : index
    %73 = vector.load %arg10[%c32, %c0_37] : memref<128x512xbf16, #tpu.memory_space<vmem>>, vector<32x512xbf16>
    %cst_38 = arith.constant dense<0.000000e+00> : vector<8x512xf32>
    %74 = tpu.matmul %72, %73, %cst_38 {dimension_numbers = #tpu.dot_dimension_numbers<[1], [0], [0], [1], [0, 0, 1, 1], [], []>} : vector<8x32xbf16>, vector<32x512xbf16>, vector<8x512xf32> -> vector<8x512xf32>
    %75 = arith.addf %71, %74 : vector<8x512xf32>
    %c0_39 = arith.constant 0 : index
    %c0_40 = arith.constant 0 : index
    %76 = vector.load %arg15[%c0_39, %c0_40] : memref<8x512xf32, #tpu.memory_space<vmem>>, vector<8x512xf32>
    tpu.vector_store %arg15[%c0_39, %c0_40], %75 {strides = array<i32>} : memref<8x512xf32, #tpu.memory_space<vmem>>, vector<8x512xf32>,
    %77 = vector.extract_strided_slice %12 {offsets = [0, 64], sizes = [8, 32], strides = [1, 1]} : vector<8x128xf32> to vector<8x32xf32>
    %78 = arith.truncf %77 : vector<8x32xf32> to vector<8x32xbf16>
    %79 = vector.extract_strided_slice %17 {offsets = [0, 64], sizes = [8, 32], strides = [1, 1]} : vector<8x128xf32> to vector<8x32xf32>
    %80 = arith.truncf %79 : vector<8x32xf32> to vector<8x32xbf16>
    %81 = vector.extract_strided_slice %22 {offsets = [0, 64], sizes = [8, 32], strides = [1, 1]} : vector<8x128xf32> to vector<8x32xf32>
    %82 = arith.truncf %81 : vector<8x32xf32> to vector<8x32xbf16>
    %cst_41 = arith.constant dense<0.000000e+00> : vector<8x8xf32>
    %83 = tpu.matmul %78, %80, %cst_41 {dimension_numbers = #tpu.dot_dimension_numbers<[1], [1], [0], [0], [0, 0, 1, 0], [], []>} : vector<8x32xbf16>, vector<8x32xbf16>, vector<8x8xf32> -> vector<8x8xf32>
    %84 = vector.broadcast %7 : vector<1x8xf32> to vector<8x8xf32>
    %85 = arith.addf %83, %84 : vector<8x8xf32>
    %cst_42 = arith.constant dense<0xFF800000> : vector<8xf32>
    %86 = vector.multi_reduction <maximumf>, %85, %cst_42 [1] : vector<8x8xf32> to vector<8xf32>
    %87 = vector.shape_cast %86 : vector<8xf32> to vector<8x1xf32>
    %88 = vector.broadcast %87 : vector<8x1xf32> to vector<8x8xf32>
    %89 = arith.subf %85, %88 : vector<8x8xf32>
    %90 = math.exp %89 : vector<8x8xf32>
    %cst_43 = arith.constant dense<0.000000e+00> : vector<8xf32>
    %91 = vector.multi_reduction <add>, %90, %cst_43 [1] : vector<8x8xf32> to vector<8xf32>
    %92 = vector.shape_cast %91 : vector<8xf32> to vector<8x1xf32>
    %93 = tpu.reciprocal %92 {approx = true} : vector<8x1xf32> -> vector<8x1xf32>
    %94 = vector.broadcast %93 : vector<8x1xf32> to vector<8x8xf32>
    %95 = arith.mulf %90, %94 : vector<8x8xf32>
    %96 = arith.truncf %95 : vector<8x8xf32> to vector<8x8xbf16>
    %cst_44 = arith.constant dense<0.000000e+00> : vector<8x32xf32>
    %97 = tpu.matmul %96, %82, %cst_44 {dimension_numbers = #tpu.dot_dimension_numbers<[1], [0], [0], [1], [0, 0, 1, 1], [], []>} : vector<8x8xbf16>, vector<8x32xbf16>, vector<8x32xf32> -> vector<8x32xf32>
    %c0_45 = arith.constant 0 : index
    %c0_46 = arith.constant 0 : index
    %98 = vector.load %arg15[%c0_45, %c0_46] : memref<8x512xf32, #tpu.memory_space<vmem>>, vector<8x512xf32>
    %99 = arith.truncf %97 : vector<8x32xf32> to vector<8x32xbf16>
    %c64 = arith.constant 64 : index
    %c0_47 = arith.constant 0 : index
    %100 = vector.load %arg10[%c64, %c0_47] : memref<128x512xbf16, #tpu.memory_space<vmem>>, vector<32x512xbf16>
    %cst_48 = arith.constant dense<0.000000e+00> : vector<8x512xf32>
    %101 = tpu.matmul %99, %100, %cst_48 {dimension_numbers = #tpu.dot_dimension_numbers<[1], [0], [0], [1], [0, 0, 1, 1], [], []>} : vector<8x32xbf16>, vector<32x512xbf16>, vector<8x512xf32> -> vector<8x512xf32>
    %102 = arith.addf %98, %101 : vector<8x512xf32>
    %c0_49 = arith.constant 0 : index
    %c0_50 = arith.constant 0 : index
    %103 = vector.load %arg15[%c0_49, %c0_50] : memref<8x512xf32, #tpu.memory_space<vmem>>, vector<8x512xf32>
    tpu.vector_store %arg15[%c0_49, %c0_50], %102 {strides = array<i32>} : memref<8x512xf32, #tpu.memory_space<vmem>>, vector<8x512xf32>,
    %104 = vector.extract_strided_slice %12 {offsets = [0, 96], sizes = [8, 32], strides = [1, 1]} : vector<8x128xf32> to vector<8x32xf32>
    %105 = arith.truncf %104 : vector<8x32xf32> to vector<8x32xbf16>
    %106 = vector.extract_strided_slice %17 {offsets = [0, 96], sizes = [8, 32], strides = [1, 1]} : vector<8x128xf32> to vector<8x32xf32>
    %107 = arith.truncf %106 : vector<8x32xf32> to vector<8x32xbf16>
    %108 = vector.extract_strided_slice %22 {offsets = [0, 96], sizes = [8, 32], strides = [1, 1]} : vector<8x128xf32> to vector<8x32xf32>
    %109 = arith.truncf %108 : vector<8x32xf32> to vector<8x32xbf16>
    %cst_51 = arith.constant dense<0.000000e+00> : vector<8x8xf32>
    %110 = tpu.matmul %105, %107, %cst_51 {dimension_numbers = #tpu.dot_dimension_numbers<[1], [1], [0], [0], [0, 0, 1, 0], [], []>} : vector<8x32xbf16>, vector<8x32xbf16>, vector<8x8xf32> -> vector<8x8xf32>
    %111 = vector.broadcast %7 : vector<1x8xf32> to vector<8x8xf32>
    %112 = arith.addf %110, %111 : vector<8x8xf32>
    %cst_52 = arith.constant dense<0xFF800000> : vector<8xf32>
    %113 = vector.multi_reduction <maximumf>, %112, %cst_52 [1] : vector<8x8xf32> to vector<8xf32>
    %114 = vector.shape_cast %113 : vector<8xf32> to vector<8x1xf32>
    %115 = vector.broadcast %114 : vector<8x1xf32> to vector<8x8xf32>
    %116 = arith.subf %112, %115 : vector<8x8xf32>
    %117 = math.exp %116 : vector<8x8xf32>
    %cst_53 = arith.constant dense<0.000000e+00> : vector<8xf32>
    %118 = vector.multi_reduction <add>, %117, %cst_53 [1] : vector<8x8xf32> to vector<8xf32>
    %119 = vector.shape_cast %118 : vector<8xf32> to vector<8x1xf32>
    %120 = tpu.reciprocal %119 {approx = true} : vector<8x1xf32> -> vector<8x1xf32>
    %121 = vector.broadcast %120 : vector<8x1xf32> to vector<8x8xf32>
    %122 = arith.mulf %117, %121 : vector<8x8xf32>
    %123 = arith.truncf %122 : vector<8x8xf32> to vector<8x8xbf16>
    %cst_54 = arith.constant dense<0.000000e+00> : vector<8x32xf32>
    %124 = tpu.matmul %123, %109, %cst_54 {dimension_numbers = #tpu.dot_dimension_numbers<[1], [0], [0], [1], [0, 0, 1, 1], [], []>} : vector<8x8xbf16>, vector<8x32xbf16>, vector<8x32xf32> -> vector<8x32xf32>
    %c0_55 = arith.constant 0 : index
    %c0_56 = arith.constant 0 : index
    %125 = vector.load %arg15[%c0_55, %c0_56] : memref<8x512xf32, #tpu.memory_space<vmem>>, vector<8x512xf32>
    %126 = arith.truncf %124 : vector<8x32xf32> to vector<8x32xbf16>
    %c96 = arith.constant 96 : index
    %c0_57 = arith.constant 0 : index
    %127 = vector.load %arg10[%c96, %c0_57] : memref<128x512xbf16, #tpu.memory_space<vmem>>, vector<32x512xbf16>
    %cst_58 = arith.constant dense<0.000000e+00> : vector<8x512xf32>
    %128 = tpu.matmul %126, %127, %cst_58 {dimension_numbers = #tpu.dot_dimension_numbers<[1], [0], [0], [1], [0, 0, 1, 1], [], []>} : vector<8x32xbf16>, vector<32x512xbf16>, vector<8x512xf32> -> vector<8x512xf32>
    %129 = arith.addf %125, %128 : vector<8x512xf32>
    %c0_59 = arith.constant 0 : index
    %c0_60 = arith.constant 0 : index
    %130 = vector.load %arg15[%c0_59, %c0_60] : memref<8x512xf32, #tpu.memory_space<vmem>>, vector<8x512xf32>
    tpu.vector_store %arg15[%c0_59, %c0_60], %129 {strides = array<i32>} : memref<8x512xf32, #tpu.memory_space<vmem>>, vector<8x512xf32>,
    %c3_i32 = arith.constant 3 : i32
    %131 = arith.cmpi eq, %arg1, %c3_i32 : i32
    %132 = arith.extui %131 : i1 to i32
    %c0_i32_61 = arith.constant 0 : i32
    %133 = arith.cmpi ne, %132, %c0_i32_61 : i32
    scf.if %133 {
      %c0_62 = arith.constant 0 : index
      %c0_63 = arith.constant 0 : index
      %134 = vector.load %arg15[%c0_62, %c0_63] : memref<8x512xf32, #tpu.memory_space<vmem>>, vector<8x512xf32>
      %c0_64 = arith.constant 0 : index
      %c0_65 = arith.constant 0 : index
      %135 = vector.load %arg11[%c0_64, %c0_65] : memref<1x512xf32, #tpu.memory_space<vmem>>, vector<1x512xf32>
      %136 = vector.broadcast %135 : vector<1x512xf32> to vector<8x512xf32>
      %137 = arith.addf %134, %136 : vector<8x512xf32>
      %c0_66 = arith.constant 0 : index
      %c0_67 = arith.constant 0 : index
      %c0_68 = arith.constant 0 : index
      %138 = vector.load %arg2[%c0_66, %c0_67, %c0_68] : memref<1x8x512xf32, #tpu.memory_space<vmem>>, vector<1x8x512xf32>
      %139 = vector.shape_cast %138 : vector<1x8x512xf32> to vector<8x512xf32>
      %140 = arith.addf %137, %139 : vector<8x512xf32>
      %cst_69 = arith.constant dense<0.000000e+00> : vector<8xf32>
      %141 = vector.multi_reduction <add>, %140, %cst_69 [1] : vector<8x512xf32> to vector<8xf32>
      %142 = vector.shape_cast %141 : vector<8xf32> to vector<8x1xf32>
      %cst_70 = arith.constant 5.120000e+02 : f32
      %143 = vector.broadcast %cst_70 : f32 to vector<8x1xf32>
      %144 = arith.divf %142, %143 : vector<8x1xf32>
      %145 = vector.broadcast %144 : vector<8x1xf32> to vector<8x512xf32>
      %146 = arith.subf %140, %145 : vector<8x512xf32>
      %147 = arith.mulf %146, %146 : vector<8x512xf32>
      %cst_71 = arith.constant dense<0.000000e+00> : vector<8xf32>
      %148 = vector.multi_reduction <add>, %147, %cst_71 [1] : vector<8x512xf32> to vector<8xf32>
      %149 = vector.shape_cast %148 : vector<8xf32> to vector<8x1xf32>
      %cst_72 = arith.constant 5.120000e+02 : f32
      %150 = vector.broadcast %cst_72 : f32 to vector<8x1xf32>
      %151 = arith.divf %149, %150 : vector<8x1xf32>
      %152 = vector.broadcast %144 : vector<8x1xf32> to vector<8x512xf32>
      %153 = arith.subf %140, %152 : vector<8x512xf32>
      %cst_73 = arith.constant 9.99999974E-6 : f32
      %154 = vector.broadcast %cst_73 : f32 to vector<8x1xf32>
      %155 = arith.addf %151, %154 : vector<8x1xf32>
      %156 = math.rsqrt %155 : vector<8x1xf32>
      %157 = vector.broadcast %156 : vector<8x1xf32> to vector<8x512xf32>
      %158 = arith.mulf %153, %157 : vector<8x512xf32>
      %c0_74 = arith.constant 0 : index
      %c0_75 = arith.constant 0 : index
      %159 = vector.load %arg12[%c0_74, %c0_75] : memref<1x512xf32, #tpu.memory_space<vmem>>, vector<1x512xf32>
      %160 = vector.broadcast %159 : vector<1x512xf32> to vector<8x512xf32>
      %161 = arith.mulf %158, %160 : vector<8x512xf32>
      %c0_76 = arith.constant 0 : index
      %c0_77 = arith.constant 0 : index
      %162 = vector.load %arg13[%c0_76, %c0_77] : memref<1x512xf32, #tpu.memory_space<vmem>>, vector<1x512xf32>
      %163 = vector.broadcast %162 : vector<1x512xf32> to vector<8x512xf32>
      %164 = arith.addf %161, %163 : vector<8x512xf32>
      %c0_78 = arith.constant 0 : index
      %c0_79 = arith.constant 0 : index
      %c0_80 = arith.constant 0 : index
      %165 = vector.load %arg14[%c0_78, %c0_79, %c0_80] : memref<1x8x512xf32, #tpu.memory_space<vmem>>, vector<1x8x512xf32>
      %166 = vector.shape_cast %165 : vector<1x8x512xf32> to vector<8x512xf32>
      %167 = vector.shape_cast %164 : vector<8x512xf32> to vector<1x8x512xf32>
      tpu.vector_store %arg14[%c0_78, %c0_79, %c0_80], %167 {strides = array<i32>} : memref<1x8x512xf32, #tpu.memory_space<vmem>>, vector<1x8x512xf32>,
    } else {
    }
    return
  }
  func.func @transform_0(%arg0: i32, %arg1: i32) -> (i32, i32, i32) {
    %c0_i32 = arith.constant 0 : i32
    %c0_i32_0 = arith.constant 0 : i32
    %c0_i32_1 = arith.constant 0 : i32
    return %arg0, %c0_i32, %c0_i32_0 : i32, i32, i32
  }
  func.func @transform_1(%arg0: i32, %arg1: i32) -> (i32, i32, i32) {
    %c0_i32 = arith.constant 0 : i32
    %c0_i32_0 = arith.constant 0 : i32
    %c0_i32_1 = arith.constant 0 : i32
    return %arg0, %c0_i32, %c0_i32_0 : i32, i32, i32
  }
  func.func @transform_2(%arg0: i32, %arg1: i32) -> (i32, i32) {
    %c0_i32 = arith.constant 0 : i32
    %0 = arith.addi %c0_i32, %arg1 : i32
    %c0_i32_0 = arith.constant 0 : i32
    %c0_i32_1 = arith.constant 0 : i32
    return %c0_i32_0, %0 : i32, i32
  }
  func.func @transform_3(%arg0: i32, %arg1: i32) -> (i32, i32) {
    %c4_i32 = arith.constant 4 : i32
    %0 = arith.addi %c4_i32, %arg1 : i32
    %c0_i32 = arith.constant 0 : i32
    %c0_i32_0 = arith.constant 0 : i32
    return %c0_i32, %0 : i32, i32
  }
  func.func @transform_4(%arg0: i32, %arg1: i32) -> (i32, i32) {
    %c8_i32 = arith.constant 8 : i32
    %0 = arith.addi %c8_i32, %arg1 : i32
    %c0_i32 = arith.constant 0 : i32
    %c0_i32_0 = arith.constant 0 : i32
    return %c0_i32, %0 : i32, i32
  }
  func.func @transform_5(%arg0: i32, %arg1: i32) -> (i32, i32) {
    %c0_i32 = arith.constant 0 : i32
    %0 = arith.addi %c0_i32, %arg1 : i32
    %c0_i32_0 = arith.constant 0 : i32
    %c0_i32_1 = arith.constant 0 : i32
    return %c0_i32_0, %0 : i32, i32
  }
  func.func @transform_6(%arg0: i32, %arg1: i32) -> (i32, i32) {
    %c4_i32 = arith.constant 4 : i32
    %0 = arith.addi %c4_i32, %arg1 : i32
    %c0_i32 = arith.constant 0 : i32
    %c0_i32_0 = arith.constant 0 : i32
    return %c0_i32, %0 : i32, i32
  }
  func.func @transform_7(%arg0: i32, %arg1: i32) -> (i32, i32) {
    %c8_i32 = arith.constant 8 : i32
    %0 = arith.addi %c8_i32, %arg1 : i32
    %c0_i32 = arith.constant 0 : i32
    %c0_i32_0 = arith.constant 0 : i32
    return %c0_i32, %0 : i32, i32
  }
  func.func @transform_8(%arg0: i32, %arg1: i32) -> (i32, i32) {
    %c0_i32 = arith.constant 0 : i32
    %c0_i32_0 = arith.constant 0 : i32
    return %arg1, %c0_i32 : i32, i32
  }
  func.func @transform_9(%arg0: i32, %arg1: i32) -> (i32, i32) {
    %c0_i32 = arith.constant 0 : i32
    %c0_i32_0 = arith.constant 0 : i32
    %c0_i32_1 = arith.constant 0 : i32
    return %c0_i32, %c0_i32_0 : i32, i32
  }
  func.func @transform_10(%arg0: i32, %arg1: i32) -> (i32, i32) {
    %c0_i32 = arith.constant 0 : i32
    %c0_i32_0 = arith.constant 0 : i32
    %c0_i32_1 = arith.constant 0 : i32
    return %c0_i32, %c0_i32_0 : i32, i32
  }
  func.func @transform_11(%arg0: i32, %arg1: i32) -> (i32, i32) {
    %c0_i32 = arith.constant 0 : i32
    %c0_i32_0 = arith.constant 0 : i32
    %c0_i32_1 = arith.constant 0 : i32
    return %c0_i32, %c0_i32_0 : i32, i32
  }
  func.func @transform_12(%arg0: i32, %arg1: i32) -> (i32, i32, i32) {
    %c0_i32 = arith.constant 0 : i32
    %c0_i32_0 = arith.constant 0 : i32
    %c0_i32_1 = arith.constant 0 : i32
    return %arg0, %c0_i32, %c0_i32_0 : i32, i32, i32
  }
}

module attributes {stable_mosaic.version = 11 : i64} {
  func.func @_ffn_block_kernel(%arg0: i32, %arg1: i32, %arg2: memref<16x512xf32, #tpu.memory_space<vmem>>, %arg3: memref<512x512xbf16, #tpu.memory_space<vmem>>, %arg4: memref<1x512xf32, #tpu.memory_space<vmem>>, %arg5: memref<512x512xbf16, #tpu.memory_space<vmem>>, %arg6: memref<1x512xf32, #tpu.memory_space<vmem>>, %arg7: memref<1x512xf32, #tpu.memory_space<vmem>>, %arg8: memref<1x512xf32, #tpu.memory_space<vmem>>, %arg9: memref<16x512xf32, #tpu.memory_space<vmem>>, %arg10: memref<16x512xf32, #tpu.memory_space<vmem>>) attributes {dimension_semantics = [#tpu.dimension_semantics<parallel>, #tpu.dimension_semantics<arbitrary>], iteration_bounds = array<i64: 1, 4>, scalar_prefetch = 0 : i64, scratch_operands = 1 : i64, tpu.core_type = #tpu.core_type<tc>, window_params = [{transform_indices = @transform_0, window_bounds = array<i64: 16, 512>}, {transform_indices = @transform_1, window_bounds = array<i64: 512, 512>}, {transform_indices = @transform_2, window_bounds = array<i64: 1, 512>}, {transform_indices = @transform_3, window_bounds = array<i64: 512, 512>}, {pipeline_mode = #tpu.pipeline_mode<synchronous>, transform_indices = @transform_4, window_bounds = array<i64: 1, 512>}, {pipeline_mode = #tpu.pipeline_mode<synchronous>, transform_indices = @transform_5, window_bounds = array<i64: 1, 512>}, {pipeline_mode = #tpu.pipeline_mode<synchronous>, transform_indices = @transform_6, window_bounds = array<i64: 1, 512>}, {transform_indices = @transform_7, window_bounds = array<i64: 16, 512>}]} {
    %c0_i32 = arith.constant 0 : i32
    %0 = arith.cmpi eq, %arg1, %c0_i32 : i32
    %1 = arith.extui %0 : i1 to i32
    %c0_i32_0 = arith.constant 0 : i32
    %2 = arith.cmpi ne, %1, %c0_i32_0 : i32
    scf.if %2 {
      %cst_15 = arith.constant 0.000000e+00 : f32
      %21 = vector.broadcast %cst_15 : f32 to vector<16x512xf32>
      %c0_16 = arith.constant 0 : index
      %c0_17 = arith.constant 0 : index
      %22 = vector.load %arg10[%c0_16, %c0_17] : memref<16x512xf32, #tpu.memory_space<vmem>>, vector<16x512xf32>
      tpu.vector_store %arg10[%c0_16, %c0_17], %21 {strides = array<i32>} : memref<16x512xf32, #tpu.memory_space<vmem>>, vector<16x512xf32>,
    } else {
    }
    %c0 = arith.constant 0 : index
    %c0_1 = arith.constant 0 : index
    %3 = vector.load %arg2[%c0, %c0_1] : memref<16x512xf32, #tpu.memory_space<vmem>>, vector<16x512xf32>
    %4 = arith.truncf %3 : vector<16x512xf32> to vector<16x512xbf16>
    %c0_2 = arith.constant 0 : index
    %c0_3 = arith.constant 0 : index
    %5 = vector.load %arg3[%c0_2, %c0_3] : memref<512x512xbf16, #tpu.memory_space<vmem>>, vector<512x512xbf16>
    %cst = arith.constant dense<0.000000e+00> : vector<16x512xf32>
    %6 = tpu.matmul %4, %5, %cst {dimension_numbers = #tpu.dot_dimension_numbers<[1], [0], [0], [1], [0, 0, 1, 1], [], []>} : vector<16x512xbf16>, vector<512x512xbf16>, vector<16x512xf32> -> vector<16x512xf32>
    %c0_4 = arith.constant 0 : index
    %c0_5 = arith.constant 0 : index
    %7 = vector.load %arg4[%c0_4, %c0_5] : memref<1x512xf32, #tpu.memory_space<vmem>>, vector<1x512xf32>
    %8 = vector.broadcast %7 : vector<1x512xf32> to vector<16x512xf32>
    %9 = arith.addf %6, %8 : vector<16x512xf32>
    %cst_6 = arith.constant 0.000000e+00 : f32
    %10 = vector.broadcast %cst_6 : f32 to vector<16x512xf32>
    %11 = arith.maximumf %9, %10 : vector<16x512xf32>
    %c0_7 = arith.constant 0 : index
    %c0_8 = arith.constant 0 : index
    %12 = vector.load %arg10[%c0_7, %c0_8] : memref<16x512xf32, #tpu.memory_space<vmem>>, vector<16x512xf32>
    %13 = arith.truncf %11 : vector<16x512xf32> to vector<16x512xbf16>
    %c0_9 = arith.constant 0 : index
    %c0_10 = arith.constant 0 : index
    %14 = vector.load %arg5[%c0_9, %c0_10] : memref<512x512xbf16, #tpu.memory_space<vmem>>, vector<512x512xbf16>
    %cst_11 = arith.constant dense<0.000000e+00> : vector<16x512xf32>
    %15 = tpu.matmul %13, %14, %cst_11 {dimension_numbers = #tpu.dot_dimension_numbers<[1], [0], [0], [1], [0, 0, 1, 1], [], []>} : vector<16x512xbf16>, vector<512x512xbf16>, vector<16x512xf32> -> vector<16x512xf32>
    %16 = arith.addf %12, %15 : vector<16x512xf32>
    %c0_12 = arith.constant 0 : index
    %c0_13 = arith.constant 0 : index
    %17 = vector.load %arg10[%c0_12, %c0_13] : memref<16x512xf32, #tpu.memory_space<vmem>>, vector<16x512xf32>
    tpu.vector_store %arg10[%c0_12, %c0_13], %16 {strides = array<i32>} : memref<16x512xf32, #tpu.memory_space<vmem>>, vector<16x512xf32>,
    %c3_i32 = arith.constant 3 : i32
    %18 = arith.cmpi eq, %arg1, %c3_i32 : i32
    %19 = arith.extui %18 : i1 to i32
    %c0_i32_14 = arith.constant 0 : i32
    %20 = arith.cmpi ne, %19, %c0_i32_14 : i32
    scf.if %20 {
      %c0_15 = arith.constant 0 : index
      %c0_16 = arith.constant 0 : index
      %21 = vector.load %arg10[%c0_15, %c0_16] : memref<16x512xf32, #tpu.memory_space<vmem>>, vector<16x512xf32>
      %c0_17 = arith.constant 0 : index
      %c0_18 = arith.constant 0 : index
      %22 = vector.load %arg6[%c0_17, %c0_18] : memref<1x512xf32, #tpu.memory_space<vmem>>, vector<1x512xf32>
      %23 = vector.broadcast %22 : vector<1x512xf32> to vector<16x512xf32>
      %24 = arith.addf %21, %23 : vector<16x512xf32>
      %c0_19 = arith.constant 0 : index
      %c0_20 = arith.constant 0 : index
      %25 = vector.load %arg2[%c0_19, %c0_20] : memref<16x512xf32, #tpu.memory_space<vmem>>, vector<16x512xf32>
      %26 = arith.addf %24, %25 : vector<16x512xf32>
      %cst_21 = arith.constant dense<0.000000e+00> : vector<16xf32>
      %27 = vector.multi_reduction <add>, %26, %cst_21 [1] : vector<16x512xf32> to vector<16xf32>
      %28 = vector.shape_cast %27 : vector<16xf32> to vector<16x1xf32>
      %cst_22 = arith.constant 5.120000e+02 : f32
      %29 = vector.broadcast %cst_22 : f32 to vector<16x1xf32>
      %30 = arith.divf %28, %29 : vector<16x1xf32>
      %31 = vector.broadcast %30 : vector<16x1xf32> to vector<16x512xf32>
      %32 = arith.subf %26, %31 : vector<16x512xf32>
      %33 = arith.mulf %32, %32 : vector<16x512xf32>
      %cst_23 = arith.constant dense<0.000000e+00> : vector<16xf32>
      %34 = vector.multi_reduction <add>, %33, %cst_23 [1] : vector<16x512xf32> to vector<16xf32>
      %35 = vector.shape_cast %34 : vector<16xf32> to vector<16x1xf32>
      %cst_24 = arith.constant 5.120000e+02 : f32
      %36 = vector.broadcast %cst_24 : f32 to vector<16x1xf32>
      %37 = arith.divf %35, %36 : vector<16x1xf32>
      %38 = vector.broadcast %30 : vector<16x1xf32> to vector<16x512xf32>
      %39 = arith.subf %26, %38 : vector<16x512xf32>
      %cst_25 = arith.constant 9.99999974E-6 : f32
      %40 = vector.broadcast %cst_25 : f32 to vector<16x1xf32>
      %41 = arith.addf %37, %40 : vector<16x1xf32>
      %42 = math.rsqrt %41 : vector<16x1xf32>
      %43 = vector.broadcast %42 : vector<16x1xf32> to vector<16x512xf32>
      %44 = arith.mulf %39, %43 : vector<16x512xf32>
      %c0_26 = arith.constant 0 : index
      %c0_27 = arith.constant 0 : index
      %45 = vector.load %arg7[%c0_26, %c0_27] : memref<1x512xf32, #tpu.memory_space<vmem>>, vector<1x512xf32>
      %46 = vector.broadcast %45 : vector<1x512xf32> to vector<16x512xf32>
      %47 = arith.mulf %44, %46 : vector<16x512xf32>
      %c0_28 = arith.constant 0 : index
      %c0_29 = arith.constant 0 : index
      %48 = vector.load %arg8[%c0_28, %c0_29] : memref<1x512xf32, #tpu.memory_space<vmem>>, vector<1x512xf32>
      %49 = vector.broadcast %48 : vector<1x512xf32> to vector<16x512xf32>
      %50 = arith.addf %47, %49 : vector<16x512xf32>
      %c0_30 = arith.constant 0 : index
      %c0_31 = arith.constant 0 : index
      %51 = vector.load %arg9[%c0_30, %c0_31] : memref<16x512xf32, #tpu.memory_space<vmem>>, vector<16x512xf32>
      tpu.vector_store %arg9[%c0_30, %c0_31], %50 {strides = array<i32>} : memref<16x512xf32, #tpu.memory_space<vmem>>, vector<16x512xf32>,
    } else {
    }
    return
  }
  func.func @transform_0(%arg0: i32, %arg1: i32) -> (i32, i32) {
    %c0_i32 = arith.constant 0 : i32
    %c0_i32_0 = arith.constant 0 : i32
    return %arg0, %c0_i32 : i32, i32
  }
  func.func @transform_1(%arg0: i32, %arg1: i32) -> (i32, i32) {
    %c0_i32 = arith.constant 0 : i32
    %c0_i32_0 = arith.constant 0 : i32
    return %c0_i32, %arg1 : i32, i32
  }
  func.func @transform_2(%arg0: i32, %arg1: i32) -> (i32, i32) {
    %c0_i32 = arith.constant 0 : i32
    %c0_i32_0 = arith.constant 0 : i32
    return %c0_i32, %arg1 : i32, i32
  }
  func.func @transform_3(%arg0: i32, %arg1: i32) -> (i32, i32) {
    %c0_i32 = arith.constant 0 : i32
    %c0_i32_0 = arith.constant 0 : i32
    return %arg1, %c0_i32 : i32, i32
  }
  func.func @transform_4(%arg0: i32, %arg1: i32) -> (i32, i32) {
    %c0_i32 = arith.constant 0 : i32
    %c0_i32_0 = arith.constant 0 : i32
    %c0_i32_1 = arith.constant 0 : i32
    return %c0_i32, %c0_i32_0 : i32, i32
  }
  func.func @transform_5(%arg0: i32, %arg1: i32) -> (i32, i32) {
    %c0_i32 = arith.constant 0 : i32
    %c0_i32_0 = arith.constant 0 : i32
    %c0_i32_1 = arith.constant 0 : i32
    return %c0_i32, %c0_i32_0 : i32, i32
  }
  func.func @transform_6(%arg0: i32, %arg1: i32) -> (i32, i32) {
    %c0_i32 = arith.constant 0 : i32
    %c0_i32_0 = arith.constant 0 : i32
    %c0_i32_1 = arith.constant 0 : i32
    return %c0_i32, %c0_i32_0 : i32, i32
  }
  func.func @transform_7(%arg0: i32, %arg1: i32) -> (i32, i32) {
    %c0_i32 = arith.constant 0 : i32
    %c0_i32_0 = arith.constant 0 : i32
    return %arg0, %c0_i32 : i32, i32
  }
}

module attributes {stable_mosaic.version = 11 : i64} {
  func.func @_attn_block_kernel(%arg0: i32, %arg1: i32, %arg2: memref<1x8x512xf32, #tpu.memory_space<vmem>>, %arg3: memref<1x1x8xf32, #tpu.memory_space<vmem>>, %arg4: memref<512x128xbf16, #tpu.memory_space<vmem>>, %arg5: memref<512x128xbf16, #tpu.memory_space<vmem>>, %arg6: memref<512x128xbf16, #tpu.memory_space<vmem>>, %arg7: memref<1x128xf32, #tpu.memory_space<vmem>>, %arg8: memref<1x128xf32, #tpu.memory_space<vmem>>, %arg9: memref<1x128xf32, #tpu.memory_space<vmem>>, %arg10: memref<128x512xbf16, #tpu.memory_space<vmem>>, %arg11: memref<1x512xf32, #tpu.memory_space<vmem>>, %arg12: memref<1x512xf32, #tpu.memory_space<vmem>>, %arg13: memref<1x512xf32, #tpu.memory_space<vmem>>, %arg14: memref<1x8x512xf32, #tpu.memory_space<vmem>>, %arg15: memref<8x512xf32, #tpu.memory_space<vmem>>) attributes {dimension_semantics = [#tpu.dimension_semantics<parallel>, #tpu.dimension_semantics<arbitrary>], iteration_bounds = array<i64: 2, 4>, scalar_prefetch = 0 : i64, scratch_operands = 1 : i64, tpu.core_type = #tpu.core_type<tc>, window_params = [{transform_indices = @transform_0, window_bounds = array<i64: 1, 8, 512>}, {transform_indices = @transform_1, window_bounds = array<i64: 1, 1, 8>}, {transform_indices = @transform_2, window_bounds = array<i64: 512, 128>}, {transform_indices = @transform_3, window_bounds = array<i64: 512, 128>}, {transform_indices = @transform_4, window_bounds = array<i64: 512, 128>}, {transform_indices = @transform_5, window_bounds = array<i64: 1, 128>}, {transform_indices = @transform_6, window_bounds = array<i64: 1, 128>}, {transform_indices = @transform_7, window_bounds = array<i64: 1, 128>}, {transform_indices = @transform_8, window_bounds = array<i64: 128, 512>}, {pipeline_mode = #tpu.pipeline_mode<synchronous>, transform_indices = @transform_9, window_bounds = array<i64: 1, 512>}, {pipeline_mode = #tpu.pipeline_mode<synchronous>, transform_indices = @transform_10, window_bounds = array<i64: 1, 512>}, {pipeline_mode = #tpu.pipeline_mode<synchronous>, transform_indices = @transform_11, window_bounds = array<i64: 1, 512>}, {transform_indices = @transform_12, window_bounds = array<i64: 1, 8, 512>}]} {
    %c0_i32 = arith.constant 0 : i32
    %0 = arith.cmpi eq, %arg1, %c0_i32 : i32
    %1 = arith.extui %0 : i1 to i32
    %c0_i32_0 = arith.constant 0 : i32
    %2 = arith.cmpi ne, %1, %c0_i32_0 : i32
    scf.if %2 {
      %cst_62 = arith.constant 0.000000e+00 : f32
      %134 = vector.broadcast %cst_62 : f32 to vector<8x512xf32>
      %c0_63 = arith.constant 0 : index
      %c0_64 = arith.constant 0 : index
      %135 = vector.load %arg15[%c0_63, %c0_64] : memref<8x512xf32, #tpu.memory_space<vmem>>, vector<8x512xf32>
      tpu.vector_store %arg15[%c0_63, %c0_64], %134 {strides = array<i32>} : memref<8x512xf32, #tpu.memory_space<vmem>>, vector<8x512xf32>,
    } else {
    }
    %c0 = arith.constant 0 : index
    %c0_1 = arith.constant 0 : index
    %c0_2 = arith.constant 0 : index
    %3 = vector.load %arg2[%c0, %c0_1, %c0_2] : memref<1x8x512xf32, #tpu.memory_space<vmem>>, vector<1x8x512xf32>
    %4 = vector.shape_cast %3 : vector<1x8x512xf32> to vector<8x512xf32>
    %5 = arith.truncf %4 : vector<8x512xf32> to vector<8x512xbf16>
    %c0_3 = arith.constant 0 : index
    %c0_4 = arith.constant 0 : index
    %c0_5 = arith.constant 0 : index
    %6 = vector.load %arg3[%c0_3, %c0_4, %c0_5] : memref<1x1x8xf32, #tpu.memory_space<vmem>>, vector<1x1x8xf32>
    %7 = vector.shape_cast %6 : vector<1x1x8xf32> to vector<1x8xf32>
    %c0_6 = arith.constant 0 : index
    %c0_7 = arith.constant 0 : index
    %8 = vector.load %arg4[%c0_6, %c0_7] : memref<512x128xbf16, #tpu.memory_space<vmem>>, vector<512x128xbf16>
    %cst = arith.constant dense<0.000000e+00> : vector<8x128xf32>
    %9 = tpu.matmul %5, %8, %cst {dimension_numbers = #tpu.dot_dimension_numbers<[1], [0], [0], [1], [0, 0, 1, 1], [], []>} : vector<8x512xbf16>, vector<512x128xbf16>, vector<8x128xf32> -> vector<8x128xf32>
    %c0_8 = arith.constant 0 : index
    %c0_9 = arith.constant 0 : index
    %10 = vector.load %arg7[%c0_8, %c0_9] : memref<1x128xf32, #tpu.memory_space<vmem>>, vector<1x128xf32>
    %11 = vector.broadcast %10 : vector<1x128xf32> to vector<8x128xf32>
    %12 = arith.addf %9, %11 : vector<8x128xf32>
    %c0_10 = arith.constant 0 : index
    %c0_11 = arith.constant 0 : index
    %13 = vector.load %arg5[%c0_10, %c0_11] : memref<512x128xbf16, #tpu.memory_space<vmem>>, vector<512x128xbf16>
    %cst_12 = arith.constant dense<0.000000e+00> : vector<8x128xf32>
    %14 = tpu.matmul %5, %13, %cst_12 {dimension_numbers = #tpu.dot_dimension_numbers<[1], [0], [0], [1], [0, 0, 1, 1], [], []>} : vector<8x512xbf16>, vector<512x128xbf16>, vector<8x128xf32> -> vector<8x128xf32>
    %c0_13 = arith.constant 0 : index
    %c0_14 = arith.constant 0 : index
    %15 = vector.load %arg8[%c0_13, %c0_14] : memref<1x128xf32, #tpu.memory_space<vmem>>, vector<1x128xf32>
    %16 = vector.broadcast %15 : vector<1x128xf32> to vector<8x128xf32>
    %17 = arith.addf %14, %16 : vector<8x128xf32>
    %c0_15 = arith.constant 0 : index
    %c0_16 = arith.constant 0 : index
    %18 = vector.load %arg6[%c0_15, %c0_16] : memref<512x128xbf16, #tpu.memory_space<vmem>>, vector<512x128xbf16>
    %cst_17 = arith.constant dense<0.000000e+00> : vector<8x128xf32>
    %19 = tpu.matmul %5, %18, %cst_17 {dimension_numbers = #tpu.dot_dimension_numbers<[1], [0], [0], [1], [0, 0, 1, 1], [], []>} : vector<8x512xbf16>, vector<512x128xbf16>, vector<8x128xf32> -> vector<8x128xf32>
    %c0_18 = arith.constant 0 : index
    %c0_19 = arith.constant 0 : index
    %20 = vector.load %arg9[%c0_18, %c0_19] : memref<1x128xf32, #tpu.memory_space<vmem>>, vector<1x128xf32>
    %21 = vector.broadcast %20 : vector<1x128xf32> to vector<8x128xf32>
    %22 = arith.addf %19, %21 : vector<8x128xf32>
    %23 = vector.extract_strided_slice %12 {offsets = [0, 0], sizes = [8, 32], strides = [1, 1]} : vector<8x128xf32> to vector<8x32xf32>
    %24 = arith.truncf %23 : vector<8x32xf32> to vector<8x32xbf16>
    %25 = vector.extract_strided_slice %17 {offsets = [0, 0], sizes = [8, 32], strides = [1, 1]} : vector<8x128xf32> to vector<8x32xf32>
    %26 = arith.truncf %25 : vector<8x32xf32> to vector<8x32xbf16>
    %27 = vector.extract_strided_slice %22 {offsets = [0, 0], sizes = [8, 32], strides = [1, 1]} : vector<8x128xf32> to vector<8x32xf32>
    %28 = arith.truncf %27 : vector<8x32xf32> to vector<8x32xbf16>
    %cst_20 = arith.constant dense<0.000000e+00> : vector<8x8xf32>
    %29 = tpu.matmul %24, %26, %cst_20 {dimension_numbers = #tpu.dot_dimension_numbers<[1], [1], [0], [0], [0, 0, 1, 0], [], []>} : vector<8x32xbf16>, vector<8x32xbf16>, vector<8x8xf32> -> vector<8x8xf32>
    %30 = vector.broadcast %7 : vector<1x8xf32> to vector<8x8xf32>
    %31 = arith.addf %29, %30 : vector<8x8xf32>
    %cst_21 = arith.constant dense<0xFF800000> : vector<8xf32>
    %32 = vector.multi_reduction <maximumf>, %31, %cst_21 [1] : vector<8x8xf32> to vector<8xf32>
    %33 = vector.shape_cast %32 : vector<8xf32> to vector<8x1xf32>
    %34 = vector.broadcast %33 : vector<8x1xf32> to vector<8x8xf32>
    %35 = arith.subf %31, %34 : vector<8x8xf32>
    %36 = math.exp %35 : vector<8x8xf32>
    %cst_22 = arith.constant dense<0.000000e+00> : vector<8xf32>
    %37 = vector.multi_reduction <add>, %36, %cst_22 [1] : vector<8x8xf32> to vector<8xf32>
    %38 = vector.shape_cast %37 : vector<8xf32> to vector<8x1xf32>
    %39 = tpu.reciprocal %38 {approx = true} : vector<8x1xf32> -> vector<8x1xf32>
    %40 = vector.broadcast %39 : vector<8x1xf32> to vector<8x8xf32>
    %41 = arith.mulf %36, %40 : vector<8x8xf32>
    %42 = arith.truncf %41 : vector<8x8xf32> to vector<8x8xbf16>
    %cst_23 = arith.constant dense<0.000000e+00> : vector<8x32xf32>
    %43 = tpu.matmul %42, %28, %cst_23 {dimension_numbers = #tpu.dot_dimension_numbers<[1], [0], [0], [1], [0, 0, 1, 1], [], []>} : vector<8x8xbf16>, vector<8x32xbf16>, vector<8x32xf32> -> vector<8x32xf32>
    %c0_24 = arith.constant 0 : index
    %c0_25 = arith.constant 0 : index
    %44 = vector.load %arg15[%c0_24, %c0_25] : memref<8x512xf32, #tpu.memory_space<vmem>>, vector<8x512xf32>
    %45 = arith.truncf %43 : vector<8x32xf32> to vector<8x32xbf16>
    %c0_26 = arith.constant 0 : index
    %c0_27 = arith.constant 0 : index
    %46 = vector.load %arg10[%c0_26, %c0_27] : memref<128x512xbf16, #tpu.memory_space<vmem>>, vector<32x512xbf16>
    %cst_28 = arith.constant dense<0.000000e+00> : vector<8x512xf32>
    %47 = tpu.matmul %45, %46, %cst_28 {dimension_numbers = #tpu.dot_dimension_numbers<[1], [0], [0], [1], [0, 0, 1, 1], [], []>} : vector<8x32xbf16>, vector<32x512xbf16>, vector<8x512xf32> -> vector<8x512xf32>
    %48 = arith.addf %44, %47 : vector<8x512xf32>
    %c0_29 = arith.constant 0 : index
    %c0_30 = arith.constant 0 : index
    %49 = vector.load %arg15[%c0_29, %c0_30] : memref<8x512xf32, #tpu.memory_space<vmem>>, vector<8x512xf32>
    tpu.vector_store %arg15[%c0_29, %c0_30], %48 {strides = array<i32>} : memref<8x512xf32, #tpu.memory_space<vmem>>, vector<8x512xf32>,
    %50 = vector.extract_strided_slice %12 {offsets = [0, 32], sizes = [8, 32], strides = [1, 1]} : vector<8x128xf32> to vector<8x32xf32>
    %51 = arith.truncf %50 : vector<8x32xf32> to vector<8x32xbf16>
    %52 = vector.extract_strided_slice %17 {offsets = [0, 32], sizes = [8, 32], strides = [1, 1]} : vector<8x128xf32> to vector<8x32xf32>
    %53 = arith.truncf %52 : vector<8x32xf32> to vector<8x32xbf16>
    %54 = vector.extract_strided_slice %22 {offsets = [0, 32], sizes = [8, 32], strides = [1, 1]} : vector<8x128xf32> to vector<8x32xf32>
    %55 = arith.truncf %54 : vector<8x32xf32> to vector<8x32xbf16>
    %cst_31 = arith.constant dense<0.000000e+00> : vector<8x8xf32>
    %56 = tpu.matmul %51, %53, %cst_31 {dimension_numbers = #tpu.dot_dimension_numbers<[1], [1], [0], [0], [0, 0, 1, 0], [], []>} : vector<8x32xbf16>, vector<8x32xbf16>, vector<8x8xf32> -> vector<8x8xf32>
    %57 = vector.broadcast %7 : vector<1x8xf32> to vector<8x8xf32>
    %58 = arith.addf %56, %57 : vector<8x8xf32>
    %cst_32 = arith.constant dense<0xFF800000> : vector<8xf32>
    %59 = vector.multi_reduction <maximumf>, %58, %cst_32 [1] : vector<8x8xf32> to vector<8xf32>
    %60 = vector.shape_cast %59 : vector<8xf32> to vector<8x1xf32>
    %61 = vector.broadcast %60 : vector<8x1xf32> to vector<8x8xf32>
    %62 = arith.subf %58, %61 : vector<8x8xf32>
    %63 = math.exp %62 : vector<8x8xf32>
    %cst_33 = arith.constant dense<0.000000e+00> : vector<8xf32>
    %64 = vector.multi_reduction <add>, %63, %cst_33 [1] : vector<8x8xf32> to vector<8xf32>
    %65 = vector.shape_cast %64 : vector<8xf32> to vector<8x1xf32>
    %66 = tpu.reciprocal %65 {approx = true} : vector<8x1xf32> -> vector<8x1xf32>
    %67 = vector.broadcast %66 : vector<8x1xf32> to vector<8x8xf32>
    %68 = arith.mulf %63, %67 : vector<8x8xf32>
    %69 = arith.truncf %68 : vector<8x8xf32> to vector<8x8xbf16>
    %cst_34 = arith.constant dense<0.000000e+00> : vector<8x32xf32>
    %70 = tpu.matmul %69, %55, %cst_34 {dimension_numbers = #tpu.dot_dimension_numbers<[1], [0], [0], [1], [0, 0, 1, 1], [], []>} : vector<8x8xbf16>, vector<8x32xbf16>, vector<8x32xf32> -> vector<8x32xf32>
    %c0_35 = arith.constant 0 : index
    %c0_36 = arith.constant 0 : index
    %71 = vector.load %arg15[%c0_35, %c0_36] : memref<8x512xf32, #tpu.memory_space<vmem>>, vector<8x512xf32>
    %72 = arith.truncf %70 : vector<8x32xf32> to vector<8x32xbf16>
    %c32 = arith.constant 32 : index
    %c0_37 = arith.constant 0 : index
    %73 = vector.load %arg10[%c32, %c0_37] : memref<128x512xbf16, #tpu.memory_space<vmem>>, vector<32x512xbf16>
    %cst_38 = arith.constant dense<0.000000e+00> : vector<8x512xf32>
    %74 = tpu.matmul %72, %73, %cst_38 {dimension_numbers = #tpu.dot_dimension_numbers<[1], [0], [0], [1], [0, 0, 1, 1], [], []>} : vector<8x32xbf16>, vector<32x512xbf16>, vector<8x512xf32> -> vector<8x512xf32>
    %75 = arith.addf %71, %74 : vector<8x512xf32>
    %c0_39 = arith.constant 0 : index
    %c0_40 = arith.constant 0 : index
    %76 = vector.load %arg15[%c0_39, %c0_40] : memref<8x512xf32, #tpu.memory_space<vmem>>, vector<8x512xf32>
    tpu.vector_store %arg15[%c0_39, %c0_40], %75 {strides = array<i32>} : memref<8x512xf32, #tpu.memory_space<vmem>>, vector<8x512xf32>,
    %77 = vector.extract_strided_slice %12 {offsets = [0, 64], sizes = [8, 32], strides = [1, 1]} : vector<8x128xf32> to vector<8x32xf32>
    %78 = arith.truncf %77 : vector<8x32xf32> to vector<8x32xbf16>
    %79 = vector.extract_strided_slice %17 {offsets = [0, 64], sizes = [8, 32], strides = [1, 1]} : vector<8x128xf32> to vector<8x32xf32>
    %80 = arith.truncf %79 : vector<8x32xf32> to vector<8x32xbf16>
    %81 = vector.extract_strided_slice %22 {offsets = [0, 64], sizes = [8, 32], strides = [1, 1]} : vector<8x128xf32> to vector<8x32xf32>
    %82 = arith.truncf %81 : vector<8x32xf32> to vector<8x32xbf16>
    %cst_41 = arith.constant dense<0.000000e+00> : vector<8x8xf32>
    %83 = tpu.matmul %78, %80, %cst_41 {dimension_numbers = #tpu.dot_dimension_numbers<[1], [1], [0], [0], [0, 0, 1, 0], [], []>} : vector<8x32xbf16>, vector<8x32xbf16>, vector<8x8xf32> -> vector<8x8xf32>
    %84 = vector.broadcast %7 : vector<1x8xf32> to vector<8x8xf32>
    %85 = arith.addf %83, %84 : vector<8x8xf32>
    %cst_42 = arith.constant dense<0xFF800000> : vector<8xf32>
    %86 = vector.multi_reduction <maximumf>, %85, %cst_42 [1] : vector<8x8xf32> to vector<8xf32>
    %87 = vector.shape_cast %86 : vector<8xf32> to vector<8x1xf32>
    %88 = vector.broadcast %87 : vector<8x1xf32> to vector<8x8xf32>
    %89 = arith.subf %85, %88 : vector<8x8xf32>
    %90 = math.exp %89 : vector<8x8xf32>
    %cst_43 = arith.constant dense<0.000000e+00> : vector<8xf32>
    %91 = vector.multi_reduction <add>, %90, %cst_43 [1] : vector<8x8xf32> to vector<8xf32>
    %92 = vector.shape_cast %91 : vector<8xf32> to vector<8x1xf32>
    %93 = tpu.reciprocal %92 {approx = true} : vector<8x1xf32> -> vector<8x1xf32>
    %94 = vector.broadcast %93 : vector<8x1xf32> to vector<8x8xf32>
    %95 = arith.mulf %90, %94 : vector<8x8xf32>
    %96 = arith.truncf %95 : vector<8x8xf32> to vector<8x8xbf16>
    %cst_44 = arith.constant dense<0.000000e+00> : vector<8x32xf32>
    %97 = tpu.matmul %96, %82, %cst_44 {dimension_numbers = #tpu.dot_dimension_numbers<[1], [0], [0], [1], [0, 0, 1, 1], [], []>} : vector<8x8xbf16>, vector<8x32xbf16>, vector<8x32xf32> -> vector<8x32xf32>
    %c0_45 = arith.constant 0 : index
    %c0_46 = arith.constant 0 : index
    %98 = vector.load %arg15[%c0_45, %c0_46] : memref<8x512xf32, #tpu.memory_space<vmem>>, vector<8x512xf32>
    %99 = arith.truncf %97 : vector<8x32xf32> to vector<8x32xbf16>
    %c64 = arith.constant 64 : index
    %c0_47 = arith.constant 0 : index
    %100 = vector.load %arg10[%c64, %c0_47] : memref<128x512xbf16, #tpu.memory_space<vmem>>, vector<32x512xbf16>
    %cst_48 = arith.constant dense<0.000000e+00> : vector<8x512xf32>
    %101 = tpu.matmul %99, %100, %cst_48 {dimension_numbers = #tpu.dot_dimension_numbers<[1], [0], [0], [1], [0, 0, 1, 1], [], []>} : vector<8x32xbf16>, vector<32x512xbf16>, vector<8x512xf32> -> vector<8x512xf32>
    %102 = arith.addf %98, %101 : vector<8x512xf32>
    %c0_49 = arith.constant 0 : index
    %c0_50 = arith.constant 0 : index
    %103 = vector.load %arg15[%c0_49, %c0_50] : memref<8x512xf32, #tpu.memory_space<vmem>>, vector<8x512xf32>
    tpu.vector_store %arg15[%c0_49, %c0_50], %102 {strides = array<i32>} : memref<8x512xf32, #tpu.memory_space<vmem>>, vector<8x512xf32>,
    %104 = vector.extract_strided_slice %12 {offsets = [0, 96], sizes = [8, 32], strides = [1, 1]} : vector<8x128xf32> to vector<8x32xf32>
    %105 = arith.truncf %104 : vector<8x32xf32> to vector<8x32xbf16>
    %106 = vector.extract_strided_slice %17 {offsets = [0, 96], sizes = [8, 32], strides = [1, 1]} : vector<8x128xf32> to vector<8x32xf32>
    %107 = arith.truncf %106 : vector<8x32xf32> to vector<8x32xbf16>
    %108 = vector.extract_strided_slice %22 {offsets = [0, 96], sizes = [8, 32], strides = [1, 1]} : vector<8x128xf32> to vector<8x32xf32>
    %109 = arith.truncf %108 : vector<8x32xf32> to vector<8x32xbf16>
    %cst_51 = arith.constant dense<0.000000e+00> : vector<8x8xf32>
    %110 = tpu.matmul %105, %107, %cst_51 {dimension_numbers = #tpu.dot_dimension_numbers<[1], [1], [0], [0], [0, 0, 1, 0], [], []>} : vector<8x32xbf16>, vector<8x32xbf16>, vector<8x8xf32> -> vector<8x8xf32>
    %111 = vector.broadcast %7 : vector<1x8xf32> to vector<8x8xf32>
    %112 = arith.addf %110, %111 : vector<8x8xf32>
    %cst_52 = arith.constant dense<0xFF800000> : vector<8xf32>
    %113 = vector.multi_reduction <maximumf>, %112, %cst_52 [1] : vector<8x8xf32> to vector<8xf32>
    %114 = vector.shape_cast %113 : vector<8xf32> to vector<8x1xf32>
    %115 = vector.broadcast %114 : vector<8x1xf32> to vector<8x8xf32>
    %116 = arith.subf %112, %115 : vector<8x8xf32>
    %117 = math.exp %116 : vector<8x8xf32>
    %cst_53 = arith.constant dense<0.000000e+00> : vector<8xf32>
    %118 = vector.multi_reduction <add>, %117, %cst_53 [1] : vector<8x8xf32> to vector<8xf32>
    %119 = vector.shape_cast %118 : vector<8xf32> to vector<8x1xf32>
    %120 = tpu.reciprocal %119 {approx = true} : vector<8x1xf32> -> vector<8x1xf32>
    %121 = vector.broadcast %120 : vector<8x1xf32> to vector<8x8xf32>
    %122 = arith.mulf %117, %121 : vector<8x8xf32>
    %123 = arith.truncf %122 : vector<8x8xf32> to vector<8x8xbf16>
    %cst_54 = arith.constant dense<0.000000e+00> : vector<8x32xf32>
    %124 = tpu.matmul %123, %109, %cst_54 {dimension_numbers = #tpu.dot_dimension_numbers<[1], [0], [0], [1], [0, 0, 1, 1], [], []>} : vector<8x8xbf16>, vector<8x32xbf16>, vector<8x32xf32> -> vector<8x32xf32>
    %c0_55 = arith.constant 0 : index
    %c0_56 = arith.constant 0 : index
    %125 = vector.load %arg15[%c0_55, %c0_56] : memref<8x512xf32, #tpu.memory_space<vmem>>, vector<8x512xf32>
    %126 = arith.truncf %124 : vector<8x32xf32> to vector<8x32xbf16>
    %c96 = arith.constant 96 : index
    %c0_57 = arith.constant 0 : index
    %127 = vector.load %arg10[%c96, %c0_57] : memref<128x512xbf16, #tpu.memory_space<vmem>>, vector<32x512xbf16>
    %cst_58 = arith.constant dense<0.000000e+00> : vector<8x512xf32>
    %128 = tpu.matmul %126, %127, %cst_58 {dimension_numbers = #tpu.dot_dimension_numbers<[1], [0], [0], [1], [0, 0, 1, 1], [], []>} : vector<8x32xbf16>, vector<32x512xbf16>, vector<8x512xf32> -> vector<8x512xf32>
    %129 = arith.addf %125, %128 : vector<8x512xf32>
    %c0_59 = arith.constant 0 : index
    %c0_60 = arith.constant 0 : index
    %130 = vector.load %arg15[%c0_59, %c0_60] : memref<8x512xf32, #tpu.memory_space<vmem>>, vector<8x512xf32>
    tpu.vector_store %arg15[%c0_59, %c0_60], %129 {strides = array<i32>} : memref<8x512xf32, #tpu.memory_space<vmem>>, vector<8x512xf32>,
    %c3_i32 = arith.constant 3 : i32
    %131 = arith.cmpi eq, %arg1, %c3_i32 : i32
    %132 = arith.extui %131 : i1 to i32
    %c0_i32_61 = arith.constant 0 : i32
    %133 = arith.cmpi ne, %132, %c0_i32_61 : i32
    scf.if %133 {
      %c0_62 = arith.constant 0 : index
      %c0_63 = arith.constant 0 : index
      %134 = vector.load %arg15[%c0_62, %c0_63] : memref<8x512xf32, #tpu.memory_space<vmem>>, vector<8x512xf32>
      %c0_64 = arith.constant 0 : index
      %c0_65 = arith.constant 0 : index
      %135 = vector.load %arg11[%c0_64, %c0_65] : memref<1x512xf32, #tpu.memory_space<vmem>>, vector<1x512xf32>
      %136 = vector.broadcast %135 : vector<1x512xf32> to vector<8x512xf32>
      %137 = arith.addf %134, %136 : vector<8x512xf32>
      %c0_66 = arith.constant 0 : index
      %c0_67 = arith.constant 0 : index
      %c0_68 = arith.constant 0 : index
      %138 = vector.load %arg2[%c0_66, %c0_67, %c0_68] : memref<1x8x512xf32, #tpu.memory_space<vmem>>, vector<1x8x512xf32>
      %139 = vector.shape_cast %138 : vector<1x8x512xf32> to vector<8x512xf32>
      %140 = arith.addf %137, %139 : vector<8x512xf32>
      %cst_69 = arith.constant dense<0.000000e+00> : vector<8xf32>
      %141 = vector.multi_reduction <add>, %140, %cst_69 [1] : vector<8x512xf32> to vector<8xf32>
      %142 = vector.shape_cast %141 : vector<8xf32> to vector<8x1xf32>
      %cst_70 = arith.constant 5.120000e+02 : f32
      %143 = vector.broadcast %cst_70 : f32 to vector<8x1xf32>
      %144 = arith.divf %142, %143 : vector<8x1xf32>
      %145 = vector.broadcast %144 : vector<8x1xf32> to vector<8x512xf32>
      %146 = arith.subf %140, %145 : vector<8x512xf32>
      %147 = arith.mulf %146, %146 : vector<8x512xf32>
      %cst_71 = arith.constant dense<0.000000e+00> : vector<8xf32>
      %148 = vector.multi_reduction <add>, %147, %cst_71 [1] : vector<8x512xf32> to vector<8xf32>
      %149 = vector.shape_cast %148 : vector<8xf32> to vector<8x1xf32>
      %cst_72 = arith.constant 5.120000e+02 : f32
      %150 = vector.broadcast %cst_72 : f32 to vector<8x1xf32>
      %151 = arith.divf %149, %150 : vector<8x1xf32>
      %152 = vector.broadcast %144 : vector<8x1xf32> to vector<8x512xf32>
      %153 = arith.subf %140, %152 : vector<8x512xf32>
      %cst_73 = arith.constant 9.99999974E-6 : f32
      %154 = vector.broadcast %cst_73 : f32 to vector<8x1xf32>
      %155 = arith.addf %151, %154 : vector<8x1xf32>
      %156 = math.rsqrt %155 : vector<8x1xf32>
      %157 = vector.broadcast %156 : vector<8x1xf32> to vector<8x512xf32>
      %158 = arith.mulf %153, %157 : vector<8x512xf32>
      %c0_74 = arith.constant 0 : index
      %c0_75 = arith.constant 0 : index
      %159 = vector.load %arg12[%c0_74, %c0_75] : memref<1x512xf32, #tpu.memory_space<vmem>>, vector<1x512xf32>
      %160 = vector.broadcast %159 : vector<1x512xf32> to vector<8x512xf32>
      %161 = arith.mulf %158, %160 : vector<8x512xf32>
      %c0_76 = arith.constant 0 : index
      %c0_77 = arith.constant 0 : index
      %162 = vector.load %arg13[%c0_76, %c0_77] : memref<1x512xf32, #tpu.memory_space<vmem>>, vector<1x512xf32>
      %163 = vector.broadcast %162 : vector<1x512xf32> to vector<8x512xf32>
      %164 = arith.addf %161, %163 : vector<8x512xf32>
      %c0_78 = arith.constant 0 : index
      %c0_79 = arith.constant 0 : index
      %c0_80 = arith.constant 0 : index
      %165 = vector.load %arg14[%c0_78, %c0_79, %c0_80] : memref<1x8x512xf32, #tpu.memory_space<vmem>>, vector<1x8x512xf32>
      %166 = vector.shape_cast %165 : vector<1x8x512xf32> to vector<8x512xf32>
      %167 = vector.shape_cast %164 : vector<8x512xf32> to vector<1x8x512xf32>
      tpu.vector_store %arg14[%c0_78, %c0_79, %c0_80], %167 {strides = array<i32>} : memref<1x8x512xf32, #tpu.memory_space<vmem>>, vector<1x8x512xf32>,
    } else {
    }
    return
  }
  func.func @transform_0(%arg0: i32, %arg1: i32) -> (i32, i32, i32) {
    %c0_i32 = arith.constant 0 : i32
    %c0_i32_0 = arith.constant 0 : i32
    %c0_i32_1 = arith.constant 0 : i32
    return %arg0, %c0_i32, %c0_i32_0 : i32, i32, i32
  }
  func.func @transform_1(%arg0: i32, %arg1: i32) -> (i32, i32, i32) {
    %c0_i32 = arith.constant 0 : i32
    %c0_i32_0 = arith.constant 0 : i32
    %c0_i32_1 = arith.constant 0 : i32
    return %arg0, %c0_i32, %c0_i32_0 : i32, i32, i32
  }
  func.func @transform_2(%arg0: i32, %arg1: i32) -> (i32, i32) {
    %c0_i32 = arith.constant 0 : i32
    %0 = arith.addi %c0_i32, %arg1 : i32
    %c0_i32_0 = arith.constant 0 : i32
    %c0_i32_1 = arith.constant 0 : i32
    return %c0_i32_0, %0 : i32, i32
  }
  func.func @transform_3(%arg0: i32, %arg1: i32) -> (i32, i32) {
    %c4_i32 = arith.constant 4 : i32
    %0 = arith.addi %c4_i32, %arg1 : i32
    %c0_i32 = arith.constant 0 : i32
    %c0_i32_0 = arith.constant 0 : i32
    return %c0_i32, %0 : i32, i32
  }
  func.func @transform_4(%arg0: i32, %arg1: i32) -> (i32, i32) {
    %c8_i32 = arith.constant 8 : i32
    %0 = arith.addi %c8_i32, %arg1 : i32
    %c0_i32 = arith.constant 0 : i32
    %c0_i32_0 = arith.constant 0 : i32
    return %c0_i32, %0 : i32, i32
  }
  func.func @transform_5(%arg0: i32, %arg1: i32) -> (i32, i32) {
    %c0_i32 = arith.constant 0 : i32
    %0 = arith.addi %c0_i32, %arg1 : i32
    %c0_i32_0 = arith.constant 0 : i32
    %c0_i32_1 = arith.constant 0 : i32
    return %c0_i32_0, %0 : i32, i32
  }
  func.func @transform_6(%arg0: i32, %arg1: i32) -> (i32, i32) {
    %c4_i32 = arith.constant 4 : i32
    %0 = arith.addi %c4_i32, %arg1 : i32
    %c0_i32 = arith.constant 0 : i32
    %c0_i32_0 = arith.constant 0 : i32
    return %c0_i32, %0 : i32, i32
  }
  func.func @transform_7(%arg0: i32, %arg1: i32) -> (i32, i32) {
    %c8_i32 = arith.constant 8 : i32
    %0 = arith.addi %c8_i32, %arg1 : i32
    %c0_i32 = arith.constant 0 : i32
    %c0_i32_0 = arith.constant 0 : i32
    return %c0_i32, %0 : i32, i32
  }
  func.func @transform_8(%arg0: i32, %arg1: i32) -> (i32, i32) {
    %c0_i32 = arith.constant 0 : i32
    %c0_i32_0 = arith.constant 0 : i32
    return %arg1, %c0_i32 : i32, i32
  }
  func.func @transform_9(%arg0: i32, %arg1: i32) -> (i32, i32) {
    %c0_i32 = arith.constant 0 : i32
    %c0_i32_0 = arith.constant 0 : i32
    %c0_i32_1 = arith.constant 0 : i32
    return %c0_i32, %c0_i32_0 : i32, i32
  }
  func.func @transform_10(%arg0: i32, %arg1: i32) -> (i32, i32) {
    %c0_i32 = arith.constant 0 : i32
    %c0_i32_0 = arith.constant 0 : i32
    %c0_i32_1 = arith.constant 0 : i32
    return %c0_i32, %c0_i32_0 : i32, i32
  }
  func.func @transform_11(%arg0: i32, %arg1: i32) -> (i32, i32) {
    %c0_i32 = arith.constant 0 : i32
    %c0_i32_0 = arith.constant 0 : i32
    %c0_i32_1 = arith.constant 0 : i32
    return %c0_i32, %c0_i32_0 : i32, i32
  }
  func.func @transform_12(%arg0: i32, %arg1: i32) -> (i32, i32, i32) {
    %c0_i32 = arith.constant 0 : i32
    %c0_i32_0 = arith.constant 0 : i32
    %c0_i32_1 = arith.constant 0 : i32
    return %arg0, %c0_i32, %c0_i32_0 : i32, i32, i32
  }
}

module attributes {stable_mosaic.version = 11 : i64} {
  func.func @_ffn_block_kernel(%arg0: i32, %arg1: i32, %arg2: memref<16x512xf32, #tpu.memory_space<vmem>>, %arg3: memref<512x512xbf16, #tpu.memory_space<vmem>>, %arg4: memref<1x512xf32, #tpu.memory_space<vmem>>, %arg5: memref<512x512xbf16, #tpu.memory_space<vmem>>, %arg6: memref<1x512xf32, #tpu.memory_space<vmem>>, %arg7: memref<1x512xf32, #tpu.memory_space<vmem>>, %arg8: memref<1x512xf32, #tpu.memory_space<vmem>>, %arg9: memref<16x512xf32, #tpu.memory_space<vmem>>, %arg10: memref<16x512xf32, #tpu.memory_space<vmem>>) attributes {dimension_semantics = [#tpu.dimension_semantics<parallel>, #tpu.dimension_semantics<arbitrary>], iteration_bounds = array<i64: 1, 4>, scalar_prefetch = 0 : i64, scratch_operands = 1 : i64, tpu.core_type = #tpu.core_type<tc>, window_params = [{transform_indices = @transform_0, window_bounds = array<i64: 16, 512>}, {transform_indices = @transform_1, window_bounds = array<i64: 512, 512>}, {transform_indices = @transform_2, window_bounds = array<i64: 1, 512>}, {transform_indices = @transform_3, window_bounds = array<i64: 512, 512>}, {pipeline_mode = #tpu.pipeline_mode<synchronous>, transform_indices = @transform_4, window_bounds = array<i64: 1, 512>}, {pipeline_mode = #tpu.pipeline_mode<synchronous>, transform_indices = @transform_5, window_bounds = array<i64: 1, 512>}, {pipeline_mode = #tpu.pipeline_mode<synchronous>, transform_indices = @transform_6, window_bounds = array<i64: 1, 512>}, {transform_indices = @transform_7, window_bounds = array<i64: 16, 512>}]} {
    %c0_i32 = arith.constant 0 : i32
    %0 = arith.cmpi eq, %arg1, %c0_i32 : i32
    %1 = arith.extui %0 : i1 to i32
    %c0_i32_0 = arith.constant 0 : i32
    %2 = arith.cmpi ne, %1, %c0_i32_0 : i32
    scf.if %2 {
      %cst_15 = arith.constant 0.000000e+00 : f32
      %21 = vector.broadcast %cst_15 : f32 to vector<16x512xf32>
      %c0_16 = arith.constant 0 : index
      %c0_17 = arith.constant 0 : index
      %22 = vector.load %arg10[%c0_16, %c0_17] : memref<16x512xf32, #tpu.memory_space<vmem>>, vector<16x512xf32>
      tpu.vector_store %arg10[%c0_16, %c0_17], %21 {strides = array<i32>} : memref<16x512xf32, #tpu.memory_space<vmem>>, vector<16x512xf32>,
    } else {
    }
    %c0 = arith.constant 0 : index
    %c0_1 = arith.constant 0 : index
    %3 = vector.load %arg2[%c0, %c0_1] : memref<16x512xf32, #tpu.memory_space<vmem>>, vector<16x512xf32>
    %4 = arith.truncf %3 : vector<16x512xf32> to vector<16x512xbf16>
    %c0_2 = arith.constant 0 : index
    %c0_3 = arith.constant 0 : index
    %5 = vector.load %arg3[%c0_2, %c0_3] : memref<512x512xbf16, #tpu.memory_space<vmem>>, vector<512x512xbf16>
    %cst = arith.constant dense<0.000000e+00> : vector<16x512xf32>
    %6 = tpu.matmul %4, %5, %cst {dimension_numbers = #tpu.dot_dimension_numbers<[1], [0], [0], [1], [0, 0, 1, 1], [], []>} : vector<16x512xbf16>, vector<512x512xbf16>, vector<16x512xf32> -> vector<16x512xf32>
    %c0_4 = arith.constant 0 : index
    %c0_5 = arith.constant 0 : index
    %7 = vector.load %arg4[%c0_4, %c0_5] : memref<1x512xf32, #tpu.memory_space<vmem>>, vector<1x512xf32>
    %8 = vector.broadcast %7 : vector<1x512xf32> to vector<16x512xf32>
    %9 = arith.addf %6, %8 : vector<16x512xf32>
    %cst_6 = arith.constant 0.000000e+00 : f32
    %10 = vector.broadcast %cst_6 : f32 to vector<16x512xf32>
    %11 = arith.maximumf %9, %10 : vector<16x512xf32>
    %c0_7 = arith.constant 0 : index
    %c0_8 = arith.constant 0 : index
    %12 = vector.load %arg10[%c0_7, %c0_8] : memref<16x512xf32, #tpu.memory_space<vmem>>, vector<16x512xf32>
    %13 = arith.truncf %11 : vector<16x512xf32> to vector<16x512xbf16>
    %c0_9 = arith.constant 0 : index
    %c0_10 = arith.constant 0 : index
    %14 = vector.load %arg5[%c0_9, %c0_10] : memref<512x512xbf16, #tpu.memory_space<vmem>>, vector<512x512xbf16>
    %cst_11 = arith.constant dense<0.000000e+00> : vector<16x512xf32>
    %15 = tpu.matmul %13, %14, %cst_11 {dimension_numbers = #tpu.dot_dimension_numbers<[1], [0], [0], [1], [0, 0, 1, 1], [], []>} : vector<16x512xbf16>, vector<512x512xbf16>, vector<16x512xf32> -> vector<16x512xf32>
    %16 = arith.addf %12, %15 : vector<16x512xf32>
    %c0_12 = arith.constant 0 : index
    %c0_13 = arith.constant 0 : index
    %17 = vector.load %arg10[%c0_12, %c0_13] : memref<16x512xf32, #tpu.memory_space<vmem>>, vector<16x512xf32>
    tpu.vector_store %arg10[%c0_12, %c0_13], %16 {strides = array<i32>} : memref<16x512xf32, #tpu.memory_space<vmem>>, vector<16x512xf32>,
    %c3_i32 = arith.constant 3 : i32
    %18 = arith.cmpi eq, %arg1, %c3_i32 : i32
    %19 = arith.extui %18 : i1 to i32
    %c0_i32_14 = arith.constant 0 : i32
    %20 = arith.cmpi ne, %19, %c0_i32_14 : i32
    scf.if %20 {
      %c0_15 = arith.constant 0 : index
      %c0_16 = arith.constant 0 : index
      %21 = vector.load %arg10[%c0_15, %c0_16] : memref<16x512xf32, #tpu.memory_space<vmem>>, vector<16x512xf32>
      %c0_17 = arith.constant 0 : index
      %c0_18 = arith.constant 0 : index
      %22 = vector.load %arg6[%c0_17, %c0_18] : memref<1x512xf32, #tpu.memory_space<vmem>>, vector<1x512xf32>
      %23 = vector.broadcast %22 : vector<1x512xf32> to vector<16x512xf32>
      %24 = arith.addf %21, %23 : vector<16x512xf32>
      %c0_19 = arith.constant 0 : index
      %c0_20 = arith.constant 0 : index
      %25 = vector.load %arg2[%c0_19, %c0_20] : memref<16x512xf32, #tpu.memory_space<vmem>>, vector<16x512xf32>
      %26 = arith.addf %24, %25 : vector<16x512xf32>
      %cst_21 = arith.constant dense<0.000000e+00> : vector<16xf32>
      %27 = vector.multi_reduction <add>, %26, %cst_21 [1] : vector<16x512xf32> to vector<16xf32>
      %28 = vector.shape_cast %27 : vector<16xf32> to vector<16x1xf32>
      %cst_22 = arith.constant 5.120000e+02 : f32
      %29 = vector.broadcast %cst_22 : f32 to vector<16x1xf32>
      %30 = arith.divf %28, %29 : vector<16x1xf32>
      %31 = vector.broadcast %30 : vector<16x1xf32> to vector<16x512xf32>
      %32 = arith.subf %26, %31 : vector<16x512xf32>
      %33 = arith.mulf %32, %32 : vector<16x512xf32>
      %cst_23 = arith.constant dense<0.000000e+00> : vector<16xf32>
      %34 = vector.multi_reduction <add>, %33, %cst_23 [1] : vector<16x512xf32> to vector<16xf32>
      %35 = vector.shape_cast %34 : vector<16xf32> to vector<16x1xf32>
      %cst_24 = arith.constant 5.120000e+02 : f32
      %36 = vector.broadcast %cst_24 : f32 to vector<16x1xf32>
      %37 = arith.divf %35, %36 : vector<16x1xf32>
      %38 = vector.broadcast %30 : vector<16x1xf32> to vector<16x512xf32>
      %39 = arith.subf %26, %38 : vector<16x512xf32>
      %cst_25 = arith.constant 9.99999974E-6 : f32
      %40 = vector.broadcast %cst_25 : f32 to vector<16x1xf32>
      %41 = arith.addf %37, %40 : vector<16x1xf32>
      %42 = math.rsqrt %41 : vector<16x1xf32>
      %43 = vector.broadcast %42 : vector<16x1xf32> to vector<16x512xf32>
      %44 = arith.mulf %39, %43 : vector<16x512xf32>
      %c0_26 = arith.constant 0 : index
      %c0_27 = arith.constant 0 : index
      %45 = vector.load %arg7[%c0_26, %c0_27] : memref<1x512xf32, #tpu.memory_space<vmem>>, vector<1x512xf32>
      %46 = vector.broadcast %45 : vector<1x512xf32> to vector<16x512xf32>
      %47 = arith.mulf %44, %46 : vector<16x512xf32>
      %c0_28 = arith.constant 0 : index
      %c0_29 = arith.constant 0 : index
      %48 = vector.load %arg8[%c0_28, %c0_29] : memref<1x512xf32, #tpu.memory_space<vmem>>, vector<1x512xf32>
      %49 = vector.broadcast %48 : vector<1x512xf32> to vector<16x512xf32>
      %50 = arith.addf %47, %49 : vector<16x512xf32>
      %c0_30 = arith.constant 0 : index
      %c0_31 = arith.constant 0 : index
      %51 = vector.load %arg9[%c0_30, %c0_31] : memref<16x512xf32, #tpu.memory_space<vmem>>, vector<16x512xf32>
      tpu.vector_store %arg9[%c0_30, %c0_31], %50 {strides = array<i32>} : memref<16x512xf32, #tpu.memory_space<vmem>>, vector<16x512xf32>,
    } else {
    }
    return
  }
  func.func @transform_0(%arg0: i32, %arg1: i32) -> (i32, i32) {
    %c0_i32 = arith.constant 0 : i32
    %c0_i32_0 = arith.constant 0 : i32
    return %arg0, %c0_i32 : i32, i32
  }
  func.func @transform_1(%arg0: i32, %arg1: i32) -> (i32, i32) {
    %c0_i32 = arith.constant 0 : i32
    %c0_i32_0 = arith.constant 0 : i32
    return %c0_i32, %arg1 : i32, i32
  }
  func.func @transform_2(%arg0: i32, %arg1: i32) -> (i32, i32) {
    %c0_i32 = arith.constant 0 : i32
    %c0_i32_0 = arith.constant 0 : i32
    return %c0_i32, %arg1 : i32, i32
  }
  func.func @transform_3(%arg0: i32, %arg1: i32) -> (i32, i32) {
    %c0_i32 = arith.constant 0 : i32
    %c0_i32_0 = arith.constant 0 : i32
    return %arg1, %c0_i32 : i32, i32
  }
  func.func @transform_4(%arg0: i32, %arg1: i32) -> (i32, i32) {
    %c0_i32 = arith.constant 0 : i32
    %c0_i32_0 = arith.constant 0 : i32
    %c0_i32_1 = arith.constant 0 : i32
    return %c0_i32, %c0_i32_0 : i32, i32
  }
  func.func @transform_5(%arg0: i32, %arg1: i32) -> (i32, i32) {
    %c0_i32 = arith.constant 0 : i32
    %c0_i32_0 = arith.constant 0 : i32
    %c0_i32_1 = arith.constant 0 : i32
    return %c0_i32, %c0_i32_0 : i32, i32
  }
  func.func @transform_6(%arg0: i32, %arg1: i32) -> (i32, i32) {
    %c0_i32 = arith.constant 0 : i32
    %c0_i32_0 = arith.constant 0 : i32
    %c0_i32_1 = arith.constant 0 : i32
    return %c0_i32, %c0_i32_0 : i32, i32
  }
  func.func @transform_7(%arg0: i32, %arg1: i32) -> (i32, i32) {
    %c0_i32 = arith.constant 0 : i32
    %c0_i32_0 = arith.constant 0 : i32
    return %arg0, %c0_i32 : i32, i32
  }
}

</mosaic_0001>

<bundles_post_ra>
// kernel: frozen_v2_encoder_forward.9
= control target key start
LH: loop header
LB: loop body
LE: loop exit
PB: predicated region body
PF: predicated region fallthrough
CT: control target
= control target key end

     0   :  { %9 = vsyncpa [#allocation3], 0  ;;  %s3368_s0 = inlined_call_operand.hbm [shape: f32[2,8,960], index: 0, kind: input, shape index: {}]   ;;  %s3369_s1 = inlined_call_operand.hbm [shape: bf16[960,512], index: 1, kind: input, shape index: {}]   ;;  %s3370_s2 = inlined_call_operand.hbm [shape: f32[1,512], index: 2, kind: input, shape index: {}]   ;;  %s3371_s3 = inlined_call_operand.vmem [shape: f32[1,8,512], index: 3, kind: input, shape index: {}]   ;;  %s3372_s4 = inlined_call_operand.vmem [shape: f32[2,8,512], index: 4, kind: output, shape index: {}]  }
   0x1   :  { %11 = vsyncpa [#allocation3 + $0x1], 0 }
   0x2   :  { %12 = vsyncpa [#allocation5], 0  ;;  %s3116_s15 = smov 0   ;;  %s3118_s16 = smov 0  }
   0x3   :  { %s3120_s17 = smov 0   ;;  %s3122_s18 = smov 0  }
   0x4   :  { %s3124_s19 = smov 0   ;;  %s3126_s20 = smov 0  }
   0x5 LB: > { %s2244_s21 = sadd.s32 4294967295, %s3084_s20   ;;  %p52_p0 = scmp.ne.s32.totalorder %s3068_s16, %s3064_s15  ;;  %s3084_s20 = sphi %s3126_s20, %s18_s20   ;;  %s3080_s19 = sphi %s3124_s19, %s3390_s19   ;;  %s3076_s18 = sphi %s3122_s18, %s3389_s18   ;;  %s3072_s17 = sphi %s3120_s17, %s3388_s17   ;;  %s3068_s16 = sphi %s3118_s16, %s3387_s16   ;;  %s3064_s15 = sphi %s3116_s15, %s3386_s15  }
   0x6   : > { %p3146_p1 = scmp.eq.s32.totalorder %s2244_s21, 0  ;;  %p2246_p2 = scmp.ge.s32.totalorder %s3084_s20, 1 }
   0x7   : > { %p159_p3 = scmp.lt.s32.totalorder %s3084_s20, 3  ;;  %s3086_s25 = smov [#allocation4]  }
   0x8   : > { %s3377_s22 = scalar_select %p3146_p1, 1, 0 }
   0x9   : > { %p3154_p4 = por %p3146_p1, %p52_p0  ;;  %p3158_p5 = pnand %p2246_p2, %p159_p3 }
   0xa   : > { %s171_s26 = sshll.u32 %s3086_s25, 4  ;;  %s3087_s28 = smov [#allocation6]   ;;  %s172_s26 = int_to_ptr.vmem [resolvable:$true] %s171_s26 }
   0xb   : > { %s3378_s23 = scalar_select %p3154_p4, 1, 0 }
   0xc   : > { %s3379_s24 = scalar_select %p3158_p5, 1, 0 }
   0xd   : > { %p2516_p6 = pneg %p3158_p5  ;;  %s185_s29 = sshll.u32 %s3087_s28, 4  ;;  %s3170_s29 = int_to_ptr.vmem [resolvable:$true] %s185_s29 }
   0xe   : > { %s2944_s6 = scalar_lea.hbm %s3369_s1, 30720 }
   0xf   : > { %p3166_p7 = pnand %p2516_p6, %p3146_p1  ;;  %p2945_p8 = scmp.ne.s32.totalorder %s3369_s1, %s2944_s6 }
  0x10   : > { %p2951_p12 = scmp.lt.u32.totalorder %s2944_s6, %s3369_s1 }
  0x11   : > { %p2946_p9 = pneg %p3166_p7 }
  0x13   : > { %p2947_p10 = pnand %p2946_p9, %p2945_p8 }
  0x15   : > { %p2948_p11 = pneg %p2947_p10 }
  0x17   : > { %p2953_p13 = pnand %p2951_p12, %p2948_p11 }
  0x19   : > { %2956 = shalt.err (!%p2953_p13)
}
  0x1a   : > { %s2957_s11 = scalar_lea.vmem %s172_s26, 30720  ;;  %p2965_p6 = scmp.lt.s32.totalorder %s172_s26, %s172_s26 }
  0x1b   : > { %p2958_p0 = scmp.ne.s32.totalorder %s172_s26, %s2957_s11  ;;  %p2966_p1 = scmp.lt.s32.totalorder %s2957_s11, %s2957_s11 }
  0x1d   : > { %p2960_p2 = pnand %p2958_p0, %p2946_p9  ;;  %p2967_p4 = por %p2966_p1, %p2965_p6 }
  0x1f   : > { %p2961_p3 = pneg %p2960_p2 }
  0x21   : > { %p2968_p5 = pnand %p2967_p4, %p2961_p3 }
  0x23   : > { %2971 = shalt.err (!%p2968_p5)
}
  0x24   : > { %s3088_s12 = smov 256   ;;  %s3089_s13 = smov 16  }
  0x25   : > { %2519 = dma.hbm_to_vmem [thread:$0]  (!%p3166_p7), %s3369_s1, 30720, %s172_s26, [#allocation5], %s3088_s12, %s3088_s12, %s3089_s13  }
  0x26   : > { %s2972_s28 = scalar_lea.hbm %s3370_s2, 64 }
  0x27   : > { %p2973_p8 = scmp.ne.s32.totalorder %s3370_s2, %s2972_s28  ;;  %p2979_p5 = scmp.lt.u32.totalorder %s2972_s28, %s3370_s2 }
  0x29   : > { %p2975_p1 = pnand %p2973_p8, %p2946_p9 }
  0x2b   : > { %p2976_p4 = pneg %p2975_p1 }
  0x2d   : > { %p2981_p10 = pnand %p2979_p5, %p2976_p4 }
  0x2f   : > { %2984 = shalt.err (!%p2981_p10)
}
  0x30   : > { %s2985_s26 = scalar_lea.vmem %s3170_s29, 64  ;;  %p2993_p0 = scmp.lt.s32.totalorder %s3170_s29, %s3170_s29 }
  0x31   : > { %p2986_p11 = scmp.ne.s32.totalorder %s3170_s29, %s2985_s26  ;;  %p2994_p2 = scmp.lt.s32.totalorder %s2985_s26, %s2985_s26 }
  0x33   : > { %p2988_p12 = pnand %p2986_p11, %p2946_p9  ;;  %p2995_p3 = por %p2994_p2, %p2993_p0 }
  0x35   : > { %p2989_p13 = pneg %p2988_p12 }
  0x37   : > { %p2996_p6 = pnand %p2995_p3, %p2989_p13 }
  0x39   : > { %2999 = shalt.err (!%p2996_p6)
}
  0x3a   : > { %2522 = dma.hbm_to_vmem [thread:$0]  (!%p3166_p7), %s3370_s2, 64, %s3170_s29, [#allocation5]  }
  0x3b   : > { %s30_s10 = sadd.s32 1, %s3080_s19  ;;  %s39_s11 = sadd.s32 1, %s3072_s17 }
  0x3c   : > { %p32_p9 = scmp.ge.s32.totalorder %s30_s10, 2  ;;  %p46_p8 = scmp.ne.s32.totalorder %s3072_s17, %s3068_s16 }
  0x3d   : > { %p47_p1 = scmp.eq.s32.totalorder %s3084_s20, 0  ;;  %p2529_p4 = scmp.lt.s32.totalorder %s3084_s20, 2 }
  0x3e   : > { %s3392_s10 = smov (%p32_p9, %s30_s10), 0  ;;  %s204_s27 = sand.u32 1, %s3072_s17  }
  0x3f   : > { %p48_p5 = por %p47_p1, %p46_p8  ;;  %s34_s12 = ssub.s32 %s3080_s19, %s3392_s10 }
  0x40   : > { %p37_p10 = scmp.eq.s32.totalorder %s34_s12, 0  ;;  %s2251_s13 = sshll.u32 %s204_s27, 6 }
  0x41   : > { %s2504_s14 = sshll.u32 %s3080_s19, 10  ;;  %s208_s28 = scalar_lea.vmem [#allocation2], %s2251_s13 }
  0x42   : > { %s3232_s15 = scalar_select %p37_p10, %s3072_s17, %s39_s11  }
  0x43   : > { %s3237_s25 = scalar_lea.hbm %s3368_s0, %s2504_s14  ;;  %s218_s30 = sshll.u32 %s208_s28, 4  ;;  %s3239_s30 = int_to_ptr.vmem [resolvable:$true] %s218_s30 }
  0x44   : > { %p3243_p7 = pnand %p2529_p4, %p48_p5  ;;  %s205_s6 = scalar_lea.sflag [#allocation3], %s204_s27 }
  0x45   : > { %s3000_s7 = scalar_lea.hbm %s3237_s25, 1024  ;;  %s3005_s9 = scalar_lea.hbm %s3368_s0, 2048 }
  0x46   : > { %p3001_p11 = scmp.ne.s32.totalorder %s3237_s25, %s3000_s7  ;;  %p3002_p12 = pneg %p3243_p7 }
  0x47   : > { %p3006_p2 = scmp.lt.u32.totalorder %s3237_s25, %s3368_s0  ;;  %p3007_p3 = scmp.lt.u32.totalorder %s3005_s9, %s3000_s7 }
  0x48   : > { %p3003_p13 = pnand %p3002_p12, %p3001_p11  ;;  %p3009_p9 = scmp.lt.u32.totalorder %s3000_s7, %s3237_s25 }
  0x49   : > { %p3008_p6 = por %p3007_p3, %p3006_p2 }
  0x4a   : > { %p3004_p0 = pneg %p3003_p13 }
  0x4b   : > { %p3010_p8 = por %p3009_p9, %p3008_p6 }
  0x4d   : > { %p3011_p1 = pnand %p3010_p8, %p3004_p0 }
  0x4f   : > { %3014 = shalt.err (!%p3011_p1)
}
  0x50   : > { %s3015_s27 = scalar_lea.vmem %s3239_s30, 1024  ;;  %s3090_s13 = smov [#allocation2]  }
  0x51   : > { %p3016_p4 = scmp.ne.s32.totalorder %s3239_s30, %s3015_s27  ;;  %s3020_s14 = sshll.u32 %s3090_s13, 4  ;;  %s3021_s14 = int_to_ptr.vmem [resolvable:$false] %s3020_s14 }
  0x52   : > { %s3022_s21 = scalar_lea.vmem %s3021_s14, 2048  ;;  %p3023_p11 = scmp.lt.s32.totalorder %s3239_s30, %s3021_s14 }
  0x53   : > { %p3018_p5 = pnand %p3016_p4, %p3002_p12  ;;  %p3024_p13 = scmp.lt.s32.totalorder %s3022_s21, %s3015_s27 }
  0x55   : > { %p3019_p10 = pneg %p3018_p5  ;;  %p3025_p2 = por %p3024_p13, %p3023_p11 }
  0x57   : > { %p3026_p3 = pnand %p3025_p2, %p3019_p10 }
  0x59   : > { %3029 = shalt.err (!%p3026_p3)
}
  0x5a   : > { %2526 = dma.hbm_to_vmem [thread:$0]  (!%p3243_p7), %s3237_s25, 1024, %s3239_s30, %s205_s6  }
  0x5b   : > { %p3382_p0 = scmp.ne.s32.totalorder %s3379_s24, 0 }
  0x5c   : > { %s229_s29 = sand.u32 (!%p3382_p0), 1, %s3068_s16   ;;  %p3383_p12 = scmp.ne.s32.totalorder (!%p3382_p0), %s3378_s23, 0 }
  0x5d   : > { %227 = sbr.rel (%p3382_p0) target bundleno = 566 (0x236), region = 36  ;;  %s2255_s28 = sshll.u32 (!%p3382_p0), %s229_s29, 6 }
  0x5e   : > { %s230_s7 = scalar_lea.sflag (!%p3382_p0), [#allocation3], %s229_s29  ;;  %s3275_s26 = scalar_lea.vmem (!%p3382_p0), [#allocation2], %s2255_s28 }
  0x64   : > { %3055 = dma.done.wait (%p3383_p12), %s230_s7, 1024  }
  0x65   : > { %3057 = vsyncadd (%p3383_p12), %s230_s7, 4294966272  ;;  %p3384_p6 = scmp.ne.s32.totalorder %s3377_s22, 0 }
  0x67   : > { %3059 = dma.done.wait (%p3384_p6), [#allocation5], 30784  }
  0x68   : > { %3061 = vsyncadd (%p3384_p6), [#allocation5], 4294936512  ;;  %v2584_v0 = vld [vmem:[#allocation4 + $0x4] ss:$16 sps:$4 sm:$0xff]   ;;  %v2588_v2 = vld [vmem:[#allocation4] ss:$16 sps:$4 sm:$0xff]  }
  0x69   : > { %v2586_v1 = vld [vmem:[#allocation4 + $0x204] ss:$16 sps:$4 sm:$0xff]   ;;  %1772 = vmatprep.subr.bf16.mxu0 %v2584_v0  ;;  %v2589_v3 = vld [vmem:[#allocation4 + $0x200] ss:$16 sps:$4 sm:$0xff]   ;;  %v291_v46 = vld [vmem:[%s3275_s26 + $0x8] sm:$0xff]  ;;  %vm1768_vm0 = vcmask 523264  }
  0x6a   : > { %1813 = vmatprep.subr.bf16.mxu1 %v2586_v1  ;;  %v2590_v4 = vld [vmem:[#allocation4 + $0x24] ss:$16 sps:$4 sm:$0xff]   ;;  %1773 = vmatpush1.bf16.msra.mxu0 %v2588_v2  ;;  %v2594_v6 = vld [vmem:[#allocation4 + $0x20] ss:$16 sps:$4 sm:$0xff]   ;;  %v3286_v49 = vpack.c.bf16 %v291_v46, %v291_v46  ;;  %v293_v50 = vld [vmem:[%s3275_s26 + $0x18] sm:$0xff]  ;;  %p280_p7 = scmp.lt.s32.totalorder %s3076_s18, 1 }
  0x6b   : > { %1814 = vmatpush1.bf16.msra.mxu1 %v2589_v3  ;;  %v2592_v5 = vld [vmem:[#allocation4 + $0x224] ss:$16 sps:$4 sm:$0xff]   ;;  %1774 = vmatprep.subr.bf16.mxu0 %v2590_v4  ;;  %v2595_v7 = vld [vmem:[#allocation4 + $0x220] ss:$16 sps:$4 sm:$0xff]   ;;  %v3289_v52 = vpack.c.bf16 %v293_v50, %v293_v50 }
  0x6c   : > { %1815 = vmatprep.subr.bf16.mxu1 %v2592_v5  ;;  %v2596_v8 = vld [vmem:[#allocation4 + $0x44] ss:$16 sps:$4 sm:$0xff]   ;;  %v2600_v10 = vld [vmem:[#allocation4 + $0x40] ss:$16 sps:$4 sm:$0xff]   ;;  %1804 = vmatprep.mubr.bf16.mxu0 %v3286_v49  ;;  %s3394_s18 = smov (!%p280_p7, %s3076_s18), 1 }
  0x6d   : > { %v2598_v9 = vld [vmem:[#allocation4 + $0x244] ss:$16 sps:$4 sm:$0xff]   ;;  %v2601_v11 = vld [vmem:[#allocation4 + $0x240] ss:$16 sps:$4 sm:$0xff]   ;;  %1845 = vmatprep.mubr.bf16.mxu1 %v3289_v52  ;;  %s2505_s22 = sshll.u32 %s3394_s18, 5 }
  0x6e   : > { %1775 = vmatpush1.bf16.msra.mxu0 %v2594_v6  ;;  %v2602_v12 = vld [vmem:[#allocation4 + $0x64] ss:$16 sps:$4 sm:$0xff]   ;;  %v2606_v14 = vld [vmem:[#allocation4 + $0x60] ss:$16 sps:$4 sm:$0xff]   ;;  %s3338_s8 = scalar_lea.vmem %s3372_s4, %s2505_s22 }
  0x6f   : > { %1816 = vmatpush1.bf16.msra.mxu1 %v2595_v7  ;;  %1776 = vmatprep.subr.bf16.mxu0 %v2596_v8  ;;  %v2604_v13 = vld [vmem:[#allocation4 + $0x264] ss:$16 sps:$4 sm:$0xff]   ;;  %v2607_v15 = vld [vmem:[#allocation4 + $0x260] ss:$16 sps:$4 sm:$0xff]  }
  0x70   : > { %1817 = vmatprep.subr.bf16.mxu1 %v2598_v9  ;;  %v2608_v16 = vld [vmem:[#allocation4 + $0x84] ss:$16 sps:$4 sm:$0xff]   ;;  %v2612_v18 = vld [vmem:[#allocation4 + $0x80] ss:$16 sps:$4 sm:$0xff]  }
  0x71   : > { %v2610_v17 = vld [vmem:[#allocation4 + $0x284] ss:$16 sps:$4 sm:$0xff]   ;;  %v2613_v19 = vld [vmem:[#allocation4 + $0x280] ss:$16 sps:$4 sm:$0xff]  }
  0x72   : > { %1777 = vmatpush1.bf16.msra.mxu0 %v2600_v10  ;;  %v2614_v20 = vld [vmem:[#allocation4 + $0xa4] ss:$16 sps:$4 sm:$0xff]   ;;  %v2618_v22 = vld [vmem:[#allocation4 + $0xa0] ss:$16 sps:$4 sm:$0xff]  }
  0x73   : > { %1818 = vmatpush1.bf16.msra.mxu1 %v2601_v11  ;;  %1778 = vmatprep.subr.bf16.mxu0 %v2602_v12  ;;  %v2616_v21 = vld [vmem:[#allocation4 + $0x2a4] ss:$16 sps:$4 sm:$0xff]   ;;  %v2619_v23 = vld [vmem:[#allocation4 + $0x2a0] ss:$16 sps:$4 sm:$0xff]  }
  0x74   : > { %1819 = vmatprep.subr.bf16.mxu1 %v2604_v13  ;;  %v2620_v24 = vld [vmem:[#allocation4 + $0xc4] ss:$16 sps:$4 sm:$0xff]   ;;  %v2624_v26 = vld [vmem:[#allocation4 + $0xc0] ss:$16 sps:$4 sm:$0xff]  }
  0x75   : > { %v2622_v25 = vld [vmem:[#allocation4 + $0x2c4] ss:$16 sps:$4 sm:$0xff]   ;;  %v2625_v27 = vld [vmem:[#allocation4 + $0x2c0] ss:$16 sps:$4 sm:$0xff]  }
  0x76   : > { %1779 = vmatpush1.bf16.msra.mxu0 %v2606_v14  ;;  %v2626_v28 = vld [vmem:[#allocation4 + $0xe4] ss:$16 sps:$4 sm:$0xff]   ;;  %v2630_v30 = vld [vmem:[#allocation4 + $0xe0] ss:$16 sps:$4 sm:$0xff]  }
  0x77   : > { %1820 = vmatpush1.bf16.msra.mxu1 %v2607_v15  ;;  %1780 = vmatprep.subr.bf16.mxu0 %v2608_v16  ;;  %v2628_v29 = vld [vmem:[#allocation4 + $0x2e4] ss:$16 sps:$4 sm:$0xff]   ;;  %v2631_v31 = vld [vmem:[#allocation4 + $0x2e0] ss:$16 sps:$4 sm:$0xff]  }
  0x78   : > { %1821 = vmatprep.subr.bf16.mxu1 %v2610_v17  ;;  %v2632_v32 = vld [vmem:[#allocation4 + $0x104] ss:$16 sps:$4 sm:$0xff]   ;;  %v2636_v34 = vld [vmem:[#allocation4 + $0x100] ss:$16 sps:$4 sm:$0xff]  }
  0x79   : > { %v2634_v33 = vld [vmem:[#allocation4 + $0x304] ss:$16 sps:$4 sm:$0xff]   ;;  %v2637_v35 = vld [vmem:[#allocation4 + $0x300] ss:$16 sps:$4 sm:$0xff]  }
  0x7a   : > { %1781 = vmatpush1.bf16.msra.mxu0 %v2612_v18  ;;  %v2638_v36 = vld [vmem:[#allocation4 + $0x124] ss:$16 sps:$4 sm:$0xff]   ;;  %v2642_v38 = vld [vmem:[#allocation4 + $0x120] ss:$16 sps:$4 sm:$0xff]  }
  0x7b   : > { %1822 = vmatpush1.bf16.msra.mxu1 %v2613_v19  ;;  %1782 = vmatprep.subr.bf16.mxu0 %v2614_v20  ;;  %v2640_v37 = vld [vmem:[#allocation4 + $0x324] ss:$16 sps:$4 sm:$0xff]   ;;  %v2643_v39 = vld [vmem:[#allocation4 + $0x320] ss:$16 sps:$4 sm:$0xff]  }
  0x7c   : > { %1823 = vmatprep.subr.bf16.mxu1 %v2616_v21  ;;  %v2644_v40 = vld [vmem:[#allocation4 + $0x144] ss:$16 sps:$4 sm:$0xff]   ;;  %v2648_v42 = vld [vmem:[#allocation4 + $0x140] ss:$16 sps:$4 sm:$0xff]  }
  0x7d   : > { %v2646_v41 = vld [vmem:[#allocation4 + $0x344] ss:$16 sps:$4 sm:$0xff]   ;;  %v2649_v43 = vld [vmem:[#allocation4 + $0x340] ss:$16 sps:$4 sm:$0xff]  }
  0x7e   : > { %1783 = vmatpush1.bf16.msra.mxu0 %v2618_v22  ;;  %v2650_v44 = vld [vmem:[#allocation4 + $0x164] ss:$16 sps:$4 sm:$0xff]   ;;  %v2654_v47 = vld [vmem:[#allocation4 + $0x160] ss:$16 sps:$4 sm:$0xff]  }
  0x7f   : > { %1824 = vmatpush1.bf16.msra.mxu1 %v2619_v23  ;;  %1784 = vmatprep.subr.bf16.mxu0 %v2620_v24  ;;  %v2652_v45 = vld [vmem:[#allocation4 + $0x364] ss:$16 sps:$4 sm:$0xff]   ;;  %v2655_v48 = vld [vmem:[#allocation4 + $0x360] ss:$16 sps:$4 sm:$0xff]   ;;  %v297_v24 = vld [vmem:[%s3275_s26 + $0x38] sm:$0xff] }
  0x80   : > { %1825 = vmatprep.subr.bf16.mxu1 %v2622_v25  ;;  %v2656_v51 = vld [vmem:[#allocation4 + $0x184] ss:$16 sps:$4 sm:$0xff]   ;;  %v2660_v54 = vld [vmem:[#allocation4 + $0x180] ss:$16 sps:$4 sm:$0xff]  }
  0x81   : > { %v2658_v53 = vld [vmem:[#allocation4 + $0x384] ss:$16 sps:$4 sm:$0xff]   ;;  %v2661_v55 = vld [vmem:[#allocation4 + $0x380] ss:$16 sps:$4 sm:$0xff]  }
  0x82   : > { %1785 = vmatpush1.bf16.msra.mxu0 %v2624_v26  ;;  %v2662_v56 = vld [vmem:[#allocation4 + $0x1a4] ss:$16 sps:$4 sm:$0xff]   ;;  %v2666_v58 = vld [vmem:[#allocation4 + $0x1a0] ss:$16 sps:$4 sm:$0xff]  }
  0x83   : > { %1826 = vmatpush1.bf16.msra.mxu1 %v2625_v27  ;;  %1786 = vmatprep.subr.bf16.mxu0 %v2626_v28  ;;  %v2664_v57 = vld [vmem:[#allocation4 + $0x3a4] ss:$16 sps:$4 sm:$0xff]   ;;  %v2667_v59 = vld [vmem:[#allocation4 + $0x3a0] ss:$16 sps:$4 sm:$0xff]   ;;  %v3302_v27 = vpack.c.bf16 %v297_v24, %v297_v24  ;;  %v2787_v24 = vld [vmem:[#allocation4 + $0x22c] ss:$16 sps:$4 sm:$0xff]  }
  0x84   : > { %1827 = vmatprep.subr.bf16.mxu1 %v2628_v29  ;;  %v2668_v60 = vld [vmem:[#allocation4 + $0x1c4] ss:$16 sps:$4 sm:$0xff]   ;;  %v2672_v62 = vld [vmem:[#allocation4 + $0x1c0] ss:$16 sps:$4 sm:$0xff]  }
  0x85   : > { %v2670_v61 = vld [vmem:[#allocation4 + $0x3c4] ss:$16 sps:$4 sm:$0xff]   ;;  %v2673_v63 = vld [vmem:[#allocation4 + $0x3c0] ss:$16 sps:$4 sm:$0xff]  }
  0x86   : > { %1787 = vmatpush1.bf16.msra.mxu0 %v2630_v30  ;;  %v2674_v0 = vld [vmem:[#allocation4 + $0x1e4] ss:$16 sps:$4 sm:$0xff]   ;;  %v2678_v2 = vld [vmem:[#allocation4 + $0x1e0] ss:$16 sps:$4 sm:$0xff]  }
  0x87   : > { %1828 = vmatpush1.bf16.msra.mxu1 %v2631_v31  ;;  %1788 = vmatprep.subr.bf16.mxu0 %v2632_v32  ;;  %v2676_v1 = vld [vmem:[#allocation4 + $0x3e4] ss:$16 sps:$4 sm:$0xff]   ;;  %v2679_v3 = vld [vmem:[#allocation4 + $0x3e0] ss:$16 sps:$4 sm:$0xff]  }
  0x88   : > { %1829 = vmatprep.subr.bf16.mxu1 %v2634_v33  ;;  %v290_v4 = vld [vmem:[%s3275_s26] sm:$0xff]  ;;  %v292_v5 = vld [vmem:[%s3275_s26 + $0x10] sm:$0xff] }
  0x89   : > { %v2682_v6 = vld [vmem:[#allocation4 + $0x404] ss:$16 sps:$4 sm:$0xff]   ;;  %v3295_v8 = vpack.c.bf16 %v290_v4, %v290_v4  ;;  %v3297_v9 = vpack.c.bf16 %v292_v5, %v292_v5  ;;  %v2680_v10 = vld [vmem:[#allocation4 + $0x400] ss:$16 sps:$4 sm:$0xff]   ;;  %v2763_v5 = vld [vmem:[#allocation4 + $0x2c] ss:$16 sps:$4 sm:$0xff]  }
  0x8a   : > { %1789 = vmatpush1.bf16.msra.mxu0 %v2636_v34  ;;  %v2685_v7 = vld [vmem:[#allocation4 + $0x604] ss:$16 sps:$4 sm:$0xff]   ;;  %v2683_v11 = vld [vmem:[#allocation4 + $0x600] ss:$16 sps:$4 sm:$0xff]  }
  0x8b   : > { %1830 = vmatpush1.bf16.msra.mxu1 %v2637_v35  ;;  %1790 = vmatprep.subr.bf16.mxu0 %v2638_v36  ;;  %v2688_v12 = vld [vmem:[#allocation4 + $0x424] ss:$16 sps:$4 sm:$0xff]   ;;  %v2686_v14 = vld [vmem:[#allocation4 + $0x420] ss:$16 sps:$4 sm:$0xff]  }
  0x8c   : > { %1831 = vmatprep.subr.bf16.mxu1 %v2640_v37  ;;  %v2691_v13 = vld [vmem:[#allocation4 + $0x624] ss:$16 sps:$4 sm:$0xff]   ;;  %v2689_v15 = vld [vmem:[#allocation4 + $0x620] ss:$16 sps:$4 sm:$0xff]  }
  0x8d   : > { %v2694_v16 = vld [vmem:[#allocation4 + $0x444] ss:$16 sps:$4 sm:$0xff]   ;;  %v2692_v18 = vld [vmem:[#allocation4 + $0x440] ss:$16 sps:$4 sm:$0xff]  }
  0x8e   : > { %1791 = vmatpush1.bf16.msra.mxu0 %v2642_v38  ;;  %v2697_v17 = vld [vmem:[#allocation4 + $0x644] ss:$16 sps:$4 sm:$0xff]   ;;  %v2695_v19 = vld [vmem:[#allocation4 + $0x640] ss:$16 sps:$4 sm:$0xff]   ;;  %v295_v38 = vld [vmem:[%s3275_s26 + $0x28] sm:$0xff] }
  0x8f   : > { %1832 = vmatpush1.bf16.msra.mxu1 %v2643_v39  ;;  %1792 = vmatprep.subr.bf16.mxu0 %v2644_v40  ;;  %v2700_v20 = vld [vmem:[#allocation4 + $0x464] ss:$16 sps:$4 sm:$0xff]   ;;  %v2698_v22 = vld [vmem:[#allocation4 + $0x460] ss:$16 sps:$4 sm:$0xff]   ;;  %v3307_v40 = vpack.c.bf16 %v295_v38, %v295_v38  ;;  %v2800_v38 = vld [vmem:[#allocation4 + $0x108] ss:$16 sps:$4 sm:$0xff]  }
  0x90   : > { %1833 = vmatprep.subr.bf16.mxu1 %v2646_v41  ;;  %v2703_v21 = vld [vmem:[#allocation4 + $0x664] ss:$16 sps:$4 sm:$0xff]   ;;  %v2701_v23 = vld [vmem:[#allocation4 + $0x660] ss:$16 sps:$4 sm:$0xff]  }
  0x91   : > { %v2706_v25 = vld [vmem:[#allocation4 + $0x484] ss:$16 sps:$4 sm:$0xff]   ;;  %v2704_v28 = vld [vmem:[#allocation4 + $0x480] ss:$16 sps:$4 sm:$0xff]  }
  0x92   : > { %1793 = vmatpush1.bf16.msra.mxu0 %v2648_v42  ;;  %v2709_v26 = vld [vmem:[#allocation4 + $0x684] ss:$16 sps:$4 sm:$0xff]   ;;  %v2707_v29 = vld [vmem:[#allocation4 + $0x680] ss:$16 sps:$4 sm:$0xff]  }
  0x93   : > { %1834 = vmatpush1.bf16.msra.mxu1 %v2649_v43  ;;  %1794 = vmatprep.subr.bf16.mxu0 %v2650_v44  ;;  %v2712_v30 = vld [vmem:[#allocation4 + $0x4a4] ss:$16 sps:$4 sm:$0xff]   ;;  %v2710_v32 = vld [vmem:[#allocation4 + $0x4a0] ss:$16 sps:$4 sm:$0xff]  }
  0x94   : > { %1835 = vmatprep.subr.bf16.mxu1 %v2652_v45  ;;  %v2715_v31 = vld [vmem:[#allocation4 + $0x6a4] ss:$16 sps:$4 sm:$0xff]   ;;  %v2713_v33 = vld [vmem:[#allocation4 + $0x6a0] ss:$16 sps:$4 sm:$0xff]  }
  0x95   : > { %v2718_v34 = vld [vmem:[#allocation4 + $0x4c4] ss:$16 sps:$4 sm:$0xff]   ;;  %v2716_v36 = vld [vmem:[#allocation4 + $0x4c0] ss:$16 sps:$4 sm:$0xff]  }
  0x96   : > { %1795 = vmatpush1.bf16.msra.mxu0 %v2654_v47  ;;  %v2721_v35 = vld [vmem:[#allocation4 + $0x6c4] ss:$16 sps:$4 sm:$0xff]   ;;  %v2719_v37 = vld [vmem:[#allocation4 + $0x6c0] ss:$16 sps:$4 sm:$0xff]  }
  0x97   : > { %1836 = vmatpush1.bf16.msra.mxu1 %v2655_v48  ;;  %1796 = vmatprep.subr.bf16.mxu0 %v2656_v51  ;;  %v2724_v39 = vld [vmem:[#allocation4 + $0x4e4] ss:$16 sps:$4 sm:$0xff]   ;;  %v2722_v42 = vld [vmem:[#allocation4 + $0x4e0] ss:$16 sps:$4 sm:$0xff]  }
  0x98   : > { %1837 = vmatprep.subr.bf16.mxu1 %v2658_v53  ;;  %v2727_v41 = vld [vmem:[#allocation4 + $0x6e4] ss:$16 sps:$4 sm:$0xff]   ;;  %v2725_v43 = vld [vmem:[#allocation4 + $0x6e0] ss:$16 sps:$4 sm:$0xff]  }
  0x99   : > { %v2730_v44 = vld [vmem:[#allocation4 + $0x504] ss:$16 sps:$4 sm:$0xff]   ;;  %v2728_v46 = vld [vmem:[#allocation4 + $0x500] ss:$16 sps:$4 sm:$0xff]  }
  0x9a   : > { %1797 = vmatpush1.bf16.msra.mxu0 %v2660_v54  ;;  %v2733_v45 = vld [vmem:[#allocation4 + $0x704] ss:$16 sps:$4 sm:$0xff]   ;;  %v2731_v47 = vld [vmem:[#allocation4 + $0x700] ss:$16 sps:$4 sm:$0xff]  }
  0x9b   : > { %1838 = vmatpush1.bf16.msra.mxu1 %v2661_v55  ;;  %1798 = vmatprep.subr.bf16.mxu0 %v2662_v56  ;;  %v2736_v48 = vld [vmem:[#allocation4 + $0x524] ss:$16 sps:$4 sm:$0xff]   ;;  %v2734_v51 = vld [vmem:[#allocation4 + $0x520] ss:$16 sps:$4 sm:$0xff]  }
  0x9c   : > { %1839 = vmatprep.subr.bf16.mxu1 %v2664_v57  ;;  %v2739_v50 = vld [vmem:[#allocation4 + $0x724] ss:$16 sps:$4 sm:$0xff]   ;;  %v2737_v53 = vld [vmem:[#allocation4 + $0x720] ss:$16 sps:$4 sm:$0xff]  }
  0x9d   : > { %v2742_v54 = vld [vmem:[#allocation4 + $0x544] ss:$16 sps:$4 sm:$0xff]   ;;  %v2740_v56 = vld [vmem:[#allocation4 + $0x540] ss:$16 sps:$4 sm:$0xff]  }
  0x9e   : > { %1799 = vmatpush1.bf16.msra.mxu0 %v2666_v58  ;;  %v2745_v55 = vld [vmem:[#allocation4 + $0x744] ss:$16 sps:$4 sm:$0xff]   ;;  %v2743_v57 = vld [vmem:[#allocation4 + $0x740] ss:$16 sps:$4 sm:$0xff]  }
  0x9f   : > { %1840 = vmatpush1.bf16.msra.mxu1 %v2667_v59  ;;  %1800 = vmatprep.subr.bf16.mxu0 %v2668_v60  ;;  %v2748_v58 = vld [vmem:[#allocation4 + $0x564] ss:$16 sps:$4 sm:$0xff]   ;;  %v2746_v60 = vld [vmem:[#allocation4 + $0x560] ss:$16 sps:$4 sm:$0xff]  }
  0xa0   : > { %1841 = vmatprep.subr.bf16.mxu1 %v2670_v61  ;;  %v2751_v59 = vld [vmem:[#allocation4 + $0x764] ss:$16 sps:$4 sm:$0xff]   ;;  %v2749_v61 = vld [vmem:[#allocation4 + $0x760] ss:$16 sps:$4 sm:$0xff]  }
  0xa1   : > { %v2760_v4 = vld [vmem:[#allocation4 + $0x5a4] ss:$16 sps:$4 sm:$0xff]  }
  0xa2   : > { %1801 = vmatpush1.bf16.msra.mxu0 %v2672_v62  ;;  %v2754_v62 = vld [vmem:[#allocation4 + $0x584] ss:$16 sps:$4 sm:$0xff]  }
  0xa3   : > { %1842 = vmatpush1.bf16.msra.mxu1 %v2673_v63  ;;  %1802 = vmatprep.subr.bf16.mxu0 %v2674_v0  ;;  %v296_v63 = vld [vmem:[%s3275_s26 + $0x30] sm:$0xff]  ;;  %v2757_v0 = vld [vmem:[#allocation4 + $0xc] ss:$16 sps:$4 sm:$0xff]  }
  0xa4   : > { %1843 = vmatprep.subr.bf16.mxu1 %v2676_v1  ;;  %v2752_v1 = vld [vmem:[#allocation4 + $0x580] ss:$16 sps:$4 sm:$0xff]  }
  0xa6   : > { %1803 = vmatpush1.bf16.msra.mxu0 %v2678_v2  ;;  %v3311_v2 = vpack.c.bf16 %v296_v63, %v296_v63  ;;  %v2841_v63 = vld [vmem:[#allocation4 + $0x34c] ss:$16 sps:$4 sm:$0xff]  }
  0xa7   : > { %1844 = vmatpush1.bf16.msra.mxu1 %v2679_v3  ;;  %1854 = vmatprep.subr.bf16.mxu0 %v2682_v6  ;;  %v2755_v3 = vld [vmem:[#allocation4 + $0x8] ss:$16 sps:$4 sm:$0xff]   ;;  %v2758_v6 = vld [vmem:[#allocation4 + $0x5a0] ss:$16 sps:$4 sm:$0xff]  }
  0xa8   : > { %1895 = vmatprep.subr.bf16.mxu1 %v2685_v7  ;;  %v2761_v7 = vld [vmem:[#allocation4 + $0x28] ss:$16 sps:$4 sm:$0xff]  }
  0xa9   : > { %1805 = vmatmul.mubr.bf16.vlgmr.msra.gmra.mrb[0].mxu0 %v3295_v8 }
  0xaa   : > { %1846 = vmatmul.mubr.bf16.vlgmr.msra.gmra.mrb[0].mxu1 %v3297_v9  ;;  %1855 = vmatpush1.bf16.msra.mxu0 %v2680_v10  ;;  %v2766_v10 = vld [vmem:[#allocation4 + $0x5c4] ss:$16 sps:$4 sm:$0xff]  }
  0xab   : > { %1896 = vmatpush1.bf16.msra.mxu1 %v2683_v11  ;;  %1856 = vmatprep.subr.bf16.mxu0 %v2688_v12  ;;  %v2769_v11 = vld [vmem:[#allocation4 + $0x4c] ss:$16 sps:$4 sm:$0xff]   ;;  %v2764_v12 = vld [vmem:[#allocation4 + $0x5c0] ss:$16 sps:$4 sm:$0xff]  }
  0xac   : > { %1897 = vmatprep.subr.bf16.mxu1 %v2691_v13  ;;  %2500 = vmatprep.mubr.msk.bf16.mxu1 %vm1768_vm0, %v3302_v27  ;;  %v2767_v13 = vld [vmem:[#allocation4 + $0x48] ss:$16 sps:$4 sm:$0xff]  }
  0xad   : > { %1886 = vmatprep.mubr.bf16.mxu0 %v3307_v40 }
  0xae   : > { %1857 = vmatpush1.bf16.msra.mxu0 %v2686_v14  ;;  %v2772_v14 = vld [vmem:[#allocation4 + $0x5e4] ss:$16 sps:$4 sm:$0xff]  }
  0xaf   : > { %1898 = vmatpush1.bf16.msra.mxu1 %v2689_v15  ;;  %1858 = vmatprep.subr.bf16.mxu0 %v2694_v16  ;;  %v2775_v15 = vld [vmem:[#allocation4 + $0x6c] ss:$16 sps:$4 sm:$0xff]   ;;  %v2770_v16 = vld [vmem:[#allocation4 + $0x5e0] ss:$16 sps:$4 sm:$0xff]  }
  0xb0   : > { %1899 = vmatprep.subr.bf16.mxu1 %v2697_v17  ;;  %v2773_v17 = vld [vmem:[#allocation4 + $0x68] ss:$16 sps:$4 sm:$0xff]  }
  0xb2   : > { %1859 = vmatpush1.bf16.msra.mxu0 %v2692_v18  ;;  %v294_v18 = vld [vmem:[%s3275_s26 + $0x20] sm:$0xff] }
  0xb3   : > { %1900 = vmatpush1.bf16.msra.mxu1 %v2695_v19  ;;  %1860 = vmatprep.subr.bf16.mxu0 %v2700_v20  ;;  %v2778_v19 = vld [vmem:[#allocation4 + $0x8c] ss:$16 sps:$4 sm:$0xff]  }
  0xb4   : > { %1901 = vmatprep.subr.bf16.mxu1 %v2703_v21  ;;  %v2781_v20 = vld [vmem:[#allocation4 + $0x20c] ss:$16 sps:$4 sm:$0xff]   ;;  %v3316_v21 = vpack.c.bf16 %v294_v18, %v294_v18 }
  0xb5   : > { %v2865_v18 = vld [vmem:[#allocation4 + $0x44c] ss:$16 sps:$4 sm:$0xff]  }
  0xb6   : > { %1861 = vmatpush1.bf16.msra.mxu0 %v2698_v22  ;;  %v2779_v22 = vld [vmem:[#allocation4 + $0x208] ss:$16 sps:$4 sm:$0xff]  }
  0xb7   : > { %1902 = vmatpush1.bf16.msra.mxu1 %v2701_v23  ;;  %1862 = vmatprep.subr.bf16.mxu0 %v2706_v25  ;;  %v2784_v23 = vld [vmem:[#allocation4 + $0xac] ss:$16 sps:$4 sm:$0xff]   ;;  %v2782_v25 = vld [vmem:[#allocation4 + $0xa8] ss:$16 sps:$4 sm:$0xff]  }
  0xb8   : > { %1903 = vmatprep.subr.bf16.mxu1 %v2709_v26  ;;  %v2785_v26 = vld [vmem:[#allocation4 + $0x228] ss:$16 sps:$4 sm:$0xff]  }
  0xba   : > { %1863 = vmatpush1.bf16.msra.mxu0 %v2704_v28  ;;  %v2790_v28 = vld [vmem:[#allocation4 + $0xcc] ss:$16 sps:$4 sm:$0xff]  }
  0xbb   : > { %1904 = vmatpush1.bf16.msra.mxu1 %v2707_v29  ;;  %1864 = vmatprep.subr.bf16.mxu0 %v2712_v30  ;;  %v2793_v29 = vld [vmem:[#allocation4 + $0x24c] ss:$16 sps:$4 sm:$0xff]   ;;  %v2788_v30 = vld [vmem:[#allocation4 + $0xc8] ss:$16 sps:$4 sm:$0xff]  }
  0xbc   : > { %1905 = vmatprep.subr.bf16.mxu1 %v2715_v31  ;;  %v2791_v31 = vld [vmem:[#allocation4 + $0x248] ss:$16 sps:$4 sm:$0xff]  }
  0xbe   : > { %1865 = vmatpush1.bf16.msra.mxu0 %v2710_v32  ;;  %v2796_v32 = vld [vmem:[#allocation4 + $0xec] ss:$16 sps:$4 sm:$0xff]  }
  0xbf   : > { %1906 = vmatpush1.bf16.msra.mxu1 %v2713_v33  ;;  %1866 = vmatprep.subr.bf16.mxu0 %v2718_v34  ;;  %v2799_v33 = vld [vmem:[#allocation4 + $0x26c] ss:$16 sps:$4 sm:$0xff]   ;;  %v2794_v34 = vld [vmem:[#allocation4 + $0xe8] ss:$16 sps:$4 sm:$0xff]  }
  0xc0   : > { %1907 = vmatprep.subr.bf16.mxu1 %v2721_v35  ;;  %v2797_v35 = vld [vmem:[#allocation4 + $0x268] ss:$16 sps:$4 sm:$0xff]  }
  0xc2   : > { %1867 = vmatpush1.bf16.msra.mxu0 %v2716_v36  ;;  %v2802_v36 = vld [vmem:[#allocation4 + $0x10c] ss:$16 sps:$4 sm:$0xff]  }
  0xc3   : > { %1908 = vmatpush1.bf16.msra.mxu1 %v2719_v37  ;;  %1868 = vmatprep.subr.bf16.mxu0 %v2724_v39  ;;  %v2805_v37 = vld [vmem:[#allocation4 + $0x28c] ss:$16 sps:$4 sm:$0xff]   ;;  %v2803_v39 = vld [vmem:[#allocation4 + $0x288] ss:$16 sps:$4 sm:$0xff]  }
  0xc4   : > { %1909 = vmatprep.subr.bf16.mxu1 %v2727_v41  ;;  %v2811_v41 = vld [vmem:[#allocation4 + $0x2ac] ss:$16 sps:$4 sm:$0xff]  }
  0xc6   : > { %1869 = vmatpush1.bf16.msra.mxu0 %v2722_v42  ;;  %v2806_v42 = vld [vmem:[#allocation4 + $0x128] ss:$16 sps:$4 sm:$0xff]  }
  0xc7   : > { %1910 = vmatpush1.bf16.msra.mxu1 %v2725_v43  ;;  %1870 = vmatprep.subr.bf16.mxu0 %v2730_v44  ;;  %v2809_v43 = vld [vmem:[#allocation4 + $0x2a8] ss:$16 sps:$4 sm:$0xff]   ;;  %v2814_v44 = vld [vmem:[#allocation4 + $0x14c] ss:$16 sps:$4 sm:$0xff]  }
  0xc8   : > { %1911 = vmatprep.subr.bf16.mxu1 %v2733_v45  ;;  %v2817_v45 = vld [vmem:[#allocation4 + $0x2cc] ss:$16 sps:$4 sm:$0xff]  }
  0xca   : > { %1871 = vmatpush1.bf16.msra.mxu0 %v2728_v46  ;;  %v2812_v46 = vld [vmem:[#allocation4 + $0x148] ss:$16 sps:$4 sm:$0xff]  }
  0xcb   : > { %1912 = vmatpush1.bf16.msra.mxu1 %v2731_v47  ;;  %1872 = vmatprep.subr.bf16.mxu0 %v2736_v48  ;;  %v2815_v47 = vld [vmem:[#allocation4 + $0x2c8] ss:$16 sps:$4 sm:$0xff]   ;;  %v2820_v48 = vld [vmem:[#allocation4 + $0x16c] ss:$16 sps:$4 sm:$0xff]  }
  0xcc   : > { %1913 = vmatprep.subr.bf16.mxu1 %v2739_v50  ;;  %v2823_v50 = vld [vmem:[#allocation4 + $0x2ec] ss:$16 sps:$4 sm:$0xff]  }
  0xce   : > { %1873 = vmatpush1.bf16.msra.mxu0 %v2734_v51  ;;  %v2818_v51 = vld [vmem:[#allocation4 + $0x168] ss:$16 sps:$4 sm:$0xff]  }
  0xcf   : > { %1914 = vmatpush1.bf16.msra.mxu1 %v2737_v53  ;;  %1874 = vmatprep.subr.bf16.mxu0 %v2742_v54  ;;  %v2821_v53 = vld [vmem:[#allocation4 + $0x2e8] ss:$16 sps:$4 sm:$0xff]   ;;  %v2826_v54 = vld [vmem:[#allocation4 + $0x18c] ss:$16 sps:$4 sm:$0xff]  }
  0xd0   : > { %1915 = vmatprep.subr.bf16.mxu1 %v2745_v55  ;;  %v2829_v55 = vld [vmem:[#allocation4 + $0x30c] ss:$16 sps:$4 sm:$0xff]  }
  0xd2   : > { %1875 = vmatpush1.bf16.msra.mxu0 %v2740_v56  ;;  %v2824_v56 = vld [vmem:[#allocation4 + $0x188] ss:$16 sps:$4 sm:$0xff]  }
  0xd3   : > { %1916 = vmatpush1.bf16.msra.mxu1 %v2743_v57  ;;  %1876 = vmatprep.subr.bf16.mxu0 %v2748_v58  ;;  %v2827_v57 = vld [vmem:[#allocation4 + $0x308] ss:$16 sps:$4 sm:$0xff]   ;;  %v2832_v58 = vld [vmem:[#allocation4 + $0x1ac] ss:$16 sps:$4 sm:$0xff]  }
  0xd4   : > { %1917 = vmatprep.subr.bf16.mxu1 %v2751_v59  ;;  %v2835_v59 = vld [vmem:[#allocation4 + $0x32c] ss:$16 sps:$4 sm:$0xff]  }
  0xd6   : > { %1877 = vmatpush1.bf16.msra.mxu0 %v2746_v60  ;;  %v2830_v60 = vld [vmem:[#allocation4 + $0x1a8] ss:$16 sps:$4 sm:$0xff]  }
  0xd7   : > { %1918 = vmatpush1.bf16.msra.mxu1 %v2749_v61  ;;  %1878 = vmatprep.subr.bf16.mxu0 %v2754_v62  ;;  %v2833_v61 = vld [vmem:[#allocation4 + $0x328] ss:$16 sps:$4 sm:$0xff]   ;;  %v2838_v62 = vld [vmem:[#allocation4 + $0x1cc] ss:$16 sps:$4 sm:$0xff]  }
  0xd8   : > { %1936 = vmatprep.subr.bf16.mxu1 %v2757_v0  ;;  %v2836_v0 = vld [vmem:[#allocation4 + $0x1c8] ss:$16 sps:$4 sm:$0xff]  }
  0xda   : > { %1928 = vmatmul.mubr.bf16.vlgmr.msra.gmra.mrb[4].mxu1 %v3311_v2  ;;  %1879 = vmatpush1.bf16.msra.mxu0 %v2752_v1  ;;  %v2839_v1 = vld [vmem:[#allocation4 + $0x348] ss:$16 sps:$4 sm:$0xff]  }
  0xdb   : > { %1937 = vmatpush1.bf16.msra.mxu1 %v2755_v3  ;;  %1880 = vmatprep.subr.bf16.mxu0 %v2760_v4  ;;  %v2844_v3 = vld [vmem:[#allocation4 + $0x1ec] ss:$16 sps:$4 sm:$0xff]  }
  0xdc   : > { %1938 = vmatprep.subr.bf16.mxu1 %v2763_v5  ;;  %1968 = vmatprep.mubr.bf16.mxu1 %v3286_v49  ;;  %v2776_v49 = vld [vmem:[#allocation4 + $0x88] ss:$16 sps:$4 sm:$0xff]   ;;  %v2847_v4 = vld [vmem:[#allocation4 + $0x36c] ss:$16 sps:$4 sm:$0xff]  }
  0xdd   : > { %v2842_v5 = vld [vmem:[#allocation4 + $0x1e8] ss:$16 sps:$4 sm:$0xff]  }
  0xde   : > { %1881 = vmatpush1.bf16.msra.mxu0 %v2758_v6  ;;  %v2845_v6 = vld [vmem:[#allocation4 + $0x368] ss:$16 sps:$4 sm:$0xff]  }
  0xdf   : > { %1939 = vmatpush1.bf16.msra.mxu1 %v2761_v7  ;;  %1882 = vmatprep.subr.bf16.mxu0 %v2766_v10  ;;  %v2850_v7 = vld [vmem:[#allocation4 + $0x38c] ss:$16 sps:$4 sm:$0xff]  }
  0xe0   : > { %1940 = vmatprep.subr.bf16.mxu1 %v2769_v11  ;;  %v2853_v10 = vld [vmem:[#allocation4 + $0x40c] ss:$16 sps:$4 sm:$0xff]   ;;  %v2848_v11 = vld [vmem:[#allocation4 + $0x388] ss:$16 sps:$4 sm:$0xff]  }
  0xe2   : > { %1883 = vmatpush1.bf16.msra.mxu0 %v2764_v12  ;;  %v2851_v12 = vld [vmem:[#allocation4 + $0x408] ss:$16 sps:$4 sm:$0xff]  }
  0xe3   : > { %1941 = vmatpush1.bf16.msra.mxu1 %v2767_v13  ;;  %1884 = vmatprep.subr.bf16.mxu0 %v2772_v14  ;;  %v2856_v13 = vld [vmem:[#allocation4 + $0x3ac] ss:$16 sps:$4 sm:$0xff]  }
  0xe4   : > { %1942 = vmatprep.subr.bf16.mxu1 %v2775_v15  ;;  %v2859_v14 = vld [vmem:[#allocation4 + $0x42c] ss:$16 sps:$4 sm:$0xff]   ;;  %v2854_v15 = vld [vmem:[#allocation4 + $0x3a8] ss:$16 sps:$4 sm:$0xff]  }
  0xe6   : > { %1885 = vmatpush1.bf16.msra.mxu0 %v2770_v16  ;;  %v2857_v16 = vld [vmem:[#allocation4 + $0x428] ss:$16 sps:$4 sm:$0xff]  }
  0xe7   : > { %1943 = vmatpush1.bf16.msra.mxu1 %v2773_v17  ;;  %1977 = vmatprep.subr.bf16.mxu0 %v2781_v20  ;;  %v2862_v17 = vld [vmem:[#allocation4 + $0x3cc] ss:$16 sps:$4 sm:$0xff]   ;;  %v2863_v20 = vld [vmem:[#allocation4 + $0x448] ss:$16 sps:$4 sm:$0xff]  }
  0xe8   : > { %1944 = vmatprep.subr.bf16.mxu1 %v2778_v19  ;;  %v2860_v19 = vld [vmem:[#allocation4 + $0x3c8] ss:$16 sps:$4 sm:$0xff]  }
  0xe9   : > { %1887 = vmatmul.mubr.bf16.vlgmr.msra.gmra.mrb[4].mxu0 %v3316_v21 }
  0xea   : > { %1978 = vmatpush1.bf16.msra.mxu0 %v2779_v22  ;;  %2009 = vmatprep.mubr.bf16.mxu0 %v3289_v52  ;;  %v2808_v52 = vld [vmem:[#allocation4 + $0x12c] ss:$16 sps:$4 sm:$0xff]  }
  0xeb   : > { %1945 = vmatpush1.bf16.msra.mxu1 %v2776_v49  ;;  %1979 = vmatprep.subr.bf16.mxu0 %v2787_v24  ;;  %v2868_v49 = vld [vmem:[#allocation4 + $0x3ec] ss:$16 sps:$4 sm:$0xff]  }
  0xec   : > { %1946 = vmatprep.subr.bf16.mxu1 %v2784_v23  ;;  %v2871_v22 = vld [vmem:[#allocation4 + $0x46c] ss:$16 sps:$4 sm:$0xff]   ;;  %v2869_v23 = vld [vmem:[#allocation4 + $0x468] ss:$16 sps:$4 sm:$0xff]  }
  0xed   : > { %v2874_v24 = vld [vmem:[#allocation4 + $0x48c] ss:$16 sps:$4 sm:$0xff]  }
  0xee   : > { %1980 = vmatpush1.bf16.msra.mxu0 %v2785_v26  ;;  %v2872_v26 = vld [vmem:[#allocation4 + $0x488] ss:$16 sps:$4 sm:$0xff]  }
  0xef   : > { %1947 = vmatpush1.bf16.msra.mxu1 %v2782_v25  ;;  %1981 = vmatprep.subr.bf16.mxu0 %v2793_v29  ;;  %v2877_v25 = vld [vmem:[#allocation4 + $0x60c] ss:$16 sps:$4 sm:$0xff]  }
  0xf0   : > { %1948 = vmatprep.subr.bf16.mxu1 %v2790_v28  ;;  %v2880_v28 = vld [vmem:[#allocation4 + $0x4ac] ss:$16 sps:$4 sm:$0xff]  }
  0xf1   : > { %v2883_v29 = vld [vmem:[#allocation4 + $0x62c] ss:$16 sps:$4 sm:$0xff]  }
  0xf2   : > { %1982 = vmatpush1.bf16.msra.mxu0 %v2791_v31  ;;  %v2881_v31 = vld [vmem:[#allocation4 + $0x628] ss:$16 sps:$4 sm:$0xff]  }
  0xf3   : > { %1949 = vmatpush1.bf16.msra.mxu1 %v2788_v30  ;;  %1983 = vmatprep.subr.bf16.mxu0 %v2799_v33  ;;  %v2878_v30 = vld [vmem:[#allocation4 + $0x4a8] ss:$16 sps:$4 sm:$0xff]   ;;  %v2889_v33 = vld [vmem:[#allocation4 + $0x64c] ss:$16 sps:$4 sm:$0xff]  }
  0xf4   : > { %1950 = vmatprep.subr.bf16.mxu1 %v2796_v32  ;;  %v2886_v32 = vld [vmem:[#allocation4 + $0x4cc] ss:$16 sps:$4 sm:$0xff]  }
  0xf6   : > { %1984 = vmatpush1.bf16.msra.mxu0 %v2797_v35  ;;  %v2887_v35 = vld [vmem:[#allocation4 + $0x648] ss:$16 sps:$4 sm:$0xff]  }
  0xf7   : > { %1951 = vmatpush1.bf16.msra.mxu1 %v2794_v34  ;;  %1985 = vmatprep.subr.bf16.mxu0 %v2805_v37  ;;  %v2884_v34 = vld [vmem:[#allocation4 + $0x4c8] ss:$16 sps:$4 sm:$0xff]   ;;  %v2895_v37 = vld [vmem:[#allocation4 + $0x66c] ss:$16 sps:$4 sm:$0xff]  }
  0xf8   : > { %1952 = vmatprep.subr.bf16.mxu1 %v2802_v36  ;;  %v2892_v36 = vld [vmem:[#allocation4 + $0x4ec] ss:$16 sps:$4 sm:$0xff]  }
  0xfa   : > { %1986 = vmatpush1.bf16.msra.mxu0 %v2803_v39  ;;  %v2898_v39 = vld [vmem:[#allocation4 + $0x50c] ss:$16 sps:$4 sm:$0xff]  }
  0xfb   : > { %1953 = vmatpush1.bf16.msra.mxu1 %v2800_v38  ;;  %1987 = vmatprep.subr.bf16.mxu0 %v2811_v41  ;;  %v2893_v38 = vld [vmem:[#allocation4 + $0x668] ss:$16 sps:$4 sm:$0xff]  }
  0xfc   : > { %1954 = vmatprep.subr.bf16.mxu1 %v2808_v52  ;;  %v2901_v52 = vld [vmem:[#allocation4 + $0x68c] ss:$16 sps:$4 sm:$0xff]   ;;  %v2896_v41 = vld [vmem:[#allocation4 + $0x508] ss:$16 sps:$4 sm:$0xff]  }
  0xfe   : > { %1988 = vmatpush1.bf16.msra.mxu0 %v2809_v43  ;;  %v2907_v43 = vld [vmem:[#allocation4 + $0x6ac] ss:$16 sps:$4 sm:$0xff]  }
  0xff   : > { %1955 = vmatpush1.bf16.msra.mxu1 %v2806_v42  ;;  %1989 = vmatprep.subr.bf16.mxu0 %v2817_v45  ;;  %v2904_v42 = vld [vmem:[#allocation4 + $0x52c] ss:$16 sps:$4 sm:$0xff]   ;;  %v2905_v45 = vld [vmem:[#allocation4 + $0x6a8] ss:$16 sps:$4 sm:$0xff]  }
 0x100   : > { %1956 = vmatprep.subr.bf16.mxu1 %v2814_v44  ;;  %v2902_v44 = vld [vmem:[#allocation4 + $0x528] ss:$16 sps:$4 sm:$0xff]  }
 0x102   : > { %1990 = vmatpush1.bf16.msra.mxu0 %v2815_v47  ;;  %v2913_v47 = vld [vmem:[#allocation4 + $0x6cc] ss:$16 sps:$4 sm:$0xff]  }
 0x103   : > { %1957 = vmatpush1.bf16.msra.mxu1 %v2812_v46  ;;  %1991 = vmatprep.subr.bf16.mxu0 %v2823_v50  ;;  %v2910_v46 = vld [vmem:[#allocation4 + $0x54c] ss:$16 sps:$4 sm:$0xff]   ;;  %v2911_v50 = vld [vmem:[#allocation4 + $0x6c8] ss:$16 sps:$4 sm:$0xff]  }
 0x104   : > { %1958 = vmatprep.subr.bf16.mxu1 %v2820_v48  ;;  %v2908_v48 = vld [vmem:[#allocation4 + $0x548] ss:$16 sps:$4 sm:$0xff]  }
 0x106   : > { %1992 = vmatpush1.bf16.msra.mxu0 %v2821_v53  ;;  %v2919_v53 = vld [vmem:[#allocation4 + $0x6ec] ss:$16 sps:$4 sm:$0xff]  }
 0x107   : > { %1959 = vmatpush1.bf16.msra.mxu1 %v2818_v51  ;;  %1993 = vmatprep.subr.bf16.mxu0 %v2829_v55  ;;  %v2916_v51 = vld [vmem:[#allocation4 + $0x56c] ss:$16 sps:$4 sm:$0xff]   ;;  %v2917_v55 = vld [vmem:[#allocation4 + $0x6e8] ss:$16 sps:$4 sm:$0xff]  }
 0x108   : > { %1960 = vmatprep.subr.bf16.mxu1 %v2826_v54  ;;  %v2914_v54 = vld [vmem:[#allocation4 + $0x568] ss:$16 sps:$4 sm:$0xff]  }
 0x10a   : > { %1994 = vmatpush1.bf16.msra.mxu0 %v2827_v57  ;;  %v2925_v57 = vld [vmem:[#allocation4 + $0x70c] ss:$16 sps:$4 sm:$0xff]  }
 0x10b   : > { %1961 = vmatpush1.bf16.msra.mxu1 %v2824_v56  ;;  %1995 = vmatprep.subr.bf16.mxu0 %v2835_v59  ;;  %v2922_v56 = vld [vmem:[#allocation4 + $0x58c] ss:$16 sps:$4 sm:$0xff]   ;;  %v2923_v59 = vld [vmem:[#allocation4 + $0x708] ss:$16 sps:$4 sm:$0xff]  }
 0x10c   : > { %1962 = vmatprep.subr.bf16.mxu1 %v2832_v58  ;;  %v2920_v58 = vld [vmem:[#allocation4 + $0x588] ss:$16 sps:$4 sm:$0xff]  }
 0x10e   : > { %1996 = vmatpush1.bf16.msra.mxu0 %v2833_v61  ;;  %v2931_v61 = vld [vmem:[#allocation4 + $0x72c] ss:$16 sps:$4 sm:$0xff]  }
 0x10f   : > { %1963 = vmatpush1.bf16.msra.mxu1 %v2830_v60  ;;  %1997 = vmatprep.subr.bf16.mxu0 %v2841_v63  ;;  %v2928_v60 = vld [vmem:[#allocation4 + $0x5ac] ss:$16 sps:$4 sm:$0xff]   ;;  %v2929_v63 = vld [vmem:[#allocation4 + $0x728] ss:$16 sps:$4 sm:$0xff]  }
 0x110   : > { %1964 = vmatprep.subr.bf16.mxu1 %v2838_v62  ;;  %v2926_v62 = vld [vmem:[#allocation4 + $0x5a8] ss:$16 sps:$4 sm:$0xff]  }
 0x112   : > { %1998 = vmatpush1.bf16.msra.mxu0 %v2839_v1  ;;  %v2937_v1 = vld [vmem:[#allocation4 + $0x74c] ss:$16 sps:$4 sm:$0xff]  }
 0x113   : > { %1965 = vmatpush1.bf16.msra.mxu1 %v2836_v0  ;;  %1999 = vmatprep.subr.bf16.mxu0 %v2847_v4  ;;  %v2934_v0 = vld [vmem:[#allocation4 + $0x5cc] ss:$16 sps:$4 sm:$0xff]   ;;  %v2935_v4 = vld [vmem:[#allocation4 + $0x748] ss:$16 sps:$4 sm:$0xff]  }
 0x114   : > { %1966 = vmatprep.subr.bf16.mxu1 %v2844_v3  ;;  %v2932_v3 = vld [vmem:[#allocation4 + $0x5c8] ss:$16 sps:$4 sm:$0xff]  }
 0x116   : > { %2000 = vmatpush1.bf16.msra.mxu0 %v2845_v6  ;;  %v2943_v6 = vld [vmem:[#allocation4 + $0x76c] ss:$16 sps:$4 sm:$0xff]  }
 0x117   : > { %1967 = vmatpush1.bf16.msra.mxu1 %v2842_v5  ;;  %2001 = vmatprep.subr.bf16.mxu0 %v2850_v7  ;;  %v2940_v5 = vld [vmem:[#allocation4 + $0x5ec] ss:$16 sps:$4 sm:$0xff]   ;;  %v2938_v7 = vld [vmem:[#allocation4 + $0x5e8] ss:$16 sps:$4 sm:$0xff]  }
 0x118   : > { %2018 = vmatprep.subr.bf16.mxu1 %v2853_v10  ;;  %v2941_v10 = vld [vmem:[#allocation4 + $0x768] ss:$16 sps:$4 sm:$0xff]  }
 0x11a   : > { %1969 = vmatmul.mubr.bf16.vlgmr.msra.gmra.mrb[8].mxu1 %v3295_v8  ;;  %2002 = vmatpush1.bf16.msra.mxu0 %v2848_v11  ;;  %v2866_v8 = vld [vmem:[#allocation4 + $0x3e8] ss:$16 sps:$4 sm:$0xff]   ;;  %v548_v11 = vlaneseq }
 0x11b   : > { %2019 = vmatpush1.bf16.msra.mxu1 %v2851_v12  ;;  %2003 = vmatprep.subr.bf16.mxu0 %v2856_v13 }
 0x11c   : > { %2020 = vmatprep.subr.bf16.mxu1 %v2859_v14  ;;  %2050 = vmatprep.mubr.bf16.mxu1 %v3307_v40  ;;  %v2875_v40 = vld [vmem:[#allocation4 + $0x608] ss:$16 sps:$4 sm:$0xff]   ;;  %v549_v12 = vshrl.u32 %v548_v11, 7  ;;  %v546_v14 = vld [vmem:[#allocation6] sm:$0xf] }
 0x11e   : > { %2004 = vmatpush1.bf16.msra.mxu0 %v2854_v15  ;;  %v550_v13 = vsub.s32 0, %v549_v12  ;;  %v554_v15 = vsub.s32 1, %v549_v12 }
 0x11f   : > { %2021 = vmatpush1.bf16.msra.mxu1 %v2857_v16  ;;  %2005 = vmatprep.subr.bf16.mxu0 %v2862_v17 }
 0x120   : > { %2022 = vmatprep.subr.bf16.mxu1 %v2865_v18  ;;  %v551_v16 = vrot.slane %v546_v14, %v550_v13  ;;  %v555_v17 = vrot.slane %v546_v14, %v554_v15 }
 0x122   : > { %2006 = vmatpush1.bf16.msra.mxu0 %v2860_v19 }
 0x123   : > { %2023 = vmatpush1.bf16.msra.mxu1 %v2863_v20  ;;  %2007 = vmatprep.subr.bf16.mxu0 %v2868_v49 }
 0x124   : > { %2024 = vmatprep.subr.bf16.mxu1 %v2871_v22 }
 0x126   : > { %2008 = vmatpush1.bf16.msra.mxu0 %v2866_v8 }
 0x127   : > { %2025 = vmatpush1.bf16.msra.mxu1 %v2869_v23  ;;  %2059 = vmatprep.subr.bf16.mxu0 %v2877_v25 }
 0x128   : > { %2026 = vmatprep.subr.bf16.mxu1 %v2874_v24 }
 0x129   : > { %2010 = vmatmul.mubr.bf16.vlgmr.msra.gmra.mrb[8].mxu0 %v3297_v9  ;;  %v2890_v9 = vld [vmem:[#allocation4 + $0x4e8] ss:$16 sps:$4 sm:$0xff]  }
 0x12a   : > { %2060 = vmatpush1.bf16.msra.mxu0 %v2875_v40  ;;  %2501 = vmatprep.mubr.msk.bf16.mxu0 %vm1768_vm0, %v3302_v27  ;;  %v2899_v27 = vld [vmem:[#allocation4 + $0x688] ss:$16 sps:$4 sm:$0xff]  }
 0x12b   : > { %2027 = vmatpush1.bf16.msra.mxu1 %v2872_v26  ;;  %2061 = vmatprep.subr.bf16.mxu0 %v2883_v29 }
 0x12c   : > { %2028 = vmatprep.subr.bf16.mxu1 %v2880_v28 }
 0x12e   : > { %2062 = vmatpush1.bf16.msra.mxu0 %v2881_v31 }
 0x12f   : > { %2029 = vmatpush1.bf16.msra.mxu1 %v2878_v30  ;;  %2063 = vmatprep.subr.bf16.mxu0 %v2889_v33 }
 0x130   : > { %2030 = vmatprep.subr.bf16.mxu1 %v2886_v32 }
 0x132   : > { %2064 = vmatpush1.bf16.msra.mxu0 %v2887_v35 }
 0x133   : > { %2031 = vmatpush1.bf16.msra.mxu1 %v2884_v34  ;;  %2065 = vmatprep.subr.bf16.mxu0 %v2895_v37  ;;  %v2100_v34 = vld [vmem:[%s3371_s3] sm:$0xff] }
 0x134   : > { %2032 = vmatprep.subr.bf16.mxu1 %v2892_v36 }
 0x136   : > { %2066 = vmatpush1.bf16.msra.mxu0 %v2893_v38 }
 0x137   : > { %2033 = vmatpush1.bf16.msra.mxu1 %v2890_v9  ;;  %2067 = vmatprep.subr.bf16.mxu0 %v2901_v52  ;;  %v2101_v9 = vld [vmem:[%s3371_s3 + $0x8] sm:$0xff] }
 0x138   : > { %2034 = vmatprep.subr.bf16.mxu1 %v2898_v39 }
 0x13a   : > { %2068 = vmatpush1.bf16.msra.mxu0 %v2899_v27 }
 0x13b   : > { %2035 = vmatpush1.bf16.msra.mxu1 %v2896_v41  ;;  %2069 = vmatprep.subr.bf16.mxu0 %v2907_v43 }
 0x13c   : > { %2036 = vmatprep.subr.bf16.mxu1 %v2904_v42 }
 0x13e   : > { %2070 = vmatpush1.bf16.msra.mxu0 %v2905_v45  ;;  %v558_v45 = vsub.s32 2, %v549_v12 }
 0x13f   : > { %2037 = vmatpush1.bf16.msra.mxu1 %v2902_v44  ;;  %2071 = vmatprep.subr.bf16.mxu0 %v2913_v47 }
 0x140   : > { %2038 = vmatprep.subr.bf16.mxu1 %v2910_v46  ;;  %v562_v46 = vsub.s32 3, %v549_v12  ;;  %v559_v47 = vrot.slane %v546_v14, %v558_v45 }
 0x142   : > { %2072 = vmatpush1.bf16.msra.mxu0 %v2911_v50 }
 0x143   : > { %2039 = vmatpush1.bf16.msra.mxu1 %v2908_v48  ;;  %2073 = vmatprep.subr.bf16.mxu0 %v2919_v53  ;;  %v563_v48 = vrot.slane %v546_v14, %v562_v46 }
 0x144   : > { %2040 = vmatprep.subr.bf16.mxu1 %v2916_v51 }
 0x146   : > { %2074 = vmatpush1.bf16.msra.mxu0 %v2917_v55 }
 0x147   : > { %2041 = vmatpush1.bf16.msra.mxu1 %v2914_v54  ;;  %2075 = vmatprep.subr.bf16.mxu0 %v2925_v57 }
 0x148   : > { %2042 = vmatprep.subr.bf16.mxu1 %v2922_v56 }
 0x14a   : > { %2076 = vmatpush1.bf16.msra.mxu0 %v2923_v59 }
 0x14b   : > { %2043 = vmatpush1.bf16.msra.mxu1 %v2920_v58  ;;  %2077 = vmatprep.subr.bf16.mxu0 %v2931_v61 }
 0x14c   : > { %2044 = vmatprep.subr.bf16.mxu1 %v2928_v60 }
 0x14e   : > { %2078 = vmatpush1.bf16.msra.mxu0 %v2929_v63 }
 0x14f   : > { %2045 = vmatpush1.bf16.msra.mxu1 %v2926_v62  ;;  %2079 = vmatprep.subr.bf16.mxu0 %v2937_v1 }
 0x150   : > { %2046 = vmatprep.subr.bf16.mxu1 %v2934_v0  ;;  %v2102_v0 = vld [vmem:[%s3371_s3 + $0x10] sm:$0xff] }
 0x152   : > { %2080 = vmatpush1.bf16.msra.mxu0 %v2935_v4 }
 0x153   : > { %2047 = vmatpush1.bf16.msra.mxu1 %v2932_v3  ;;  %2081 = vmatprep.subr.bf16.mxu0 %v2943_v6  ;;  %v2103_v6 = vld [vmem:[%s3371_s3 + $0x18] sm:$0xff] }
 0x154   : > { %2048 = vmatprep.subr.bf16.mxu1 %v2940_v5 }
 0x156   : > { %2082 = vmatpush1.bf16.msra.mxu0 %v2941_v10 }
 0x157   : > { %2049 = vmatpush1.bf16.msra.mxu1 %v2938_v7 }
 0x159   : > { %2092 = vmatmul.mubr.bf16.vlgmr.msra.gmra.mrb[12].mxu0 %v3311_v2 }
 0x15a   : > { %2051 = vmatmul.mubr.bf16.vlgmr.msra.gmra.mrb[12].mxu1 %v3316_v21 }
 0x17c   : > { %v1806_v18 = vpop.f32.mrb[0].mxu0 }
 0x17d   : > { %v1847_v19 = vpop.f32.mrb[0].mxu1  ;;  %v1807_v20 = vadd.f32 %v1806_v18, %v551_v16  ;;  %v1808_v49 = vpop.f32.mrb[1].mxu0 }
 0x17e   : > { %v1849_v22 = vpop.f32.mrb[1].mxu1  ;;  %v1809_v8 = vadd.f32 %v1808_v49, %v555_v17  ;;  %v1810_v23 = vpop.f32.mrb[2].mxu0 }
 0x17f   : > { %v1851_v24 = vpop.f32.mrb[2].mxu1  ;;  %v1848_v21 = vadd.f32 %v1847_v19, %v1807_v20  ;;  %v1811_v25 = vpop.f32.mrb[3].mxu0 }
 0x180   : > { %v1852_v2 = vpop.f32.mrb[3].mxu1  ;;  %v1850_v26 = vadd.f32 %v1849_v22, %v1809_v8 }
 0x1ad   : > { %v1929_v40 = vpop.f32.mrb[4].mxu1 }
 0x1ae   : > { %v1931_v28 = vpop.f32.mrb[5].mxu1 }
 0x1af   : > { %v1933_v29 = vpop.f32.mrb[6].mxu1 }
 0x1b0   : > { %v1934_v30 = vpop.f32.mrb[7].mxu1 }
 0x1bc   : > { %v1888_v31 = vpop.f32.mrb[4].mxu0 }
 0x1bd   : > { %v1889_v32 = vadd.f32 %v1888_v31, %v1848_v21  ;;  %v1890_v33 = vpop.f32.mrb[5].mxu0 }
 0x1be   : > { %v1891_v35 = vadd.f32 %v1890_v33, %v1850_v26  ;;  %v1892_v36 = vpop.f32.mrb[6].mxu0 }
 0x1bf   : > { %v1930_v37 = vadd.f32 %v1929_v40, %v1889_v32  ;;  %v1893_v38 = vpop.f32.mrb[7].mxu0 }
 0x1c0   : > { %v1932_v39 = vadd.f32 %v1931_v28, %v1891_v35 }
 0x1c1   : > { %v2104_v52 = vadd.f32 %v2100_v34, %v1930_v37 }
 0x1c2   : > { %v2105_v41 = vadd.f32 %v2101_v9, %v1932_v39 }
 0x1c3   : > { %2108 = vst [vmem:[%s3338_s8] sm:$0xff] %v2104_v52 }
 0x1c4   : > { %2109 = vst [vmem:[%s3338_s8 + $0x8] sm:$0xff] %v2105_v41 }
 0x1ed   : > { %v1970_v27 = vpop.f32.mrb[8].mxu1 }
 0x1ee   : > { %v1972_v42 = vpop.f32.mrb[9].mxu1  ;;  %v1971_v50 = vadd.f32 %v1970_v27, %v559_v47 }
 0x1ef   : > { %v1974_v43 = vpop.f32.mrb[10].mxu1  ;;  %v1973_v51 = vadd.f32 %v1972_v42, %v563_v48 }
 0x1f0   : > { %v1975_v44 = vpop.f32.mrb[11].mxu1 }
 0x1fc   : > { %v2011_v53 = vpop.f32.mrb[8].mxu0 }
 0x1fd   : > { %v2012_v54 = vadd.f32 %v2011_v53, %v1971_v50  ;;  %v2013_v55 = vpop.f32.mrb[9].mxu0 }
 0x1fe   : > { %v2014_v56 = vadd.f32 %v2013_v55, %v1973_v51  ;;  %v2015_v57 = vpop.f32.mrb[10].mxu0 }
 0x1ff   : > { %v2016_v58 = vpop.f32.mrb[11].mxu0 }
 0x22c   : > { %v2093_v60 = vpop.f32.mrb[12].mxu0 }
 0x22d   : > { %v2052_v59 = vpop.f32.mrb[12].mxu1  ;;  %v2095_v63 = vpop.f32.mrb[13].mxu0 }
 0x22e   : > { %v2053_v61 = vadd.f32 %v2052_v59, %v2012_v54  ;;  %v2054_v62 = vpop.f32.mrb[13].mxu1  ;;  %v2097_v4 = vpop.f32.mrb[14].mxu0 }
 0x22f   : > { %v2055_v1 = vadd.f32 %v2054_v62, %v2014_v56  ;;  %v2056_v3 = vpop.f32.mrb[14].mxu1  ;;  %v2098_v10 = vpop.f32.mrb[15].mxu0 }
 0x230   : > { %v2094_v5 = vadd.f32 %v2093_v60, %v2053_v61  ;;  %v2057_v7 = vpop.f32.mrb[15].mxu1 }
 0x231   : > { %v2096_v11 = vadd.f32 %v2095_v63, %v2055_v1 }
 0x232   : > { %v2106_v12 = vadd.f32 %v2102_v0, %v2094_v5 }
 0x233   : > { %v2107_v13 = vadd.f32 %v2103_v6, %v2096_v11 }
 0x234   : > { %2110 = vst [vmem:[%s3338_s8 + $0x10] sm:$0xff] %v2106_v12 }
 0x235   : > { %2111 = vst [vmem:[%s3338_s8 + $0x18] sm:$0xff] %v2107_v13 }
 0x236 PF: > { %s18_s20 = sadd.s32 1, %s3084_s20   ;;  %s3385_s27 = smov %s3232_s15 }
 0x237   : > { %p15_p9 = scmp.ge.s32.totalorder %s18_s20, 4   ;;  %s3386_s15 = smov %s3068_s16 }
 0x238   : > { %s3387_s16 = smov %s3072_s17  ;;  %s3388_s17 = smov %s3385_s27 }
 0x239   : > { %s3389_s18 = smov %s3080_s19  ;;  %s3390_s19 = smov %s3392_s10 }
 0x23a   :  { %17 = sbr.rel (!%p15_p9) target bundleno = 5 (0x5), region = 87 }
 0x241   :  { %2141 = vsyncpa [#allocation3], 1 }
 0x242   :  { %2143 = vsyncpa [#allocation3 + $0x1], 1 }
 0x243   :  { %2144 = vsyncpa [#allocation5], 1 }

// kernel: frozen_v2_encoder_forward.10
= control target key start
LH: loop header
LB: loop body
LE: loop exit
PB: predicated region body
PF: predicated region fallthrough
CT: control target
= control target key end

     0   :  { %s5130_s0 = inlined_call_operand.vmem [shape: f32[2,8,512], index: 0, kind: input, shape index: {}]   ;;  %s5131_s1 = inlined_call_operand.vmem [shape: f32[2,1,8], index: 1, kind: input, shape index: {}]   ;;  %s5132_s2 = inlined_call_operand.hbm [shape: bf16[512,1536], index: 2, kind: input, shape index: {}, may-alias: {2,3,4}]   ;;  %s5133_s3 = inlined_call_operand.hbm [shape: bf16[512,1536], index: 3, kind: input, shape index: {}, may-alias: {2,3,4}]   ;;  %s5134_s4 = inlined_call_operand.hbm [shape: bf16[512,1536], index: 4, kind: input, shape index: {}, may-alias: {2,3,4}]   ;;  %s5135_s5 = inlined_call_operand.vmem [shape: f32[1,1536], index: 5, kind: input, shape index: {}, may-alias: {5,6,7}]   ;;  %s5136_s6 = inlined_call_operand.vmem [shape: f32[1,1536], index: 6, kind: input, shape index: {}, may-alias: {5,6,7}]   ;;  %s5137_s7 = inlined_call_operand.vmem [shape: f32[1,1536], index: 7, kind: input, shape index: {}, may-alias: {5,6,7}]   ;;  %s5138_s8 = inlined_call_operand.hbm [shape: bf16[512,512], index: 8, kind: input, shape index: {}]   ;;  %s5139_s9 = inlined_call_operand.hbm [shape: f32[1,512], index: 9, kind: input, shape index: {}]   ;;  %s5140_s10 = inlined_call_operand.hbm [shape: f32[1,512], index: 10, kind: input, shape index: {}]   ;;  %s5141_s11 = inlined_call_operand.hbm [shape: f32[1,512], index: 11, kind: input, shape index: {}]   ;;  %s5142_s12 = inlined_call_operand.vmem [shape: f32[2,8,512], index: 12, kind: output, shape index: {}]  }
   0x1   :  { %5173 = sst [smem:[#allocation34_spill]] %s5130_s0 }
   0x2   :  { %5174 = sst [smem:[#allocation35_spill]] %s5131_s1 }
   0x3   :  { %5175 = sst [smem:[#allocation36_spill]] %s5132_s2 }
   0x4   :  { %5176 = sst [smem:[#allocation37_spill]] %s5133_s3 }
   0x5   :  { %5177 = sst [smem:[#allocation38_spill]] %s5134_s4 }
   0x6   :  { %5178 = sst [smem:[#allocation39_spill]] %s5135_s5 }
   0x7   :  { %5179 = sst [smem:[#allocation40_spill]] %s5136_s6 }
   0x8   :  { %5180 = sst [smem:[#allocation41_spill]] %s5137_s7 }
   0x9   :  { %5181 = sst [smem:[#allocation42_spill]] %s5138_s8 }
   0xa   :  { %5182 = sst [smem:[#allocation43_spill]] %s5139_s9 }
   0xb   :  { %5183 = sst [smem:[#allocation44_spill]] %s5140_s10 }
   0xc   :  { %5184 = sst [smem:[#allocation45_spill]] %s5141_s11 }
   0xd   :  { %5185 = sst [smem:[#allocation46_spill]] %s5142_s12 }
   0xe   :  { %17 = vsyncpa [#allocation4], 0 }
   0xf   :  { %19 = vsyncpa [#allocation4 + $0x1], 0 }
  0x10   :  { %20 = vsyncpa [#allocation6], 0 }
  0x11   :  { %22 = vsyncpa [#allocation6 + $0x1], 0 }
  0x12   :  { %23 = vsyncpa [#allocation9], 0 }
  0x13   :  { %25 = vsyncpa [#allocation9 + $0x1], 0 }
  0x14   :  { %26 = vsyncpa [#allocation12], 0  ;;  %s4270_s21 = smov 0   ;;  %s4272_s22 = smov 0  }
  0x15   :  { %s4274_s23 = smov 0   ;;  %s4276_s24 = smov 0  }
  0x16   :  { %s4278_s25 = smov 0   ;;  %s4280_s26 = smov 0  }
  0x17   :  { %s4282_s27 = smov 0   ;;  %s4284_s28 = smov 0  }
  0x18   :  { %s4286_s29 = smov 0   ;;  %s4288_s30 = smov 0  }
  0x19   :  { %s4290_s13 = smov 0   ;;  %s4292_s14 = smov 0  }
  0x1a   :  { %s4294_s15 = smov 0   ;;  %s4296_s16 = smov 0  }
  0x1b LB: > { %5186 = sst [smem:[#allocation20_spill]] %s4152_s26  ;;  %s5143_s17 = sadd.s32 4294967295, %s4184_s16   ;;  %s4184_s16 = sphi %s4296_s16, %s32_s16   ;;  %s4180_s15 = sphi %s4294_s15, %s5260_s15   ;;  %s4176_s14 = sphi %s4292_s14, %s5259_s14   ;;  %s4172_s13 = sphi %s4290_s13, %s5266_s13   ;;  %s4168_s30 = sphi %s4288_s30, %s5257_s30   ;;  %s4164_s29 = sphi %s4286_s29, %s5256_s29   ;;  %s4160_s28 = sphi %s4284_s28, %s5255_s28   ;;  %s4156_s27 = sphi %s4282_s27, %s5254_s27   ;;  %s4152_s26 = sphi %s4280_s26, %s5253_s26   ;;  %s4148_s25 = sphi %s4278_s25, %s5265_s25   ;;  %s4144_s24 = sphi %s4276_s24, %s5264_s24   ;;  %s4140_s23 = sphi %s4274_s23, %s5263_s23   ;;  %s4136_s22 = sphi %s4272_s22, %s5262_s22   ;;  %s4132_s21 = sphi %s4270_s21, %s5261_s21  }
  0x1c   : > { %5187 = sst [smem:[#allocation21_spill]] %s4160_s28  ;;  %p172_p0 = scmp.ne.s32.totalorder %s4136_s22, %s4132_s21 }
  0x1d   : > { %5188 = sst [smem:[#allocation22_spill]] %s4164_s29  ;;  %p4342_p1 = scmp.eq.s32.totalorder %s5143_s17, 0 }
  0x1e   : > { %5189 = sst [smem:[#allocation23_spill]] %s4168_s30  ;;  %p3126_p2 = scmp.ge.s32.totalorder %s4184_s16, 1 }
  0x1f   : > { %5190 = sst [smem:[#allocation24_spill]] %s4172_s13  ;;  %p380_p3 = scmp.lt.s32.totalorder %s4184_s16, 9 }
  0x20   : > { %5191 = sst [smem:[#allocation25_spill]] %s4176_s14  ;;  %p4350_p4 = por %p172_p0, %p4342_p1 }
  0x21   : > { %5192 = sst [smem:[#allocation26_spill]] %s4180_s15  ;;  %p4354_p5 = pnand %p3126_p2, %p380_p3 }
  0x22   : > { %s5193_s18 = scalar_select %p4342_p1, 1, 0 }
  0x23   : > { %s5194_s19 = scalar_select %p4350_p4, 1, 0 }
  0x24   : > { %s5196_s20 = scalar_select %p4354_p5, 1, 0 }
  0x25   : > { %5195 = sst [smem:[#allocation27_spill]] %s5194_s19  ;;  %s4186_s21 = smov [#allocation10]  }
  0x26   : > { %5197 = sst [smem:[#allocation28_spill]] %s5196_s20  ;;  %s393_s7 = sshll.u32 %s4186_s21, 4  ;;  %s394_s7 = int_to_ptr.vmem [resolvable:$true] %s393_s7 }
  0x27   : > { %p3525_p6 = pneg %p4354_p5  ;;  %s4187_s17 = smov [#allocation11]  }
  0x28   : > { %s404_s6 = sshll.u32 %s4187_s17, 4  ;;  %s5199_s9 = sld [smem:[#allocation43_spill]]  ;;  %s4366_s6 = int_to_ptr.vmem [resolvable:$true] %s404_s6 }
  0x29   : > { %p4362_p7 = pnand %p3525_p6, %p4342_p1 }
  0x2b   : > { %s5198_s12 = scalar_select %p4362_p7, 1, 0 }
  0x2c   : > { %p4376_p9 = pneg %p4362_p7 }
  0x2e   : > { %s3844_s1 = scalar_lea.hbm %s5199_s9, 64 }
  0x2f   : > { %p3845_p8 = scmp.ne.s32.totalorder %s5199_s9, %s3844_s1  ;;  %p3851_p12 = scmp.lt.u32.totalorder %s3844_s1, %s5199_s9 }
  0x31   : > { %p3847_p10 = pnand %p4376_p9, %p3845_p8 }
  0x33   : > { %p3848_p11 = pneg %p3847_p10 }
  0x35   : > { %p3853_p13 = pnand %p3851_p12, %p3848_p11 }
  0x37   : > { %3856 = shalt.err (!%p3853_p13)
}
  0x38   : > { %s3857_s0 = scalar_lea.vmem %s394_s7, 64  ;;  %p3865_p6 = scmp.lt.s32.totalorder %s394_s7, %s394_s7 }
  0x39   : > { %p3858_p0 = scmp.ne.s32.totalorder %s394_s7, %s3857_s0  ;;  %p3866_p4 = scmp.lt.s32.totalorder %s3857_s0, %s3857_s0 }
  0x3b   : > { %p3860_p2 = pnand %p3858_p0, %p4376_p9  ;;  %p3867_p5 = por %p3866_p4, %p3865_p6 }
  0x3d   : > { %p3861_p3 = pneg %p3860_p2 }
  0x3f   : > { %p3868_p1 = pnand %p3867_p5, %p3861_p3 }
  0x41   : > { %3871 = shalt.err (!%p3868_p1)
}
  0x42   : > { %3528 = dma.hbm_to_vmem [thread:$0]  (!%p4362_p7), %s5199_s9, 64, %s394_s7, [#allocation9]  }
  0x43   : > { %s5201_s10 = sld [smem:[#allocation44_spill]] }
  0x49   : > { %s3872_s19 = scalar_lea.hbm %s5201_s10, 64 }
  0x4a   : > { %p3873_p8 = scmp.ne.s32.totalorder %s5201_s10, %s3872_s19  ;;  %p3879_p1 = scmp.lt.u32.totalorder %s3872_s19, %s5201_s10 }
  0x4c   : > { %p3875_p10 = pnand %p3873_p8, %p4376_p9 }
  0x4e   : > { %p3876_p4 = pneg %p3875_p10 }
  0x50   : > { %p3881_p5 = pnand %p3879_p1, %p3876_p4 }
  0x52   : > { %3884 = shalt.err (!%p3881_p5)
}
  0x53   : > { %s3885_s7 = scalar_lea.vmem %s4366_s6, 64  ;;  %p3893_p0 = scmp.lt.s32.totalorder %s4366_s6, %s4366_s6 }
  0x54   : > { %p3886_p11 = scmp.ne.s32.totalorder %s4366_s6, %s3885_s7  ;;  %p3894_p2 = scmp.lt.s32.totalorder %s3885_s7, %s3885_s7 }
  0x56   : > { %p3888_p12 = pnand %p3886_p11, %p4376_p9  ;;  %p3895_p3 = por %p3894_p2, %p3893_p0 }
  0x58   : > { %p3889_p13 = pneg %p3888_p12 }
  0x5a   : > { %p3896_p6 = pnand %p3895_p3, %p3889_p13 }
  0x5c   : > { %3899 = shalt.err (!%p3896_p6)
}
  0x5d   : > { %3531 = dma.hbm_to_vmem [thread:$0]  (!%p4362_p7), %s5201_s10, 64, %s4366_s6, [#allocation12]  }
  0x5e   : > { %s41_s5 = sadd.s32 1, %s4176_s14  ;;  %s44_s30 = sadd.s32 1, %s4180_s15 }
  0x5f   : > { %p42_p8 = scmp.ge.s32.totalorder %s41_s5, 4  ;;  %p5160_p10 = scmp.eq.s32.totalorder %s4184_s16, 0 }
  0x60   : > { %s126_s1 = sadd.s32 4, %s4176_s14  ;;  %s131_s13 = sadd.s32 1, %s4152_s26 }
  0x61   : > { %s5268_s5 = smov (%p42_p8, %s41_s5), 0  ;;  %s5270_s30 = smov (!%p42_p8, %s44_s30), %s4180_s15 }
  0x62   : > { %5202 = sst [smem:[#allocation29_spill]] %s5268_s5  ;;  %s127_s19 = sadd.s32 4, %s5268_s5 }
  0x63   : > { %p138_p4 = scmp.ne.s32.totalorder %s4152_s26, %s4148_s25  ;;  %p46_p1 = scmp.ge.s32.totalorder %s5270_s30, 2 }
  0x64   : > { %s128_s6 = ssub.s32 %s126_s1, %s127_s19  ;;  %p144_p12 = scmp.ne.s32.totalorder %s4148_s25, %s4144_s24 }
  0x65   : > { %p129_p5 = scmp.eq.s32.totalorder %s128_s6, 0  ;;  %p4428_p11 = por %p138_p4, %p5160_p10 }
  0x66   : > { %s5272_s30 = smov (%p46_p1, %s5270_s30), 0  ;;  %p5159_p13 = scmp.lt.s32.totalorder %s4184_s16, 8 }
  0x67   : > { %5204 = sst [smem:[#allocation30_spill]] %s5272_s30  ;;  %s4441_s7 = sshll.u32 %s4176_s14, 6 }
  0x68   : > { %s4435_s0 = scalar_select %p129_p5, %s4152_s26, %s131_s13  }
  0x69   : > { %p5206_p0 = scmp.ne.s32.totalorder %s5193_s18, 0  ;;  %s5163_s20 = sand.u32 1, %s4184_s16  }
  0x6a   : > { %5205 = sst [smem:[#allocation31_spill]] %s4435_s0  ;;  %s462_s1 = sand.u32 1, %s4152_s26  }
  0x6b   : > { %p4445_p2 = por %p144_p12, %p5206_p0  ;;  %s3133_s19 = sshll.u32 %s462_s1, 8 }
  0x6c   : > { %s5209_s3 = sld [smem:[#allocation37_spill]]  ;;  %s464_s24 = scalar_lea.vmem [#allocation5], %s3133_s19 }
  0x6d   : > { %s5207_s8 = scalar_select %p4445_p2, 1, 0 }
  0x6e   : > { %s471_s30 = sshll.u32 %s464_s24, 4  ;;  %p4461_p3 = pnand %p5159_p13, %p4428_p11  ;;  %s4465_s30 = int_to_ptr.vmem [resolvable:$true] %s471_s30 }
  0x6f   : > { %5208 = sst [smem:[#allocation32_spill]] %s5207_s8  ;;  %s4188_s1 = smov [#allocation13]  }
  0x70   : > { %s4467_s9 = sshll.u32 %s4188_s1, 4  ;;  %s4471_s6 = scalar_lea.sflag [#allocation6], %s5163_s20  ;;  %s416_s9 = int_to_ptr.vmem [resolvable:$true] %s4467_s9 }
  0x71   : > { %p3902_p8 = pneg %p4461_p3 }
  0x72   : > { %s2945_s10 = scalar_lea.hbm %s5209_s3, %s4441_s7  ;;  %s3905_s24 = scalar_lea.hbm %s5209_s3, 49152 }
  0x73   : > { %s4455_s13 = scalar_lea.hbm %s2945_s10, 256  ;;  %s3930_s0 = scalar_lea.hbm %s2945_s10, 4352 }
  0x74   : > { %p3901_p6 = scmp.ne.s32.totalorder %s4455_s13, %s3930_s0  ;;  %p3906_p5 = scmp.lt.u32.totalorder %s4455_s13, %s5209_s3 }
  0x75   : > { %p3907_p11 = scmp.lt.u32.totalorder %s3905_s24, %s3930_s0  ;;  %p3909_p13 = scmp.lt.u32.totalorder %s3930_s0, %s4455_s13 }
  0x76   : > { %p3903_p4 = pnand %p3902_p8, %p3901_p6 }
  0x77   : > { %p3908_p12 = por %p3907_p11, %p3906_p5 }
  0x78   : > { %p3904_p1 = pneg %p3903_p4 }
  0x79   : > { %p3910_p10 = por %p3909_p13, %p3908_p12 }
  0x7b   : > { %p3911_p2 = pnand %p3910_p10, %p3904_p1 }
  0x7d   : > { %3914 = shalt.err (!%p3911_p2)
}
  0x7e   : > { %s3915_s10 = scalar_lea.vmem %s4465_s30, 4096  ;;  %s4189_s1 = smov [#allocation5]  }
  0x7f   : > { %p3916_p6 = scmp.ne.s32.totalorder %s4465_s30, %s3915_s10  ;;  %s3920_s17 = sshll.u32 %s4189_s1, 4  ;;  %s3921_s17 = int_to_ptr.vmem [resolvable:$false] %s3920_s17 }
  0x80   : > { %s3922_s26 = scalar_lea.vmem %s3921_s17, 8192  ;;  %p3923_p7 = scmp.lt.s32.totalorder %s4465_s30, %s3921_s17 }
  0x81   : > { %p3918_p4 = pnand %p3916_p6, %p3902_p8  ;;  %p3924_p5 = scmp.lt.s32.totalorder %s3922_s26, %s3915_s10 }
  0x83   : > { %p3919_p0 = pneg %p3918_p4  ;;  %p3925_p11 = por %p3924_p5, %p3923_p7 }
  0x85   : > { %p3926_p13 = pnand %p3925_p11, %p3919_p0 }
  0x87   : > { %3929 = shalt.err (!%p3926_p13)
}
  0x88   : > { %s5164_s0 = smov 768   ;;  %s4191_s8 = smov 64  }
  0x89   : > { %s4192_s19 = smov 4   ;;  %s5211_s11 = sld [smem:[#allocation45_spill]] }
  0x8a   : > { %3541 = dma.hbm_to_vmem [thread:$0]  (!%p4461_p3), %s4455_s13, 4096, %s4465_s30, %s4471_s6, %s5164_s0, %s4191_s8, %s4192_s19  }
  0x8f   : > { %s3931_s1 = scalar_lea.hbm %s5211_s11, 64 }
  0x90   : > { %p3932_p7 = scmp.ne.s32.totalorder %s5211_s11, %s3931_s1  ;;  %p3938_p2 = scmp.lt.u32.totalorder %s3931_s1, %s5211_s11 }
  0x92   : > { %p3934_p10 = pnand %p3932_p7, %p4376_p9 }
  0x94   : > { %p3935_p0 = pneg %p3934_p10 }
  0x96   : > { %p3940_p8 = pnand %p3938_p2, %p3935_p0 }
  0x98   : > { %3943 = shalt.err (!%p3940_p8)
}
  0x99   : > { %s3944_s15 = scalar_lea.vmem %s416_s9, 64  ;;  %p3952_p6 = scmp.lt.s32.totalorder %s416_s9, %s416_s9 }
  0x9a   : > { %p3945_p3 = scmp.ne.s32.totalorder %s416_s9, %s3944_s15  ;;  %p3953_p4 = scmp.lt.s32.totalorder %s3944_s15, %s3944_s15 }
  0x9c   : > { %p3947_p1 = pnand %p3945_p3, %p4376_p9  ;;  %p3954_p5 = por %p3953_p4, %p3952_p6 }
  0x9e   : > { %p3948_p12 = pneg %p3947_p1 }
  0xa0   : > { %p3955_p11 = pnand %p3954_p5, %p3948_p12 }
  0xa2   : > { %3958 = shalt.err (!%p3955_p11)
}
  0xa3   : > { %p5212_p13 = scmp.ne.s32.totalorder %s5198_s12, 0  ;;  %s100_s3 = ssub.s32 %s4176_s14, %s5268_s5 }
  0xa4   : > { %p101_p9 = scmp.eq.s32.totalorder %s100_s3, 0  ;;  %s103_s12 = sadd.s32 1, %s4164_s29 }
  0xa5   : > { %3534 = dma.hbm_to_vmem [thread:$0]  (!%p5212_p13), %s5211_s11, 64, %s416_s9, [#allocation12]  }
  0xa6   : > { %p110_p7 = scmp.ne.s32.totalorder %s4164_s29, %s4160_s28  ;;  %p116_p10 = scmp.ne.s32.totalorder %s4160_s28, %s4156_s27 }
  0xa7   : > { %s4528_s21 = scalar_select %p101_p9, %s4164_s29, %s103_s12  }
  0xa8   : > { %p5214_p0 = scmp.eq.s32.totalorder %s4184_s16, 0  ;;  %p5215_p8 = scmp.ne.s32.totalorder %s5193_s18, 0 }
  0xa9   : > { %5213 = sst [smem:[#allocation33_spill]] %s4528_s21  ;;  %s440_s24 = sand.u32 1, %s4164_s29  }
  0xaa   : > { %p112_p2 = por %p5214_p0, %p110_p7  ;;  %p4534_p3 = por %p5215_p8, %p116_p10 }
  0xab   : > { %s5217_s2 = sld [smem:[#allocation36_spill]]  ;;  %s4545_s27 = sshll.u32 %s440_s24, 8 }
  0xac   : > { %s5216_s20 = scalar_select %p4534_p3, 1, 0 }
  0xad   : > { %p5218_p1 = scmp.lt.s32.totalorder %s4184_s16, 8  ;;  %s444_s26 = scalar_lea.vmem [#allocation3], %s4545_s27 }
  0xae   : > { %s450_s15 = sshll.u32 %s444_s26, 4  ;;  %s4556_s30 = scalar_lea.sflag [#allocation4], %s440_s24  ;;  %s4554_s15 = int_to_ptr.vmem [resolvable:$true] %s450_s15 }
  0xaf   : > { %p4549_p12 = pnand %p5218_p1, %p112_p2 }
  0xb1   : > { %s4543_s17 = scalar_lea.hbm %s5217_s2, %s4441_s7  ;;  %p5167_p4 = pneg %p4549_p12 }
  0xb2   : > { %s3959_s13 = scalar_lea.hbm %s4543_s17, 4096  ;;  %s3964_s10 = scalar_lea.hbm %s5217_s2, 49152 }
  0xb3   : > { %p3960_p6 = scmp.ne.s32.totalorder %s4543_s17, %s3959_s13  ;;  %p3965_p13 = scmp.lt.u32.totalorder %s4543_s17, %s5217_s2 }
  0xb4   : > { %p3966_p9 = scmp.lt.u32.totalorder %s3964_s10, %s3959_s13  ;;  %p3968_p10 = scmp.lt.u32.totalorder %s3959_s13, %s4543_s17 }
  0xb5   : > { %p3962_p5 = pnand %p5167_p4, %p3960_p6 }
  0xb6   : > { %p3967_p7 = por %p3966_p9, %p3965_p13 }
  0xb7   : > { %p3963_p11 = pneg %p3962_p5 }
  0xb8   : > { %p3969_p0 = por %p3968_p10, %p3967_p7 }
  0xba   : > { %p3970_p2 = pnand %p3969_p0, %p3963_p11 }
  0xbc   : > { %3973 = shalt.err (!%p3970_p2)
}
  0xbd   : > { %s3974_s24 = scalar_lea.vmem %s4554_s15, 4096  ;;  %s4193_s26 = smov [#allocation3]  }
  0xbe   : > { %p3975_p8 = scmp.ne.s32.totalorder %s4554_s15, %s3974_s24  ;;  %s3979_s3 = sshll.u32 %s4193_s26, 4  ;;  %s3980_s3 = int_to_ptr.vmem [resolvable:$false] %s3979_s3 }
  0xbf   : > { %s3981_s0 = scalar_lea.vmem %s3980_s3, 8192  ;;  %p3982_p5 = scmp.lt.s32.totalorder %s4554_s15, %s3980_s3 }
  0xc0   : > { %p3977_p1 = pnand %p3975_p8, %p5167_p4  ;;  %p3983_p13 = scmp.lt.s32.totalorder %s3981_s0, %s3974_s24 }
  0xc2   : > { %p3978_p6 = pneg %p3977_p1  ;;  %p3984_p9 = por %p3983_p13, %p3982_p5 }
  0xc4   : > { %p3985_p7 = pnand %p3984_p9, %p3978_p6 }
  0xc6   : > { %3988 = shalt.err (!%p3985_p7)
}
  0xc7   : > { %s5220_s13 = smov 768   ;;  %s154_s12 = sadd.s32 8, %s4176_s14 }
  0xc8   : > { %3538 = dma.hbm_to_vmem [thread:$0]  (!%p4549_p12), %s4543_s17, 4096, %s4554_s15, %s4556_s30, %s5220_s13, %s4191_s8, %s4192_s19  }
  0xc9   : > { %s155_s10 = sadd.s32 8, %s5268_s5  ;;  %s159_s1 = sadd.s32 1, %s4140_s23 }
  0xca   : > { %s156_s24 = ssub.s32 %s154_s12, %s155_s10  ;;  %p166_p11 = scmp.ne.s32.totalorder %s4140_s23, %s4136_s22 }
  0xcb   : > { %p157_p10 = scmp.eq.s32.totalorder %s156_s24, 0  ;;  %s483_s26 = sand.u32 1, %s4140_s23  }
  0xcc   : > { %p5221_p0 = scmp.eq.s32.totalorder %s4184_s16, 0  ;;  %s3135_s3 = sshll.u32 %s483_s26, 8 }
  0xcd   : > { %s4596_s0 = scalar_select %p157_p10, %s4140_s23, %s159_s1  }
  0xce   : > { %p168_p2 = por %p166_p11, %p5221_p0  ;;  %s5222_s4 = sld [smem:[#allocation38_spill]] }
  0xcf   : > { %s485_s17 = scalar_lea.vmem [#allocation7], %s3135_s3  ;;  %p5223_p8 = scmp.lt.s32.totalorder %s4184_s16, 8 }
  0xd0   : > { %s492_s15 = sshll.u32 %s485_s17, 4  ;;  %s3306_s12 = sshll.u32 %s4176_s14, 12  ;;  %s4604_s15 = int_to_ptr.vmem [resolvable:$true] %s492_s15 }
  0xd1   : > { %p4608_p1 = pnand %p5223_p8, %p168_p2 }
  0xd3   : > { %p3991_p5 = pneg %p4608_p1 }
  0xd4   : > { %s2951_s21 = scalar_lea.hbm %s5222_s4, %s4441_s7  ;;  %s3994_s7 = scalar_lea.hbm %s5222_s4, 49152 }
  0xd5   : > { %s4602_s29 = scalar_lea.hbm %s2951_s21, 512  ;;  %s4019_s10 = scalar_lea.hbm %s2951_s21, 4608 }
  0xd6   : > { %p3990_p6 = scmp.ne.s32.totalorder %s4602_s29, %s4019_s10  ;;  %p3995_p7 = scmp.lt.u32.totalorder %s4602_s29, %s5222_s4 }
  0xd7   : > { %p3996_p11 = scmp.lt.u32.totalorder %s3994_s7, %s4019_s10  ;;  %p3998_p0 = scmp.lt.u32.totalorder %s4019_s10, %s4602_s29 }
  0xd8   : > { %p3992_p13 = pnand %p3991_p5, %p3990_p6 }
  0xd9   : > { %p3997_p10 = por %p3996_p11, %p3995_p7 }
  0xda   : > { %p3993_p9 = pneg %p3992_p13 }
  0xdb   : > { %p3999_p2 = por %p3998_p0, %p3997_p10 }
  0xdd   : > { %p4000_p8 = pnand %p3999_p2, %p3993_p9 }
  0xdf   : > { %4003 = shalt.err (!%p4000_p8)
}
  0xe0   : > { %s4004_s21 = scalar_lea.vmem %s4604_s15, 4096  ;;  %s4194_s26 = smov [#allocation7]  }
  0xe1   : > { %p4005_p6 = scmp.ne.s32.totalorder %s4604_s15, %s4004_s21  ;;  %s4009_s3 = sshll.u32 %s4194_s26, 4  ;;  %s4010_s3 = int_to_ptr.vmem [resolvable:$false] %s4009_s3 }
  0xe2   : > { %s4011_s17 = scalar_lea.vmem %s4010_s3, 8192  ;;  %p4012_p3 = scmp.lt.s32.totalorder %s4604_s15, %s4010_s3 }
  0xe3   : > { %p4007_p13 = pnand %p4005_p6, %p3991_p5  ;;  %p4013_p7 = scmp.lt.s32.totalorder %s4011_s17, %s4004_s21 }
  0xe5   : > { %p4008_p4 = pneg %p4007_p13  ;;  %p4014_p11 = por %p4013_p7, %p4012_p3 }
  0xe7   : > { %p4015_p10 = pnand %p4014_p11, %p4008_p4 }
  0xe9   : > { %4018 = shalt.err (!%p4015_p10)
}
  0xea   : > { %3544 = dma.hbm_to_vmem [thread:$0]  (!%p4608_p1), %s4602_s29, 4096, %s4604_s15, %s4471_s6, %s5220_s13, %s4191_s8, %s4192_s19  }
  0xeb   : > { %s5225_s11 = sld [smem:[#allocation42_spill]]  ;;  %s528_s30 = scalar_lea.vmem [#allocation8], %s4545_s27 }
  0xec   : > { %s536_s1 = sshll.u32 %s528_s30, 4  ;;  %s5226_s24 = sand.u32 1, %s4184_s16   ;;  %s4649_s1 = int_to_ptr.vmem [resolvable:$true] %s536_s1 }
  0xed   : > { %s4653_s21 = scalar_lea.sflag [#allocation9], %s5226_s24  ;;  %p5227_p4 = pneg %p4549_p12 }
  0xf1   : > { %s4646_s7 = scalar_lea.hbm %s5225_s11, %s3306_s12  ;;  %s4025_s8 = scalar_lea.hbm %s5225_s11, 16384 }
  0xf2   : > { %s4020_s26 = scalar_lea.hbm %s4646_s7, 4096  ;;  %p4026_p9 = scmp.lt.u32.totalorder %s4646_s7, %s5225_s11 }
  0xf3   : > { %p4021_p3 = scmp.ne.s32.totalorder %s4646_s7, %s4020_s26  ;;  %p4027_p0 = scmp.lt.u32.totalorder %s4025_s8, %s4020_s26 }
  0xf4   : > { %p4029_p8 = scmp.lt.u32.totalorder %s4020_s26, %s4646_s7 }
  0xf5   : > { %p4023_p1 = pnand %p4021_p3, %p5227_p4  ;;  %p4028_p2 = por %p4027_p0, %p4026_p9 }
  0xf7   : > { %p4024_p5 = pneg %p4023_p1  ;;  %p4030_p6 = por %p4029_p8, %p4028_p2 }
  0xf9   : > { %p4031_p13 = pnand %p4030_p6, %p4024_p5 }
  0xfb   : > { %4034 = shalt.err (!%p4031_p13)
}
  0xfc   : > { %s4035_s27 = scalar_lea.vmem %s4649_s1, 4096  ;;  %p5228_p11 = pmov %p5227_p4 }
  0xfd   : > { %p4036_p7 = scmp.ne.s32.totalorder %s4649_s1, %s4035_s27  ;;  %s4195_s15 = smov [#allocation8]  }
  0xfe   : > { %s4040_s12 = sshll.u32 %s4195_s15, 4  ;;  %s4041_s12 = int_to_ptr.vmem [resolvable:$false] %s4040_s12 }
  0xff   : > { %p4038_p10 = pnand %p4036_p7, %p5228_p11  ;;  %s4042_s3 = scalar_lea.vmem %s4041_s12, 8192 }
 0x100   : > { %p4043_p4 = scmp.lt.s32.totalorder %s4649_s1, %s4041_s12  ;;  %p4044_p1 = scmp.lt.s32.totalorder %s4042_s3, %s4035_s27 }
 0x101   : > { %p4039_p3 = pneg %p4038_p10 }
 0x102   : > { %p4045_p9 = por %p4044_p1, %p4043_p4 }
 0x104   : > { %p4046_p0 = pnand %p4045_p9, %p4039_p3 }
 0x106   : > { %4049 = shalt.err (!%p4046_p0)
}
 0x107   : > { %s4196_s17 = smov 256   ;;  %s4197_s10 = smov 16  }
 0x108   : > { %3547 = dma.hbm_to_vmem [thread:$0]  (!%p4549_p12), %s4646_s7, 4096, %s4649_s1, %s4653_s21, %s4196_s17, %s4196_s17, %s4197_s10  }
 0x109   : > { %s5229_s2 = sld [smem:[#allocation28_spill]] }
 0x10f   : > { %p5230_p5 = scmp.ne.s32.totalorder %s5229_s2, 0 }
 0x110   : > { %s550_s30 = sand.u32 (!%p5230_p5), 1, %s4160_s28   ;;  %p5231_p2 = scmp.ne.s32.totalorder (!%p5230_p5), %s5216_s20, 0 }
 0x111   : > { %548 = sbr.rel (%p5230_p5) target bundleno = 4176 (0x1050), region = 68  ;;  %s3142_s24 = sshll.u32 (!%p5230_p5), %s550_s30, 8 }
 0x112   : > { %s551_s26 = scalar_lea.sflag (!%p5230_p5), [#allocation4], %s550_s30  ;;  %s4682_s29 = scalar_lea.vmem (!%p5230_p5), [#allocation3], %s3142_s24 }
 0x118   : > { %4107 = dma.done.wait (%p5231_p2), %s551_s26, 4096  }
 0x119   : > { %4109 = vsyncadd (%p5231_p2), %s551_s26, 4294963200  ;;  %s5232_s6 = sadd.s32 4294967295, %s4184_s16   ;;  %s5233_s9 = sld [smem:[#allocation32_spill]] }
 0x11a   : > { %s559_s7 = sand.u32 1, %s5232_s6   ;;  %s561_s1 = sand.u32 1, %s4148_s25  }
 0x11b   : > { %s3143_s21 = sshll.u32 %s561_s1, 8  ;;  %s560_s8 = scalar_lea.sflag [#allocation6], %s559_s7 }
 0x11c   : > { %s4691_s19 = scalar_lea.vmem [#allocation5], %s3143_s21 }
 0x11f   : > { %p5234_p12 = scmp.ne.s32.totalorder %s5233_s9, 0 }
 0x121   : > { %4111 = dma.done.wait (%p5234_p12), %s560_s8, 4096  }
 0x122   : > { %4113 = vsyncadd (%p5234_p12), %s560_s8, 4294963200  ;;  %s5235_s13 = sld [smem:[#allocation27_spill]]  ;;  %s570_s27 = sand.u32 1, %s4136_s22  }
 0x123   : > { %s3144_s15 = sshll.u32 %s570_s27, 8 }
 0x124   : > { %s4698_s12 = scalar_lea.vmem [#allocation7], %s3144_s15 }
 0x128   : > { %p5236_p8 = scmp.ne.s32.totalorder %s5235_s13, 0 }
 0x12a   : > { %4115 = dma.done.wait (%p5236_p8), %s560_s8, 4096  }
 0x12b   : > { %4117 = vsyncadd (%p5236_p8), %s560_s8, 4294963200  ;;  %s578_s3 = scalar_lea.sflag [#allocation9], %s559_s7  ;;  %s4704_s17 = scalar_lea.vmem [#allocation8], %s3142_s24 }
 0x12c   : > { %4119 = dma.done.wait (%p5231_p2), %s578_s3, 4096  }
 0x12d   : > { %4121 = vsyncadd (%p5231_p2), %s578_s3, 4294963200  ;;  %p5237_p6 = scmp.ne.s32.totalorder %s5193_s18, 0 }
 0x12f   : > { %4123 = dma.done.wait (%p5237_p6), [#allocation9], 64  }
 0x130   : > { %4125 = vsyncadd (%p5237_p6), [#allocation9], 4294967232 }
 0x131   : > { %4127 = dma.done.wait (%p5237_p6), [#allocation12], 128  }
 0x132   : > { %4129 = vsyncadd (%p5237_p6), [#allocation12], 4294967168  ;;  %s5238_s10 = sld [smem:[#allocation24_spill]]  ;;  %s5239_s2 = sld [smem:[#allocation23_spill]] }
 0x133   : > { %s5240_s9 = sld [smem:[#allocation35_spill]]  ;;  %s5241_s8 = sld [smem:[#allocation34_spill]] }
 0x134   : > { %s5242_s3 = sld [smem:[#allocation39_spill]]  ;;  %s5243_s14 = sld [smem:[#allocation46_spill]] }
 0x135   : > { %s5245_s27 = sld [smem:[#allocation41_spill]] }
 0x138   : > { %p668_p13 = scmp.lt.s32.totalorder %s5238_s10, 1  ;;  %p678_p7 = scmp.lt.s32.totalorder %s5239_s2, 11 }
 0x139   : > { %s681_s20 = sadd.s32 4, %s5239_s2  ;;  %s686_s30 = sadd.s32 8, %s5239_s2 }
 0x13a   : > { %s5274_s10 = smov (!%p668_p13, %s5238_s10), 1  ;;  %p682_p11 = scmp.lt.s32.totalorder %s681_s20, 11 }
 0x13b   : > { %s4726_s24 = scalar_select %p678_p7, %s5239_s2, 11 }
 0x13c   : > { %s3307_s26 = sshll.u32 %s5274_s10, 5  ;;  %s675_s7 = scalar_lea.vmem %s5240_s9, %s5274_s10 }
 0x13d   : > { %s4736_s13 = scalar_lea.vmem %s5241_s8, %s3307_s26  ;;  %s680_s4 = scalar_lea.vmem %s5242_s3, %s4726_s24 }
 0x13e   : > { %p687_p10 = scmp.lt.s32.totalorder %s686_s30, 11  ;;  %s4745_s28 = scalar_lea.vmem %s5243_s14, %s3307_s26 }
 0x13f   : > { %s5276_s20 = smov (!%p682_p11, %s681_s20), 11  ;;  %s5244_s9 = sld [smem:[#allocation40_spill]] }
 0x140   : > { %s5278_s30 = smov (!%p687_p10, %s686_s30), 11  ;;  %p3153_p3 = scmp.ne.s32.totalorder %s5239_s2, 0 }
 0x141   : > { %s689_s15 = scalar_lea.vmem %s5245_s27, %s5278_s30  ;;  %v4198_v0 = vmov (!%p3153_p3), 0.0  }
 0x142   : > { %701 = sbr.rel (%p3153_p3) target bundleno = 329 (0x149), region = 100  ;;  %702 = vst [vmem:[#allocation2] sm:$0xff] (!%p3153_p3), %v4198_v0  ;;  %703 = vst [vmem:[#allocation2 + $0x8] sm:$0xff] (!%p3153_p3), %v4198_v0 }
 0x143   : > { %704 = vst [vmem:[#allocation2 + $0x10] sm:$0xff] (!%p3153_p3), %v4198_v0  ;;  %705 = vst [vmem:[#allocation2 + $0x18] sm:$0xff] (!%p3153_p3), %v4198_v0 }
 0x145   : > { %s684_s1 = scalar_lea.vmem %s5244_s9, %s5276_s20 }
 0x149 PF: > { %v3682_v1 = vld [vmem:[%s4682_s29 + $0x40] sm:$0xff]   ;;  %v3686_v5 = vld [vmem:[%s4682_s29 + $0x48] sm:$0xff]   ;;  %v3690_v9 = vld [vmem:[%s4682_s29 + $0x50] sm:$0xff]   ;;  %vm4200_vm0 = vmmov 0   ;;  %vm1753_vm1 = vcmask 261120   ;;  %vm1816_vm2 = vcmask 1043456  }
 0x14a   : > { %v3683_v2 = vld [vmem:[%s4682_s29 + $0xc0] sm:$0xff]   ;;  %3309 = vmatprep.subr.bf16.mxu0 %v3682_v1  ;;  %v3687_v6 = vld [vmem:[%s4682_s29 + $0xc8] sm:$0xff]   ;;  %v3691_v10 = vld [vmem:[%s4682_s29 + $0xd0] sm:$0xff]   ;;  %vm1800_vm3 = vcmask 64512   ;;  %s4203_s10 = smov 64   ;;  %s4204_s30 = smov 32  }
 0x14b   : > { %v3684_v3 = vld [vmem:[%s4682_s29] sm:$0xff]   ;;  %3331 = vmatprep.subr.bf16.mxu1 %v3683_v2  ;;  %v3688_v7 = vld [vmem:[%s4682_s29 + $0x8] sm:$0xff]   ;;  %v3692_v11 = vld [vmem:[%s4682_s29 + $0x10] sm:$0xff]  }
 0x14c   : > { %v3685_v4 = vld [vmem:[%s4682_s29 + $0x80] sm:$0xff]   ;;  %3310 = vmatpush3.bf16.msra.mxu0 %v3684_v3  ;;  %v3689_v8 = vld [vmem:[%s4682_s29 + $0x88] sm:$0xff]   ;;  %v3693_v12 = vld [vmem:[%s4682_s29 + $0x90] sm:$0xff]  }
 0x14d   : > { %3332 = vmatpush3.bf16.msra.mxu1 %v3685_v4  ;;  %3311 = vmatprep.subr.bf16.mxu0 %v3686_v5  ;;  %v3694_v13 = vld [vmem:[%s4682_s29 + $0x58] sm:$0xff]   ;;  %v3698_v17 = vld [vmem:[%s4682_s29 + $0x60] sm:$0xff]   ;;  %v3702_v21 = vld [vmem:[%s4682_s29 + $0x68] sm:$0xff]  }
 0x14e   : > { %3333 = vmatprep.subr.bf16.mxu1 %v3687_v6  ;;  %v3695_v14 = vld [vmem:[%s4682_s29 + $0xd8] sm:$0xff]   ;;  %v3699_v18 = vld [vmem:[%s4682_s29 + $0xe0] sm:$0xff]   ;;  %v3703_v22 = vld [vmem:[%s4682_s29 + $0xe8] sm:$0xff]  }
 0x14f   : > { %v3696_v15 = vld [vmem:[%s4682_s29 + $0x18] sm:$0xff]   ;;  %v3700_v19 = vld [vmem:[%s4682_s29 + $0x20] sm:$0xff]   ;;  %v3704_v23 = vld [vmem:[%s4682_s29 + $0x28] sm:$0xff]  }
 0x150   : > { %3312 = vmatpush3.bf16.msra.mxu0 %v3688_v7  ;;  %v3697_v16 = vld [vmem:[%s4682_s29 + $0x98] sm:$0xff]   ;;  %v3701_v20 = vld [vmem:[%s4682_s29 + $0xa0] sm:$0xff]   ;;  %v3705_v24 = vld [vmem:[%s4682_s29 + $0xa8] sm:$0xff]  }
 0x151   : > { %3334 = vmatpush3.bf16.msra.mxu1 %v3689_v8  ;;  %3313 = vmatprep.subr.bf16.mxu0 %v3690_v9  ;;  %v3706_v25 = vld [vmem:[%s4682_s29 + $0x70] sm:$0xff]   ;;  %v3710_v29 = vld [vmem:[%s4682_s29 + $0x78] sm:$0xff]   ;;  %v707_v33 = vld [vmem:[%s4736_s13 + $0x8] sm:$0xff] }
 0x152   : > { %3335 = vmatprep.subr.bf16.mxu1 %v3691_v10  ;;  %v3707_v26 = vld [vmem:[%s4682_s29 + $0xf0] sm:$0xff]   ;;  %v3711_v30 = vld [vmem:[%s4682_s29 + $0xf8] sm:$0xff]   ;;  %v706_v35 = vld [vmem:[%s4736_s13] sm:$0xff]  ;;  %v4795_v36 = vpack.c.bf16 %v707_v33, %v707_v33 }
 0x153   : > { %v3708_v27 = vld [vmem:[%s4682_s29 + $0x30] sm:$0xff]   ;;  %v3712_v31 = vld [vmem:[%s4682_s29 + $0x38] sm:$0xff]   ;;  %v4799_v38 = vpack.c.bf16 %v706_v35, %v706_v35  ;;  %v3714_v41 = vld [vmem:[%s4691_s19 + $0x40] sm:$0xff]  }
 0x154   : > { %3314 = vmatpush3.bf16.msra.mxu0 %v3692_v11  ;;  %v3709_v28 = vld [vmem:[%s4682_s29 + $0xb0] sm:$0xff]   ;;  %v3713_v32 = vld [vmem:[%s4682_s29 + $0xb8] sm:$0xff]   ;;  %1010 = vmatprep.mubr.bf16.mxu0 %v4795_v36  ;;  %v3715_v42 = vld [vmem:[%s4691_s19 + $0xc0] sm:$0xff]  }
 0x155   : > { %3336 = vmatpush3.bf16.msra.mxu1 %v3693_v12  ;;  %3315 = vmatprep.subr.bf16.mxu0 %v3694_v13  ;;  %v709_v34 = vld [vmem:[%s4736_s13 + $0x18] sm:$0xff]  ;;  %v708_v39 = vld [vmem:[%s4736_s13 + $0x10] sm:$0xff]  ;;  %v3716_v43 = vld [vmem:[%s4691_s19] sm:$0xff]  }
 0x156   : > { %3337 = vmatprep.subr.bf16.mxu1 %v3695_v14  ;;  %v4797_v37 = vpack.c.bf16 %v709_v34, %v709_v34  ;;  %v4802_v40 = vpack.c.bf16 %v708_v39, %v708_v39  ;;  %v3717_v44 = vld [vmem:[%s4691_s19 + $0x80] sm:$0xff]   ;;  %v3718_v45 = vld [vmem:[%s4691_s19 + $0x48] sm:$0xff]   ;;  %v3722_v49 = vld [vmem:[%s4691_s19 + $0x50] sm:$0xff]  }
 0x157   : > { %v3719_v46 = vld [vmem:[%s4691_s19 + $0xc8] sm:$0xff]   ;;  %v3723_v50 = vld [vmem:[%s4691_s19 + $0xd0] sm:$0xff]   ;;  %v3726_v53 = vld [vmem:[%s4691_s19 + $0x58] sm:$0xff]  }
 0x158   : > { %3316 = vmatpush3.bf16.msra.mxu0 %v3696_v15  ;;  %1050 = vmatprep.mubr.bf16.mxu1 %v4797_v37  ;;  %v3720_v47 = vld [vmem:[%s4691_s19 + $0x8] sm:$0xff]   ;;  %v3724_v51 = vld [vmem:[%s4691_s19 + $0x10] sm:$0xff]   ;;  %v3727_v54 = vld [vmem:[%s4691_s19 + $0xd8] sm:$0xff]  }
 0x159   : > { %3338 = vmatpush3.bf16.msra.mxu1 %v3697_v16  ;;  %3317 = vmatprep.subr.bf16.mxu0 %v3698_v17  ;;  %v3721_v48 = vld [vmem:[%s4691_s19 + $0x88] sm:$0xff]   ;;  %v3725_v52 = vld [vmem:[%s4691_s19 + $0x90] sm:$0xff]   ;;  %v3728_v55 = vld [vmem:[%s4691_s19 + $0x18] sm:$0xff]  }
 0x15a   : > { %3339 = vmatprep.subr.bf16.mxu1 %v3699_v18  ;;  %v3729_v56 = vld [vmem:[%s4691_s19 + $0x98] sm:$0xff]   ;;  %v3730_v57 = vld [vmem:[%s4691_s19 + $0x60] sm:$0xff]   ;;  %v3734_v61 = vld [vmem:[%s4691_s19 + $0x68] sm:$0xff]  }
 0x15b   : > { %v3731_v58 = vld [vmem:[%s4691_s19 + $0xe0] sm:$0xff]   ;;  %v3735_v62 = vld [vmem:[%s4691_s19 + $0xe8] sm:$0xff]   ;;  %v3738_v1 = vld [vmem:[%s4691_s19 + $0x70] sm:$0xff]  }
 0x15c   : > { %3318 = vmatpush3.bf16.msra.mxu0 %v3700_v19  ;;  %v3732_v59 = vld [vmem:[%s4691_s19 + $0x20] sm:$0xff]   ;;  %v3736_v63 = vld [vmem:[%s4691_s19 + $0x28] sm:$0xff]   ;;  %v3739_v2 = vld [vmem:[%s4691_s19 + $0xf0] sm:$0xff]  }
 0x15d   : > { %3340 = vmatpush3.bf16.msra.mxu1 %v3701_v20  ;;  %3319 = vmatprep.subr.bf16.mxu0 %v3702_v21  ;;  %v3733_v60 = vld [vmem:[%s4691_s19 + $0xa0] sm:$0xff]   ;;  %v3737_v0 = vld [vmem:[%s4691_s19 + $0xa8] sm:$0xff]   ;;  %v3740_v3 = vld [vmem:[%s4691_s19 + $0x30] sm:$0xff]  }
 0x15e   : > { %3341 = vmatprep.subr.bf16.mxu1 %v3703_v22  ;;  %v3741_v4 = vld [vmem:[%s4691_s19 + $0xb0] sm:$0xff]   ;;  %v3742_v5 = vld [vmem:[%s4691_s19 + $0x78] sm:$0xff]   ;;  %v3746_v9 = vld [vmem:[%s4698_s12 + $0x40] sm:$0xff]  }
 0x15f   : > { %v3743_v6 = vld [vmem:[%s4691_s19 + $0xf8] sm:$0xff]   ;;  %v3747_v10 = vld [vmem:[%s4698_s12] sm:$0xff]   ;;  %v3748_v11 = vld [vmem:[%s4698_s12 + $0x48] sm:$0xff]  }
 0x160   : > { %3320 = vmatpush3.bf16.msra.mxu0 %v3704_v23  ;;  %v3744_v7 = vld [vmem:[%s4691_s19 + $0x38] sm:$0xff]   ;;  %v3749_v12 = vld [vmem:[%s4698_s12 + $0x8] sm:$0xff]   ;;  %v3750_v13 = vld [vmem:[%s4698_s12 + $0xc0] sm:$0xff]  }
 0x161   : > { %3342 = vmatpush3.bf16.msra.mxu1 %v3705_v24  ;;  %3321 = vmatprep.subr.bf16.mxu0 %v3706_v25  ;;  %v3745_v8 = vld [vmem:[%s4691_s19 + $0xb8] sm:$0xff]   ;;  %v3751_v14 = vld [vmem:[%s4698_s12 + $0x50] sm:$0xff]   ;;  %v3752_v15 = vld [vmem:[%s4698_s12 + $0x80] sm:$0xff]  }
 0x162   : > { %3343 = vmatprep.subr.bf16.mxu1 %v3707_v26  ;;  %v3754_v16 = vld [vmem:[%s4698_s12 + $0xc8] sm:$0xff]   ;;  %v3753_v18 = vld [vmem:[%s4698_s12 + $0x10] sm:$0xff]   ;;  %v3755_v20 = vld [vmem:[%s4698_s12 + $0x58] sm:$0xff]  }
 0x163   : > { %v3756_v17 = vld [vmem:[%s4698_s12 + $0x88] sm:$0xff]   ;;  %v3758_v19 = vld [vmem:[%s4698_s12 + $0xd0] sm:$0xff]   ;;  %v3757_v22 = vld [vmem:[%s4698_s12 + $0x18] sm:$0xff]  }
 0x164   : > { %3322 = vmatpush3.bf16.msra.mxu0 %v3708_v27  ;;  %v3760_v21 = vld [vmem:[%s4698_s12 + $0x90] sm:$0xff]   ;;  %v3762_v23 = vld [vmem:[%s4698_s12 + $0xd8] sm:$0xff]   ;;  %v3759_v24 = vld [vmem:[%s4698_s12 + $0x60] sm:$0xff]  }
 0x165   : > { %3344 = vmatpush3.bf16.msra.mxu1 %v3709_v28  ;;  %3323 = vmatprep.subr.bf16.mxu0 %v3710_v29  ;;  %v3764_v25 = vld [vmem:[%s4698_s12 + $0x98] sm:$0xff]   ;;  %v3761_v26 = vld [vmem:[%s4698_s12 + $0x20] sm:$0xff]   ;;  %v3763_v28 = vld [vmem:[%s4698_s12 + $0x68] sm:$0xff]  }
 0x166   : > { %3345 = vmatprep.subr.bf16.mxu1 %v3711_v30  ;;  %v3766_v27 = vld [vmem:[%s4698_s12 + $0xe0] sm:$0xff]   ;;  %v3765_v30 = vld [vmem:[%s4698_s12 + $0x28] sm:$0xff]   ;;  %v3771_v35 = vld [vmem:[%s4698_s12 + $0x78] sm:$0xff]  }
 0x167   : > { %v3768_v29 = vld [vmem:[%s4698_s12 + $0xa0] sm:$0xff]   ;;  %v3770_v33 = vld [vmem:[%s4698_s12 + $0xe8] sm:$0xff]   ;;  %v3775_v39 = vld [vmem:[%s4698_s12 + $0xb0] sm:$0xff]  }
 0x168   : > { %3324 = vmatpush3.bf16.msra.mxu0 %v3712_v31  ;;  %v3767_v31 = vld [vmem:[%s4698_s12 + $0x70] sm:$0xff]   ;;  %v3772_v34 = vld [vmem:[%s4698_s12 + $0xa8] sm:$0xff]  }
 0x169   : > { %3346 = vmatpush3.bf16.msra.mxu1 %v3713_v32  ;;  %3353 = vmatprep.subr.bf16.mxu0 %v3714_v41  ;;  %v3769_v32 = vld [vmem:[%s4698_s12 + $0x30] sm:$0xff]   ;;  %v3776_v41 = vld [vmem:[%s4698_s12 + $0xf8] sm:$0xff]  }
 0x16a   : > { %3375 = vmatprep.subr.bf16.mxu1 %v3715_v42  ;;  %v3777_v42 = vld [vmem:[%s4698_s12 + $0xb8] sm:$0xff]  }
 0x16b   : > { %1011 = vmatmul.mubr.bf16.vlgmr.msra.gmra.mrb[0].mxu0 %v4799_v38 }
 0x16c   : > { %1051 = vmatmul.mubr.bf16.vlgmr.msra.gmra.mrb[0].mxu1 %v4802_v40  ;;  %3354 = vmatpush3.bf16.msra.mxu0 %v3716_v43  ;;  %v4199_v43 = vmov 0.0  }
 0x16d   : > { %1353 = vmatprep.mubr.bf16.mxu0 %v4795_v36  ;;  %3376 = vmatpush3.bf16.msra.mxu1 %v3717_v44 }
 0x16e   : > { %1393 = vmatprep.mubr.bf16.mxu1 %v4797_v37  ;;  %3355 = vmatprep.subr.bf16.mxu0 %v3718_v45  ;;  %v3154_v45 = vld [vmem:[%s680_s4] ss:$0 sm:$0xff]  ;;  %s4201_s4 = smov 96  }
 0x16f   : > { %3377 = vmatprep.subr.bf16.mxu1 %v3719_v46 }
 0x170   : > { %3356 = vmatpush3.bf16.msra.mxu0 %v3720_v47 }
 0x171   : > { %3378 = vmatpush3.bf16.msra.mxu1 %v3721_v48  ;;  %3357 = vmatprep.subr.bf16.mxu0 %v3722_v49 }
 0x172   : > { %3379 = vmatprep.subr.bf16.mxu1 %v3723_v50 }
 0x174   : > { %3358 = vmatpush3.bf16.msra.mxu0 %v3724_v51 }
 0x175   : > { %3380 = vmatpush3.bf16.msra.mxu1 %v3725_v52  ;;  %3359 = vmatprep.subr.bf16.mxu0 %v3726_v53 }
 0x176   : > { %3381 = vmatprep.subr.bf16.mxu1 %v3727_v54 }
 0x178   : > { %3360 = vmatpush3.bf16.msra.mxu0 %v3728_v55 }
 0x179   : > { %3382 = vmatpush3.bf16.msra.mxu1 %v3729_v56  ;;  %3361 = vmatprep.subr.bf16.mxu0 %v3730_v57  ;;  %v3187_v57 = vld [vmem:[%s684_s1] ss:$0 sm:$0xff] }
 0x17a   : > { %3383 = vmatprep.subr.bf16.mxu1 %v3731_v58 }
 0x17c   : > { %3362 = vmatpush3.bf16.msra.mxu0 %v3732_v59 }
 0x17d   : > { %3384 = vmatpush3.bf16.msra.mxu1 %v3733_v60  ;;  %3363 = vmatprep.subr.bf16.mxu0 %v3734_v61 }
 0x17e   : > { %3385 = vmatprep.subr.bf16.mxu1 %v3735_v62 }
 0x180   : > { %3364 = vmatpush3.bf16.msra.mxu0 %v3736_v63 }
 0x181   : > { %3386 = vmatpush3.bf16.msra.mxu1 %v3737_v0  ;;  %3365 = vmatprep.subr.bf16.mxu0 %v3738_v1 }
 0x182   : > { %3387 = vmatprep.subr.bf16.mxu1 %v3739_v2 }
 0x184   : > { %3366 = vmatpush3.bf16.msra.mxu0 %v3740_v3 }
 0x185   : > { %3388 = vmatpush3.bf16.msra.mxu1 %v3741_v4  ;;  %3367 = vmatprep.subr.bf16.mxu0 %v3742_v5 }
 0x186   : > { %3389 = vmatprep.subr.bf16.mxu1 %v3743_v6 }
 0x188   : > { %3368 = vmatpush3.bf16.msra.mxu0 %v3744_v7 }
 0x189   : > { %3390 = vmatpush3.bf16.msra.mxu1 %v3745_v8  ;;  %3397 = vmatprep.subr.bf16.mxu0 %v3746_v9 }
 0x18a   : > { %3419 = vmatprep.subr.bf16.mxu1 %v3750_v13 }
 0x18b   : > { %1354 = vmatmul.mubr.bf16.vlgmr.msra.gmra.mrb[4].mxu0 %v4799_v38 }
 0x18c   : > { %1394 = vmatmul.mubr.bf16.vlgmr.msra.gmra.mrb[4].mxu1 %v4802_v40  ;;  %1696 = vmatprep.mubr.bf16.mxu0 %v4795_v36  ;;  %v3773_v36 = vld [vmem:[%s4698_s12 + $0x38] sm:$0xff]  }
 0x18d   : > { %1736 = vmatprep.mubr.bf16.mxu1 %v4797_v37  ;;  %3398 = vmatpush3.bf16.msra.mxu0 %v3747_v10  ;;  %v3774_v37 = vld [vmem:[%s4698_s12 + $0xf0] sm:$0xff]  }
 0x18e   : > { %3399 = vmatprep.subr.bf16.mxu0 %v3748_v11  ;;  %3420 = vmatpush3.bf16.msra.mxu1 %v3752_v15  ;;  %v3220_v11 = vld [vmem:[%s689_s15] ss:$0 sm:$0xff] }
 0x18f   : > { %3421 = vmatprep.subr.bf16.mxu1 %v3754_v16 }
 0x191   : > { %3400 = vmatpush3.bf16.msra.mxu0 %v3749_v12 }
 0x192   : > { %3401 = vmatprep.subr.bf16.mxu0 %v3751_v14  ;;  %3422 = vmatpush3.bf16.msra.mxu1 %v3756_v17 }
 0x193   : > { %3423 = vmatprep.subr.bf16.mxu1 %v3758_v19 }
 0x195   : > { %3402 = vmatpush3.bf16.msra.mxu0 %v3753_v18 }
 0x196   : > { %3403 = vmatprep.subr.bf16.mxu0 %v3755_v20  ;;  %3424 = vmatpush3.bf16.msra.mxu1 %v3760_v21 }
 0x197   : > { %3425 = vmatprep.subr.bf16.mxu1 %v3762_v23 }
 0x199   : > { %3404 = vmatpush3.bf16.msra.mxu0 %v3757_v22  ;;  %v4922_v22 = vld [vmem:[%s675_s7] ss:$0 sm:$0xff] }
 0x19a   : > { %3405 = vmatprep.subr.bf16.mxu0 %v3759_v24  ;;  %3426 = vmatpush3.bf16.msra.mxu1 %v3764_v25 }
 0x19b   : > { %3427 = vmatprep.subr.bf16.mxu1 %v3766_v27 }
 0x19d   : > { %3406 = vmatpush3.bf16.msra.mxu0 %v3761_v26 }
 0x19e   : > { %3407 = vmatprep.subr.bf16.mxu0 %v3763_v28  ;;  %3428 = vmatpush3.bf16.msra.mxu1 %v3768_v29 }
 0x19f   : > { %3429 = vmatprep.subr.bf16.mxu1 %v3770_v33 }
 0x1a1   : > { %3408 = vmatpush3.bf16.msra.mxu0 %v3765_v30 }
 0x1a2   : > { %3409 = vmatprep.subr.bf16.mxu0 %v3767_v31  ;;  %3430 = vmatpush3.bf16.msra.mxu1 %v3772_v34  ;;  %v3778_v34 = vld [vmem:[%s4704_s17] ss:$16 sps:$4 sm:$0xff]  }
 0x1a3   : > { %3431 = vmatprep.subr.bf16.mxu1 %v3774_v37  ;;  %v3786_v37 = vld [vmem:[%s4704_s17 + $0xc] ss:$16 sps:$4 sm:$0xff]  }
 0x1a5   : > { %3410 = vmatpush3.bf16.msra.mxu0 %v3769_v32 }
 0x1a6   : > { %3411 = vmatprep.subr.bf16.mxu0 %v3771_v35  ;;  %3432 = vmatpush3.bf16.msra.mxu1 %v3775_v39  ;;  %v3780_v35 = vld [vmem:[%s4704_s17 + $0x4] ss:$16 sps:$4 sm:$0xff]   ;;  %v3781_v39 = vld [vmem:[%s4704_s17 + $0x20] ss:$16 sps:$4 sm:$0xff]  }
 0x1a7   : > { %3433 = vmatprep.subr.bf16.mxu1 %v3776_v41 }
 0x1a9   : > { %3412 = vmatpush3.bf16.msra.mxu0 %v3773_v36  ;;  %v3783_v36 = vld [vmem:[%s4704_s17 + $0x24] ss:$16 sps:$4 sm:$0xff]  }
 0x1aa   : > { %3434 = vmatpush3.bf16.msra.mxu1 %v3777_v42  ;;  %3457 = vmatprep.subr.bf16.mxu0 %v4199_v43 }
 0x1ab   : > { %3463 = vmatprep.subr.bf16.mxu1 %v4199_v43 }
 0x1ac   : > { %1697 = vmatmul.mubr.bf16.vlgmr.msra.gmra.mrb[8].mxu0 %v4799_v38 }
 0x1ad   : > { %1737 = vmatmul.mubr.bf16.vlgmr.msra.gmra.mrb[8].mxu1 %v4802_v40  ;;  %3459 = vmatprep.mubr.msk.bf16.mxu0 %vm4200_vm0, %v4199_v43 }
 0x1ae   : > { %3465 = vmatprep.mubr.msk.bf16.mxu1 %vm4200_vm0, %v4199_v43 }
 0x23e   : > { %v3325_v38 = vpop.f32.mrb[0].mxu0 }
 0x23f   : > { %v3347_v44 = vpop.f32.mrb[0].mxu1  ;;  %v3326_v46 = vpop.f32.mrb[1].mxu0 }
 0x240   : > { %v3348_v47 = vpop.f32.mrb[1].mxu1  ;;  %v3327_v48 = vadd.f32 %v3326_v46, %v3325_v38  ;;  %v3328_v40 = vpop.f32.mrb[2].mxu0  ;;  %v3789_v46 = vld [vmem:[%s4704_s17 + $0x2c] ss:$16 sps:$4 sm:$0xff]  }
 0x241   : > { %v3349_v49 = vadd.f32 %v3348_v47, %v3347_v44  ;;  %v3350_v50 = vpop.f32.mrb[2].mxu1  ;;  %v3329_v51 = vpop.f32.mrb[3].mxu0  ;;  %v3784_v44 = vld [vmem:[%s4704_s17 + $0x8] ss:$16 sps:$4 sm:$0xff]  }
 0x242   : > { %v3351_v52 = vpop.f32.mrb[3].mxu1  ;;  %v1013_v53 = vadd.f32 %v3327_v48, %v3154_v45  ;;  %v3787_v47 = vld [vmem:[%s4704_s17 + $0x28] ss:$16 sps:$4 sm:$0xff]   ;;  %v4202_v48 = vmov 0  }
 0x244   : > { %v1053_v54 = vadd.f32 %v3349_v49, %v1013_v53 }
 0x246   : > { %v4902_v6 = vpack.c.bf16 %v1053_v54, %v1053_v54 }
 0x25e   : > { %v3369_v55 = vpop.f32.mrb[4].mxu0 }
 0x25f   : > { %v3391_v56 = vpop.f32.mrb[4].mxu1  ;;  %v3370_v58 = vpop.f32.mrb[5].mxu0 }
 0x260   : > { %v3371_v59 = vadd.f32 %v3370_v58, %v3369_v55  ;;  %v3392_v60 = vpop.f32.mrb[5].mxu1  ;;  %v3372_v61 = vpop.f32.mrb[6].mxu0 }
 0x261   : > { %v3393_v62 = vadd.f32 %v3392_v60, %v3391_v56  ;;  %v3394_v63 = vpop.f32.mrb[6].mxu1  ;;  %v3373_v0 = vpop.f32.mrb[7].mxu0 }
 0x262   : > { %v1356_v1 = vadd.f32 %v3371_v59, %v3187_v57  ;;  %v3395_v2 = vpop.f32.mrb[7].mxu1 }
 0x264   : > { %v1396_v3 = vadd.f32 %v3393_v62, %v1356_v1 }
 0x266   : > { %v4896_v4 = vpack.c.bf16 %v1396_v3, %v1396_v3 }
 0x268   : > { %2010 = vrot.lane.b32.xlu1 %v4896_v4, %s4201_s4  ;;  %v1758_v5 = vsel %vm1753_vm1, %v4896_v4, 0 }
 0x269   : > { %3458 = vmatpush3.bf16.xpose.msra.mxu0 %v1758_v5 }
 0x26a   : > { %1916 = vmatprep.subr.bf16.mxu0 %v3780_v35 }
 0x26c   : > { %2007 = vrot.lane.b32.xlu1 %v4902_v6, %s4201_s4 }
 0x270   : > { %3460 = vmatmul.mubr.msk.bf16.vlgmr.msra.gmra.mrb[12].mxu0 %vm1753_vm1, %v4902_v6 }
 0x271   : > { %1917 = vmatpush1.bf16.msra.mxu0 %v3778_v34  ;;  %1948 = vmatprep.mubr.bf16.mxu0 %v4202_v48 }
 0x272   : > { %1918 = vmatprep.subr.bf16.mxu0 %v3783_v36 }
 0x275   : > { %1919 = vmatpush1.bf16.msra.mxu0 %v3781_v39  ;;  %v1862_v39 = vld [vmem:[#allocation2 + $0x10] sm:$0xff] }
 0x276   : > { %3469 = vmatprep.subr.bf16.mxu0 %v4199_v43 }
 0x27f   : > { %v3413_v7 = vpop.f32.mrb[8].mxu0 }
 0x280   : > { %v3414_v8 = vpop.f32.mrb[9].mxu0  ;;  %v3435_v14 = vpop.f32.mrb[8].mxu1 }
 0x281   : > { %v3415_v9 = vadd.f32 %v3414_v8, %v3413_v7  ;;  %v3416_v10 = vpop.f32.mrb[10].mxu0  ;;  %v3436_v15 = vpop.f32.mrb[9].mxu1 }
 0x282   : > { %v3417_v12 = vpop.f32.mrb[11].mxu0  ;;  %v3437_v16 = vadd.f32 %v3436_v15, %v3435_v14  ;;  %v3438_v17 = vpop.f32.mrb[10].mxu1  ;;  %v3790_v15 = vld [vmem:[%s4704_s17 + $0x40] ss:$16 sps:$4 sm:$0xff]  }
 0x283   : > { %v1699_v13 = vadd.f32 %v3415_v9, %v3220_v11  ;;  %v3439_v18 = vpop.f32.mrb[11].mxu1  ;;  %v3795_v17 = vld [vmem:[%s4704_s17 + $0x64] ss:$16 sps:$4 sm:$0xff]  }
 0x284   : > { %v3798_v18 = vld [vmem:[%s4704_s17 + $0x4c] ss:$16 sps:$4 sm:$0xff]  }
 0x285   : > { %v1739_v19 = vadd.f32 %v3437_v16, %v1699_v13  ;;  %v3792_v16 = vld [vmem:[%s4704_s17 + $0x44] ss:$16 sps:$4 sm:$0xff]  }
 0x287   : > { %v4913_v20 = vpack.c.bf16 %v1739_v19, %v1739_v19  ;;  %v3793_v19 = vld [vmem:[%s4704_s17 + $0x60] ss:$16 sps:$4 sm:$0xff]  }
 0x289   : > { %v1818_v21 = vsel %vm1816_vm2, %v4913_v20, 0 }
 0x28a   : > { %3464 = vmatpush3.bf16.msra.mxu1 %v1818_v21 }
 0x28b   : > { %1957 = vmatprep.subr.bf16.mxu1 %v3786_v37  ;;  %v1860_v37 = vld [vmem:[#allocation2] sm:$0xff] }
 0x2da   : > { %v2011_v49 = vpop.permute.xlu1 %2010 }
 0x2db   : > { %v2016_v53 = vsel %vm1753_vm1, %v2011_v49, 0 }
 0x2de   : > { %v2008_v55 = vpop.permute.xlu1 %2007 }
 0x343   : > { %v1794_v23 = vpop.f32.mrb[12].mxu0 }
 0x344   : > { %v1795_v24 = vadd.f32 %v4922_v22, %v1794_v23  ;;  %v3461_v25 = vpop.f32.mrb[13].mxu0 }
 0x345   : > { %v1797_v26 = vpop.f32.mrb[14].mxu0  ;;  %v3796_v25 = vld [vmem:[%s4704_s17 + $0x48] ss:$16 sps:$4 sm:$0xff]  }
 0x346   : > { %v3462_v27 = vpop.f32.mrb[15].mxu0  ;;  %v1801_v28 = vsel %vm1800_vm3, %v1795_v24, -inf }
 0x347   : > { %1802 = vmax.xlane.f32.xlu0 %v1801_v28  ;;  %v3801_v27 = vld [vmem:[%s4704_s17 + $0x6c] ss:$16 sps:$4 sm:$0xff]   ;;  %v3799_v28 = vld [vmem:[%s4704_s17 + $0x68] ss:$16 sps:$4 sm:$0xff]  }
 0x3d4   : > { %v1803_v29 = vpop.xlane.xlu0 %1802 }
 0x3d5   : > { %v1804_v30 = vsub.f32 %v1795_v24, %v1803_v29 }
 0x3d7   : > { %v1805_v31 = vmul.f32 1.442695, %v1804_v30 }
 0x3d9   : > { %3826 = vpow2.f32 %v1805_v31 }
 0x3e3   : > { %v3827_v32 = vpop.eup %3826 }
 0x3e4   : > { %v1807_v33 = vsel %vm1800_vm3, %v3827_v32, 0.0 }
 0x3e5   : > { %1808 = vadd.xlane.f32.xlu0 %v1807_v33 }
 0x472   : > { %v1809_v41 = vpop.xlane.xlu0 %1808 }
 0x473   : > { %3828 = vrcp.f32 %v1809_v41  ;;  %v1861_v41 = vld [vmem:[#allocation2 + $0x8] sm:$0xff] }
 0x47d   : > { %v3829_v42 = vpop.eup %3828 }
 0x47e   : > { %v1811_v38 = vmul.f32 %v3829_v42, %v3827_v32  ;;  %v1863_v42 = vld [vmem:[#allocation2 + $0x18] sm:$0xff] }
 0x480   : > { %v1812_v45 = vpack.c.bf16 %v1811_v38, %v1811_v38 }
 0x482   : > { %3466 = vmatmul.mubr.msk.bf16.vlgmr.msra.gmra.mrb[12].mxu1 %vm1800_vm3, %v1812_v45 }
 0x483   : > { %1958 = vmatpush1.bf16.msra.mxu1 %v3784_v44  ;;  %1989 = vmatprep.mubr.bf16.mxu1 %v4202_v48 }
 0x484   : > { %1959 = vmatprep.subr.bf16.mxu1 %v3789_v46 }
 0x487   : > { %1960 = vmatpush1.bf16.msra.mxu1 %v3787_v47 }
 0x488   : > { %3475 = vmatprep.subr.bf16.mxu1 %v4199_v43 }
 0x555   : > { %v1854_v40 = vpop.f32.mrb[12].mxu1 }
 0x556   : > { %v1864_v50 = vpack.c.bf16 %v1854_v40, %v1854_v40  ;;  %v3467_v51 = vpop.f32.mrb[13].mxu1 }
 0x557   : > { %v1857_v52 = vpop.f32.mrb[14].mxu1 }
 0x558   : > { %v3468_v54 = vpop.f32.mrb[15].mxu1  ;;  %3264 = vmatmul.mubr.msk.bf16.vlgmr.msra.gmra.mrb[16].mxu0 %vm1753_vm1, %v1864_v50  ;;  %3265 = vmatmul.mubr.msk.bf16.vlgmr.msra.gmra.mrb[16].mxu1 %vm1753_vm1, %v1864_v50 }
 0x559   : > { %3470 = vmatpush3.bf16.xpose.msra.mxu0 %v2016_v53  ;;  %3471 = vmatprep.mubr.msk.bf16.mxu0 %vm4200_vm0, %v4199_v43 }
 0x55a   : > { %3477 = vmatprep.mubr.msk.bf16.mxu1 %vm4200_vm0, %v4199_v43  ;;  %2175 = vmatprep.subr.bf16.mxu0 %v3792_v16  ;;  %v3808_v16 = vld [vmem:[%s4704_s17 + $0x88] ss:$16 sps:$4 sm:$0xff]  }
 0x560   : > { %3472 = vmatmul.mubr.msk.bf16.vlgmr.msra.gmra.mrb[20].mxu0 %vm1753_vm1, %v2008_v55 }
 0x561   : > { %2207 = vmatprep.mubr.bf16.mxu0 %v4202_v48  ;;  %2176 = vmatpush1.bf16.msra.mxu0 %v3790_v15 }
 0x562   : > { %2177 = vmatprep.subr.bf16.mxu0 %v3795_v17 }
 0x565   : > { %2178 = vmatpush1.bf16.msra.mxu0 %v3793_v19  ;;  %v3811_v19 = vld [vmem:[%s4704_s17 + $0xa8] ss:$16 sps:$4 sm:$0xff]  }
 0x566   : > { %3481 = vmatprep.subr.bf16.mxu0 %v4199_v43 }
 0x62b   : > { %v4949_v56 = vpop.f32.mrb[16].mxu0  ;;  %v4951_v57 = vpop.f32.mrb[16].mxu1 }
 0x62c   : > { %v4953_v58 = vpop.f32.mrb[17].mxu0  ;;  %v4955_v59 = vpop.f32.mrb[17].mxu1  ;;  %v1998_v38 = vadd.f32 %v4949_v56, %v1860_v37  ;;  %v2000_v44 = vadd.f32 %v4951_v57, %v1862_v39 }
 0x62d   : > { %v1954_v60 = vpop.f32.mrb[18].mxu0  ;;  %v1995_v61 = vpop.f32.mrb[18].mxu1  ;;  %v1999_v45 = vadd.f32 %v4953_v58, %v1861_v41  ;;  %v2001_v46 = vadd.f32 %v4955_v59, %v1863_v42 }
 0x62e   : > { %v1955_v62 = vpop.f32.mrb[19].mxu0  ;;  %v1996_v63 = vpop.f32.mrb[19].mxu1 }
 0x633   : > { %v2052_v0 = vpop.f32.mrb[20].mxu0 }
 0x634   : > { %v2053_v1 = vadd.f32 %v4922_v22, %v2052_v0  ;;  %v3473_v2 = vpop.f32.mrb[21].mxu0 }
 0x635   : > { %v2055_v3 = vpop.f32.mrb[22].mxu0 }
 0x636   : > { %v3474_v5 = vpop.f32.mrb[23].mxu0  ;;  %v2058_v7 = vsel %vm1800_vm3, %v2053_v1, -inf }
 0x637   : > { %2059 = vmax.xlane.f32.xlu0 %v2058_v7 }
 0x64d   : > { %2071 = vrot.lane.b32.xlu0 %v4913_v20, %s4201_s4 }
 0x651   : > { %2267 = vrot.lane.b32.xlu0 %v4896_v4, %s4203_s10 }
 0x655   : > { %2265 = vrot.lane.b32.xlu0 %v4902_v6, %s4203_s10 }
 0x6c4   : > { %v2060_v8 = vpop.xlane.xlu0 %2059 }
 0x6c5   : > { %v2061_v9 = vsub.f32 %v2053_v1, %v2060_v8  ;;  %v3802_v8 = vld [vmem:[%s4704_s17 + $0x80] ss:$16 sps:$4 sm:$0xff]  }
 0x6c7   : > { %v2062_v10 = vmul.f32 1.442695, %v2061_v9  ;;  %v3804_v9 = vld [vmem:[%s4704_s17 + $0x84] ss:$16 sps:$4 sm:$0xff]  }
 0x6c8   : > { %v2072_v11 = vpop.permute.xlu0 %2071 }
 0x6c9   : > { %3830 = vpow2.f32 %v2062_v10  ;;  %v2077_v12 = vsel %vm1816_vm2, %v2072_v11, 0  ;;  %v3807_v10 = vld [vmem:[%s4704_s17 + $0xa4] ss:$16 sps:$4 sm:$0xff]   ;;  %v3805_v11 = vld [vmem:[%s4704_s17 + $0xa0] ss:$16 sps:$4 sm:$0xff]  }
 0x6ca   : > { %3476 = vmatpush3.bf16.msra.mxu1 %v2077_v12 }
 0x6cb   : > { %2216 = vmatprep.subr.bf16.mxu1 %v3798_v18  ;;  %v3813_v18 = vld [vmem:[%s4704_s17 + $0xac] ss:$16 sps:$4 sm:$0xff]  }
 0x6cc   : > { %v2268_v29 = vpop.permute.xlu0 %2267 }
 0x6cd   : > { %v2273_v34 = vsel %vm1753_vm1, %v2268_v29, 0 }
 0x6d0   : > { %v2266_v36 = vpop.permute.xlu0 %2265 }
 0x6d3   : > { %v3831_v13 = vpop.eup %3830 }
 0x6d4   : > { %v2064_v14 = vsel %vm1800_vm3, %v3831_v13, 0.0 }
 0x6d5   : > { %2065 = vadd.xlane.f32.xlu1 %v2064_v14 }
 0x762   : > { %v2066_v21 = vpop.xlane.xlu1 %2065 }
 0x763   : > { %3832 = vrcp.f32 %v2066_v21 }
 0x76d   : > { %v3833_v23 = vpop.eup %3832 }
 0x76e   : > { %v2068_v24 = vmul.f32 %v3833_v23, %v3831_v13  ;;  %v3810_v13 = vld [vmem:[%s4704_s17 + $0x8c] ss:$16 sps:$4 sm:$0xff]  }
 0x770   : > { %v2069_v26 = vpack.c.bf16 %v2068_v24, %v2068_v24 }
 0x772   : > { %3478 = vmatmul.mubr.msk.bf16.vlgmr.msra.gmra.mrb[20].mxu1 %vm1800_vm3, %v2069_v26 }
 0x773   : > { %2217 = vmatpush1.bf16.msra.mxu1 %v3796_v25  ;;  %2248 = vmatprep.mubr.bf16.mxu1 %v4202_v48 }
 0x774   : > { %2218 = vmatprep.subr.bf16.mxu1 %v3801_v27 }
 0x777   : > { %2219 = vmatpush1.bf16.msra.mxu1 %v3799_v28 }
 0x778   : > { %3487 = vmatprep.subr.bf16.mxu1 %v4199_v43 }
 0x845   : > { %v2113_v30 = vpop.f32.mrb[20].mxu1 }
 0x846   : > { %v2123_v31 = vpack.c.bf16 %v2113_v30, %v2113_v30  ;;  %v3479_v32 = vpop.f32.mrb[21].mxu1 }
 0x847   : > { %v2116_v33 = vpop.f32.mrb[22].mxu1 }
 0x848   : > { %v3480_v35 = vpop.f32.mrb[23].mxu1  ;;  %3276 = vmatmul.mubr.msk.bf16.vlgmr.msra.gmra.mrb[24].mxu0 %vm1753_vm1, %v2123_v31  ;;  %3277 = vmatmul.mubr.msk.bf16.vlgmr.msra.gmra.mrb[24].mxu1 %vm1753_vm1, %v2123_v31 }
 0x849   : > { %3482 = vmatpush3.bf16.xpose.msra.mxu0 %v2273_v34  ;;  %3483 = vmatprep.mubr.msk.bf16.mxu0 %vm4200_vm0, %v4199_v43 }
 0x84a   : > { %3489 = vmatprep.mubr.msk.bf16.mxu1 %vm4200_vm0, %v4199_v43  ;;  %2431 = vmatprep.subr.bf16.mxu0 %v3804_v9 }
 0x850   : > { %3484 = vmatmul.mubr.msk.bf16.vlgmr.msra.gmra.mrb[28].mxu0 %vm1753_vm1, %v2266_v36 }
 0x851   : > { %2463 = vmatprep.mubr.bf16.mxu0 %v4202_v48  ;;  %2432 = vmatpush1.bf16.msra.mxu0 %v3802_v8 }
 0x852   : > { %2433 = vmatprep.subr.bf16.mxu0 %v3807_v10 }
 0x855   : > { %2434 = vmatpush1.bf16.msra.mxu0 %v3805_v11 }
 0x856   : > { %3493 = vmatprep.subr.bf16.mxu0 %v4199_v43 }
 0x91b   : > { %v2209_v47 = vpop.f32.mrb[24].mxu0  ;;  %v2250_v49 = vpop.f32.mrb[24].mxu1 }
 0x91c   : > { %v4992_v40 = vadd.f32 %v2209_v47, %v1998_v38  ;;  %v4994_v50 = vadd.f32 %v2250_v49, %v2000_v44  ;;  %v2211_v51 = vpop.f32.mrb[25].mxu0  ;;  %v2252_v52 = vpop.f32.mrb[25].mxu1 }
 0x91d   : > { %v4996_v53 = vadd.f32 %v2211_v51, %v1999_v45  ;;  %v4998_v54 = vadd.f32 %v2252_v52, %v2001_v46  ;;  %v2213_v55 = vpop.f32.mrb[26].mxu0  ;;  %v2254_v56 = vpop.f32.mrb[26].mxu1 }
 0x91e   : > { %v2214_v60 = vpop.f32.mrb[27].mxu0  ;;  %v2255_v57 = vpop.f32.mrb[27].mxu1  ;;  %v3814_v55 = vld [vmem:[%s4704_s17 + $0xc0] ss:$16 sps:$4 sm:$0xff]   ;;  %v3816_v56 = vld [vmem:[%s4704_s17 + $0xc4] ss:$16 sps:$4 sm:$0xff]  }
 0x91f   : > { %v3819_v60 = vld [vmem:[%s4704_s17 + $0xcc] ss:$16 sps:$4 sm:$0xff]   ;;  %v3822_v57 = vld [vmem:[%s4704_s17 + $0xe4] ss:$16 sps:$4 sm:$0xff]  }
 0x923   : > { %v2309_v61 = vpop.f32.mrb[28].mxu0 }
 0x924   : > { %v2310_v58 = vadd.f32 %v4922_v22, %v2309_v61  ;;  %v3485_v59 = vpop.f32.mrb[29].mxu0 }
 0x925   : > { %v2312_v62 = vpop.f32.mrb[30].mxu0 }
 0x926   : > { %v3486_v63 = vpop.f32.mrb[31].mxu0  ;;  %v2315_v0 = vsel %vm1800_vm3, %v2310_v58, -inf  ;;  %v3817_v62 = vld [vmem:[%s4704_s17 + $0xc8] ss:$16 sps:$4 sm:$0xff]  }
 0x927   : > { %2316 = vmax.xlane.f32.xlu0 %v2315_v0  ;;  %v3825_v0 = vld [vmem:[%s4704_s17 + $0xec] ss:$16 sps:$4 sm:$0xff]  }
 0x9b4   : > { %v2317_v1 = vpop.xlane.xlu0 %2316 }
 0x9b5   : > { %v2318_v2 = vsub.f32 %v2310_v58, %v2317_v1  ;;  %v3823_v1 = vld [vmem:[%s4704_s17 + $0xe8] ss:$16 sps:$4 sm:$0xff]  }
 0x9b7   : > { %v2319_v3 = vmul.f32 1.442695, %v2318_v2 }
 0x9b9   : > { %3834 = vpow2.f32 %v2319_v3 }
 0x9c3   : > { %v3835_v5 = vpop.eup %3834 }
 0x9c4   : > { %v2321_v7 = vsel %vm1800_vm3, %v3835_v5, 0.0 }
 0x9c5   : > { %2322 = vadd.xlane.f32.xlu1 %v2321_v7 }
 0x9d6   : > { %2327 = vrot.lane.b32.xlu1 %v4913_v20, %s4203_s10 }
 0x9da   : > { %2523 = vrot.lane.b32.xlu1 %v4896_v4, %s4204_s30 }
 0x9de   : > { %2521 = vrot.lane.b32.xlu1 %v4902_v6, %s4204_s30 }
 0xa52   : > { %v2323_v12 = vpop.xlane.xlu1 %2322 }
 0xa53   : > { %3836 = vrcp.f32 %v2323_v12 }
 0xa56   : > { %v2328_v4 = vpop.permute.xlu1 %2327 }
 0xa57   : > { %v2333_v14 = vsel %vm1816_vm2, %v2328_v4, 0 }
 0xa58   : > { %3488 = vmatpush3.bf16.msra.mxu1 %v2333_v14 }
 0xa59   : > { %2472 = vmatprep.subr.bf16.mxu1 %v3810_v13 }
 0xa5a   : > { %v2524_v21 = vpop.permute.xlu1 %2523 }
 0xa5b   : > { %v2529_v27 = vsel %vm1753_vm1, %v2524_v21, 0 }
 0xa5d   : > { %v3837_v6 = vpop.eup %3836 }
 0xa5e   : > { %v2325_v15 = vmul.f32 %v3837_v6, %v3835_v5  ;;  %v2522_v29 = vpop.permute.xlu1 %2521 }
 0xa60   : > { %v2326_v17 = vpack.c.bf16 %v2325_v15, %v2325_v15 }
 0xa62   : > { %3490 = vmatmul.mubr.msk.bf16.vlgmr.msra.gmra.mrb[28].mxu1 %vm1800_vm3, %v2326_v17 }
 0xa63   : > { %2473 = vmatpush1.bf16.msra.mxu1 %v3808_v16  ;;  %2504 = vmatprep.mubr.bf16.mxu1 %v4202_v48 }
 0xa64   : > { %2474 = vmatprep.subr.bf16.mxu1 %v3813_v18 }
 0xa67   : > { %2475 = vmatpush1.bf16.msra.mxu1 %v3811_v19 }
 0xa68   : > { %3499 = vmatprep.subr.bf16.mxu1 %v4199_v43 }
 0xb35   : > { %v2369_v23 = vpop.f32.mrb[28].mxu1 }
 0xb36   : > { %v2379_v24 = vpack.c.bf16 %v2369_v23, %v2369_v23  ;;  %v3491_v25 = vpop.f32.mrb[29].mxu1 }
 0xb37   : > { %v2372_v26 = vpop.f32.mrb[30].mxu1 }
 0xb38   : > { %v3492_v28 = vpop.f32.mrb[31].mxu1  ;;  %3288 = vmatmul.mubr.msk.bf16.vlgmr.msra.gmra.mrb[32].mxu0 %vm1753_vm1, %v2379_v24  ;;  %3289 = vmatmul.mubr.msk.bf16.vlgmr.msra.gmra.mrb[32].mxu1 %vm1753_vm1, %v2379_v24 }
 0xb39   : > { %3494 = vmatpush3.bf16.xpose.msra.mxu0 %v2529_v27  ;;  %3495 = vmatprep.mubr.msk.bf16.mxu0 %vm4200_vm0, %v4199_v43 }
 0xb3a   : > { %3501 = vmatprep.mubr.msk.bf16.mxu1 %vm4200_vm0, %v4199_v43  ;;  %2687 = vmatprep.subr.bf16.mxu0 %v3816_v56 }
 0xb40   : > { %3496 = vmatmul.mubr.msk.bf16.vlgmr.msra.gmra.mrb[36].mxu0 %vm1753_vm1, %v2522_v29 }
 0xb41   : > { %2719 = vmatprep.mubr.bf16.mxu0 %v4202_v48  ;;  %2688 = vmatpush1.bf16.msra.mxu0 %v3814_v55 }
 0xb42   : > { %2689 = vmatprep.subr.bf16.mxu0 %v3822_v57 }
 0xc0b   : > { %v2465_v30 = vpop.f32.mrb[32].mxu0  ;;  %v2506_v31 = vpop.f32.mrb[32].mxu1 }
 0xc0c   : > { %v2513_v32 = vadd.f32 %v2465_v30, %v4992_v40  ;;  %v2515_v33 = vadd.f32 %v2506_v31, %v4994_v50  ;;  %v2467_v34 = vpop.f32.mrb[33].mxu0  ;;  %v2508_v35 = vpop.f32.mrb[33].mxu1 }
 0xc0d   : > { %v2514_v36 = vadd.f32 %v2467_v34, %v4996_v53  ;;  %v2516_v37 = vadd.f32 %v2508_v35, %v4998_v54  ;;  %v2469_v39 = vpop.f32.mrb[34].mxu0  ;;  %v2510_v41 = vpop.f32.mrb[34].mxu1 }
 0xc0e   : > { %v2470_v43 = vpop.f32.mrb[35].mxu0  ;;  %v2511_v42 = vpop.f32.mrb[35].mxu1 }
 0xc13   : > { %v2565_v38 = vpop.f32.mrb[36].mxu0 }
 0xc14   : > { %v2566_v44 = vadd.f32 %v4922_v22, %v2565_v38  ;;  %v3497_v45 = vpop.f32.mrb[37].mxu0 }
 0xc15   : > { %v2568_v46 = vpop.f32.mrb[38].mxu0 }
 0xc16   : > { %v3498_v47 = vpop.f32.mrb[39].mxu0  ;;  %v2571_v49 = vsel %vm1800_vm3, %v2566_v44, -inf }
 0xc17   : > { %2572 = vmax.xlane.f32.xlu0 %v2571_v49 }
 0xc2d   : > { %2583 = vrot.lane.b32.xlu0 %v4913_v20, %s4204_s30  ;;  %v3820_v20 = vld [vmem:[%s4704_s17 + $0xe0] ss:$16 sps:$4 sm:$0xff]   ;;  %s5250_s17 = sld [smem:[#allocation23_spill]] }
 0xc2e   : > { %2690 = vmatpush1.bf16.msra.mxu0 %v3820_v20 }
 0xc33   : > { %p3302_p4 = scmp.ne.s32.totalorder %s5250_s17, 3 }
 0xc34   : > { %v2787_v18 = vlaneseq (!%p3302_p4)  ;;  %v2785_v21 = vld [vmem:[#allocation10] sm:$0xf] (!%p3302_p4)  ;;  %v2814_v38 = vld [vmem:[%s4736_s13 + $0x18] sm:$0xff] (!%p3302_p4) }
 0xc35   : > { %v2811_v35 = vld [vmem:[%s4736_s13] sm:$0xff] (!%p3302_p4) }
 0xc36   : > { %v2788_v19 = vshrl.u32 (!%p3302_p4), %v2787_v18, 7 }
 0xc38   : > { %v5054_v24 = vsub.s32 (!%p3302_p4), 0, %v2788_v19  ;;  %v5056_v25 = vsub.s32 (!%p3302_p4), 1, %v2788_v19  ;;  %v5058_v26 = vsub.s32 (!%p3302_p4), 2, %v2788_v19  ;;  %v5060_v27 = vsub.s32 (!%p3302_p4), 3, %v2788_v19 }
 0xc3a   : > { %v2790_v31 = vrot.slane (!%p3302_p4), %v2785_v21, %v5054_v24  ;;  %v2802_v34 = vrot.slane (!%p3302_p4), %v2785_v21, %v5060_v27 }
 0xca4   : > { %v2573_v40 = vpop.xlane.xlu0 %2572 }
 0xca5   : > { %v2574_v50 = vsub.f32 %v2566_v44, %v2573_v40 }
 0xca7   : > { %v2575_v51 = vmul.f32 1.442695, %v2574_v50 }
 0xca8   : > { %v2584_v52 = vpop.permute.xlu0 %2583 }
 0xca9   : > { %3838 = vpow2.f32 %v2575_v51  ;;  %v2589_v22 = vsel %vm1816_vm2, %v2584_v52, 0 }
 0xcaa   : > { %3500 = vmatpush3.bf16.msra.mxu1 %v2589_v22 }
 0xcab   : > { %2728 = vmatprep.subr.bf16.mxu1 %v3819_v60 }
 0xcb3   : > { %v3839_v53 = vpop.eup %3838 }
 0xcb4   : > { %v2577_v54 = vsel %vm1800_vm3, %v3839_v53, 0.0 }
 0xcb5   : > { %2578 = vadd.xlane.f32.xlu1 %v2577_v54 }
 0xd42   : > { %v2579_v61 = vpop.xlane.xlu1 %2578 }
 0xd43   : > { %3840 = vrcp.f32 %v2579_v61 }
 0xd4d   : > { %v3841_v58 = vpop.eup %3840 }
 0xd4e   : > { %v2581_v59 = vmul.f32 %v3841_v58, %v3839_v53 }
 0xd50   : > { %v2582_v63 = vpack.c.bf16 %v2581_v59, %v2581_v59 }
 0xd52   : > { %3502 = vmatmul.mubr.msk.bf16.vlgmr.msra.gmra.mrb[36].mxu1 %vm1800_vm3, %v2582_v63 }
 0xd53   : > { %2729 = vmatpush1.bf16.msra.mxu1 %v3817_v62  ;;  %2760 = vmatprep.mubr.bf16.mxu1 %v4202_v48 }
 0xd54   : > { %2730 = vmatprep.subr.bf16.mxu1 %v3825_v0 }
 0xd57   : > { %2731 = vmatpush1.bf16.msra.mxu1 %v3823_v1  ;;  %v2846_v1 = vld [vmem:[#allocation11] sm:$0xf] (!%p3302_p4) }
 0xe25   : > { %v2625_v2 = vpop.f32.mrb[36].mxu1 }
 0xe26   : > { %v2635_v3 = vpack.c.bf16 %v2625_v2, %v2625_v2  ;;  %v3503_v5 = vpop.f32.mrb[37].mxu1  ;;  %v2872_v2 = vld [vmem:[#allocation13] sm:$0xf] (!%p3302_p4) }
 0xe27   : > { %v2628_v7 = vpop.f32.mrb[38].mxu1  ;;  %v2855_v5 = vrot.slane (!%p3302_p4), %v2846_v1, %v5056_v25 }
 0xe28   : > { %v3504_v8 = vpop.f32.mrb[39].mxu1  ;;  %3300 = vmatmul.mubr.msk.bf16.vlgmr.msra.gmra.mrb[40].mxu0 %vm1753_vm1, %v2635_v3  ;;  %3301 = vmatmul.mubr.msk.bf16.vlgmr.msra.gmra.mrb[40].mxu1 %vm1753_vm1, %v2635_v3  ;;  %v2851_v3 = vrot.slane (!%p3302_p4), %v2846_v1, %v5054_v24  ;;  %v2859_v7 = vrot.slane (!%p3302_p4), %v2846_v1, %v5058_v26 }
 0xe29   : > { %v2863_v8 = vrot.slane (!%p3302_p4), %v2846_v1, %v5060_v27 }
 0xef9   : > { %2780 = sbr.rel (%p3302_p4) target bundleno = 4176 (0x1050), region = 104 }
 0xefb   : > { %v2721_v9 = vpop.f32.mrb[40].mxu0  ;;  %v2762_v10 = vpop.f32.mrb[40].mxu1 }
 0xefc   : > { %v2769_v11 = vadd.f32 %v2721_v9, %v2513_v32  ;;  %v2771_v12 = vadd.f32 %v2762_v10, %v2515_v33  ;;  %v2723_v13 = vpop.f32.mrb[41].mxu0  ;;  %v2764_v4 = vpop.f32.mrb[41].mxu1  ;;  %v2794_v32 = vrot.slane (!%p3302_p4), %v2785_v21, %v5056_v25  ;;  %v2798_v33 = vrot.slane (!%p3302_p4), %v2785_v21, %v5058_v26 }
 0xefd   : > { %v2770_v14 = vadd.f32 %v2723_v13, %v2514_v36  ;;  %v2772_v6 = vadd.f32 %v2764_v4, %v2516_v37  ;;  %v2725_v48 = vpop.f32.mrb[42].mxu0  ;;  %v2766_v15 = vpop.f32.mrb[42].mxu1  ;;  %v2812_v36 = vld [vmem:[%s4736_s13 + $0x8] sm:$0xff] (!%p3302_p4)  ;;  %v2813_v37 = vld [vmem:[%s4736_s13 + $0x10] sm:$0xff] (!%p3302_p4)  ;;  %v2877_v10 = vrot.slane (!%p3302_p4), %v2872_v2, %v5054_v24  ;;  %v2889_v13 = vrot.slane (!%p3302_p4), %v2872_v2, %v5060_v27 }
 0xefe   : > { %2773 = vst [vmem:[#allocation2] sm:$0xff] %v2769_v11  ;;  %2775 = vst [vmem:[#allocation2 + $0x10] sm:$0xff] %v2771_v12  ;;  %v2726_v16 = vpop.f32.mrb[43].mxu0  ;;  %v2767_v17 = vpop.f32.mrb[43].mxu1  ;;  %v2881_v11 = vrot.slane (!%p3302_p4), %v2872_v2, %v5056_v25  ;;  %v2885_v12 = vrot.slane (!%p3302_p4), %v2872_v2, %v5058_v26 }
 0xeff   : > { %2774 = vst [vmem:[#allocation2 + $0x8] sm:$0xff] %v2770_v14  ;;  %2776 = vst [vmem:[#allocation2 + $0x18] sm:$0xff] %v2772_v6 }
 0xf05   : > { %v2781_v23 = vld [vmem:[#allocation2] sm:$0xff]  ;;  %v2783_v29 = vld [vmem:[#allocation2 + $0x10] sm:$0xff] }
 0xf06   : > { %v2782_v28 = vld [vmem:[#allocation2 + $0x8] sm:$0xff]  ;;  %v2784_v30 = vld [vmem:[#allocation2 + $0x18] sm:$0xff]  ;;  %v2807_v39 = vadd.f32 %v2790_v31, %v2781_v23  ;;  %v2809_v43 = vadd.f32 %v2798_v33, %v2783_v29 }
 0xf07   : > { %v2808_v41 = vadd.f32 %v2794_v32, %v2782_v28  ;;  %v2810_v42 = vadd.f32 %v2802_v34, %v2784_v30 }
 0xf08   : > { %v2815_v44 = vadd.f32 %v2811_v35, %v2807_v39  ;;  %v2817_v46 = vadd.f32 %v2813_v37, %v2809_v43 }
 0xf09   : > { %v2816_v45 = vadd.f32 %v2812_v36, %v2808_v41  ;;  %v2818_v47 = vadd.f32 %v2814_v38, %v2810_v42 }
 0xf0b   : > { %v2819_v49 = vadd.f32 %v2816_v45, %v2815_v44 }
 0xf0d   : > { %v2820_v40 = vadd.f32 %v2819_v49, %v2817_v46 }
 0xf0f   : > { %v2821_v50 = vadd.f32 %v2820_v40, %v2818_v47 }
 0xf11   : > { %2822 = vadd.xlane.f32.xlu0 %v2821_v50 }
 0xf9e   : > { %v2823_v51 = vpop.xlane.xlu0 %2822 }
 0xf9f   : > { %v2825_v52 = vmul.f32 0.001953125, %v2823_v51 }
 0xfa1   : > { %v2826_v22 = vsub.f32 %v2815_v44, %v2825_v52  ;;  %v2827_v53 = vsub.f32 %v2816_v45, %v2825_v52  ;;  %v2828_v54 = vsub.f32 %v2817_v46, %v2825_v52  ;;  %v2829_v55 = vsub.f32 %v2818_v47, %v2825_v52 }
 0xfa3   : > { %v2830_v56 = vmul.f32 %v2826_v22, %v2826_v22  ;;  %v2831_v60 = vmul.f32 %v2827_v53, %v2827_v53  ;;  %v2832_v57 = vmul.f32 %v2828_v54, %v2828_v54  ;;  %v2833_v61 = vmul.f32 %v2829_v55, %v2829_v55 }
 0xfa5   : > { %v2834_v20 = vadd.f32 %v2831_v60, %v2830_v56 }
 0xfa7   : > { %v2835_v58 = vadd.f32 %v2834_v20, %v2832_v57 }
 0xfa9   : > { %v2836_v59 = vadd.f32 %v2835_v58, %v2833_v61 }
 0xfab   : > { %2837 = vadd.xlane.f32.xlu0 %v2836_v59 }
0x1038   : > { %v2838_v62 = vpop.xlane.xlu0 %2837 }
0x1039   : > { %v2839_v63 = vmul.f32 0.001953125, %v2838_v62 }
0x103b   : > { %v2840_v0 = vadd.f32 1e-05, %v2839_v63 }
0x103d   : > { %3842 = vrsqrt.f32 %v2840_v0 }
0x1047   : > { %v3843_v9 = vpop.eup %3842 }
0x1048   : > { %v2842_v4 = vmul.f32 %v3843_v9, %v2826_v22  ;;  %v2843_v14 = vmul.f32 %v3843_v9, %v2827_v53  ;;  %v2844_v6 = vmul.f32 %v3843_v9, %v2828_v54  ;;  %v2845_v48 = vmul.f32 %v3843_v9, %v2829_v55 }
0x104a   : > { %v2868_v15 = vmul.f32 %v2851_v3, %v2842_v4  ;;  %v2869_v16 = vmul.f32 %v2855_v5, %v2843_v14  ;;  %v2870_v17 = vmul.f32 %v2859_v7, %v2844_v6  ;;  %v2871_v18 = vmul.f32 %v2863_v8, %v2845_v48 }
0x104c   : > { %v2894_v19 = vadd.f32 %v2877_v10, %v2868_v15  ;;  %v2895_v21 = vadd.f32 %v2881_v11, %v2869_v16  ;;  %v2896_v23 = vadd.f32 %v2885_v12, %v2870_v17  ;;  %v2897_v24 = vadd.f32 %v2889_v13, %v2871_v18 }
0x104e   : > { %2898 = vst [vmem:[%s4745_s28] sm:$0xff] %v2894_v19  ;;  %2899 = vst [vmem:[%s4745_s28 + $0x8] sm:$0xff] %v2895_v21 }
0x104f   : > { %2900 = vst [vmem:[%s4745_s28 + $0x10] sm:$0xff] %v2896_v23  ;;  %2901 = vst [vmem:[%s4745_s28 + $0x18] sm:$0xff] %v2897_v24 }
0x1050 PF: > { %s32_s16 = sadd.s32 1, %s4184_s16   ;;  %s5252_s13 = sld [smem:[#allocation20_spill]] }
0x1051   : > { %p5083_p1 = scmp.ge.s32.totalorder %s32_s16, 10   ;;  %s5253_s26 = sld [smem:[#allocation31_spill]] }
0x1052   : > { %s5254_s27 = sld [smem:[#allocation21_spill]]  ;;  %s5255_s28 = sld [smem:[#allocation22_spill]] }
0x1053   : > { %s5256_s29 = sld [smem:[#allocation33_spill]]  ;;  %s5257_s30 = sld [smem:[#allocation25_spill]] }
0x1054   : > { %s5258_s6 = sld [smem:[#allocation26_spill]]  ;;  %s5259_s14 = sld [smem:[#allocation29_spill]] }
0x1055   : > { %s5260_s15 = sld [smem:[#allocation30_spill]]  ;;  %s5261_s21 = smov %s4136_s22 }
0x1056   : > { %s5262_s22 = smov %s4140_s23  ;;  %s5263_s23 = smov %s4596_s0 }
0x1057   : > { %s5264_s24 = smov %s4148_s25  ;;  %s5265_s25 = smov %s5252_s13 }
0x1058   :  { %31 = sbr.rel (!%p5083_p1) target bundleno = 27 (0x1b), region = 180 }
0x105a   : > { %s5266_s13 = smov %s5258_s6 }
0x105f   :  { %2923 = vsyncpa [#allocation4], 1 }
0x1060   :  { %2925 = vsyncpa [#allocation4 + $0x1], 1 }
0x1061   :  { %2926 = vsyncpa [#allocation6], 1 }
0x1062   :  { %2928 = vsyncpa [#allocation6 + $0x1], 1 }
0x1063   :  { %2929 = vsyncpa [#allocation9], 1 }
0x1064   :  { %2931 = vsyncpa [#allocation9 + $0x1], 1 }
0x1065   :  { %2932 = vsyncpa [#allocation12], 1 }

// kernel: frozen_v2_encoder_forward.11
= control target key start
LH: loop header
LB: loop body
LE: loop exit
PB: predicated region body
PF: predicated region fallthrough
CT: control target
= control target key end

     0   :  { %s3696_s24 = smov 0   ;;  %s3698_s25 = smov 0   ;;  %s4404_s0 = inlined_call_operand.vmem [shape: f32[16,512], index: 0, kind: input, shape index: {}]   ;;  %s4405_s1 = inlined_call_operand.vmem [shape: bf16[512,2048], index: 1, kind: input, shape index: {}]   ;;  %s4406_s2 = inlined_call_operand.vmem [shape: f32[1,2048], index: 2, kind: input, shape index: {}]   ;;  %s4407_s3 = inlined_call_operand.vmem [shape: bf16[2048,512], index: 3, kind: input, shape index: {}]   ;;  %s4408_s4 = inlined_call_operand.vmem [shape: f32[1,512], index: 4, kind: input, shape index: {}]   ;;  %s4409_s5 = inlined_call_operand.vmem [shape: f32[1,512], index: 5, kind: input, shape index: {}]   ;;  %s4410_s6 = inlined_call_operand.vmem [shape: f32[1,512], index: 6, kind: input, shape index: {}]   ;;  %s4411_s7 = inlined_call_operand.vmem [shape: f32[16,512], index: 7, kind: output, shape index: {}]  }
   0x1   :  { %s3700_s26 = smov 0   ;;  %s3702_s27 = smov 0  }
   0x2   :  { %s3704_s28 = smov 0  }
   0x3 LB: > { %s26_s29 = sadd.s32 1, %s3649_s27  ;;  %p69_p1 = scmp.ne.s32.totalorder %s3641_s25, %s3637_s24  ;;  %s3653_s28 = sphi %s3704_s28, %s17_s28   ;;  %s3649_s27 = sphi %s3702_s27, %s4415_s27   ;;  %s3645_s26 = sphi %s3700_s26, %s4414_s26   ;;  %s3641_s25 = sphi %s3698_s25, %s4413_s25   ;;  %s3637_s24 = sphi %s3696_s24, %s4412_s24  }
   0x4   : > { %p27_p0 = scmp.ge.s32.totalorder %s26_s29, 4  ;;  %p70_p2 = scmp.eq.s32.totalorder %s3653_s28, 0 }
   0x5   : > { %s62_s8 = sadd.s32 1, %s3641_s25  ;;  %p2888_p5 = scmp.ge.s32.totalorder %s3653_s28, 4 }
   0x6   : > { %s4417_s29 = smov (%p27_p0, %s26_s29), 0  ;;  %p71_p3 = por %p70_p2, %p69_p1 }
   0x7   : > { %s59_s30 = ssub.s32 %s3649_s27, %s4417_s29  ;;  %255 = sbr.rel (%p2888_p5) target bundleno = 82 (0x52), region = 32 }
   0x8   : > { %p60_p4 = scmp.eq.s32.totalorder %s59_s30, 0 }
   0xa   : > { %s3731_s9 = scalar_select %p60_p4, %s3641_s25, %s62_s8  }
   0xe   : > { %258 = sbr.rel (!%p71_p3) target bundleno = 82 (0x52), region = 36  ;;  %s260_s10 = sand.u32 (%p71_p3), 1, %s3641_s25  }
   0xf   : > { %s3160_s11 = sshll.u32 (%p71_p3), %s3649_s27, 4  ;;  %s2889_s12 = sshll.u32 (%p71_p3), %s260_s10, 10 }
  0x10   : > { %s3739_s15 = scalar_lea.vmem (%p71_p3), %s4405_s1, %s3160_s11  ;;  %s3744_s16 = scalar_lea.vmem (%p71_p3), [#allocation3], %s2889_s12 }
  0x11   : > { %v278_v0 = vld [vmem:[%s3739_s15] sm:$0xff] (%p71_p3)  ;;  %v280_v1 = vld [vmem:[%s3739_s15 + $0x8] sm:$0xff] (%p71_p3) }
  0x12   : > { %v282_v2 = vld [vmem:[%s3739_s15 + $0x40] sm:$0xff] (%p71_p3)  ;;  %279 = vst [vmem:[%s3744_s16] sm:$0xff] (%p71_p3), %v278_v0  ;;  %281 = vst [vmem:[%s3744_s16 + $0x8] sm:$0xff] (%p71_p3), %v280_v1  ;;  %v284_v3 = vld [vmem:[%s3739_s15 + $0x48] sm:$0xff] (%p71_p3) }
  0x13   : > { %283 = vst [vmem:[%s3744_s16 + $0x10] sm:$0xff] (%p71_p3), %v282_v2  ;;  %v286_v4 = vld [vmem:[%s3739_s15 + $0x80] sm:$0xff] (%p71_p3)  ;;  %v288_v5 = vld [vmem:[%s3739_s15 + $0x88] sm:$0xff] (%p71_p3)  ;;  %285 = vst [vmem:[%s3744_s16 + $0x18] sm:$0xff] (%p71_p3), %v284_v3 }
  0x14   : > { %287 = vst [vmem:[%s3744_s16 + $0x20] sm:$0xff] (%p71_p3), %v286_v4  ;;  %289 = vst [vmem:[%s3744_s16 + $0x28] sm:$0xff] (%p71_p3), %v288_v5  ;;  %v290_v6 = vld [vmem:[%s3739_s15 + $0xc0] sm:$0xff] (%p71_p3)  ;;  %v292_v7 = vld [vmem:[%s3739_s15 + $0xc8] sm:$0xff] (%p71_p3) }
  0x15   : > { %v294_v8 = vld [vmem:[%s3739_s15 + $0x100] sm:$0xff]  ;;  %291 = vst [vmem:[%s3744_s16 + $0x30] sm:$0xff] %v290_v6  ;;  %293 = vst [vmem:[%s3744_s16 + $0x38] sm:$0xff] %v292_v7  ;;  %v296_v9 = vld [vmem:[%s3739_s15 + $0x108] sm:$0xff] }
  0x16   : > { %295 = vst [vmem:[%s3744_s16 + $0x40] sm:$0xff] %v294_v8  ;;  %v298_v10 = vld [vmem:[%s3739_s15 + $0x140] sm:$0xff]  ;;  %v300_v11 = vld [vmem:[%s3739_s15 + $0x148] sm:$0xff]  ;;  %297 = vst [vmem:[%s3744_s16 + $0x48] sm:$0xff] %v296_v9 }
  0x17   : > { %299 = vst [vmem:[%s3744_s16 + $0x50] sm:$0xff] %v298_v10  ;;  %301 = vst [vmem:[%s3744_s16 + $0x58] sm:$0xff] %v300_v11  ;;  %v302_v12 = vld [vmem:[%s3739_s15 + $0x180] sm:$0xff]  ;;  %v304_v13 = vld [vmem:[%s3739_s15 + $0x188] sm:$0xff] }
  0x18   : > { %v306_v14 = vld [vmem:[%s3739_s15 + $0x1c0] sm:$0xff]  ;;  %303 = vst [vmem:[%s3744_s16 + $0x60] sm:$0xff] %v302_v12  ;;  %305 = vst [vmem:[%s3744_s16 + $0x68] sm:$0xff] %v304_v13  ;;  %v308_v15 = vld [vmem:[%s3739_s15 + $0x1c8] sm:$0xff] }
  0x19   : > { %307 = vst [vmem:[%s3744_s16 + $0x70] sm:$0xff] %v306_v14  ;;  %v310_v16 = vld [vmem:[%s3739_s15 + $0x200] sm:$0xff]  ;;  %v312_v17 = vld [vmem:[%s3739_s15 + $0x208] sm:$0xff]  ;;  %309 = vst [vmem:[%s3744_s16 + $0x78] sm:$0xff] %v308_v15 }
  0x1a   : > { %311 = vst [vmem:[%s3744_s16 + $0x80] sm:$0xff] %v310_v16  ;;  %313 = vst [vmem:[%s3744_s16 + $0x88] sm:$0xff] %v312_v17  ;;  %v314_v18 = vld [vmem:[%s3739_s15 + $0x240] sm:$0xff]  ;;  %v316_v19 = vld [vmem:[%s3739_s15 + $0x248] sm:$0xff] }
  0x1b   : > { %v318_v20 = vld [vmem:[%s3739_s15 + $0x280] sm:$0xff]  ;;  %315 = vst [vmem:[%s3744_s16 + $0x90] sm:$0xff] %v314_v18  ;;  %317 = vst [vmem:[%s3744_s16 + $0x98] sm:$0xff] %v316_v19  ;;  %v320_v21 = vld [vmem:[%s3739_s15 + $0x288] sm:$0xff] }
  0x1c   : > { %319 = vst [vmem:[%s3744_s16 + $0xa0] sm:$0xff] %v318_v20  ;;  %v322_v22 = vld [vmem:[%s3739_s15 + $0x2c0] sm:$0xff]  ;;  %v324_v23 = vld [vmem:[%s3739_s15 + $0x2c8] sm:$0xff]  ;;  %321 = vst [vmem:[%s3744_s16 + $0xa8] sm:$0xff] %v320_v21 }
  0x1d   : > { %323 = vst [vmem:[%s3744_s16 + $0xb0] sm:$0xff] %v322_v22  ;;  %325 = vst [vmem:[%s3744_s16 + $0xb8] sm:$0xff] %v324_v23  ;;  %v326_v24 = vld [vmem:[%s3739_s15 + $0x300] sm:$0xff]  ;;  %v328_v25 = vld [vmem:[%s3739_s15 + $0x308] sm:$0xff] }
  0x1e   : > { %v330_v26 = vld [vmem:[%s3739_s15 + $0x340] sm:$0xff]  ;;  %327 = vst [vmem:[%s3744_s16 + $0xc0] sm:$0xff] %v326_v24  ;;  %329 = vst [vmem:[%s3744_s16 + $0xc8] sm:$0xff] %v328_v25  ;;  %v332_v27 = vld [vmem:[%s3739_s15 + $0x348] sm:$0xff] }
  0x1f   : > { %331 = vst [vmem:[%s3744_s16 + $0xd0] sm:$0xff] %v330_v26  ;;  %v334_v28 = vld [vmem:[%s3739_s15 + $0x380] sm:$0xff]  ;;  %v336_v29 = vld [vmem:[%s3739_s15 + $0x388] sm:$0xff]  ;;  %333 = vst [vmem:[%s3744_s16 + $0xd8] sm:$0xff] %v332_v27 }
  0x20   : > { %335 = vst [vmem:[%s3744_s16 + $0xe0] sm:$0xff] %v334_v28  ;;  %337 = vst [vmem:[%s3744_s16 + $0xe8] sm:$0xff] %v336_v29  ;;  %v338_v30 = vld [vmem:[%s3739_s15 + $0x3c0] sm:$0xff]  ;;  %v340_v31 = vld [vmem:[%s3739_s15 + $0x3c8] sm:$0xff] }
  0x21   : > { %v342_v32 = vld [vmem:[%s3739_s15 + $0x400] sm:$0xff]  ;;  %339 = vst [vmem:[%s3744_s16 + $0xf0] sm:$0xff] %v338_v30  ;;  %341 = vst [vmem:[%s3744_s16 + $0xf8] sm:$0xff] %v340_v31  ;;  %v344_v33 = vld [vmem:[%s3739_s15 + $0x408] sm:$0xff] }
  0x22   : > { %343 = vst [vmem:[%s3744_s16 + $0x100] sm:$0xff] %v342_v32  ;;  %v346_v34 = vld [vmem:[%s3739_s15 + $0x440] sm:$0xff]  ;;  %v348_v35 = vld [vmem:[%s3739_s15 + $0x448] sm:$0xff]  ;;  %345 = vst [vmem:[%s3744_s16 + $0x108] sm:$0xff] %v344_v33 }
  0x23   : > { %347 = vst [vmem:[%s3744_s16 + $0x110] sm:$0xff] %v346_v34  ;;  %349 = vst [vmem:[%s3744_s16 + $0x118] sm:$0xff] %v348_v35  ;;  %v350_v36 = vld [vmem:[%s3739_s15 + $0x480] sm:$0xff]  ;;  %v352_v37 = vld [vmem:[%s3739_s15 + $0x488] sm:$0xff] }
  0x24   : > { %v354_v38 = vld [vmem:[%s3739_s15 + $0x4c0] sm:$0xff]  ;;  %351 = vst [vmem:[%s3744_s16 + $0x120] sm:$0xff] %v350_v36  ;;  %353 = vst [vmem:[%s3744_s16 + $0x128] sm:$0xff] %v352_v37  ;;  %v356_v39 = vld [vmem:[%s3739_s15 + $0x4c8] sm:$0xff] }
  0x25   : > { %355 = vst [vmem:[%s3744_s16 + $0x130] sm:$0xff] %v354_v38  ;;  %v358_v40 = vld [vmem:[%s3739_s15 + $0x500] sm:$0xff]  ;;  %v360_v41 = vld [vmem:[%s3739_s15 + $0x508] sm:$0xff]  ;;  %357 = vst [vmem:[%s3744_s16 + $0x138] sm:$0xff] %v356_v39 }
  0x26   : > { %359 = vst [vmem:[%s3744_s16 + $0x140] sm:$0xff] %v358_v40  ;;  %361 = vst [vmem:[%s3744_s16 + $0x148] sm:$0xff] %v360_v41  ;;  %v362_v42 = vld [vmem:[%s3739_s15 + $0x540] sm:$0xff]  ;;  %v364_v43 = vld [vmem:[%s3739_s15 + $0x548] sm:$0xff] }
  0x27   : > { %v366_v44 = vld [vmem:[%s3739_s15 + $0x580] sm:$0xff]  ;;  %363 = vst [vmem:[%s3744_s16 + $0x150] sm:$0xff] %v362_v42  ;;  %365 = vst [vmem:[%s3744_s16 + $0x158] sm:$0xff] %v364_v43  ;;  %v368_v45 = vld [vmem:[%s3739_s15 + $0x588] sm:$0xff] }
  0x28   : > { %367 = vst [vmem:[%s3744_s16 + $0x160] sm:$0xff] %v366_v44  ;;  %v370_v46 = vld [vmem:[%s3739_s15 + $0x5c0] sm:$0xff]  ;;  %v372_v47 = vld [vmem:[%s3739_s15 + $0x5c8] sm:$0xff]  ;;  %369 = vst [vmem:[%s3744_s16 + $0x168] sm:$0xff] %v368_v45 }
  0x29   : > { %371 = vst [vmem:[%s3744_s16 + $0x170] sm:$0xff] %v370_v46  ;;  %373 = vst [vmem:[%s3744_s16 + $0x178] sm:$0xff] %v372_v47  ;;  %v374_v48 = vld [vmem:[%s3739_s15 + $0x600] sm:$0xff]  ;;  %v376_v49 = vld [vmem:[%s3739_s15 + $0x608] sm:$0xff] }
  0x2a   : > { %v378_v50 = vld [vmem:[%s3739_s15 + $0x640] sm:$0xff]  ;;  %375 = vst [vmem:[%s3744_s16 + $0x180] sm:$0xff] %v374_v48  ;;  %377 = vst [vmem:[%s3744_s16 + $0x188] sm:$0xff] %v376_v49  ;;  %v380_v51 = vld [vmem:[%s3739_s15 + $0x648] sm:$0xff] }
  0x2b   : > { %379 = vst [vmem:[%s3744_s16 + $0x190] sm:$0xff] %v378_v50  ;;  %v382_v52 = vld [vmem:[%s3739_s15 + $0x680] sm:$0xff]  ;;  %v384_v53 = vld [vmem:[%s3739_s15 + $0x688] sm:$0xff]  ;;  %381 = vst [vmem:[%s3744_s16 + $0x198] sm:$0xff] %v380_v51 }
  0x2c   : > { %383 = vst [vmem:[%s3744_s16 + $0x1a0] sm:$0xff] %v382_v52  ;;  %385 = vst [vmem:[%s3744_s16 + $0x1a8] sm:$0xff] %v384_v53  ;;  %v386_v54 = vld [vmem:[%s3739_s15 + $0x6c0] sm:$0xff]  ;;  %v388_v55 = vld [vmem:[%s3739_s15 + $0x6c8] sm:$0xff] }
  0x2d   : > { %v390_v56 = vld [vmem:[%s3739_s15 + $0x700] sm:$0xff]  ;;  %387 = vst [vmem:[%s3744_s16 + $0x1b0] sm:$0xff] %v386_v54  ;;  %389 = vst [vmem:[%s3744_s16 + $0x1b8] sm:$0xff] %v388_v55  ;;  %v392_v57 = vld [vmem:[%s3739_s15 + $0x708] sm:$0xff] }
  0x2e   : > { %391 = vst [vmem:[%s3744_s16 + $0x1c0] sm:$0xff] %v390_v56  ;;  %v394_v58 = vld [vmem:[%s3739_s15 + $0x740] sm:$0xff]  ;;  %v396_v59 = vld [vmem:[%s3739_s15 + $0x748] sm:$0xff]  ;;  %393 = vst [vmem:[%s3744_s16 + $0x1c8] sm:$0xff] %v392_v57 }
  0x2f   : > { %395 = vst [vmem:[%s3744_s16 + $0x1d0] sm:$0xff] %v394_v58  ;;  %397 = vst [vmem:[%s3744_s16 + $0x1d8] sm:$0xff] %v396_v59  ;;  %v398_v60 = vld [vmem:[%s3739_s15 + $0x780] sm:$0xff]  ;;  %v400_v61 = vld [vmem:[%s3739_s15 + $0x788] sm:$0xff] }
  0x30   : > { %v402_v62 = vld [vmem:[%s3739_s15 + $0x7c0] sm:$0xff]  ;;  %399 = vst [vmem:[%s3744_s16 + $0x1e0] sm:$0xff] %v398_v60  ;;  %401 = vst [vmem:[%s3744_s16 + $0x1e8] sm:$0xff] %v400_v61  ;;  %v404_v63 = vld [vmem:[%s3739_s15 + $0x7c8] sm:$0xff] }
  0x31   : > { %403 = vst [vmem:[%s3744_s16 + $0x1f0] sm:$0xff] %v402_v62  ;;  %v406_v0 = vld [vmem:[%s3739_s15 + $0x800] sm:$0xff]  ;;  %v408_v1 = vld [vmem:[%s3739_s15 + $0x808] sm:$0xff]  ;;  %405 = vst [vmem:[%s3744_s16 + $0x1f8] sm:$0xff] %v404_v63 }
  0x32   : > { %407 = vst [vmem:[%s3744_s16 + $0x200] sm:$0xff] %v406_v0  ;;  %409 = vst [vmem:[%s3744_s16 + $0x208] sm:$0xff] %v408_v1  ;;  %v410_v2 = vld [vmem:[%s3739_s15 + $0x840] sm:$0xff]  ;;  %v412_v3 = vld [vmem:[%s3739_s15 + $0x848] sm:$0xff] }
  0x33   : > { %v414_v4 = vld [vmem:[%s3739_s15 + $0x880] sm:$0xff]  ;;  %411 = vst [vmem:[%s3744_s16 + $0x210] sm:$0xff] %v410_v2  ;;  %413 = vst [vmem:[%s3744_s16 + $0x218] sm:$0xff] %v412_v3  ;;  %v416_v5 = vld [vmem:[%s3739_s15 + $0x888] sm:$0xff] }
  0x34   : > { %415 = vst [vmem:[%s3744_s16 + $0x220] sm:$0xff] %v414_v4  ;;  %v418_v6 = vld [vmem:[%s3739_s15 + $0x8c0] sm:$0xff]  ;;  %v420_v7 = vld [vmem:[%s3739_s15 + $0x8c8] sm:$0xff]  ;;  %417 = vst [vmem:[%s3744_s16 + $0x228] sm:$0xff] %v416_v5 }
  0x35   : > { %419 = vst [vmem:[%s3744_s16 + $0x230] sm:$0xff] %v418_v6  ;;  %421 = vst [vmem:[%s3744_s16 + $0x238] sm:$0xff] %v420_v7  ;;  %v422_v8 = vld [vmem:[%s3739_s15 + $0x900] sm:$0xff]  ;;  %v424_v9 = vld [vmem:[%s3739_s15 + $0x908] sm:$0xff] }
  0x36   : > { %v426_v10 = vld [vmem:[%s3739_s15 + $0x940] sm:$0xff]  ;;  %423 = vst [vmem:[%s3744_s16 + $0x240] sm:$0xff] %v422_v8  ;;  %425 = vst [vmem:[%s3744_s16 + $0x248] sm:$0xff] %v424_v9  ;;  %v428_v11 = vld [vmem:[%s3739_s15 + $0x948] sm:$0xff] }
  0x37   : > { %427 = vst [vmem:[%s3744_s16 + $0x250] sm:$0xff] %v426_v10  ;;  %v430_v12 = vld [vmem:[%s3739_s15 + $0x980] sm:$0xff]  ;;  %v432_v13 = vld [vmem:[%s3739_s15 + $0x988] sm:$0xff]  ;;  %429 = vst [vmem:[%s3744_s16 + $0x258] sm:$0xff] %v428_v11 }
  0x38   : > { %431 = vst [vmem:[%s3744_s16 + $0x260] sm:$0xff] %v430_v12  ;;  %433 = vst [vmem:[%s3744_s16 + $0x268] sm:$0xff] %v432_v13  ;;  %v434_v14 = vld [vmem:[%s3739_s15 + $0x9c0] sm:$0xff]  ;;  %v436_v15 = vld [vmem:[%s3739_s15 + $0x9c8] sm:$0xff] }
  0x39   : > { %v438_v16 = vld [vmem:[%s3739_s15 + $0xa00] sm:$0xff]  ;;  %435 = vst [vmem:[%s3744_s16 + $0x270] sm:$0xff] %v434_v14  ;;  %437 = vst [vmem:[%s3744_s16 + $0x278] sm:$0xff] %v436_v15  ;;  %v440_v17 = vld [vmem:[%s3739_s15 + $0xa08] sm:$0xff] }
  0x3a   : > { %439 = vst [vmem:[%s3744_s16 + $0x280] sm:$0xff] %v438_v16  ;;  %v442_v18 = vld [vmem:[%s3739_s15 + $0xa40] sm:$0xff]  ;;  %v444_v19 = vld [vmem:[%s3739_s15 + $0xa48] sm:$0xff]  ;;  %441 = vst [vmem:[%s3744_s16 + $0x288] sm:$0xff] %v440_v17 }
  0x3b   : > { %443 = vst [vmem:[%s3744_s16 + $0x290] sm:$0xff] %v442_v18  ;;  %445 = vst [vmem:[%s3744_s16 + $0x298] sm:$0xff] %v444_v19  ;;  %v446_v20 = vld [vmem:[%s3739_s15 + $0xa80] sm:$0xff]  ;;  %v448_v21 = vld [vmem:[%s3739_s15 + $0xa88] sm:$0xff] }
  0x3c   : > { %v450_v22 = vld [vmem:[%s3739_s15 + $0xac0] sm:$0xff]  ;;  %447 = vst [vmem:[%s3744_s16 + $0x2a0] sm:$0xff] %v446_v20  ;;  %449 = vst [vmem:[%s3744_s16 + $0x2a8] sm:$0xff] %v448_v21  ;;  %v452_v23 = vld [vmem:[%s3739_s15 + $0xac8] sm:$0xff] }
  0x3d   : > { %451 = vst [vmem:[%s3744_s16 + $0x2b0] sm:$0xff] %v450_v22  ;;  %v454_v24 = vld [vmem:[%s3739_s15 + $0xb00] sm:$0xff]  ;;  %v456_v25 = vld [vmem:[%s3739_s15 + $0xb08] sm:$0xff]  ;;  %453 = vst [vmem:[%s3744_s16 + $0x2b8] sm:$0xff] %v452_v23 }
  0x3e   : > { %455 = vst [vmem:[%s3744_s16 + $0x2c0] sm:$0xff] %v454_v24  ;;  %457 = vst [vmem:[%s3744_s16 + $0x2c8] sm:$0xff] %v456_v25  ;;  %v458_v26 = vld [vmem:[%s3739_s15 + $0xb40] sm:$0xff]  ;;  %v460_v27 = vld [vmem:[%s3739_s15 + $0xb48] sm:$0xff] }
  0x3f   : > { %v462_v28 = vld [vmem:[%s3739_s15 + $0xb80] sm:$0xff]  ;;  %459 = vst [vmem:[%s3744_s16 + $0x2d0] sm:$0xff] %v458_v26  ;;  %461 = vst [vmem:[%s3744_s16 + $0x2d8] sm:$0xff] %v460_v27  ;;  %v464_v29 = vld [vmem:[%s3739_s15 + $0xb88] sm:$0xff] }
  0x40   : > { %463 = vst [vmem:[%s3744_s16 + $0x2e0] sm:$0xff] %v462_v28  ;;  %v466_v30 = vld [vmem:[%s3739_s15 + $0xbc0] sm:$0xff]  ;;  %v468_v31 = vld [vmem:[%s3739_s15 + $0xbc8] sm:$0xff]  ;;  %465 = vst [vmem:[%s3744_s16 + $0x2e8] sm:$0xff] %v464_v29 }
  0x41   : > { %467 = vst [vmem:[%s3744_s16 + $0x2f0] sm:$0xff] %v466_v30  ;;  %469 = vst [vmem:[%s3744_s16 + $0x2f8] sm:$0xff] %v468_v31  ;;  %v470_v32 = vld [vmem:[%s3739_s15 + $0xc00] sm:$0xff]  ;;  %v472_v33 = vld [vmem:[%s3739_s15 + $0xc08] sm:$0xff] }
  0x42   : > { %v474_v34 = vld [vmem:[%s3739_s15 + $0xc40] sm:$0xff]  ;;  %471 = vst [vmem:[%s3744_s16 + $0x300] sm:$0xff] %v470_v32  ;;  %473 = vst [vmem:[%s3744_s16 + $0x308] sm:$0xff] %v472_v33  ;;  %v476_v35 = vld [vmem:[%s3739_s15 + $0xc48] sm:$0xff] }
  0x43   : > { %475 = vst [vmem:[%s3744_s16 + $0x310] sm:$0xff] %v474_v34  ;;  %v478_v36 = vld [vmem:[%s3739_s15 + $0xc80] sm:$0xff]  ;;  %v480_v37 = vld [vmem:[%s3739_s15 + $0xc88] sm:$0xff]  ;;  %477 = vst [vmem:[%s3744_s16 + $0x318] sm:$0xff] %v476_v35 }
  0x44   : > { %479 = vst [vmem:[%s3744_s16 + $0x320] sm:$0xff] %v478_v36  ;;  %481 = vst [vmem:[%s3744_s16 + $0x328] sm:$0xff] %v480_v37  ;;  %v482_v38 = vld [vmem:[%s3739_s15 + $0xcc0] sm:$0xff]  ;;  %v484_v39 = vld [vmem:[%s3739_s15 + $0xcc8] sm:$0xff] }
  0x45   : > { %v486_v40 = vld [vmem:[%s3739_s15 + $0xd00] sm:$0xff]  ;;  %483 = vst [vmem:[%s3744_s16 + $0x330] sm:$0xff] %v482_v38  ;;  %485 = vst [vmem:[%s3744_s16 + $0x338] sm:$0xff] %v484_v39  ;;  %v488_v41 = vld [vmem:[%s3739_s15 + $0xd08] sm:$0xff] }
  0x46   : > { %487 = vst [vmem:[%s3744_s16 + $0x340] sm:$0xff] %v486_v40  ;;  %v490_v42 = vld [vmem:[%s3739_s15 + $0xd40] sm:$0xff]  ;;  %v492_v43 = vld [vmem:[%s3739_s15 + $0xd48] sm:$0xff]  ;;  %489 = vst [vmem:[%s3744_s16 + $0x348] sm:$0xff] %v488_v41 }
  0x47   : > { %491 = vst [vmem:[%s3744_s16 + $0x350] sm:$0xff] %v490_v42  ;;  %493 = vst [vmem:[%s3744_s16 + $0x358] sm:$0xff] %v492_v43  ;;  %v494_v44 = vld [vmem:[%s3739_s15 + $0xd80] sm:$0xff]  ;;  %v496_v45 = vld [vmem:[%s3739_s15 + $0xd88] sm:$0xff] }
  0x48   : > { %v498_v46 = vld [vmem:[%s3739_s15 + $0xdc0] sm:$0xff]  ;;  %495 = vst [vmem:[%s3744_s16 + $0x360] sm:$0xff] %v494_v44  ;;  %497 = vst [vmem:[%s3744_s16 + $0x368] sm:$0xff] %v496_v45  ;;  %v500_v47 = vld [vmem:[%s3739_s15 + $0xdc8] sm:$0xff] }
  0x49   : > { %499 = vst [vmem:[%s3744_s16 + $0x370] sm:$0xff] %v498_v46  ;;  %v502_v48 = vld [vmem:[%s3739_s15 + $0xe00] sm:$0xff]  ;;  %v504_v49 = vld [vmem:[%s3739_s15 + $0xe08] sm:$0xff]  ;;  %501 = vst [vmem:[%s3744_s16 + $0x378] sm:$0xff] %v500_v47 }
  0x4a   : > { %503 = vst [vmem:[%s3744_s16 + $0x380] sm:$0xff] %v502_v48  ;;  %505 = vst [vmem:[%s3744_s16 + $0x388] sm:$0xff] %v504_v49  ;;  %v506_v50 = vld [vmem:[%s3739_s15 + $0xe40] sm:$0xff]  ;;  %v508_v51 = vld [vmem:[%s3739_s15 + $0xe48] sm:$0xff] }
  0x4b   : > { %v510_v52 = vld [vmem:[%s3739_s15 + $0xe80] sm:$0xff]  ;;  %507 = vst [vmem:[%s3744_s16 + $0x390] sm:$0xff] %v506_v50  ;;  %509 = vst [vmem:[%s3744_s16 + $0x398] sm:$0xff] %v508_v51  ;;  %v512_v53 = vld [vmem:[%s3739_s15 + $0xe88] sm:$0xff] }
  0x4c   : > { %511 = vst [vmem:[%s3744_s16 + $0x3a0] sm:$0xff] %v510_v52  ;;  %v514_v54 = vld [vmem:[%s3739_s15 + $0xec0] sm:$0xff]  ;;  %v516_v55 = vld [vmem:[%s3739_s15 + $0xec8] sm:$0xff]  ;;  %513 = vst [vmem:[%s3744_s16 + $0x3a8] sm:$0xff] %v512_v53 }
  0x4d   : > { %515 = vst [vmem:[%s3744_s16 + $0x3b0] sm:$0xff] %v514_v54  ;;  %517 = vst [vmem:[%s3744_s16 + $0x3b8] sm:$0xff] %v516_v55  ;;  %v518_v56 = vld [vmem:[%s3739_s15 + $0xf00] sm:$0xff]  ;;  %v520_v57 = vld [vmem:[%s3739_s15 + $0xf08] sm:$0xff] }
  0x4e   : > { %v522_v58 = vld [vmem:[%s3739_s15 + $0xf40] sm:$0xff]  ;;  %519 = vst [vmem:[%s3744_s16 + $0x3c0] sm:$0xff] %v518_v56  ;;  %521 = vst [vmem:[%s3744_s16 + $0x3c8] sm:$0xff] %v520_v57  ;;  %v524_v59 = vld [vmem:[%s3739_s15 + $0xf48] sm:$0xff] }
  0x4f   : > { %523 = vst [vmem:[%s3744_s16 + $0x3d0] sm:$0xff] %v522_v58  ;;  %v526_v60 = vld [vmem:[%s3739_s15 + $0xf80] sm:$0xff]  ;;  %v528_v61 = vld [vmem:[%s3739_s15 + $0xf88] sm:$0xff]  ;;  %525 = vst [vmem:[%s3744_s16 + $0x3d8] sm:$0xff] %v524_v59 }
  0x50   : > { %527 = vst [vmem:[%s3744_s16 + $0x3e0] sm:$0xff] %v526_v60  ;;  %529 = vst [vmem:[%s3744_s16 + $0x3e8] sm:$0xff] %v528_v61  ;;  %v530_v62 = vld [vmem:[%s3739_s15 + $0xfc0] sm:$0xff]  ;;  %v532_v63 = vld [vmem:[%s3739_s15 + $0xfc8] sm:$0xff] }
  0x51   : > { %531 = vst [vmem:[%s3744_s16 + $0x3f0] sm:$0xff] %v530_v62  ;;  %533 = vst [vmem:[%s3744_s16 + $0x3f8] sm:$0xff] %v532_v63 }
  0x52 PF: > { %p2892_p6 = scmp.ge.s32.totalorder %s3653_s28, 1  ;;  %p556_p7 = scmp.lt.s32.totalorder %s3653_s28, 5 }
  0x54   : > { %p557_p8 = pnand %p2892_p6, %p556_p7 }
  0x55   : > { %s563_s17 = sand.u32 (!%p557_p8), 1, %s3637_s24   ;;  %s2894_s18 = sshll.u32 (!%p557_p8), %s3645_s26, 2 }
  0x56   : > { %560 = sbr.rel (%p557_p8) target bundleno = 1074 (0x432), region = 67  ;;  %s2893_s19 = sshll.u32 (!%p557_p8), %s563_s17, 10 }
  0x57   : > { %p620_p9 = scmp.lt.s32.totalorder (!%p557_p8), %s2894_s18, 15  ;;  %s2895_s20 = sshll.u32 (!%p557_p8), %s3645_s26, 6 }
  0x58   : > { %p625_p10 = scmp.lt.s32.totalorder (!%p557_p8), %s2895_s20, 255  ;;  %s4015_s24 = scalar_lea.vmem (!%p557_p8), [#allocation3], %s2893_s19 }
  0x59   : > { %p2898_p11 = scmp.ne.s32.totalorder (!%p557_p8), %s3645_s26, 0 }
  0x5d   : > { %s4419_s18 = smov (!%p620_p9, %s2894_s18), 15  ;;  %s4421_s20 = smov (!%p625_p10, %s2895_s20), 255 }
  0x5e   : > { %s622_s23 = scalar_lea.vmem %s4406_s2, %s4419_s18  ;;  %s3161_s30 = sshll.u32 %s4421_s20, 4  ;;  %v3655_v0 = vmov (!%p2898_p11), 0.0  }
  0x5f   : > { %s4013_s11 = scalar_lea.vmem %s4407_s3, %s3161_s30  ;;  %641 = sbr.rel (%p2898_p11) target bundleno = 102 (0x66), region = 75  ;;  %642 = vst [vmem:[#allocation2] sm:$0xff] (!%p2898_p11), %v3655_v0  ;;  %643 = vst [vmem:[#allocation2 + $0x8] sm:$0xff] (!%p2898_p11), %v3655_v0 }
  0x60   : > { %644 = vst [vmem:[#allocation2 + $0x10] sm:$0xff] (!%p2898_p11), %v3655_v0  ;;  %645 = vst [vmem:[#allocation2 + $0x18] sm:$0xff] (!%p2898_p11), %v3655_v0 }
  0x61   : > { %646 = vst [vmem:[#allocation2 + $0x20] sm:$0xff] (!%p2898_p11), %v3655_v0  ;;  %647 = vst [vmem:[#allocation2 + $0x28] sm:$0xff] (!%p2898_p11), %v3655_v0 }
  0x62   : > { %648 = vst [vmem:[#allocation2 + $0x30] sm:$0xff] (!%p2898_p11), %v3655_v0  ;;  %649 = vst [vmem:[#allocation2 + $0x38] sm:$0xff] (!%p2898_p11), %v3655_v0 }
  0x66 PF: > { %v3227_v1 = vld [vmem:[%s4015_s24 + $0x4] ss:$16 sps:$4 sm:$0xff]   ;;  %v3229_v2 = vld [vmem:[%s4015_s24 + $0xc] ss:$16 sps:$4 sm:$0xff]   ;;  %v3231_v3 = vld [vmem:[%s4015_s24] ss:$16 sps:$4 sm:$0xff]  }
  0x67   : > { %1452 = vmatprep.subr.bf16.mxu0 %v3227_v1  ;;  %v3232_v4 = vld [vmem:[%s4015_s24 + $0x8] ss:$16 sps:$4 sm:$0xff]   ;;  %1538 = vmatprep.subr.bf16.mxu1 %v3229_v2  ;;  %v3233_v5 = vld [vmem:[%s4015_s24 + $0x24] ss:$16 sps:$4 sm:$0xff]   ;;  %v3235_v6 = vld [vmem:[%s4015_s24 + $0x2c] ss:$16 sps:$4 sm:$0xff]  }
  0x68   : > { %1453 = vmatpush1.bf16.msra.mxu0 %v3231_v3  ;;  %1539 = vmatpush1.bf16.msra.mxu1 %v3232_v4  ;;  %v3237_v7 = vld [vmem:[%s4015_s24 + $0x20] ss:$16 sps:$4 sm:$0xff]   ;;  %v3238_v8 = vld [vmem:[%s4015_s24 + $0x28] ss:$16 sps:$4 sm:$0xff]   ;;  %v3239_v9 = vld [vmem:[%s4015_s24 + $0x44] ss:$16 sps:$4 sm:$0xff]  }
  0x69   : > { %1454 = vmatprep.subr.bf16.mxu0 %v3233_v5  ;;  %1540 = vmatprep.subr.bf16.mxu1 %v3235_v6  ;;  %v3241_v10 = vld [vmem:[%s4015_s24 + $0x4c] ss:$16 sps:$4 sm:$0xff]   ;;  %v3243_v11 = vld [vmem:[%s4015_s24 + $0x40] ss:$16 sps:$4 sm:$0xff]   ;;  %v3244_v12 = vld [vmem:[%s4015_s24 + $0x48] ss:$16 sps:$4 sm:$0xff]  }
  0x6a   : > { %v3245_v13 = vld [vmem:[%s4015_s24 + $0x64] ss:$16 sps:$4 sm:$0xff]   ;;  %v3247_v14 = vld [vmem:[%s4015_s24 + $0x6c] ss:$16 sps:$4 sm:$0xff]   ;;  %v3249_v15 = vld [vmem:[%s4015_s24 + $0x60] ss:$16 sps:$4 sm:$0xff]  }
  0x6b   : > { %v3250_v16 = vld [vmem:[%s4015_s24 + $0x68] ss:$16 sps:$4 sm:$0xff]   ;;  %v3251_v17 = vld [vmem:[%s4015_s24 + $0x84] ss:$16 sps:$4 sm:$0xff]   ;;  %v3253_v18 = vld [vmem:[%s4015_s24 + $0x8c] ss:$16 sps:$4 sm:$0xff]  }
  0x6c   : > { %1455 = vmatpush1.bf16.msra.mxu0 %v3237_v7  ;;  %1541 = vmatpush1.bf16.msra.mxu1 %v3238_v8  ;;  %v3255_v19 = vld [vmem:[%s4015_s24 + $0x80] ss:$16 sps:$4 sm:$0xff]   ;;  %v3256_v20 = vld [vmem:[%s4015_s24 + $0x88] ss:$16 sps:$4 sm:$0xff]   ;;  %v3257_v21 = vld [vmem:[%s4015_s24 + $0xa4] ss:$16 sps:$4 sm:$0xff]  }
  0x6d   : > { %1456 = vmatprep.subr.bf16.mxu0 %v3239_v9  ;;  %1542 = vmatprep.subr.bf16.mxu1 %v3241_v10  ;;  %v3259_v22 = vld [vmem:[%s4015_s24 + $0xac] ss:$16 sps:$4 sm:$0xff]   ;;  %v3261_v23 = vld [vmem:[%s4015_s24 + $0xa0] ss:$16 sps:$4 sm:$0xff]   ;;  %v3262_v24 = vld [vmem:[%s4015_s24 + $0xa8] ss:$16 sps:$4 sm:$0xff]  }
  0x6e   : > { %v3263_v25 = vld [vmem:[%s4015_s24 + $0xc4] ss:$16 sps:$4 sm:$0xff]   ;;  %v3265_v26 = vld [vmem:[%s4015_s24 + $0xcc] ss:$16 sps:$4 sm:$0xff]   ;;  %v3267_v27 = vld [vmem:[%s4015_s24 + $0xc0] ss:$16 sps:$4 sm:$0xff]  }
  0x6f   : > { %v3268_v28 = vld [vmem:[%s4015_s24 + $0xc8] ss:$16 sps:$4 sm:$0xff]   ;;  %v3269_v29 = vld [vmem:[%s4015_s24 + $0xe4] ss:$16 sps:$4 sm:$0xff]   ;;  %v3271_v30 = vld [vmem:[%s4015_s24 + $0xec] ss:$16 sps:$4 sm:$0xff]  }
  0x70   : > { %1457 = vmatpush1.bf16.msra.mxu0 %v3243_v11  ;;  %1543 = vmatpush1.bf16.msra.mxu1 %v3244_v12  ;;  %v3273_v31 = vld [vmem:[%s4015_s24 + $0xe0] ss:$16 sps:$4 sm:$0xff]   ;;  %v3274_v32 = vld [vmem:[%s4015_s24 + $0xe8] ss:$16 sps:$4 sm:$0xff]   ;;  %v3275_v33 = vld [vmem:[%s4015_s24 + $0x104] ss:$16 sps:$4 sm:$0xff]  }
  0x71   : > { %1458 = vmatprep.subr.bf16.mxu0 %v3245_v13  ;;  %1544 = vmatprep.subr.bf16.mxu1 %v3247_v14  ;;  %v3277_v34 = vld [vmem:[%s4015_s24 + $0x10c] ss:$16 sps:$4 sm:$0xff]   ;;  %v3279_v35 = vld [vmem:[%s4015_s24 + $0x100] ss:$16 sps:$4 sm:$0xff]   ;;  %v3280_v36 = vld [vmem:[%s4015_s24 + $0x108] ss:$16 sps:$4 sm:$0xff]  }
  0x72   : > { %v3281_v37 = vld [vmem:[%s4015_s24 + $0x124] ss:$16 sps:$4 sm:$0xff]   ;;  %v3283_v38 = vld [vmem:[%s4015_s24 + $0x12c] ss:$16 sps:$4 sm:$0xff]   ;;  %v3285_v39 = vld [vmem:[%s4015_s24 + $0x120] ss:$16 sps:$4 sm:$0xff]  }
  0x73   : > { %v3286_v40 = vld [vmem:[%s4015_s24 + $0x128] ss:$16 sps:$4 sm:$0xff]   ;;  %v3287_v41 = vld [vmem:[%s4015_s24 + $0x144] ss:$16 sps:$4 sm:$0xff]   ;;  %v3289_v42 = vld [vmem:[%s4015_s24 + $0x14c] ss:$16 sps:$4 sm:$0xff]  }
  0x74   : > { %1459 = vmatpush1.bf16.msra.mxu0 %v3249_v15  ;;  %1545 = vmatpush1.bf16.msra.mxu1 %v3250_v16  ;;  %v3291_v43 = vld [vmem:[%s4015_s24 + $0x140] ss:$16 sps:$4 sm:$0xff]   ;;  %v3292_v44 = vld [vmem:[%s4015_s24 + $0x148] ss:$16 sps:$4 sm:$0xff]   ;;  %v3293_v45 = vld [vmem:[%s4015_s24 + $0x164] ss:$16 sps:$4 sm:$0xff]  }
  0x75   : > { %1460 = vmatprep.subr.bf16.mxu0 %v3251_v17  ;;  %1546 = vmatprep.subr.bf16.mxu1 %v3253_v18  ;;  %v3295_v46 = vld [vmem:[%s4015_s24 + $0x16c] ss:$16 sps:$4 sm:$0xff]   ;;  %v3297_v49 = vld [vmem:[%s4015_s24 + $0x160] ss:$16 sps:$4 sm:$0xff]   ;;  %v3298_v50 = vld [vmem:[%s4015_s24 + $0x168] ss:$16 sps:$4 sm:$0xff]  }
  0x76   : > { %v651_v47 = vld [vmem:[%s4404_s0 + $0x8] sm:$0xff]  ;;  %v3299_v52 = vld [vmem:[%s4015_s24 + $0x184] ss:$16 sps:$4 sm:$0xff]   ;;  %v3303_v54 = vld [vmem:[%s4015_s24 + $0x180] ss:$16 sps:$4 sm:$0xff]   ;;  %p3155_p12 = scmp.ne.s32.totalorder %s3645_s26, 3 }
  0x77   : > { %v655_v48 = vld [vmem:[%s4404_s0 + $0x28] sm:$0xff]  ;;  %v3305_v56 = vld [vmem:[%s4015_s24 + $0x1a4] ss:$16 sps:$4 sm:$0xff]   ;;  %v3309_v58 = vld [vmem:[%s4015_s24 + $0x1a0] ss:$16 sps:$4 sm:$0xff]  }
  0x78   : > { %1461 = vmatpush1.bf16.msra.mxu0 %v3255_v19  ;;  %1547 = vmatpush1.bf16.msra.mxu1 %v3256_v20  ;;  %v659_v51 = vpack.c.bf16 %v655_v48, %v651_v47  ;;  %v3301_v53 = vld [vmem:[%s4015_s24 + $0x18c] ss:$16 sps:$4 sm:$0xff]   ;;  %v3304_v55 = vld [vmem:[%s4015_s24 + $0x188] ss:$16 sps:$4 sm:$0xff]   ;;  %v3311_v60 = vld [vmem:[%s4015_s24 + $0x1c4] ss:$16 sps:$4 sm:$0xff]  }
  0x79   : > { %1462 = vmatprep.subr.bf16.mxu0 %v3257_v21  ;;  %1548 = vmatprep.subr.bf16.mxu1 %v3259_v22  ;;  %v3307_v57 = vld [vmem:[%s4015_s24 + $0x1ac] ss:$16 sps:$4 sm:$0xff]   ;;  %v3310_v59 = vld [vmem:[%s4015_s24 + $0x1a8] ss:$16 sps:$4 sm:$0xff]   ;;  %v3315_v62 = vld [vmem:[%s4015_s24 + $0x1c0] ss:$16 sps:$4 sm:$0xff]  }
  0x7a   : > { %1484 = vmatprep.mubr.bf16.mxu0 %v659_v51  ;;  %1570 = vmatprep.mubr.bf16.mxu1 %v659_v51  ;;  %v3313_v61 = vld [vmem:[%s4015_s24 + $0x1cc] ss:$16 sps:$4 sm:$0xff]   ;;  %v3316_v63 = vld [vmem:[%s4015_s24 + $0x1c8] ss:$16 sps:$4 sm:$0xff]   ;;  %v3317_v0 = vld [vmem:[%s4015_s24 + $0x1e4] ss:$16 sps:$4 sm:$0xff]  }
  0x7b   : > { %v3319_v1 = vld [vmem:[%s4015_s24 + $0x1ec] ss:$16 sps:$4 sm:$0xff]   ;;  %v3321_v2 = vld [vmem:[%s4015_s24 + $0x1e0] ss:$16 sps:$4 sm:$0xff]   ;;  %v3322_v3 = vld [vmem:[%s4015_s24 + $0x1e8] ss:$16 sps:$4 sm:$0xff]  }
  0x7c   : > { %1463 = vmatpush1.bf16.msra.mxu0 %v3261_v23  ;;  %1549 = vmatpush1.bf16.msra.mxu1 %v3262_v24  ;;  %v3325_v4 = vld [vmem:[%s4015_s24 + $0x204] ss:$16 sps:$4 sm:$0xff]   ;;  %v3328_v7 = vld [vmem:[%s4015_s24 + $0x20c] ss:$16 sps:$4 sm:$0xff]   ;;  %v3323_v8 = vld [vmem:[%s4015_s24 + $0x200] ss:$16 sps:$4 sm:$0xff]  }
  0x7d   : > { %1464 = vmatprep.subr.bf16.mxu0 %v3263_v25  ;;  %1550 = vmatprep.subr.bf16.mxu1 %v3265_v26  ;;  %v650_v5 = vld [vmem:[%s4404_s0] sm:$0xff]  ;;  %v3326_v9 = vld [vmem:[%s4015_s24 + $0x208] ss:$16 sps:$4 sm:$0xff]   ;;  %v3334_v12 = vld [vmem:[%s4015_s24 + $0x22c] ss:$16 sps:$4 sm:$0xff]  }
  0x7e   : > { %v654_v6 = vld [vmem:[%s4404_s0 + $0x20] sm:$0xff]  ;;  %v3332_v14 = vld [vmem:[%s4015_s24 + $0x228] ss:$16 sps:$4 sm:$0xff]   ;;  %v3340_v16 = vld [vmem:[%s4015_s24 + $0x24c] ss:$16 sps:$4 sm:$0xff]  }
  0x7f   : > { %v658_v10 = vpack.c.bf16 %v654_v6, %v650_v5  ;;  %v3331_v11 = vld [vmem:[%s4015_s24 + $0x224] ss:$16 sps:$4 sm:$0xff]   ;;  %v3329_v13 = vld [vmem:[%s4015_s24 + $0x220] ss:$16 sps:$4 sm:$0xff]   ;;  %v3338_v18 = vld [vmem:[%s4015_s24 + $0x248] ss:$16 sps:$4 sm:$0xff]  }
  0x80   : > { %1465 = vmatpush1.bf16.msra.mxu0 %v3267_v27  ;;  %1551 = vmatpush1.bf16.msra.mxu1 %v3268_v28  ;;  %v3337_v15 = vld [vmem:[%s4015_s24 + $0x244] ss:$16 sps:$4 sm:$0xff]   ;;  %v3335_v17 = vld [vmem:[%s4015_s24 + $0x240] ss:$16 sps:$4 sm:$0xff]   ;;  %v3346_v20 = vld [vmem:[%s4015_s24 + $0x26c] ss:$16 sps:$4 sm:$0xff]  }
  0x81   : > { %1466 = vmatprep.subr.bf16.mxu0 %v3269_v29  ;;  %1552 = vmatprep.subr.bf16.mxu1 %v3271_v30  ;;  %v3343_v19 = vld [vmem:[%s4015_s24 + $0x264] ss:$16 sps:$4 sm:$0xff]   ;;  %v3341_v21 = vld [vmem:[%s4015_s24 + $0x260] ss:$16 sps:$4 sm:$0xff]   ;;  %v3344_v22 = vld [vmem:[%s4015_s24 + $0x268] ss:$16 sps:$4 sm:$0xff]  }
  0x82   : > { %v3349_v23 = vld [vmem:[%s4015_s24 + $0x284] ss:$16 sps:$4 sm:$0xff]   ;;  %v3352_v24 = vld [vmem:[%s4015_s24 + $0x28c] ss:$16 sps:$4 sm:$0xff]   ;;  %v3347_v25 = vld [vmem:[%s4015_s24 + $0x280] ss:$16 sps:$4 sm:$0xff]  }
  0x83   : > { %v3350_v26 = vld [vmem:[%s4015_s24 + $0x288] ss:$16 sps:$4 sm:$0xff]   ;;  %v3355_v27 = vld [vmem:[%s4015_s24 + $0x2a4] ss:$16 sps:$4 sm:$0xff]   ;;  %v3358_v28 = vld [vmem:[%s4015_s24 + $0x2ac] ss:$16 sps:$4 sm:$0xff]  }
  0x84   : > { %1467 = vmatpush1.bf16.msra.mxu0 %v3273_v31  ;;  %1553 = vmatpush1.bf16.msra.mxu1 %v3274_v32  ;;  %v3353_v29 = vld [vmem:[%s4015_s24 + $0x2a0] ss:$16 sps:$4 sm:$0xff]   ;;  %v3356_v30 = vld [vmem:[%s4015_s24 + $0x2a8] ss:$16 sps:$4 sm:$0xff]   ;;  %v3361_v31 = vld [vmem:[%s4015_s24 + $0x2c4] ss:$16 sps:$4 sm:$0xff]  }
  0x85   : > { %1468 = vmatprep.subr.bf16.mxu0 %v3275_v33  ;;  %1554 = vmatprep.subr.bf16.mxu1 %v3277_v34  ;;  %v3364_v32 = vld [vmem:[%s4015_s24 + $0x2cc] ss:$16 sps:$4 sm:$0xff]   ;;  %v3359_v34 = vld [vmem:[%s4015_s24 + $0x2c0] ss:$16 sps:$4 sm:$0xff]   ;;  %v3410_v5 = vld [vmem:[%s4015_s24 + $0x3c8] ss:$16 sps:$4 sm:$0xff]  }
  0x86   : > { %v653_v33 = vld [vmem:[%s4404_s0 + $0x18] sm:$0xff]  ;;  %v3377_v48 = vld [vmem:[%s4015_s24 + $0x320] ss:$16 sps:$4 sm:$0xff]   ;;  %v3415_v6 = vld [vmem:[%s4015_s24 + $0x3e4] ss:$16 sps:$4 sm:$0xff]  }
  0x87   : > { %v3382_v47 = vld [vmem:[%s4015_s24 + $0x32c] ss:$16 sps:$4 sm:$0xff]  }
  0x88   : > { %1469 = vmatpush1.bf16.msra.mxu0 %v3279_v35  ;;  %1555 = vmatpush1.bf16.msra.mxu1 %v3280_v36  ;;  %v3362_v35 = vld [vmem:[%s4015_s24 + $0x2c8] ss:$16 sps:$4 sm:$0xff]   ;;  %v3388_v51 = vld [vmem:[%s4015_s24 + $0x34c] ss:$16 sps:$4 sm:$0xff]  }
  0x89   : > { %1470 = vmatprep.subr.bf16.mxu0 %v3281_v37  ;;  %1556 = vmatprep.subr.bf16.mxu1 %v3283_v38  ;;  %v657_v36 = vld [vmem:[%s4404_s0 + $0x38] sm:$0xff]  ;;  %v3367_v37 = vld [vmem:[%s4015_s24 + $0x2e4] ss:$16 sps:$4 sm:$0xff]  }
  0x8a   : > { %v661_v38 = vpack.c.bf16 %v657_v36, %v653_v33  ;;  %v3451_v33 = vld [vmem:[%s4013_s11 + $0xa4] ss:$16 sps:$4 sm:$0xff]   ;;  %v3452_v36 = vld [vmem:[%s4013_s11 + $0xa8] ss:$16 sps:$4 sm:$0xff]  }
  0x8c   : > { %1471 = vmatpush1.bf16.msra.mxu0 %v3285_v39  ;;  %1557 = vmatpush1.bf16.msra.mxu1 %v3286_v40  ;;  %v3370_v39 = vld [vmem:[%s4015_s24 + $0x2ec] ss:$16 sps:$4 sm:$0xff]   ;;  %v3365_v40 = vld [vmem:[%s4015_s24 + $0x2e0] ss:$16 sps:$4 sm:$0xff]  }
  0x8d   : > { %1472 = vmatprep.subr.bf16.mxu0 %v3287_v41  ;;  %1558 = vmatprep.subr.bf16.mxu1 %v3289_v42  ;;  %v3368_v41 = vld [vmem:[%s4015_s24 + $0x2e8] ss:$16 sps:$4 sm:$0xff]   ;;  %v3373_v42 = vld [vmem:[%s4015_s24 + $0x304] ss:$16 sps:$4 sm:$0xff]  }
  0x90   : > { %1473 = vmatpush1.bf16.msra.mxu0 %v3291_v43  ;;  %1559 = vmatpush1.bf16.msra.mxu1 %v3292_v44  ;;  %v3376_v43 = vld [vmem:[%s4015_s24 + $0x30c] ss:$16 sps:$4 sm:$0xff]   ;;  %v3371_v44 = vld [vmem:[%s4015_s24 + $0x300] ss:$16 sps:$4 sm:$0xff]  }
  0x91   : > { %1474 = vmatprep.subr.bf16.mxu0 %v3293_v45  ;;  %1560 = vmatprep.subr.bf16.mxu1 %v3295_v46  ;;  %v3374_v45 = vld [vmem:[%s4015_s24 + $0x308] ss:$16 sps:$4 sm:$0xff]   ;;  %v3379_v46 = vld [vmem:[%s4015_s24 + $0x324] ss:$16 sps:$4 sm:$0xff]  }
  0x94   : > { %1475 = vmatpush1.bf16.msra.mxu0 %v3297_v49  ;;  %1561 = vmatpush1.bf16.msra.mxu1 %v3298_v50  ;;  %v3380_v49 = vld [vmem:[%s4015_s24 + $0x328] ss:$16 sps:$4 sm:$0xff]   ;;  %v3385_v50 = vld [vmem:[%s4015_s24 + $0x344] ss:$16 sps:$4 sm:$0xff]  }
  0x95   : > { %1476 = vmatprep.subr.bf16.mxu0 %v3299_v52  ;;  %1562 = vmatprep.subr.bf16.mxu1 %v3301_v53  ;;  %v3383_v52 = vld [vmem:[%s4015_s24 + $0x340] ss:$16 sps:$4 sm:$0xff]   ;;  %v3386_v53 = vld [vmem:[%s4015_s24 + $0x348] ss:$16 sps:$4 sm:$0xff]  }
  0x98   : > { %1477 = vmatpush1.bf16.msra.mxu0 %v3303_v54  ;;  %1563 = vmatpush1.bf16.msra.mxu1 %v3304_v55  ;;  %v3391_v54 = vld [vmem:[%s4015_s24 + $0x364] ss:$16 sps:$4 sm:$0xff]   ;;  %v3394_v55 = vld [vmem:[%s4015_s24 + $0x36c] ss:$16 sps:$4 sm:$0xff]  }
  0x99   : > { %1478 = vmatprep.subr.bf16.mxu0 %v3305_v56  ;;  %1564 = vmatprep.subr.bf16.mxu1 %v3307_v57  ;;  %v3389_v56 = vld [vmem:[%s4015_s24 + $0x360] ss:$16 sps:$4 sm:$0xff]   ;;  %v3392_v57 = vld [vmem:[%s4015_s24 + $0x368] ss:$16 sps:$4 sm:$0xff]  }
  0x9c   : > { %1479 = vmatpush1.bf16.msra.mxu0 %v3309_v58  ;;  %1565 = vmatpush1.bf16.msra.mxu1 %v3310_v59  ;;  %v3397_v58 = vld [vmem:[%s4015_s24 + $0x384] ss:$16 sps:$4 sm:$0xff]   ;;  %v3400_v59 = vld [vmem:[%s4015_s24 + $0x38c] ss:$16 sps:$4 sm:$0xff]  }
  0x9d   : > { %1480 = vmatprep.subr.bf16.mxu0 %v3311_v60  ;;  %1566 = vmatprep.subr.bf16.mxu1 %v3313_v61  ;;  %v3395_v60 = vld [vmem:[%s4015_s24 + $0x380] ss:$16 sps:$4 sm:$0xff]   ;;  %v3398_v61 = vld [vmem:[%s4015_s24 + $0x388] ss:$16 sps:$4 sm:$0xff]  }
  0xa0   : > { %1481 = vmatpush1.bf16.msra.mxu0 %v3315_v62  ;;  %1567 = vmatpush1.bf16.msra.mxu1 %v3316_v63  ;;  %v3403_v62 = vld [vmem:[%s4015_s24 + $0x3a4] ss:$16 sps:$4 sm:$0xff]   ;;  %v3406_v63 = vld [vmem:[%s4015_s24 + $0x3ac] ss:$16 sps:$4 sm:$0xff]  }
  0xa1   : > { %1482 = vmatprep.subr.bf16.mxu0 %v3317_v0  ;;  %1568 = vmatprep.subr.bf16.mxu1 %v3319_v1  ;;  %v3401_v0 = vld [vmem:[%s4015_s24 + $0x3a0] ss:$16 sps:$4 sm:$0xff]   ;;  %v3404_v1 = vld [vmem:[%s4015_s24 + $0x3a8] ss:$16 sps:$4 sm:$0xff]  }
  0xa4   : > { %1483 = vmatpush1.bf16.msra.mxu0 %v3321_v2  ;;  %1569 = vmatpush1.bf16.msra.mxu1 %v3322_v3  ;;  %v3409_v2 = vld [vmem:[%s4015_s24 + $0x3c4] ss:$16 sps:$4 sm:$0xff]   ;;  %v3412_v3 = vld [vmem:[%s4015_s24 + $0x3cc] ss:$16 sps:$4 sm:$0xff]  }
  0xa5   : > { %1495 = vmatprep.subr.bf16.mxu0 %v3325_v4  ;;  %1581 = vmatprep.subr.bf16.mxu1 %v3328_v7  ;;  %v3407_v4 = vld [vmem:[%s4015_s24 + $0x3c0] ss:$16 sps:$4 sm:$0xff]   ;;  %v3418_v7 = vld [vmem:[%s4015_s24 + $0x3ec] ss:$16 sps:$4 sm:$0xff]  }
  0xa7   : > { %1485 = vmatmul.mubr.bf16.vlgmr.msra.gmra.mrb[0].mxu0 %v658_v10  ;;  %1571 = vmatmul.mubr.bf16.vlgmr.msra.gmra.mrb[0].mxu1 %v658_v10  ;;  %v652_v10 = vld [vmem:[%s4404_s0 + $0x10] sm:$0xff] }
  0xa8   : > { %1496 = vmatpush1.bf16.msra.mxu0 %v3323_v8  ;;  %1582 = vmatpush1.bf16.msra.mxu1 %v3326_v9  ;;  %v3413_v8 = vld [vmem:[%s4015_s24 + $0x3e0] ss:$16 sps:$4 sm:$0xff]   ;;  %v3416_v9 = vld [vmem:[%s4015_s24 + $0x3e8] ss:$16 sps:$4 sm:$0xff]  }
  0xa9   : > { %1497 = vmatprep.subr.bf16.mxu0 %v3331_v11  ;;  %1583 = vmatprep.subr.bf16.mxu1 %v3334_v12  ;;  %v656_v11 = vld [vmem:[%s4404_s0 + $0x30] sm:$0xff] }
  0xaa   : > { %1527 = vmatprep.mubr.bf16.mxu0 %v661_v38  ;;  %1613 = vmatprep.mubr.bf16.mxu1 %v661_v38  ;;  %v3421_v12 = vld [vmem:[%s4013_s11 + $0x4] ss:$16 sps:$4 sm:$0xff]   ;;  %v3460_v38 = vld [vmem:[%s4013_s11 + $0xcc] ss:$16 sps:$4 sm:$0xff]  }
  0xac   : > { %1498 = vmatpush1.bf16.msra.mxu0 %v3329_v13  ;;  %1584 = vmatpush1.bf16.msra.mxu1 %v3332_v14  ;;  %v3424_v13 = vld [vmem:[%s4013_s11 + $0xc] ss:$16 sps:$4 sm:$0xff]   ;;  %v3419_v14 = vld [vmem:[%s4013_s11] ss:$16 sps:$4 sm:$0xff]  }
  0xad   : > { %1499 = vmatprep.subr.bf16.mxu0 %v3337_v15  ;;  %1585 = vmatprep.subr.bf16.mxu1 %v3340_v16  ;;  %v3422_v15 = vld [vmem:[%s4013_s11 + $0x8] ss:$16 sps:$4 sm:$0xff]   ;;  %v660_v16 = vpack.c.bf16 %v656_v11, %v652_v10  ;;  %v3514_v10 = vld [vmem:[%s4013_s11 + $0x1ec] ss:$16 sps:$4 sm:$0xff]   ;;  %v3509_v11 = vld [vmem:[%s4013_s11 + $0x1e0] ss:$16 sps:$4 sm:$0xff]  }
  0xb0   : > { %1500 = vmatpush1.bf16.msra.mxu0 %v3335_v17  ;;  %1586 = vmatpush1.bf16.msra.mxu1 %v3338_v18  ;;  %v3427_v17 = vld [vmem:[%s4013_s11 + $0x24] ss:$16 sps:$4 sm:$0xff]   ;;  %v3430_v18 = vld [vmem:[%s4013_s11 + $0x2c] ss:$16 sps:$4 sm:$0xff]  }
  0xb1   : > { %1501 = vmatprep.subr.bf16.mxu0 %v3343_v19  ;;  %1587 = vmatprep.subr.bf16.mxu1 %v3346_v20  ;;  %v3425_v19 = vld [vmem:[%s4013_s11 + $0x20] ss:$16 sps:$4 sm:$0xff]   ;;  %v3428_v20 = vld [vmem:[%s4013_s11 + $0x28] ss:$16 sps:$4 sm:$0xff]  }
  0xb4   : > { %1502 = vmatpush1.bf16.msra.mxu0 %v3341_v21  ;;  %1588 = vmatpush1.bf16.msra.mxu1 %v3344_v22  ;;  %v3433_v21 = vld [vmem:[%s4013_s11 + $0x44] ss:$16 sps:$4 sm:$0xff]   ;;  %v3436_v22 = vld [vmem:[%s4013_s11 + $0x4c] ss:$16 sps:$4 sm:$0xff]  }
  0xb5   : > { %1503 = vmatprep.subr.bf16.mxu0 %v3349_v23  ;;  %1589 = vmatprep.subr.bf16.mxu1 %v3352_v24  ;;  %v3431_v23 = vld [vmem:[%s4013_s11 + $0x40] ss:$16 sps:$4 sm:$0xff]   ;;  %v3434_v24 = vld [vmem:[%s4013_s11 + $0x48] ss:$16 sps:$4 sm:$0xff]  }
  0xb8   : > { %1504 = vmatpush1.bf16.msra.mxu0 %v3347_v25  ;;  %1590 = vmatpush1.bf16.msra.mxu1 %v3350_v26  ;;  %v3439_v25 = vld [vmem:[%s4013_s11 + $0x64] ss:$16 sps:$4 sm:$0xff]   ;;  %v3442_v26 = vld [vmem:[%s4013_s11 + $0x6c] ss:$16 sps:$4 sm:$0xff]  }
  0xb9   : > { %1505 = vmatprep.subr.bf16.mxu0 %v3355_v27  ;;  %1591 = vmatprep.subr.bf16.mxu1 %v3358_v28  ;;  %v3437_v27 = vld [vmem:[%s4013_s11 + $0x60] ss:$16 sps:$4 sm:$0xff]   ;;  %v3440_v28 = vld [vmem:[%s4013_s11 + $0x68] ss:$16 sps:$4 sm:$0xff]  }
  0xbc   : > { %1506 = vmatpush1.bf16.msra.mxu0 %v3353_v29  ;;  %1592 = vmatpush1.bf16.msra.mxu1 %v3356_v30  ;;  %v3445_v29 = vld [vmem:[%s4013_s11 + $0x84] ss:$16 sps:$4 sm:$0xff]   ;;  %v3448_v30 = vld [vmem:[%s4013_s11 + $0x8c] ss:$16 sps:$4 sm:$0xff]  }
  0xbd   : > { %1507 = vmatprep.subr.bf16.mxu0 %v3361_v31  ;;  %1593 = vmatprep.subr.bf16.mxu1 %v3364_v32  ;;  %v3443_v31 = vld [vmem:[%s4013_s11 + $0x80] ss:$16 sps:$4 sm:$0xff]   ;;  %v3446_v32 = vld [vmem:[%s4013_s11 + $0x88] ss:$16 sps:$4 sm:$0xff]  }
  0xc0   : > { %1508 = vmatpush1.bf16.msra.mxu0 %v3359_v34  ;;  %1594 = vmatpush1.bf16.msra.mxu1 %v3362_v35  ;;  %v3454_v34 = vld [vmem:[%s4013_s11 + $0xac] ss:$16 sps:$4 sm:$0xff]   ;;  %v3449_v35 = vld [vmem:[%s4013_s11 + $0xa0] ss:$16 sps:$4 sm:$0xff]  }
  0xc1   : > { %1509 = vmatprep.subr.bf16.mxu0 %v3367_v37  ;;  %1595 = vmatprep.subr.bf16.mxu1 %v3370_v39  ;;  %v3457_v37 = vld [vmem:[%s4013_s11 + $0xc4] ss:$16 sps:$4 sm:$0xff]   ;;  %v3455_v39 = vld [vmem:[%s4013_s11 + $0xc0] ss:$16 sps:$4 sm:$0xff]  }
  0xc4   : > { %1510 = vmatpush1.bf16.msra.mxu0 %v3365_v40  ;;  %1596 = vmatpush1.bf16.msra.mxu1 %v3368_v41  ;;  %v3458_v40 = vld [vmem:[%s4013_s11 + $0xc8] ss:$16 sps:$4 sm:$0xff]   ;;  %v3463_v41 = vld [vmem:[%s4013_s11 + $0xe4] ss:$16 sps:$4 sm:$0xff]  }
  0xc5   : > { %1511 = vmatprep.subr.bf16.mxu0 %v3373_v42  ;;  %1597 = vmatprep.subr.bf16.mxu1 %v3376_v43  ;;  %v3466_v42 = vld [vmem:[%s4013_s11 + $0xec] ss:$16 sps:$4 sm:$0xff]   ;;  %v3461_v43 = vld [vmem:[%s4013_s11 + $0xe0] ss:$16 sps:$4 sm:$0xff]  }
  0xc8   : > { %1512 = vmatpush1.bf16.msra.mxu0 %v3371_v44  ;;  %1598 = vmatpush1.bf16.msra.mxu1 %v3374_v45  ;;  %v3464_v44 = vld [vmem:[%s4013_s11 + $0xe8] ss:$16 sps:$4 sm:$0xff]   ;;  %v3469_v45 = vld [vmem:[%s4013_s11 + $0x104] ss:$16 sps:$4 sm:$0xff]  }
  0xc9   : > { %1513 = vmatprep.subr.bf16.mxu0 %v3379_v46  ;;  %1599 = vmatprep.subr.bf16.mxu1 %v3382_v47  ;;  %v3472_v46 = vld [vmem:[%s4013_s11 + $0x10c] ss:$16 sps:$4 sm:$0xff]   ;;  %v3467_v47 = vld [vmem:[%s4013_s11 + $0x100] ss:$16 sps:$4 sm:$0xff]  }
  0xcc   : > { %1514 = vmatpush1.bf16.msra.mxu0 %v3377_v48  ;;  %1600 = vmatpush1.bf16.msra.mxu1 %v3380_v49  ;;  %v3470_v48 = vld [vmem:[%s4013_s11 + $0x108] ss:$16 sps:$4 sm:$0xff]   ;;  %v3475_v49 = vld [vmem:[%s4013_s11 + $0x124] ss:$16 sps:$4 sm:$0xff]  }
  0xcd   : > { %1515 = vmatprep.subr.bf16.mxu0 %v3385_v50  ;;  %1601 = vmatprep.subr.bf16.mxu1 %v3388_v51  ;;  %v3478_v50 = vld [vmem:[%s4013_s11 + $0x12c] ss:$16 sps:$4 sm:$0xff]   ;;  %v3473_v51 = vld [vmem:[%s4013_s11 + $0x120] ss:$16 sps:$4 sm:$0xff]  }
  0xd0   : > { %1516 = vmatpush1.bf16.msra.mxu0 %v3383_v52  ;;  %1602 = vmatpush1.bf16.msra.mxu1 %v3386_v53  ;;  %v3476_v52 = vld [vmem:[%s4013_s11 + $0x128] ss:$16 sps:$4 sm:$0xff]   ;;  %v3481_v53 = vld [vmem:[%s4013_s11 + $0x144] ss:$16 sps:$4 sm:$0xff]  }
  0xd1   : > { %1517 = vmatprep.subr.bf16.mxu0 %v3391_v54  ;;  %1603 = vmatprep.subr.bf16.mxu1 %v3394_v55  ;;  %v3484_v54 = vld [vmem:[%s4013_s11 + $0x14c] ss:$16 sps:$4 sm:$0xff]   ;;  %v3479_v55 = vld [vmem:[%s4013_s11 + $0x140] ss:$16 sps:$4 sm:$0xff]  }
  0xd4   : > { %1518 = vmatpush1.bf16.msra.mxu0 %v3389_v56  ;;  %1604 = vmatpush1.bf16.msra.mxu1 %v3392_v57  ;;  %v3482_v56 = vld [vmem:[%s4013_s11 + $0x148] ss:$16 sps:$4 sm:$0xff]   ;;  %v3487_v57 = vld [vmem:[%s4013_s11 + $0x164] ss:$16 sps:$4 sm:$0xff]  }
  0xd5   : > { %1519 = vmatprep.subr.bf16.mxu0 %v3397_v58  ;;  %1605 = vmatprep.subr.bf16.mxu1 %v3400_v59  ;;  %v3490_v58 = vld [vmem:[%s4013_s11 + $0x16c] ss:$16 sps:$4 sm:$0xff]   ;;  %v3485_v59 = vld [vmem:[%s4013_s11 + $0x160] ss:$16 sps:$4 sm:$0xff]  }
  0xd8   : > { %1520 = vmatpush1.bf16.msra.mxu0 %v3395_v60  ;;  %1606 = vmatpush1.bf16.msra.mxu1 %v3398_v61  ;;  %v3488_v60 = vld [vmem:[%s4013_s11 + $0x168] ss:$16 sps:$4 sm:$0xff]   ;;  %v3493_v61 = vld [vmem:[%s4013_s11 + $0x184] ss:$16 sps:$4 sm:$0xff]  }
  0xd9   : > { %1521 = vmatprep.subr.bf16.mxu0 %v3403_v62  ;;  %1607 = vmatprep.subr.bf16.mxu1 %v3406_v63  ;;  %v3496_v62 = vld [vmem:[%s4013_s11 + $0x18c] ss:$16 sps:$4 sm:$0xff]   ;;  %v3491_v63 = vld [vmem:[%s4013_s11 + $0x180] ss:$16 sps:$4 sm:$0xff]  }
  0xdc   : > { %1522 = vmatpush1.bf16.msra.mxu0 %v3401_v0  ;;  %1608 = vmatpush1.bf16.msra.mxu1 %v3404_v1  ;;  %v3494_v0 = vld [vmem:[%s4013_s11 + $0x188] ss:$16 sps:$4 sm:$0xff]   ;;  %v3499_v1 = vld [vmem:[%s4013_s11 + $0x1a4] ss:$16 sps:$4 sm:$0xff]  }
  0xdd   : > { %1523 = vmatprep.subr.bf16.mxu0 %v3409_v2  ;;  %1609 = vmatprep.subr.bf16.mxu1 %v3412_v3  ;;  %v3502_v2 = vld [vmem:[%s4013_s11 + $0x1ac] ss:$16 sps:$4 sm:$0xff]   ;;  %v3497_v3 = vld [vmem:[%s4013_s11 + $0x1a0] ss:$16 sps:$4 sm:$0xff]  }
  0xe0   : > { %1524 = vmatpush1.bf16.msra.mxu0 %v3407_v4  ;;  %1610 = vmatpush1.bf16.msra.mxu1 %v3410_v5  ;;  %v3500_v4 = vld [vmem:[%s4013_s11 + $0x1a8] ss:$16 sps:$4 sm:$0xff]   ;;  %v3505_v5 = vld [vmem:[%s4013_s11 + $0x1c4] ss:$16 sps:$4 sm:$0xff]  }
  0xe1   : > { %1525 = vmatprep.subr.bf16.mxu0 %v3415_v6  ;;  %1611 = vmatprep.subr.bf16.mxu1 %v3418_v7  ;;  %v3508_v6 = vld [vmem:[%s4013_s11 + $0x1cc] ss:$16 sps:$4 sm:$0xff]   ;;  %v3503_v7 = vld [vmem:[%s4013_s11 + $0x1c0] ss:$16 sps:$4 sm:$0xff]  }
  0xe4   : > { %1526 = vmatpush1.bf16.msra.mxu0 %v3413_v8  ;;  %1612 = vmatpush1.bf16.msra.mxu1 %v3416_v9  ;;  %v3506_v8 = vld [vmem:[%s4013_s11 + $0x1c8] ss:$16 sps:$4 sm:$0xff]   ;;  %v3511_v9 = vld [vmem:[%s4013_s11 + $0x1e4] ss:$16 sps:$4 sm:$0xff]  }
  0xe5   : > { %2412 = vmatprep.subr.bf16.mxu0 %v3421_v12  ;;  %2498 = vmatprep.subr.bf16.mxu1 %v3424_v13  ;;  %v3512_v12 = vld [vmem:[%s4013_s11 + $0x1e8] ss:$16 sps:$4 sm:$0xff]   ;;  %v3517_v13 = vld [vmem:[%s4013_s11 + $0x204] ss:$16 sps:$4 sm:$0xff]  }
  0xe7   : > { %1528 = vmatmul.mubr.bf16.vlgmr.msra.gmra.mrb[0].mxu0 %v660_v16  ;;  %1614 = vmatmul.mubr.bf16.vlgmr.msra.gmra.mrb[0].mxu1 %v660_v16 }
  0xe8   : > { %2413 = vmatpush1.bf16.msra.mxu0 %v3419_v14  ;;  %2499 = vmatpush1.bf16.msra.mxu1 %v3422_v15  ;;  %v3520_v14 = vld [vmem:[%s4013_s11 + $0x20c] ss:$16 sps:$4 sm:$0xff]   ;;  %v792_v15 = vlaneseq }
  0xe9   : > { %2414 = vmatprep.subr.bf16.mxu0 %v3427_v17  ;;  %2500 = vmatprep.subr.bf16.mxu1 %v3430_v18 }
  0xea   : > { %v793_v16 = vshrl.u32 %v792_v15, 7  ;;  %v3554_v15 = vld [vmem:[%s4013_s11 + $0x2c8] ss:$16 sps:$4 sm:$0xff]  }
  0xec   : > { %2415 = vmatpush1.bf16.msra.mxu0 %v3425_v19  ;;  %2501 = vmatpush1.bf16.msra.mxu1 %v3428_v20  ;;  %v4236_v17 = vsub.s32 0, %v793_v16  ;;  %v4238_v18 = vsub.s32 2, %v793_v16  ;;  %v790_v19 = vld [vmem:[%s622_s23] sm:$0xf]  ;;  %v4245_v20 = vsub.s32 1, %v793_v16 }
  0xed   : > { %2416 = vmatprep.subr.bf16.mxu0 %v3433_v21  ;;  %2502 = vmatprep.subr.bf16.mxu1 %v3436_v22  ;;  %v4247_v21 = vsub.s32 3, %v793_v16  ;;  %v3559_v16 = vld [vmem:[%s4013_s11 + $0x2e4] ss:$16 sps:$4 sm:$0xff]  }
  0xee   : > { %v795_v22 = vrot.slane %v790_v19, %v4236_v17 }
  0xf0   : > { %2417 = vmatpush1.bf16.msra.mxu0 %v3431_v23  ;;  %2503 = vmatpush1.bf16.msra.mxu1 %v3434_v24  ;;  %v803_v23 = vrot.slane %v790_v19, %v4238_v18  ;;  %v799_v24 = vrot.slane %v790_v19, %v4245_v20 }
  0xf1   : > { %2418 = vmatprep.subr.bf16.mxu0 %v3439_v25  ;;  %2504 = vmatprep.subr.bf16.mxu1 %v3442_v26  ;;  %v807_v25 = vrot.slane %v790_v19, %v4247_v21  ;;  %v3562_v19 = vld [vmem:[%s4013_s11 + $0x2ec] ss:$16 sps:$4 sm:$0xff]  }
  0xf4   : > { %2419 = vmatpush1.bf16.msra.mxu0 %v3437_v27  ;;  %2505 = vmatpush1.bf16.msra.mxu1 %v3440_v28 }
  0xf5   : > { %2420 = vmatprep.subr.bf16.mxu0 %v3445_v29  ;;  %2506 = vmatprep.subr.bf16.mxu1 %v3448_v30 }
  0xf8   : > { %2421 = vmatpush1.bf16.msra.mxu0 %v3443_v31  ;;  %2507 = vmatpush1.bf16.msra.mxu1 %v3446_v32 }
  0xf9   : > { %2422 = vmatprep.subr.bf16.mxu0 %v3451_v33  ;;  %2508 = vmatprep.subr.bf16.mxu1 %v3454_v34 }
  0xfc   : > { %2423 = vmatpush1.bf16.msra.mxu0 %v3449_v35  ;;  %2509 = vmatpush1.bf16.msra.mxu1 %v3452_v36 }
  0xfd   : > { %2424 = vmatprep.subr.bf16.mxu0 %v3457_v37  ;;  %2510 = vmatprep.subr.bf16.mxu1 %v3460_v38 }
 0x100   : > { %2425 = vmatpush1.bf16.msra.mxu0 %v3455_v39  ;;  %2511 = vmatpush1.bf16.msra.mxu1 %v3458_v40 }
 0x101   : > { %2426 = vmatprep.subr.bf16.mxu0 %v3463_v41  ;;  %2512 = vmatprep.subr.bf16.mxu1 %v3466_v42 }
 0x104   : > { %2427 = vmatpush1.bf16.msra.mxu0 %v3461_v43  ;;  %2513 = vmatpush1.bf16.msra.mxu1 %v3464_v44 }
 0x105   : > { %2428 = vmatprep.subr.bf16.mxu0 %v3469_v45  ;;  %2514 = vmatprep.subr.bf16.mxu1 %v3472_v46 }
 0x108   : > { %2429 = vmatpush1.bf16.msra.mxu0 %v3467_v47  ;;  %2515 = vmatpush1.bf16.msra.mxu1 %v3470_v48 }
 0x109   : > { %2430 = vmatprep.subr.bf16.mxu0 %v3475_v49  ;;  %2516 = vmatprep.subr.bf16.mxu1 %v3478_v50 }
 0x10c   : > { %2431 = vmatpush1.bf16.msra.mxu0 %v3473_v51  ;;  %2517 = vmatpush1.bf16.msra.mxu1 %v3476_v52 }
 0x10d   : > { %2432 = vmatprep.subr.bf16.mxu0 %v3481_v53  ;;  %2518 = vmatprep.subr.bf16.mxu1 %v3484_v54  ;;  %v3515_v54 = vld [vmem:[%s4013_s11 + $0x200] ss:$16 sps:$4 sm:$0xff]  }
 0x110   : > { %2433 = vmatpush1.bf16.msra.mxu0 %v3479_v55  ;;  %2519 = vmatpush1.bf16.msra.mxu1 %v3482_v56  ;;  %v3518_v55 = vld [vmem:[%s4013_s11 + $0x208] ss:$16 sps:$4 sm:$0xff]   ;;  %v3523_v56 = vld [vmem:[%s4013_s11 + $0x224] ss:$16 sps:$4 sm:$0xff]  }
 0x111   : > { %2434 = vmatprep.subr.bf16.mxu0 %v3487_v57  ;;  %2520 = vmatprep.subr.bf16.mxu1 %v3490_v58  ;;  %v3526_v57 = vld [vmem:[%s4013_s11 + $0x22c] ss:$16 sps:$4 sm:$0xff]   ;;  %v3521_v58 = vld [vmem:[%s4013_s11 + $0x220] ss:$16 sps:$4 sm:$0xff]  }
 0x114   : > { %2435 = vmatpush1.bf16.msra.mxu0 %v3485_v59  ;;  %2521 = vmatpush1.bf16.msra.mxu1 %v3488_v60  ;;  %v3524_v59 = vld [vmem:[%s4013_s11 + $0x228] ss:$16 sps:$4 sm:$0xff]   ;;  %v3529_v60 = vld [vmem:[%s4013_s11 + $0x244] ss:$16 sps:$4 sm:$0xff]  }
 0x115   : > { %2436 = vmatprep.subr.bf16.mxu0 %v3493_v61  ;;  %2522 = vmatprep.subr.bf16.mxu1 %v3496_v62  ;;  %v3532_v61 = vld [vmem:[%s4013_s11 + $0x24c] ss:$16 sps:$4 sm:$0xff]   ;;  %v3527_v62 = vld [vmem:[%s4013_s11 + $0x240] ss:$16 sps:$4 sm:$0xff]  }
 0x118   : > { %2437 = vmatpush1.bf16.msra.mxu0 %v3491_v63  ;;  %2523 = vmatpush1.bf16.msra.mxu1 %v3494_v0  ;;  %v3530_v63 = vld [vmem:[%s4013_s11 + $0x248] ss:$16 sps:$4 sm:$0xff]   ;;  %v3535_v0 = vld [vmem:[%s4013_s11 + $0x264] ss:$16 sps:$4 sm:$0xff]  }
 0x119   : > { %2438 = vmatprep.subr.bf16.mxu0 %v3499_v1  ;;  %2524 = vmatprep.subr.bf16.mxu1 %v3502_v2  ;;  %v3538_v1 = vld [vmem:[%s4013_s11 + $0x26c] ss:$16 sps:$4 sm:$0xff]   ;;  %v3533_v2 = vld [vmem:[%s4013_s11 + $0x260] ss:$16 sps:$4 sm:$0xff]  }
 0x11c   : > { %2439 = vmatpush1.bf16.msra.mxu0 %v3497_v3  ;;  %2525 = vmatpush1.bf16.msra.mxu1 %v3500_v4  ;;  %v3536_v3 = vld [vmem:[%s4013_s11 + $0x268] ss:$16 sps:$4 sm:$0xff]   ;;  %v3541_v4 = vld [vmem:[%s4013_s11 + $0x284] ss:$16 sps:$4 sm:$0xff]  }
 0x11d   : > { %2440 = vmatprep.subr.bf16.mxu0 %v3505_v5  ;;  %2526 = vmatprep.subr.bf16.mxu1 %v3508_v6  ;;  %v3544_v5 = vld [vmem:[%s4013_s11 + $0x28c] ss:$16 sps:$4 sm:$0xff]   ;;  %v3539_v6 = vld [vmem:[%s4013_s11 + $0x280] ss:$16 sps:$4 sm:$0xff]  }
 0x120   : > { %2441 = vmatpush1.bf16.msra.mxu0 %v3503_v7  ;;  %2527 = vmatpush1.bf16.msra.mxu1 %v3506_v8  ;;  %v3542_v7 = vld [vmem:[%s4013_s11 + $0x288] ss:$16 sps:$4 sm:$0xff]   ;;  %v3547_v8 = vld [vmem:[%s4013_s11 + $0x2a4] ss:$16 sps:$4 sm:$0xff]  }
 0x121   : > { %2442 = vmatprep.subr.bf16.mxu0 %v3511_v9  ;;  %2528 = vmatprep.subr.bf16.mxu1 %v3514_v10  ;;  %v3550_v9 = vld [vmem:[%s4013_s11 + $0x2ac] ss:$16 sps:$4 sm:$0xff]   ;;  %v3545_v10 = vld [vmem:[%s4013_s11 + $0x2a0] ss:$16 sps:$4 sm:$0xff]  }
 0x124   : > { %2443 = vmatpush1.bf16.msra.mxu0 %v3509_v11  ;;  %2529 = vmatpush1.bf16.msra.mxu1 %v3512_v12  ;;  %v3548_v11 = vld [vmem:[%s4013_s11 + $0x2a8] ss:$16 sps:$4 sm:$0xff]   ;;  %v3553_v12 = vld [vmem:[%s4013_s11 + $0x2c4] ss:$16 sps:$4 sm:$0xff]  }
 0x125   : > { %2455 = vmatprep.subr.bf16.mxu0 %v3517_v13  ;;  %2541 = vmatprep.subr.bf16.mxu1 %v3520_v14  ;;  %v3556_v13 = vld [vmem:[%s4013_s11 + $0x2cc] ss:$16 sps:$4 sm:$0xff]   ;;  %v3551_v14 = vld [vmem:[%s4013_s11 + $0x2c0] ss:$16 sps:$4 sm:$0xff]  }
 0x1ba   : > { %v1529_v26 = vpop.f32.mrb[0].mxu0  ;;  %v1615_v27 = vpop.f32.mrb[0].mxu1 }
 0x1bb   : > { %v3162_v28 = vadd.f32 %v1529_v26, %v795_v22  ;;  %v3166_v29 = vadd.f32 %v1615_v27, %v803_v23  ;;  %v1531_v30 = vpop.f32.mrb[1].mxu0  ;;  %v1617_v31 = vpop.f32.mrb[1].mxu1  ;;  %v3563_v26 = vld [vmem:[%s4013_s11 + $0x300] ss:$16 sps:$4 sm:$0xff]   ;;  %v3566_v27 = vld [vmem:[%s4013_s11 + $0x308] ss:$16 sps:$4 sm:$0xff]  }
 0x1bc   : > { %v3163_v32 = vadd.f32 %v1531_v30, %v799_v24  ;;  %v3167_v33 = vadd.f32 %v1617_v31, %v807_v25  ;;  %v1533_v34 = vpop.f32.mrb[2].mxu0  ;;  %v1619_v35 = vpop.f32.mrb[2].mxu1  ;;  %v3569_v30 = vld [vmem:[%s4013_s11 + $0x320] ss:$16 sps:$4 sm:$0xff]   ;;  %v3572_v31 = vld [vmem:[%s4013_s11 + $0x328] ss:$16 sps:$4 sm:$0xff]  }
 0x1bd   : > { %v3164_v36 = vadd.f32 %v1533_v34, %v795_v22  ;;  %v3168_v37 = vadd.f32 %v1619_v35, %v803_v23  ;;  %v1535_v38 = vpop.f32.mrb[3].mxu0  ;;  %v1621_v39 = vpop.f32.mrb[3].mxu1  ;;  %v1624_v42 = vmax.f32 %v3162_v28, 0.0  ;;  %v1626_v43 = vmax.f32 %v3166_v29, 0.0  ;;  %v3557_v22 = vld [vmem:[%s4013_s11 + $0x2e0] ss:$16 sps:$4 sm:$0xff]  }
 0x1be   : > { %v3165_v40 = vadd.f32 %v1535_v38, %v799_v24  ;;  %v3169_v41 = vadd.f32 %v1621_v39, %v807_v25  ;;  %v1625_v46 = vmax.f32 %v3163_v32, 0.0  ;;  %v1627_v47 = vmax.f32 %v3167_v33, 0.0  ;;  %v3560_v23 = vld [vmem:[%s4013_s11 + $0x2e8] ss:$16 sps:$4 sm:$0xff]   ;;  %v3565_v24 = vld [vmem:[%s4013_s11 + $0x304] ss:$16 sps:$4 sm:$0xff]  }
 0x1bf   : > { %v1628_v44 = vmax.f32 %v3164_v36, 0.0  ;;  %v1630_v45 = vmax.f32 %v3168_v37, 0.0  ;;  %v3568_v25 = vld [vmem:[%s4013_s11 + $0x30c] ss:$16 sps:$4 sm:$0xff]   ;;  %v3571_v28 = vld [vmem:[%s4013_s11 + $0x324] ss:$16 sps:$4 sm:$0xff]  }
 0x1c0   : > { %v1629_v48 = vmax.f32 %v3165_v40, 0.0  ;;  %v1631_v49 = vmax.f32 %v3169_v41, 0.0  ;;  %v3574_v29 = vld [vmem:[%s4013_s11 + $0x32c] ss:$16 sps:$4 sm:$0xff]   ;;  %v3577_v32 = vld [vmem:[%s4013_s11 + $0x344] ss:$16 sps:$4 sm:$0xff]  }
 0x1c1   : > { %v1640_v50 = vpack.c.bf16 %v1628_v44, %v1624_v42  ;;  %v4253_v51 = vpack.c.bf16 %v1630_v45, %v1626_v43  ;;  %v3580_v33 = vld [vmem:[%s4013_s11 + $0x34c] ss:$16 sps:$4 sm:$0xff]   ;;  %v3575_v34 = vld [vmem:[%s4013_s11 + $0x340] ss:$16 sps:$4 sm:$0xff]   ;;  %v3578_v35 = vld [vmem:[%s4013_s11 + $0x348] ss:$16 sps:$4 sm:$0xff]  }
 0x1c2   : > { %v1641_v52 = vpack.c.bf16 %v1629_v48, %v1625_v46  ;;  %v1643_v53 = vpack.c.bf16 %v1631_v49, %v1627_v47  ;;  %v3583_v36 = vld [vmem:[%s4013_s11 + $0x364] ss:$16 sps:$4 sm:$0xff]   ;;  %v3586_v37 = vld [vmem:[%s4013_s11 + $0x36c] ss:$16 sps:$4 sm:$0xff]   ;;  %v3581_v38 = vld [vmem:[%s4013_s11 + $0x360] ss:$16 sps:$4 sm:$0xff]  }
 0x1c3   : > { %v3584_v39 = vld [vmem:[%s4013_s11 + $0x368] ss:$16 sps:$4 sm:$0xff]   ;;  %v3589_v40 = vld [vmem:[%s4013_s11 + $0x384] ss:$16 sps:$4 sm:$0xff]   ;;  %v3592_v41 = vld [vmem:[%s4013_s11 + $0x38c] ss:$16 sps:$4 sm:$0xff]  }
 0x1c4   : > { %2444 = vmatprep.mubr.bf16.mxu0 %v1641_v52  ;;  %2530 = vmatprep.mubr.bf16.mxu1 %v1641_v52  ;;  %v3587_v42 = vld [vmem:[%s4013_s11 + $0x380] ss:$16 sps:$4 sm:$0xff]   ;;  %v3590_v43 = vld [vmem:[%s4013_s11 + $0x388] ss:$16 sps:$4 sm:$0xff]   ;;  %v3595_v44 = vld [vmem:[%s4013_s11 + $0x3a4] ss:$16 sps:$4 sm:$0xff]  }
 0x1c5   : > { %2445 = vmatmul.mubr.bf16.vlgmr.msra.gmra.mrb[4].mxu0 %v1640_v50  ;;  %2531 = vmatmul.mubr.bf16.vlgmr.msra.gmra.mrb[4].mxu1 %v1640_v50  ;;  %v3598_v45 = vld [vmem:[%s4013_s11 + $0x3ac] ss:$16 sps:$4 sm:$0xff]   ;;  %v3593_v46 = vld [vmem:[%s4013_s11 + $0x3a0] ss:$16 sps:$4 sm:$0xff]   ;;  %v3596_v47 = vld [vmem:[%s4013_s11 + $0x3a8] ss:$16 sps:$4 sm:$0xff]  }
 0x1c6   : > { %2456 = vmatpush1.bf16.msra.mxu0 %v3515_v54  ;;  %2542 = vmatpush1.bf16.msra.mxu1 %v3518_v55  ;;  %v3601_v48 = vld [vmem:[%s4013_s11 + $0x3c4] ss:$16 sps:$4 sm:$0xff]   ;;  %v3604_v49 = vld [vmem:[%s4013_s11 + $0x3cc] ss:$16 sps:$4 sm:$0xff]   ;;  %v3599_v50 = vld [vmem:[%s4013_s11 + $0x3c0] ss:$16 sps:$4 sm:$0xff]  }
 0x1c7   : > { %2487 = vmatprep.mubr.bf16.mxu0 %v1643_v53  ;;  %2573 = vmatprep.mubr.bf16.mxu1 %v1643_v53  ;;  %v3602_v52 = vld [vmem:[%s4013_s11 + $0x3c8] ss:$16 sps:$4 sm:$0xff]   ;;  %v3607_v53 = vld [vmem:[%s4013_s11 + $0x3e4] ss:$16 sps:$4 sm:$0xff]   ;;  %v3610_v54 = vld [vmem:[%s4013_s11 + $0x3ec] ss:$16 sps:$4 sm:$0xff]  }
 0x1c8   : > { %2457 = vmatprep.subr.bf16.mxu0 %v3523_v56  ;;  %2543 = vmatprep.subr.bf16.mxu1 %v3526_v57  ;;  %v3605_v55 = vld [vmem:[%s4013_s11 + $0x3e0] ss:$16 sps:$4 sm:$0xff]   ;;  %v3608_v56 = vld [vmem:[%s4013_s11 + $0x3e8] ss:$16 sps:$4 sm:$0xff]  }
 0x1c9   : > { %v1632_v57 = vld [vmem:[#allocation2] sm:$0xff] }
 0x1ca   : > { %2458 = vmatpush1.bf16.msra.mxu0 %v3521_v58  ;;  %2544 = vmatpush1.bf16.msra.mxu1 %v3524_v59  ;;  %v1634_v58 = vld [vmem:[#allocation2 + $0x10] sm:$0xff]  ;;  %v1633_v59 = vld [vmem:[#allocation2 + $0x8] sm:$0xff] }
 0x1cb   : > { %2459 = vmatprep.subr.bf16.mxu0 %v3529_v60  ;;  %2545 = vmatprep.subr.bf16.mxu1 %v3532_v61  ;;  %v1635_v60 = vld [vmem:[#allocation2 + $0x18] sm:$0xff] }
 0x1ce   : > { %2460 = vmatpush1.bf16.msra.mxu0 %v3527_v62  ;;  %2546 = vmatpush1.bf16.msra.mxu1 %v3530_v63  ;;  %v1636_v63 = vld [vmem:[#allocation2 + $0x20] sm:$0xff] }
 0x1cf   : > { %2461 = vmatprep.subr.bf16.mxu0 %v3535_v0  ;;  %2547 = vmatprep.subr.bf16.mxu1 %v3538_v1  ;;  %v1638_v0 = vld [vmem:[#allocation2 + $0x30] sm:$0xff] }
 0x1d2   : > { %2462 = vmatpush1.bf16.msra.mxu0 %v3533_v2  ;;  %2548 = vmatpush1.bf16.msra.mxu1 %v3536_v3 }
 0x1d3   : > { %2463 = vmatprep.subr.bf16.mxu0 %v3541_v4  ;;  %2549 = vmatprep.subr.bf16.mxu1 %v3544_v5  ;;  %v1637_v5 = vld [vmem:[#allocation2 + $0x28] sm:$0xff] }
 0x1d6   : > { %2464 = vmatpush1.bf16.msra.mxu0 %v3539_v6  ;;  %2550 = vmatpush1.bf16.msra.mxu1 %v3542_v7  ;;  %v1639_v6 = vld [vmem:[#allocation2 + $0x38] sm:$0xff] }
 0x1d7   : > { %2465 = vmatprep.subr.bf16.mxu0 %v3547_v8  ;;  %2551 = vmatprep.subr.bf16.mxu1 %v3550_v9 }
 0x1da   : > { %2466 = vmatpush1.bf16.msra.mxu0 %v3545_v10  ;;  %2552 = vmatpush1.bf16.msra.mxu1 %v3548_v11 }
 0x1db   : > { %2467 = vmatprep.subr.bf16.mxu0 %v3553_v12  ;;  %2553 = vmatprep.subr.bf16.mxu1 %v3556_v13 }
 0x1de   : > { %2468 = vmatpush1.bf16.msra.mxu0 %v3551_v14  ;;  %2554 = vmatpush1.bf16.msra.mxu1 %v3554_v15 }
 0x1df   : > { %2469 = vmatprep.subr.bf16.mxu0 %v3559_v16  ;;  %2555 = vmatprep.subr.bf16.mxu1 %v3562_v19 }
 0x1e2   : > { %2470 = vmatpush1.bf16.msra.mxu0 %v3557_v22  ;;  %2556 = vmatpush1.bf16.msra.mxu1 %v3560_v23 }
 0x1e3   : > { %2471 = vmatprep.subr.bf16.mxu0 %v3565_v24  ;;  %2557 = vmatprep.subr.bf16.mxu1 %v3568_v25  ;;  %v2612_v24 = vld [vmem:[%s4408_s4] sm:$0xf] (!%p3155_p12) }
 0x1e4   : > { %v2617_v25 = vrot.slane (!%p3155_p12), %v2612_v24, %v4236_v17 }
 0x1e6   : > { %2472 = vmatpush1.bf16.msra.mxu0 %v3563_v26  ;;  %2558 = vmatpush1.bf16.msra.mxu1 %v3566_v27  ;;  %v2621_v26 = vrot.slane (!%p3155_p12), %v2612_v24, %v4245_v20  ;;  %v2625_v27 = vrot.slane (!%p3155_p12), %v2612_v24, %v4238_v18 }
 0x1e7   : > { %2473 = vmatprep.subr.bf16.mxu0 %v3571_v28  ;;  %2559 = vmatprep.subr.bf16.mxu1 %v3574_v29  ;;  %v2629_v28 = vrot.slane (!%p3155_p12), %v2612_v24, %v4247_v21  ;;  %v2642_v29 = vld [vmem:[%s4404_s0] sm:$0xff] (!%p3155_p12) }
 0x1ea   : > { %2474 = vmatpush1.bf16.msra.mxu0 %v3569_v30  ;;  %2560 = vmatpush1.bf16.msra.mxu1 %v3572_v31  ;;  %v2643_v30 = vld [vmem:[%s4404_s0 + $0x8] sm:$0xff] (!%p3155_p12)  ;;  %v2644_v31 = vld [vmem:[%s4404_s0 + $0x10] sm:$0xff] (!%p3155_p12) }
 0x1eb   : > { %2475 = vmatprep.subr.bf16.mxu0 %v3577_v32  ;;  %2561 = vmatprep.subr.bf16.mxu1 %v3580_v33 }
 0x1ee   : > { %2476 = vmatpush1.bf16.msra.mxu0 %v3575_v34  ;;  %2562 = vmatpush1.bf16.msra.mxu1 %v3578_v35 }
 0x1ef   : > { %2477 = vmatprep.subr.bf16.mxu0 %v3583_v36  ;;  %2563 = vmatprep.subr.bf16.mxu1 %v3586_v37 }
 0x1f2   : > { %2478 = vmatpush1.bf16.msra.mxu0 %v3581_v38  ;;  %2564 = vmatpush1.bf16.msra.mxu1 %v3584_v39 }
 0x1f3   : > { %2479 = vmatprep.subr.bf16.mxu0 %v3589_v40  ;;  %2565 = vmatprep.subr.bf16.mxu1 %v3592_v41  ;;  %v2646_v40 = vld [vmem:[%s4404_s0 + $0x20] sm:$0xff] (!%p3155_p12)  ;;  %v2647_v41 = vld [vmem:[%s4404_s0 + $0x28] sm:$0xff] (!%p3155_p12) }
 0x1f6   : > { %2480 = vmatpush1.bf16.msra.mxu0 %v3587_v42  ;;  %2566 = vmatpush1.bf16.msra.mxu1 %v3590_v43  ;;  %v2645_v42 = vld [vmem:[%s4404_s0 + $0x18] sm:$0xff] (!%p3155_p12) }
 0x1f7   : > { %2481 = vmatprep.subr.bf16.mxu0 %v3595_v44  ;;  %2567 = vmatprep.subr.bf16.mxu1 %v3598_v45 }
 0x1fa   : > { %2482 = vmatpush1.bf16.msra.mxu0 %v3593_v46  ;;  %2568 = vmatpush1.bf16.msra.mxu1 %v3596_v47  ;;  %v2648_v46 = vld [vmem:[%s4404_s0 + $0x30] sm:$0xff] (!%p3155_p12) }
 0x1fb   : > { %2483 = vmatprep.subr.bf16.mxu0 %v3601_v48  ;;  %2569 = vmatprep.subr.bf16.mxu1 %v3604_v49 }
 0x1fe   : > { %2484 = vmatpush1.bf16.msra.mxu0 %v3599_v50  ;;  %2570 = vmatpush1.bf16.msra.mxu1 %v3602_v52  ;;  %v2649_v52 = vld [vmem:[%s4404_s0 + $0x38] sm:$0xff] (!%p3155_p12) }
 0x1ff   : > { %2485 = vmatprep.subr.bf16.mxu0 %v3607_v53  ;;  %2571 = vmatprep.subr.bf16.mxu1 %v3610_v54 }
 0x202   : > { %2486 = vmatpush1.bf16.msra.mxu0 %v3605_v55  ;;  %2572 = vmatpush1.bf16.msra.mxu1 %v3608_v56 }
 0x205   : > { %2488 = vmatmul.mubr.bf16.vlgmr.msra.gmra.mrb[4].mxu0 %v4253_v51  ;;  %2574 = vmatmul.mubr.bf16.vlgmr.msra.gmra.mrb[4].mxu1 %v4253_v51 }
 0x2d8   : > { %v2489_v61 = vpop.f32.mrb[4].mxu0  ;;  %v2575_v62 = vpop.f32.mrb[4].mxu1  ;;  %2603 = sbr.rel (%p3155_p12) target bundleno = 1074 (0x432), region = 79 }
 0x2d9   : > { %v2584_v1 = vadd.f32 %v2489_v61, %v1632_v57  ;;  %v2586_v2 = vadd.f32 %v2575_v62, %v1634_v58  ;;  %v2491_v3 = vpop.f32.mrb[5].mxu0  ;;  %v2577_v4 = vpop.f32.mrb[5].mxu1 }
 0x2da   : > { %v2585_v7 = vadd.f32 %v2491_v3, %v1633_v59  ;;  %v2587_v8 = vadd.f32 %v2577_v4, %v1635_v60  ;;  %v2493_v9 = vpop.f32.mrb[6].mxu0  ;;  %v2579_v10 = vpop.f32.mrb[6].mxu1 }
 0x2db   : > { %2592 = vst [vmem:[#allocation2] sm:$0xff] %v2584_v1  ;;  %2594 = vst [vmem:[#allocation2 + $0x10] sm:$0xff] %v2586_v2  ;;  %v2588_v51 = vadd.f32 %v2493_v9, %v1636_v63  ;;  %v2590_v11 = vadd.f32 %v2579_v10, %v1638_v0  ;;  %v2495_v12 = vpop.f32.mrb[7].mxu0  ;;  %v2581_v13 = vpop.f32.mrb[7].mxu1 }
 0x2dc   : > { %2593 = vst [vmem:[#allocation2 + $0x8] sm:$0xff] %v2585_v7  ;;  %2595 = vst [vmem:[#allocation2 + $0x18] sm:$0xff] %v2587_v8  ;;  %v2589_v14 = vadd.f32 %v2495_v12, %v1637_v5  ;;  %v2591_v15 = vadd.f32 %v2581_v13, %v1639_v6 }
 0x2dd   : > { %2596 = vst [vmem:[#allocation2 + $0x20] sm:$0xff] %v2588_v51  ;;  %2598 = vst [vmem:[#allocation2 + $0x30] sm:$0xff] %v2590_v11 }
 0x2de   : > { %2597 = vst [vmem:[#allocation2 + $0x28] sm:$0xff] %v2589_v14  ;;  %2599 = vst [vmem:[#allocation2 + $0x38] sm:$0xff] %v2591_v15 }
 0x2e2   : > { %v2604_v16 = vld [vmem:[#allocation2] sm:$0xff]  ;;  %v2606_v22 = vld [vmem:[#allocation2 + $0x10] sm:$0xff] }
 0x2e3   : > { %v2605_v19 = vld [vmem:[#allocation2 + $0x8] sm:$0xff]  ;;  %v2607_v23 = vld [vmem:[#allocation2 + $0x18] sm:$0xff]  ;;  %v2634_v35 = vadd.f32 %v2617_v25, %v2604_v16  ;;  %v2636_v37 = vadd.f32 %v2625_v27, %v2606_v22 }
 0x2e4   : > { %v2608_v32 = vld [vmem:[#allocation2 + $0x20] sm:$0xff]  ;;  %v2610_v34 = vld [vmem:[#allocation2 + $0x30] sm:$0xff]  ;;  %v2635_v36 = vadd.f32 %v2621_v26, %v2605_v19  ;;  %v2637_v38 = vadd.f32 %v2629_v28, %v2607_v23 }
 0x2e5   : > { %v2609_v33 = vld [vmem:[#allocation2 + $0x28] sm:$0xff]  ;;  %v2611_v39 = vld [vmem:[#allocation2 + $0x38] sm:$0xff]  ;;  %v2638_v43 = vadd.f32 %v2617_v25, %v2608_v32  ;;  %v2640_v45 = vadd.f32 %v2625_v27, %v2610_v34  ;;  %v2650_v47 = vadd.f32 %v2642_v29, %v2634_v35  ;;  %v2652_v49 = vadd.f32 %v2644_v31, %v2636_v37  ;;  %v2711_v35 = vld [vmem:[%s4409_s5] sm:$0xf] }
 0x2e6   : > { %v2639_v44 = vadd.f32 %v2621_v26, %v2609_v33  ;;  %v2651_v48 = vadd.f32 %v2643_v30, %v2635_v36  ;;  %v2641_v50 = vadd.f32 %v2629_v28, %v2611_v39  ;;  %v2653_v56 = vadd.f32 %v2645_v42, %v2637_v38  ;;  %v2741_v36 = vld [vmem:[%s4410_s6] sm:$0xf] }
 0x2e7   : > { %v2654_v53 = vadd.f32 %v2646_v40, %v2638_v43  ;;  %v2656_v55 = vadd.f32 %v2648_v46, %v2640_v45  ;;  %v2716_v37 = vrot.slane %v2711_v35, %v4236_v17  ;;  %v2720_v38 = vrot.slane %v2711_v35, %v4245_v20 }
 0x2e8   : > { %v2655_v54 = vadd.f32 %v2647_v41, %v2639_v44  ;;  %v2658_v57 = vadd.f32 %v2651_v48, %v2650_v47  ;;  %v2657_v60 = vadd.f32 %v2649_v52, %v2641_v50  ;;  %v2724_v39 = vrot.slane %v2711_v35, %v4238_v18 }
 0x2e9   : > { %v2728_v40 = vrot.slane %v2711_v35, %v4247_v21  ;;  %v2746_v42 = vrot.slane %v2741_v36, %v4236_v17  ;;  %v2750_v43 = vrot.slane %v2741_v36, %v4245_v20  ;;  %v2754_v44 = vrot.slane %v2741_v36, %v4238_v18 }
 0x2ea   : > { %v2663_v58 = vadd.f32 %v2655_v54, %v2654_v53  ;;  %v2659_v59 = vadd.f32 %v2658_v57, %v2652_v49  ;;  %v2758_v45 = vrot.slane %v2741_v36, %v4247_v21 }
 0x2ec   : > { %v2664_v61 = vadd.f32 %v2663_v58, %v2656_v55  ;;  %v2660_v62 = vadd.f32 %v2659_v59, %v2653_v56 }
 0x2ee   : > { %2661 = vadd.xlane.f32.xlu0 %v2660_v62  ;;  %v2665_v63 = vadd.f32 %v2664_v61, %v2657_v60 }
 0x2f2   : > { %2666 = vadd.xlane.f32.xlu0 %v2665_v63 }
 0x37b   : > { %v2662_v0 = vpop.xlane.xlu0 %2661 }
 0x37c   : > { %v2669_v1 = vmul.f32 0.001953125, %v2662_v0 }
 0x37e   : > { %v2671_v2 = vsub.f32 %v2650_v47, %v2669_v1  ;;  %v2672_v3 = vsub.f32 %v2651_v48, %v2669_v1  ;;  %v2673_v4 = vsub.f32 %v2652_v49, %v2669_v1  ;;  %v2674_v6 = vsub.f32 %v2653_v56, %v2669_v1 }
 0x37f   : > { %v2667_v5 = vpop.xlane.xlu0 %2666 }
 0x380   : > { %v2670_v7 = vmul.f32 0.001953125, %v2667_v5  ;;  %v2679_v8 = vmul.f32 %v2671_v2, %v2671_v2  ;;  %v2680_v9 = vmul.f32 %v2672_v3, %v2672_v3  ;;  %v2681_v10 = vmul.f32 %v2673_v4, %v2673_v4 }
 0x381   : > { %v2682_v14 = vmul.f32 %v2674_v6, %v2674_v6 }
 0x382   : > { %v2675_v51 = vsub.f32 %v2654_v53, %v2670_v7  ;;  %v2676_v11 = vsub.f32 %v2655_v54, %v2670_v7  ;;  %v2687_v12 = vadd.f32 %v2680_v9, %v2679_v8  ;;  %v2677_v13 = vsub.f32 %v2656_v55, %v2670_v7 }
 0x383   : > { %v2678_v16 = vsub.f32 %v2657_v60, %v2670_v7 }
 0x384   : > { %v2688_v15 = vadd.f32 %v2687_v12, %v2681_v10  ;;  %v2683_v19 = vmul.f32 %v2675_v51, %v2675_v51  ;;  %v2684_v22 = vmul.f32 %v2676_v11, %v2676_v11  ;;  %v2685_v24 = vmul.f32 %v2677_v13, %v2677_v13 }
 0x385   : > { %v2686_v26 = vmul.f32 %v2678_v16, %v2678_v16 }
 0x386   : > { %v2689_v23 = vadd.f32 %v2688_v15, %v2682_v14  ;;  %v2692_v25 = vadd.f32 %v2684_v22, %v2683_v19 }
 0x388   : > { %2690 = vadd.xlane.f32.xlu1 %v2689_v23  ;;  %v2693_v27 = vadd.f32 %v2692_v25, %v2685_v24 }
 0x38a   : > { %v2694_v28 = vadd.f32 %v2693_v27, %v2686_v26 }
 0x38c   : > { %2695 = vadd.xlane.f32.xlu1 %v2694_v28 }
 0x415   : > { %v2691_v29 = vpop.xlane.xlu1 %2690 }
 0x416   : > { %v2697_v30 = vmul.f32 0.001953125, %v2691_v29 }
 0x418   : > { %v2699_v31 = vadd.f32 1e-05, %v2697_v30 }
 0x419   : > { %v2696_v32 = vpop.xlane.xlu1 %2695 }
 0x41a   : > { %3611 = vrsqrt.f32 %v2699_v31  ;;  %v2698_v33 = vmul.f32 0.001953125, %v2696_v32 }
 0x41c   : > { %v2700_v34 = vadd.f32 1e-05, %v2698_v33 }
 0x41e   : > { %3613 = vrsqrt.f32 %v2700_v34 }
 0x424   : > { %v3612_v41 = vpop.eup %3611 }
 0x425   : > { %v2703_v46 = vmul.f32 %v3612_v41, %v2671_v2  ;;  %v2704_v47 = vmul.f32 %v3612_v41, %v2672_v3  ;;  %v2705_v48 = vmul.f32 %v3612_v41, %v2673_v4  ;;  %v2706_v49 = vmul.f32 %v3612_v41, %v2674_v6 }
 0x427   : > { %v2733_v50 = vmul.f32 %v2716_v37, %v2703_v46  ;;  %v2734_v52 = vmul.f32 %v2720_v38, %v2704_v47  ;;  %v2735_v53 = vmul.f32 %v2724_v39, %v2705_v48  ;;  %v2736_v54 = vmul.f32 %v2728_v40, %v2706_v49 }
 0x428   : > { %v3614_v55 = vpop.eup %3613 }
 0x429   : > { %v2763_v56 = vadd.f32 %v2746_v42, %v2733_v50  ;;  %v2764_v57 = vadd.f32 %v2750_v43, %v2734_v52  ;;  %v2765_v58 = vadd.f32 %v2754_v44, %v2735_v53  ;;  %v2766_v59 = vadd.f32 %v2758_v45, %v2736_v54 }
 0x42a   : > { %v2707_v17 = vmul.f32 %v3614_v55, %v2675_v51  ;;  %v2708_v60 = vmul.f32 %v3614_v55, %v2676_v11  ;;  %v2709_v20 = vmul.f32 %v3614_v55, %v2677_v13  ;;  %v2710_v61 = vmul.f32 %v3614_v55, %v2678_v16 }
 0x42b   : > { %2771 = vst [vmem:[%s4411_s7] sm:$0xff] %v2763_v56  ;;  %2772 = vst [vmem:[%s4411_s7 + $0x8] sm:$0xff] %v2764_v57 }
 0x42c   : > { %2773 = vst [vmem:[%s4411_s7 + $0x10] sm:$0xff] %v2765_v58  ;;  %2774 = vst [vmem:[%s4411_s7 + $0x18] sm:$0xff] %v2766_v59  ;;  %v2737_v18 = vmul.f32 %v2716_v37, %v2707_v17  ;;  %v2738_v21 = vmul.f32 %v2720_v38, %v2708_v60  ;;  %v2739_v62 = vmul.f32 %v2724_v39, %v2709_v20 }
 0x42d   : > { %v2740_v63 = vmul.f32 %v2728_v40, %v2710_v61 }
 0x42e   : > { %v2767_v0 = vadd.f32 %v2746_v42, %v2737_v18  ;;  %v2768_v1 = vadd.f32 %v2750_v43, %v2738_v21  ;;  %v2769_v2 = vadd.f32 %v2754_v44, %v2739_v62 }
 0x42f   : > { %v2770_v3 = vadd.f32 %v2758_v45, %v2740_v63 }
 0x430   : > { %2775 = vst [vmem:[%s4411_s7 + $0x20] sm:$0xff] %v2767_v0  ;;  %2776 = vst [vmem:[%s4411_s7 + $0x28] sm:$0xff] %v2768_v1 }
 0x431   : > { %2777 = vst [vmem:[%s4411_s7 + $0x30] sm:$0xff] %v2769_v2  ;;  %2778 = vst [vmem:[%s4411_s7 + $0x38] sm:$0xff] %v2770_v3 }
 0x432 PF: > { %s17_s28 = sadd.s32 1, %s3653_s28   ;;  %s4412_s24 = smov %s3641_s25 }
 0x433   : > { %p14_p13 = scmp.ge.s32.totalorder %s17_s28, 6   ;;  %s4413_s25 = smov %s3731_s9 }
 0x434   : > { %s4414_s26 = smov %s3649_s27  ;;  %s4415_s27 = smov %s4417_s29 }
 0x435   :  { %16 = sbr.rel (!%p14_p13) target bundleno = 3 (0x3), region = 123 }

// kernel: frozen_v2_encoder_forward.12
= control target key start
LH: loop header
LB: loop body
LE: loop exit
PB: predicated region body
PF: predicated region fallthrough
CT: control target
= control target key end

     0   :  { %s5706_s0 = inlined_call_operand.vmem [shape: f32[2,8,512], index: 0, kind: input, shape index: {}]   ;;  %s5707_s1 = inlined_call_operand.vmem [shape: f32[2,1,8], index: 1, kind: input, shape index: {}]   ;;  %s5708_s2 = inlined_call_operand.vmem [shape: bf16[512,1536], index: 2, kind: input, shape index: {}, may-alias: {2,3,4}]   ;;  %s5709_s3 = inlined_call_operand.vmem [shape: bf16[512,1536], index: 3, kind: input, shape index: {}, may-alias: {2,3,4}]   ;;  %s5710_s4 = inlined_call_operand.vmem [shape: bf16[512,1536], index: 4, kind: input, shape index: {}, may-alias: {2,3,4}]   ;;  %s5711_s5 = inlined_call_operand.vmem [shape: f32[1,1536], index: 5, kind: input, shape index: {}, may-alias: {5,6,7}]   ;;  %s5712_s6 = inlined_call_operand.vmem [shape: f32[1,1536], index: 6, kind: input, shape index: {}, may-alias: {5,6,7}]   ;;  %s5713_s7 = inlined_call_operand.vmem [shape: f32[1,1536], index: 7, kind: input, shape index: {}, may-alias: {5,6,7}]   ;;  %s5714_s8 = inlined_call_operand.vmem [shape: bf16[512,512], index: 8, kind: input, shape index: {}]   ;;  %s5715_s9 = inlined_call_operand.vmem [shape: f32[1,512], index: 9, kind: input, shape index: {}]   ;;  %s5716_s10 = inlined_call_operand.vmem [shape: f32[1,512], index: 10, kind: input, shape index: {}]   ;;  %s5717_s11 = inlined_call_operand.vmem [shape: f32[1,512], index: 11, kind: input, shape index: {}]   ;;  %s5718_s12 = inlined_call_operand.vmem [shape: f32[2,8,512], index: 12, kind: output, shape index: {}]  }
   0x1   :  { %5725 = sst [smem:[#allocation16_spill]] %s5706_s0 }
   0x2   :  { %5726 = sst [smem:[#allocation17_spill]] %s5708_s2 }
   0x3   :  { %5727 = sst [smem:[#allocation18_spill]] %s5709_s3 }
   0x4   :  { %5728 = sst [smem:[#allocation19_spill]] %s5710_s4 }
   0x5   :  { %5729 = sst [smem:[#allocation20_spill]] %s5712_s6 }
   0x6   :  { %5730 = sst [smem:[#allocation21_spill]] %s5713_s7 }
   0x7   :  { %5731 = sst [smem:[#allocation22_spill]] %s5714_s8 }
   0x8   :  { %5732 = sst [smem:[#allocation23_spill]] %s5715_s9 }
   0x9   :  { %5733 = sst [smem:[#allocation24_spill]] %s5716_s10 }
   0xa   :  { %5734 = sst [smem:[#allocation25_spill]] %s5717_s11 }
   0xb   :  { %5735 = sst [smem:[#allocation26_spill]] %s5718_s12 }
   0xc   :  { %s4760_s21 = smov 0   ;;  %s4762_s22 = smov 0  }
   0xd   :  { %s4764_s23 = smov 0   ;;  %s4766_s24 = smov 0  }
   0xe   :  { %s4768_s25 = smov 0   ;;  %s4770_s26 = smov 0  }
   0xf   :  { %s4772_s27 = smov 0   ;;  %s4774_s28 = smov 0  }
  0x10   :  { %s4776_s29 = smov 0   ;;  %s4778_s30 = smov 0  }
  0x11   :  { %s4780_s13 = smov 0  }
  0x12 LB: > { %5736 = sst [smem:[#allocation6_spill]] %s4650_s22  ;;  %s31_s14 = sadd.s32 1, %s4678_s29  ;;  %s4686_s13 = sphi %s4780_s13, %s22_s13   ;;  %s4682_s30 = sphi %s4778_s30, %s5773_s30   ;;  %s4678_s29 = sphi %s4776_s29, %s5772_s29   ;;  %s4674_s28 = sphi %s4774_s28, %s5771_s28   ;;  %s4670_s27 = sphi %s4772_s27, %s5770_s27   ;;  %s4666_s26 = sphi %s4770_s26, %s5769_s26   ;;  %s4662_s25 = sphi %s4768_s25, %s5768_s25   ;;  %s4658_s24 = sphi %s4766_s24, %s5767_s24   ;;  %s4654_s23 = sphi %s4764_s23, %s5766_s23   ;;  %s4650_s22 = sphi %s4762_s22, %s5765_s22   ;;  %s4646_s21 = sphi %s4760_s21, %s5764_s21  }
  0x13   : > { %5737 = sst [smem:[#allocation7_spill]] %s4658_s24  ;;  %s34_s15 = sadd.s32 1, %s4682_s30 }
  0x14   : > { %5738 = sst [smem:[#allocation8_spill]] %s4666_s26  ;;  %p32_p0 = scmp.ge.s32.totalorder %s31_s14, 4 }
  0x15   : > { %5739 = sst [smem:[#allocation9_spill]] %s4678_s29  ;;  %s93_s16 = sadd.s32 1, %s4666_s26 }
  0x16   : > { %5740 = sst [smem:[#allocation10_spill]] %s4682_s30  ;;  %p100_p1 = scmp.ne.s32.totalorder %s4666_s26, %s4662_s25 }
  0x17   : > { %p101_p2 = scmp.eq.s32.totalorder %s4686_s13, 0  ;;  %s5775_s14 = smov (%p32_p0, %s31_s14), 0 }
  0x18   : > { %5741 = sst [smem:[#allocation11_spill]] %s5775_s14  ;;  %s5777_s15 = smov (!%p32_p0, %s34_s15), %s4682_s30 }
  0x19   : > { %s90_s17 = ssub.s32 %s4678_s29, %s5775_s14  ;;  %p4828_p3 = por %p101_p2, %p100_p1 }
  0x1a   : > { %p36_p4 = scmp.ge.s32.totalorder %s5777_s15, 2  ;;  %p91_p5 = scmp.eq.s32.totalorder %s90_s17, 0 }
  0x1b   : > { %s116_s19 = sadd.s32 4, %s4678_s29  ;;  %s117_s20 = sadd.s32 4, %s5775_s14 }
  0x1c   : > { %s5779_s15 = smov (%p36_p4, %s5777_s15), 0  ;;  %s118_s30 = ssub.s32 %s116_s19, %s117_s20 }
  0x1d   : > { %5743 = sst [smem:[#allocation12_spill]] %s5779_s15  ;;  %s121_s10 = sadd.s32 1, %s4658_s24 }
  0x1e   : > { %s4837_s11 = scalar_select %p91_p5, %s4666_s26, %s93_s16  }
  0x1f   : > { %p119_p6 = scmp.eq.s32.totalorder %s118_s30, 0  ;;  %p128_p7 = scmp.ne.s32.totalorder %s4658_s24, %s4654_s23 }
  0x20   : > { %5744 = sst [smem:[#allocation13_spill]] %s4837_s11  ;;  %s144_s9 = sadd.s32 8, %s4678_s29 }
  0x21   : > { %s145_s8 = sadd.s32 8, %s5775_s14  ;;  %p4849_p8 = por %p128_p7, %p101_p2 }
  0x22   : > { %s4845_s12 = scalar_select %p119_p6, %s4658_s24, %s121_s10  }
  0x23   : > { %s146_s7 = ssub.s32 %s144_s9, %s145_s8  ;;  %s149_s6 = sadd.s32 1, %s4650_s22 }
  0x24   : > { %5745 = sst [smem:[#allocation14_spill]] %s4845_s12  ;;  %p147_p9 = scmp.eq.s32.totalorder %s146_s7, 0 }
  0x25   : > { %p156_p10 = scmp.ne.s32.totalorder %s4650_s22, %s4646_s21  ;;  %p3846_p12 = scmp.ge.s32.totalorder %s4686_s13, 8 }
  0x26   : > { %s4857_s15 = scalar_select %p147_p9, %s4650_s22, %s149_s6  }
  0x27   : > { %p4861_p11 = por %p156_p10, %p101_p2  ;;  %388 = sbr.rel (%p3846_p12) target bundleno = 205 (0xcd), region = 28 }
  0x28   : > { %5747 = sst [smem:[#allocation15_spill]] %s4857_s15 }
  0x2e   : > { %405 = sbr.rel (!%p4828_p3) target bundleno = 99 (0x63), region = 40  ;;  %s407_s10 = sand.u32 (%p4828_p3), 1, %s4666_s26  }
  0x2f   : > { %s3848_s8 = sshll.u32 (%p4828_p3), %s4678_s29, 2  ;;  %s3847_s7 = sshll.u32 (%p4828_p3), %s407_s10, 8 }
  0x30   : > { %s5749_s2 = sld [smem:[#allocation17_spill]] (%p4828_p3)  ;;  %s4877_s18 = scalar_lea.vmem (%p4828_p3), [#allocation3], %s3847_s7 }
  0x36   : > { %s4873_s6 = scalar_lea.vmem %s5749_s2, %s3848_s8 }
  0x37   : > { %v427_v0 = vld [vmem:[%s4873_s6] sm:$0xf]  ;;  %v429_v1 = vld [vmem:[%s4873_s6 + $0x30] sm:$0xf] }
  0x38   : > { %428 = vst [vmem:[%s4877_s18] sm:$0xf] %v427_v0  ;;  %430 = vst [vmem:[%s4877_s18 + $0x4] sm:$0xf] %v429_v1  ;;  %v431_v2 = vld [vmem:[%s4873_s6 + $0x60] sm:$0xf] }
  0x39   : > { %v433_v3 = vld [vmem:[%s4873_s6 + $0x90] sm:$0xf]  ;;  %v435_v4 = vld [vmem:[%s4873_s6 + $0xc0] sm:$0xf]  ;;  %432 = vst [vmem:[%s4877_s18 + $0x8] sm:$0xf] %v431_v2 }
  0x3a   : > { %434 = vst [vmem:[%s4877_s18 + $0xc] sm:$0xf] %v433_v3  ;;  %436 = vst [vmem:[%s4877_s18 + $0x10] sm:$0xf] %v435_v4  ;;  %v437_v5 = vld [vmem:[%s4873_s6 + $0xf0] sm:$0xf] }
  0x3b   : > { %v439_v6 = vld [vmem:[%s4873_s6 + $0x120] sm:$0xf]  ;;  %v441_v7 = vld [vmem:[%s4873_s6 + $0x150] sm:$0xf]  ;;  %438 = vst [vmem:[%s4877_s18 + $0x14] sm:$0xf] %v437_v5 }
  0x3c   : > { %440 = vst [vmem:[%s4877_s18 + $0x18] sm:$0xf] %v439_v6  ;;  %442 = vst [vmem:[%s4877_s18 + $0x1c] sm:$0xf] %v441_v7  ;;  %v443_v8 = vld [vmem:[%s4873_s6 + $0x180] sm:$0xf] }
  0x3d   : > { %v445_v9 = vld [vmem:[%s4873_s6 + $0x1b0] sm:$0xf]  ;;  %v447_v10 = vld [vmem:[%s4873_s6 + $0x1e0] sm:$0xf]  ;;  %444 = vst [vmem:[%s4877_s18 + $0x20] sm:$0xf] %v443_v8 }
  0x3e   : > { %446 = vst [vmem:[%s4877_s18 + $0x24] sm:$0xf] %v445_v9  ;;  %448 = vst [vmem:[%s4877_s18 + $0x28] sm:$0xf] %v447_v10  ;;  %v449_v11 = vld [vmem:[%s4873_s6 + $0x210] sm:$0xf] }
  0x3f   : > { %v451_v12 = vld [vmem:[%s4873_s6 + $0x240] sm:$0xf]  ;;  %v453_v13 = vld [vmem:[%s4873_s6 + $0x270] sm:$0xf]  ;;  %450 = vst [vmem:[%s4877_s18 + $0x2c] sm:$0xf] %v449_v11 }
  0x40   : > { %452 = vst [vmem:[%s4877_s18 + $0x30] sm:$0xf] %v451_v12  ;;  %454 = vst [vmem:[%s4877_s18 + $0x34] sm:$0xf] %v453_v13  ;;  %v455_v14 = vld [vmem:[%s4873_s6 + $0x2a0] sm:$0xf] }
  0x41   : > { %v457_v15 = vld [vmem:[%s4873_s6 + $0x2d0] sm:$0xf]  ;;  %v459_v16 = vld [vmem:[%s4873_s6 + $0x300] sm:$0xf]  ;;  %456 = vst [vmem:[%s4877_s18 + $0x38] sm:$0xf] %v455_v14 }
  0x42   : > { %458 = vst [vmem:[%s4877_s18 + $0x3c] sm:$0xf] %v457_v15  ;;  %460 = vst [vmem:[%s4877_s18 + $0x40] sm:$0xf] %v459_v16  ;;  %v461_v17 = vld [vmem:[%s4873_s6 + $0x330] sm:$0xf] }
  0x43   : > { %v463_v18 = vld [vmem:[%s4873_s6 + $0x360] sm:$0xf]  ;;  %v465_v19 = vld [vmem:[%s4873_s6 + $0x390] sm:$0xf]  ;;  %462 = vst [vmem:[%s4877_s18 + $0x44] sm:$0xf] %v461_v17 }
  0x44   : > { %464 = vst [vmem:[%s4877_s18 + $0x48] sm:$0xf] %v463_v18  ;;  %466 = vst [vmem:[%s4877_s18 + $0x4c] sm:$0xf] %v465_v19  ;;  %v467_v20 = vld [vmem:[%s4873_s6 + $0x3c0] sm:$0xf] }
  0x45   : > { %v469_v21 = vld [vmem:[%s4873_s6 + $0x3f0] sm:$0xf]  ;;  %v471_v22 = vld [vmem:[%s4873_s6 + $0x420] sm:$0xf]  ;;  %468 = vst [vmem:[%s4877_s18 + $0x50] sm:$0xf] %v467_v20 }
  0x46   : > { %470 = vst [vmem:[%s4877_s18 + $0x54] sm:$0xf] %v469_v21  ;;  %472 = vst [vmem:[%s4877_s18 + $0x58] sm:$0xf] %v471_v22  ;;  %v473_v23 = vld [vmem:[%s4873_s6 + $0x450] sm:$0xf] }
  0x47   : > { %v475_v24 = vld [vmem:[%s4873_s6 + $0x480] sm:$0xf]  ;;  %v477_v25 = vld [vmem:[%s4873_s6 + $0x4b0] sm:$0xf]  ;;  %474 = vst [vmem:[%s4877_s18 + $0x5c] sm:$0xf] %v473_v23 }
  0x48   : > { %476 = vst [vmem:[%s4877_s18 + $0x60] sm:$0xf] %v475_v24  ;;  %478 = vst [vmem:[%s4877_s18 + $0x64] sm:$0xf] %v477_v25  ;;  %v479_v26 = vld [vmem:[%s4873_s6 + $0x4e0] sm:$0xf] }
  0x49   : > { %v481_v27 = vld [vmem:[%s4873_s6 + $0x510] sm:$0xf]  ;;  %v483_v28 = vld [vmem:[%s4873_s6 + $0x540] sm:$0xf]  ;;  %480 = vst [vmem:[%s4877_s18 + $0x68] sm:$0xf] %v479_v26 }
  0x4a   : > { %482 = vst [vmem:[%s4877_s18 + $0x6c] sm:$0xf] %v481_v27  ;;  %484 = vst [vmem:[%s4877_s18 + $0x70] sm:$0xf] %v483_v28  ;;  %v485_v29 = vld [vmem:[%s4873_s6 + $0x570] sm:$0xf] }
  0x4b   : > { %v487_v30 = vld [vmem:[%s4873_s6 + $0x5a0] sm:$0xf]  ;;  %v489_v31 = vld [vmem:[%s4873_s6 + $0x5d0] sm:$0xf]  ;;  %486 = vst [vmem:[%s4877_s18 + $0x74] sm:$0xf] %v485_v29 }
  0x4c   : > { %488 = vst [vmem:[%s4877_s18 + $0x78] sm:$0xf] %v487_v30  ;;  %490 = vst [vmem:[%s4877_s18 + $0x7c] sm:$0xf] %v489_v31  ;;  %v491_v32 = vld [vmem:[%s4873_s6 + $0x600] sm:$0xf] }
  0x4d   : > { %v493_v33 = vld [vmem:[%s4873_s6 + $0x630] sm:$0xf]  ;;  %v495_v34 = vld [vmem:[%s4873_s6 + $0x660] sm:$0xf]  ;;  %492 = vst [vmem:[%s4877_s18 + $0x80] sm:$0xf] %v491_v32 }
  0x4e   : > { %494 = vst [vmem:[%s4877_s18 + $0x84] sm:$0xf] %v493_v33  ;;  %496 = vst [vmem:[%s4877_s18 + $0x88] sm:$0xf] %v495_v34  ;;  %v497_v35 = vld [vmem:[%s4873_s6 + $0x690] sm:$0xf] }
  0x4f   : > { %v499_v36 = vld [vmem:[%s4873_s6 + $0x6c0] sm:$0xf]  ;;  %v501_v37 = vld [vmem:[%s4873_s6 + $0x6f0] sm:$0xf]  ;;  %498 = vst [vmem:[%s4877_s18 + $0x8c] sm:$0xf] %v497_v35 }
  0x50   : > { %500 = vst [vmem:[%s4877_s18 + $0x90] sm:$0xf] %v499_v36  ;;  %502 = vst [vmem:[%s4877_s18 + $0x94] sm:$0xf] %v501_v37  ;;  %v503_v38 = vld [vmem:[%s4873_s6 + $0x720] sm:$0xf] }
  0x51   : > { %v505_v39 = vld [vmem:[%s4873_s6 + $0x750] sm:$0xf]  ;;  %v507_v40 = vld [vmem:[%s4873_s6 + $0x780] sm:$0xf]  ;;  %504 = vst [vmem:[%s4877_s18 + $0x98] sm:$0xf] %v503_v38 }
  0x52   : > { %506 = vst [vmem:[%s4877_s18 + $0x9c] sm:$0xf] %v505_v39  ;;  %508 = vst [vmem:[%s4877_s18 + $0xa0] sm:$0xf] %v507_v40  ;;  %v509_v41 = vld [vmem:[%s4873_s6 + $0x7b0] sm:$0xf] }
  0x53   : > { %v511_v42 = vld [vmem:[%s4873_s6 + $0x7e0] sm:$0xf]  ;;  %v513_v43 = vld [vmem:[%s4873_s6 + $0x810] sm:$0xf]  ;;  %510 = vst [vmem:[%s4877_s18 + $0xa4] sm:$0xf] %v509_v41 }
  0x54   : > { %512 = vst [vmem:[%s4877_s18 + $0xa8] sm:$0xf] %v511_v42  ;;  %514 = vst [vmem:[%s4877_s18 + $0xac] sm:$0xf] %v513_v43  ;;  %v515_v44 = vld [vmem:[%s4873_s6 + $0x840] sm:$0xf] }
  0x55   : > { %v517_v45 = vld [vmem:[%s4873_s6 + $0x870] sm:$0xf]  ;;  %v519_v46 = vld [vmem:[%s4873_s6 + $0x8a0] sm:$0xf]  ;;  %516 = vst [vmem:[%s4877_s18 + $0xb0] sm:$0xf] %v515_v44 }
  0x56   : > { %518 = vst [vmem:[%s4877_s18 + $0xb4] sm:$0xf] %v517_v45  ;;  %520 = vst [vmem:[%s4877_s18 + $0xb8] sm:$0xf] %v519_v46  ;;  %v521_v47 = vld [vmem:[%s4873_s6 + $0x8d0] sm:$0xf] }
  0x57   : > { %v523_v48 = vld [vmem:[%s4873_s6 + $0x900] sm:$0xf]  ;;  %v525_v49 = vld [vmem:[%s4873_s6 + $0x930] sm:$0xf]  ;;  %522 = vst [vmem:[%s4877_s18 + $0xbc] sm:$0xf] %v521_v47 }
  0x58   : > { %524 = vst [vmem:[%s4877_s18 + $0xc0] sm:$0xf] %v523_v48  ;;  %526 = vst [vmem:[%s4877_s18 + $0xc4] sm:$0xf] %v525_v49  ;;  %v527_v50 = vld [vmem:[%s4873_s6 + $0x960] sm:$0xf] }
  0x59   : > { %v529_v51 = vld [vmem:[%s4873_s6 + $0x990] sm:$0xf]  ;;  %v531_v52 = vld [vmem:[%s4873_s6 + $0x9c0] sm:$0xf]  ;;  %528 = vst [vmem:[%s4877_s18 + $0xc8] sm:$0xf] %v527_v50 }
  0x5a   : > { %530 = vst [vmem:[%s4877_s18 + $0xcc] sm:$0xf] %v529_v51  ;;  %532 = vst [vmem:[%s4877_s18 + $0xd0] sm:$0xf] %v531_v52  ;;  %v533_v53 = vld [vmem:[%s4873_s6 + $0x9f0] sm:$0xf] }
  0x5b   : > { %v535_v54 = vld [vmem:[%s4873_s6 + $0xa20] sm:$0xf]  ;;  %v537_v55 = vld [vmem:[%s4873_s6 + $0xa50] sm:$0xf]  ;;  %534 = vst [vmem:[%s4877_s18 + $0xd4] sm:$0xf] %v533_v53 }
  0x5c   : > { %536 = vst [vmem:[%s4877_s18 + $0xd8] sm:$0xf] %v535_v54  ;;  %538 = vst [vmem:[%s4877_s18 + $0xdc] sm:$0xf] %v537_v55  ;;  %v539_v56 = vld [vmem:[%s4873_s6 + $0xa80] sm:$0xf] }
  0x5d   : > { %v541_v57 = vld [vmem:[%s4873_s6 + $0xab0] sm:$0xf]  ;;  %v543_v58 = vld [vmem:[%s4873_s6 + $0xae0] sm:$0xf]  ;;  %540 = vst [vmem:[%s4877_s18 + $0xe0] sm:$0xf] %v539_v56 }
  0x5e   : > { %542 = vst [vmem:[%s4877_s18 + $0xe4] sm:$0xf] %v541_v57  ;;  %544 = vst [vmem:[%s4877_s18 + $0xe8] sm:$0xf] %v543_v58  ;;  %v545_v59 = vld [vmem:[%s4873_s6 + $0xb10] sm:$0xf] }
  0x5f   : > { %v547_v60 = vld [vmem:[%s4873_s6 + $0xb40] sm:$0xf]  ;;  %v549_v61 = vld [vmem:[%s4873_s6 + $0xb70] sm:$0xf]  ;;  %546 = vst [vmem:[%s4877_s18 + $0xec] sm:$0xf] %v545_v59 }
  0x60   : > { %548 = vst [vmem:[%s4877_s18 + $0xf0] sm:$0xf] %v547_v60  ;;  %550 = vst [vmem:[%s4877_s18 + $0xf4] sm:$0xf] %v549_v61  ;;  %v551_v62 = vld [vmem:[%s4873_s6 + $0xba0] sm:$0xf] }
  0x61   : > { %v553_v63 = vld [vmem:[%s4873_s6 + $0xbd0] sm:$0xf]  ;;  %552 = vst [vmem:[%s4877_s18 + $0xf8] sm:$0xf] %v551_v62 }
  0x62   : > { %554 = vst [vmem:[%s4877_s18 + $0xfc] sm:$0xf] %v553_v63 }
  0x63 PF: > { %705 = sbr.rel (!%p4849_p8) target bundleno = 152 (0x98), region = 81  ;;  %s707_s19 = sand.u32 (%p4849_p8), 1, %s4658_s24  }
  0x64   : > { %s3850_s20 = sshll.u32 (%p4849_p8), %s4678_s29, 2  ;;  %s3849_s10 = sshll.u32 (%p4849_p8), %s707_s19, 8 }
  0x65   : > { %s5750_s3 = sld [smem:[#allocation18_spill]] (%p4849_p8)  ;;  %s5016_s17 = scalar_lea.vmem (%p4849_p8), [#allocation4], %s3849_s10 }
  0x6b   : > { %s5012_s9 = scalar_lea.vmem %s5750_s3, %s3850_s20 }
  0x6c   : > { %v3851_v0 = vld [vmem:[%s5012_s9 + $0x10] sm:$0xf]  ;;  %v3852_v1 = vld [vmem:[%s5012_s9 + $0x40] sm:$0xf] }
  0x6d   : > { %729 = vst [vmem:[%s5016_s17] sm:$0xf] %v3851_v0  ;;  %731 = vst [vmem:[%s5016_s17 + $0x4] sm:$0xf] %v3852_v1  ;;  %v3853_v2 = vld [vmem:[%s5012_s9 + $0x70] sm:$0xf] }
  0x6e   : > { %v3854_v3 = vld [vmem:[%s5012_s9 + $0xa0] sm:$0xf]  ;;  %v3855_v4 = vld [vmem:[%s5012_s9 + $0xd0] sm:$0xf]  ;;  %733 = vst [vmem:[%s5016_s17 + $0x8] sm:$0xf] %v3853_v2 }
  0x6f   : > { %735 = vst [vmem:[%s5016_s17 + $0xc] sm:$0xf] %v3854_v3  ;;  %737 = vst [vmem:[%s5016_s17 + $0x10] sm:$0xf] %v3855_v4  ;;  %v3856_v5 = vld [vmem:[%s5012_s9 + $0x100] sm:$0xf] }
  0x70   : > { %v3857_v6 = vld [vmem:[%s5012_s9 + $0x130] sm:$0xf]  ;;  %v3858_v7 = vld [vmem:[%s5012_s9 + $0x160] sm:$0xf]  ;;  %739 = vst [vmem:[%s5016_s17 + $0x14] sm:$0xf] %v3856_v5 }
  0x71   : > { %741 = vst [vmem:[%s5016_s17 + $0x18] sm:$0xf] %v3857_v6  ;;  %743 = vst [vmem:[%s5016_s17 + $0x1c] sm:$0xf] %v3858_v7  ;;  %v3859_v8 = vld [vmem:[%s5012_s9 + $0x190] sm:$0xf] }
  0x72   : > { %v3860_v9 = vld [vmem:[%s5012_s9 + $0x1c0] sm:$0xf]  ;;  %v3861_v10 = vld [vmem:[%s5012_s9 + $0x1f0] sm:$0xf]  ;;  %745 = vst [vmem:[%s5016_s17 + $0x20] sm:$0xf] %v3859_v8 }
  0x73   : > { %747 = vst [vmem:[%s5016_s17 + $0x24] sm:$0xf] %v3860_v9  ;;  %749 = vst [vmem:[%s5016_s17 + $0x28] sm:$0xf] %v3861_v10  ;;  %v3862_v11 = vld [vmem:[%s5012_s9 + $0x220] sm:$0xf] }
  0x74   : > { %v3863_v12 = vld [vmem:[%s5012_s9 + $0x250] sm:$0xf]  ;;  %v3864_v13 = vld [vmem:[%s5012_s9 + $0x280] sm:$0xf]  ;;  %751 = vst [vmem:[%s5016_s17 + $0x2c] sm:$0xf] %v3862_v11 }
  0x75   : > { %753 = vst [vmem:[%s5016_s17 + $0x30] sm:$0xf] %v3863_v12  ;;  %755 = vst [vmem:[%s5016_s17 + $0x34] sm:$0xf] %v3864_v13  ;;  %v3865_v14 = vld [vmem:[%s5012_s9 + $0x2b0] sm:$0xf] }
  0x76   : > { %v3866_v15 = vld [vmem:[%s5012_s9 + $0x2e0] sm:$0xf]  ;;  %v3867_v16 = vld [vmem:[%s5012_s9 + $0x310] sm:$0xf]  ;;  %757 = vst [vmem:[%s5016_s17 + $0x38] sm:$0xf] %v3865_v14 }
  0x77   : > { %759 = vst [vmem:[%s5016_s17 + $0x3c] sm:$0xf] %v3866_v15  ;;  %761 = vst [vmem:[%s5016_s17 + $0x40] sm:$0xf] %v3867_v16  ;;  %v3868_v17 = vld [vmem:[%s5012_s9 + $0x340] sm:$0xf] }
  0x78   : > { %v3869_v18 = vld [vmem:[%s5012_s9 + $0x370] sm:$0xf]  ;;  %v3870_v19 = vld [vmem:[%s5012_s9 + $0x3a0] sm:$0xf]  ;;  %763 = vst [vmem:[%s5016_s17 + $0x44] sm:$0xf] %v3868_v17 }
  0x79   : > { %765 = vst [vmem:[%s5016_s17 + $0x48] sm:$0xf] %v3869_v18  ;;  %767 = vst [vmem:[%s5016_s17 + $0x4c] sm:$0xf] %v3870_v19  ;;  %v3871_v20 = vld [vmem:[%s5012_s9 + $0x3d0] sm:$0xf] }
  0x7a   : > { %v3872_v21 = vld [vmem:[%s5012_s9 + $0x400] sm:$0xf]  ;;  %v3873_v22 = vld [vmem:[%s5012_s9 + $0x430] sm:$0xf]  ;;  %769 = vst [vmem:[%s5016_s17 + $0x50] sm:$0xf] %v3871_v20 }
  0x7b   : > { %771 = vst [vmem:[%s5016_s17 + $0x54] sm:$0xf] %v3872_v21  ;;  %773 = vst [vmem:[%s5016_s17 + $0x58] sm:$0xf] %v3873_v22  ;;  %v3874_v23 = vld [vmem:[%s5012_s9 + $0x460] sm:$0xf] }
  0x7c   : > { %v3875_v24 = vld [vmem:[%s5012_s9 + $0x490] sm:$0xf]  ;;  %v3876_v25 = vld [vmem:[%s5012_s9 + $0x4c0] sm:$0xf]  ;;  %775 = vst [vmem:[%s5016_s17 + $0x5c] sm:$0xf] %v3874_v23 }
  0x7d   : > { %777 = vst [vmem:[%s5016_s17 + $0x60] sm:$0xf] %v3875_v24  ;;  %779 = vst [vmem:[%s5016_s17 + $0x64] sm:$0xf] %v3876_v25  ;;  %v3877_v26 = vld [vmem:[%s5012_s9 + $0x4f0] sm:$0xf] }
  0x7e   : > { %v3878_v27 = vld [vmem:[%s5012_s9 + $0x520] sm:$0xf]  ;;  %v3879_v28 = vld [vmem:[%s5012_s9 + $0x550] sm:$0xf]  ;;  %781 = vst [vmem:[%s5016_s17 + $0x68] sm:$0xf] %v3877_v26 }
  0x7f   : > { %783 = vst [vmem:[%s5016_s17 + $0x6c] sm:$0xf] %v3878_v27  ;;  %785 = vst [vmem:[%s5016_s17 + $0x70] sm:$0xf] %v3879_v28  ;;  %v3880_v29 = vld [vmem:[%s5012_s9 + $0x580] sm:$0xf] }
  0x80   : > { %v3881_v30 = vld [vmem:[%s5012_s9 + $0x5b0] sm:$0xf]  ;;  %v3882_v31 = vld [vmem:[%s5012_s9 + $0x5e0] sm:$0xf]  ;;  %787 = vst [vmem:[%s5016_s17 + $0x74] sm:$0xf] %v3880_v29 }
  0x81   : > { %789 = vst [vmem:[%s5016_s17 + $0x78] sm:$0xf] %v3881_v30  ;;  %791 = vst [vmem:[%s5016_s17 + $0x7c] sm:$0xf] %v3882_v31  ;;  %v3883_v32 = vld [vmem:[%s5012_s9 + $0x610] sm:$0xf] }
  0x82   : > { %v3884_v33 = vld [vmem:[%s5012_s9 + $0x640] sm:$0xf]  ;;  %v3885_v34 = vld [vmem:[%s5012_s9 + $0x670] sm:$0xf]  ;;  %793 = vst [vmem:[%s5016_s17 + $0x80] sm:$0xf] %v3883_v32 }
  0x83   : > { %795 = vst [vmem:[%s5016_s17 + $0x84] sm:$0xf] %v3884_v33  ;;  %797 = vst [vmem:[%s5016_s17 + $0x88] sm:$0xf] %v3885_v34  ;;  %v3886_v35 = vld [vmem:[%s5012_s9 + $0x6a0] sm:$0xf] }
  0x84   : > { %v3887_v36 = vld [vmem:[%s5012_s9 + $0x6d0] sm:$0xf]  ;;  %v3888_v37 = vld [vmem:[%s5012_s9 + $0x700] sm:$0xf]  ;;  %799 = vst [vmem:[%s5016_s17 + $0x8c] sm:$0xf] %v3886_v35 }
  0x85   : > { %801 = vst [vmem:[%s5016_s17 + $0x90] sm:$0xf] %v3887_v36  ;;  %803 = vst [vmem:[%s5016_s17 + $0x94] sm:$0xf] %v3888_v37  ;;  %v3889_v38 = vld [vmem:[%s5012_s9 + $0x730] sm:$0xf] }
  0x86   : > { %v3890_v39 = vld [vmem:[%s5012_s9 + $0x760] sm:$0xf]  ;;  %v3891_v40 = vld [vmem:[%s5012_s9 + $0x790] sm:$0xf]  ;;  %805 = vst [vmem:[%s5016_s17 + $0x98] sm:$0xf] %v3889_v38 }
  0x87   : > { %807 = vst [vmem:[%s5016_s17 + $0x9c] sm:$0xf] %v3890_v39  ;;  %809 = vst [vmem:[%s5016_s17 + $0xa0] sm:$0xf] %v3891_v40  ;;  %v3892_v41 = vld [vmem:[%s5012_s9 + $0x7c0] sm:$0xf] }
  0x88   : > { %v3893_v42 = vld [vmem:[%s5012_s9 + $0x7f0] sm:$0xf]  ;;  %v3894_v43 = vld [vmem:[%s5012_s9 + $0x820] sm:$0xf]  ;;  %811 = vst [vmem:[%s5016_s17 + $0xa4] sm:$0xf] %v3892_v41 }
  0x89   : > { %813 = vst [vmem:[%s5016_s17 + $0xa8] sm:$0xf] %v3893_v42  ;;  %815 = vst [vmem:[%s5016_s17 + $0xac] sm:$0xf] %v3894_v43  ;;  %v3895_v44 = vld [vmem:[%s5012_s9 + $0x850] sm:$0xf] }
  0x8a   : > { %v3896_v45 = vld [vmem:[%s5012_s9 + $0x880] sm:$0xf]  ;;  %v3897_v46 = vld [vmem:[%s5012_s9 + $0x8b0] sm:$0xf]  ;;  %817 = vst [vmem:[%s5016_s17 + $0xb0] sm:$0xf] %v3895_v44 }
  0x8b   : > { %819 = vst [vmem:[%s5016_s17 + $0xb4] sm:$0xf] %v3896_v45  ;;  %821 = vst [vmem:[%s5016_s17 + $0xb8] sm:$0xf] %v3897_v46  ;;  %v3898_v47 = vld [vmem:[%s5012_s9 + $0x8e0] sm:$0xf] }
  0x8c   : > { %v3899_v48 = vld [vmem:[%s5012_s9 + $0x910] sm:$0xf]  ;;  %v3900_v49 = vld [vmem:[%s5012_s9 + $0x940] sm:$0xf]  ;;  %823 = vst [vmem:[%s5016_s17 + $0xbc] sm:$0xf] %v3898_v47 }
  0x8d   : > { %825 = vst [vmem:[%s5016_s17 + $0xc0] sm:$0xf] %v3899_v48  ;;  %827 = vst [vmem:[%s5016_s17 + $0xc4] sm:$0xf] %v3900_v49  ;;  %v3901_v50 = vld [vmem:[%s5012_s9 + $0x970] sm:$0xf] }
  0x8e   : > { %v3902_v51 = vld [vmem:[%s5012_s9 + $0x9a0] sm:$0xf]  ;;  %v3903_v52 = vld [vmem:[%s5012_s9 + $0x9d0] sm:$0xf]  ;;  %829 = vst [vmem:[%s5016_s17 + $0xc8] sm:$0xf] %v3901_v50 }
  0x8f   : > { %831 = vst [vmem:[%s5016_s17 + $0xcc] sm:$0xf] %v3902_v51  ;;  %833 = vst [vmem:[%s5016_s17 + $0xd0] sm:$0xf] %v3903_v52  ;;  %v3904_v53 = vld [vmem:[%s5012_s9 + $0xa00] sm:$0xf] }
  0x90   : > { %v3905_v54 = vld [vmem:[%s5012_s9 + $0xa30] sm:$0xf]  ;;  %v3906_v55 = vld [vmem:[%s5012_s9 + $0xa60] sm:$0xf]  ;;  %835 = vst [vmem:[%s5016_s17 + $0xd4] sm:$0xf] %v3904_v53 }
  0x91   : > { %837 = vst [vmem:[%s5016_s17 + $0xd8] sm:$0xf] %v3905_v54  ;;  %839 = vst [vmem:[%s5016_s17 + $0xdc] sm:$0xf] %v3906_v55  ;;  %v3907_v56 = vld [vmem:[%s5012_s9 + $0xa90] sm:$0xf] }
  0x92   : > { %v3908_v57 = vld [vmem:[%s5012_s9 + $0xac0] sm:$0xf]  ;;  %v3909_v58 = vld [vmem:[%s5012_s9 + $0xaf0] sm:$0xf]  ;;  %841 = vst [vmem:[%s5016_s17 + $0xe0] sm:$0xf] %v3907_v56 }
  0x93   : > { %843 = vst [vmem:[%s5016_s17 + $0xe4] sm:$0xf] %v3908_v57  ;;  %845 = vst [vmem:[%s5016_s17 + $0xe8] sm:$0xf] %v3909_v58  ;;  %v3910_v59 = vld [vmem:[%s5012_s9 + $0xb20] sm:$0xf] }
  0x94   : > { %v3911_v60 = vld [vmem:[%s5012_s9 + $0xb50] sm:$0xf]  ;;  %v3912_v61 = vld [vmem:[%s5012_s9 + $0xb80] sm:$0xf]  ;;  %847 = vst [vmem:[%s5016_s17 + $0xec] sm:$0xf] %v3910_v59 }
  0x95   : > { %849 = vst [vmem:[%s5016_s17 + $0xf0] sm:$0xf] %v3911_v60  ;;  %851 = vst [vmem:[%s5016_s17 + $0xf4] sm:$0xf] %v3912_v61  ;;  %v3913_v62 = vld [vmem:[%s5012_s9 + $0xbb0] sm:$0xf] }
  0x96   : > { %v3914_v63 = vld [vmem:[%s5012_s9 + $0xbe0] sm:$0xf]  ;;  %853 = vst [vmem:[%s5016_s17 + $0xf8] sm:$0xf] %v3913_v62 }
  0x97   : > { %855 = vst [vmem:[%s5016_s17 + $0xfc] sm:$0xf] %v3914_v63 }
  0x98 PF: > { %1006 = sbr.rel (!%p4861_p11) target bundleno = 205 (0xcd), region = 122  ;;  %s1008_s30 = sand.u32 (%p4861_p11), 1, %s4650_s22  }
  0x99   : > { %s3916_s6 = sshll.u32 (%p4861_p11), %s4678_s29, 2  ;;  %s3915_s18 = sshll.u32 (%p4861_p11), %s1008_s30, 8 }
  0x9a   : > { %s5751_s4 = sld [smem:[#allocation19_spill]] (%p4861_p11)  ;;  %s5155_s16 = scalar_lea.vmem (%p4861_p11), [#allocation5], %s3915_s18 }
  0xa0   : > { %s5151_s10 = scalar_lea.vmem %s5751_s4, %s3916_s6 }
  0xa1   : > { %v3917_v0 = vld [vmem:[%s5151_s10 + $0x20] sm:$0xf]  ;;  %v3918_v1 = vld [vmem:[%s5151_s10 + $0x50] sm:$0xf] }
  0xa2   : > { %1030 = vst [vmem:[%s5155_s16] sm:$0xf] %v3917_v0  ;;  %1032 = vst [vmem:[%s5155_s16 + $0x4] sm:$0xf] %v3918_v1  ;;  %v3919_v2 = vld [vmem:[%s5151_s10 + $0x80] sm:$0xf] }
  0xa3   : > { %v3920_v3 = vld [vmem:[%s5151_s10 + $0xb0] sm:$0xf]  ;;  %v3921_v4 = vld [vmem:[%s5151_s10 + $0xe0] sm:$0xf]  ;;  %1034 = vst [vmem:[%s5155_s16 + $0x8] sm:$0xf] %v3919_v2 }
  0xa4   : > { %1036 = vst [vmem:[%s5155_s16 + $0xc] sm:$0xf] %v3920_v3  ;;  %1038 = vst [vmem:[%s5155_s16 + $0x10] sm:$0xf] %v3921_v4  ;;  %v3922_v5 = vld [vmem:[%s5151_s10 + $0x110] sm:$0xf] }
  0xa5   : > { %v3923_v6 = vld [vmem:[%s5151_s10 + $0x140] sm:$0xf]  ;;  %v3924_v7 = vld [vmem:[%s5151_s10 + $0x170] sm:$0xf]  ;;  %1040 = vst [vmem:[%s5155_s16 + $0x14] sm:$0xf] %v3922_v5 }
  0xa6   : > { %1042 = vst [vmem:[%s5155_s16 + $0x18] sm:$0xf] %v3923_v6  ;;  %1044 = vst [vmem:[%s5155_s16 + $0x1c] sm:$0xf] %v3924_v7  ;;  %v3925_v8 = vld [vmem:[%s5151_s10 + $0x1a0] sm:$0xf] }
  0xa7   : > { %v3926_v9 = vld [vmem:[%s5151_s10 + $0x1d0] sm:$0xf]  ;;  %v3927_v10 = vld [vmem:[%s5151_s10 + $0x200] sm:$0xf]  ;;  %1046 = vst [vmem:[%s5155_s16 + $0x20] sm:$0xf] %v3925_v8 }
  0xa8   : > { %1048 = vst [vmem:[%s5155_s16 + $0x24] sm:$0xf] %v3926_v9  ;;  %1050 = vst [vmem:[%s5155_s16 + $0x28] sm:$0xf] %v3927_v10  ;;  %v3928_v11 = vld [vmem:[%s5151_s10 + $0x230] sm:$0xf] }
  0xa9   : > { %v3929_v12 = vld [vmem:[%s5151_s10 + $0x260] sm:$0xf]  ;;  %v3930_v13 = vld [vmem:[%s5151_s10 + $0x290] sm:$0xf]  ;;  %1052 = vst [vmem:[%s5155_s16 + $0x2c] sm:$0xf] %v3928_v11 }
  0xaa   : > { %1054 = vst [vmem:[%s5155_s16 + $0x30] sm:$0xf] %v3929_v12  ;;  %1056 = vst [vmem:[%s5155_s16 + $0x34] sm:$0xf] %v3930_v13  ;;  %v3931_v14 = vld [vmem:[%s5151_s10 + $0x2c0] sm:$0xf] }
  0xab   : > { %v3932_v15 = vld [vmem:[%s5151_s10 + $0x2f0] sm:$0xf]  ;;  %v3933_v16 = vld [vmem:[%s5151_s10 + $0x320] sm:$0xf]  ;;  %1058 = vst [vmem:[%s5155_s16 + $0x38] sm:$0xf] %v3931_v14 }
  0xac   : > { %1060 = vst [vmem:[%s5155_s16 + $0x3c] sm:$0xf] %v3932_v15  ;;  %1062 = vst [vmem:[%s5155_s16 + $0x40] sm:$0xf] %v3933_v16  ;;  %v3934_v17 = vld [vmem:[%s5151_s10 + $0x350] sm:$0xf] }
  0xad   : > { %v3935_v18 = vld [vmem:[%s5151_s10 + $0x380] sm:$0xf]  ;;  %v3936_v19 = vld [vmem:[%s5151_s10 + $0x3b0] sm:$0xf]  ;;  %1064 = vst [vmem:[%s5155_s16 + $0x44] sm:$0xf] %v3934_v17 }
  0xae   : > { %1066 = vst [vmem:[%s5155_s16 + $0x48] sm:$0xf] %v3935_v18  ;;  %1068 = vst [vmem:[%s5155_s16 + $0x4c] sm:$0xf] %v3936_v19  ;;  %v3937_v20 = vld [vmem:[%s5151_s10 + $0x3e0] sm:$0xf] }
  0xaf   : > { %v3938_v21 = vld [vmem:[%s5151_s10 + $0x410] sm:$0xf]  ;;  %v3939_v22 = vld [vmem:[%s5151_s10 + $0x440] sm:$0xf]  ;;  %1070 = vst [vmem:[%s5155_s16 + $0x50] sm:$0xf] %v3937_v20 }
  0xb0   : > { %1072 = vst [vmem:[%s5155_s16 + $0x54] sm:$0xf] %v3938_v21  ;;  %1074 = vst [vmem:[%s5155_s16 + $0x58] sm:$0xf] %v3939_v22  ;;  %v3940_v23 = vld [vmem:[%s5151_s10 + $0x470] sm:$0xf] }
  0xb1   : > { %v3941_v24 = vld [vmem:[%s5151_s10 + $0x4a0] sm:$0xf]  ;;  %v3942_v25 = vld [vmem:[%s5151_s10 + $0x4d0] sm:$0xf]  ;;  %1076 = vst [vmem:[%s5155_s16 + $0x5c] sm:$0xf] %v3940_v23 }
  0xb2   : > { %1078 = vst [vmem:[%s5155_s16 + $0x60] sm:$0xf] %v3941_v24  ;;  %1080 = vst [vmem:[%s5155_s16 + $0x64] sm:$0xf] %v3942_v25  ;;  %v3943_v26 = vld [vmem:[%s5151_s10 + $0x500] sm:$0xf] }
  0xb3   : > { %v3944_v27 = vld [vmem:[%s5151_s10 + $0x530] sm:$0xf]  ;;  %v3945_v28 = vld [vmem:[%s5151_s10 + $0x560] sm:$0xf]  ;;  %1082 = vst [vmem:[%s5155_s16 + $0x68] sm:$0xf] %v3943_v26 }
  0xb4   : > { %1084 = vst [vmem:[%s5155_s16 + $0x6c] sm:$0xf] %v3944_v27  ;;  %1086 = vst [vmem:[%s5155_s16 + $0x70] sm:$0xf] %v3945_v28  ;;  %v3946_v29 = vld [vmem:[%s5151_s10 + $0x590] sm:$0xf] }
  0xb5   : > { %v3947_v30 = vld [vmem:[%s5151_s10 + $0x5c0] sm:$0xf]  ;;  %v3948_v31 = vld [vmem:[%s5151_s10 + $0x5f0] sm:$0xf]  ;;  %1088 = vst [vmem:[%s5155_s16 + $0x74] sm:$0xf] %v3946_v29 }
  0xb6   : > { %1090 = vst [vmem:[%s5155_s16 + $0x78] sm:$0xf] %v3947_v30  ;;  %1092 = vst [vmem:[%s5155_s16 + $0x7c] sm:$0xf] %v3948_v31  ;;  %v3949_v32 = vld [vmem:[%s5151_s10 + $0x620] sm:$0xf] }
  0xb7   : > { %v3950_v33 = vld [vmem:[%s5151_s10 + $0x650] sm:$0xf]  ;;  %v3951_v34 = vld [vmem:[%s5151_s10 + $0x680] sm:$0xf]  ;;  %1094 = vst [vmem:[%s5155_s16 + $0x80] sm:$0xf] %v3949_v32 }
  0xb8   : > { %1096 = vst [vmem:[%s5155_s16 + $0x84] sm:$0xf] %v3950_v33  ;;  %1098 = vst [vmem:[%s5155_s16 + $0x88] sm:$0xf] %v3951_v34  ;;  %v3952_v35 = vld [vmem:[%s5151_s10 + $0x6b0] sm:$0xf] }
  0xb9   : > { %v3953_v36 = vld [vmem:[%s5151_s10 + $0x6e0] sm:$0xf]  ;;  %v3954_v37 = vld [vmem:[%s5151_s10 + $0x710] sm:$0xf]  ;;  %1100 = vst [vmem:[%s5155_s16 + $0x8c] sm:$0xf] %v3952_v35 }
  0xba   : > { %1102 = vst [vmem:[%s5155_s16 + $0x90] sm:$0xf] %v3953_v36  ;;  %1104 = vst [vmem:[%s5155_s16 + $0x94] sm:$0xf] %v3954_v37  ;;  %v3955_v38 = vld [vmem:[%s5151_s10 + $0x740] sm:$0xf] }
  0xbb   : > { %v3956_v39 = vld [vmem:[%s5151_s10 + $0x770] sm:$0xf]  ;;  %v3957_v40 = vld [vmem:[%s5151_s10 + $0x7a0] sm:$0xf]  ;;  %1106 = vst [vmem:[%s5155_s16 + $0x98] sm:$0xf] %v3955_v38 }
  0xbc   : > { %1108 = vst [vmem:[%s5155_s16 + $0x9c] sm:$0xf] %v3956_v39  ;;  %1110 = vst [vmem:[%s5155_s16 + $0xa0] sm:$0xf] %v3957_v40  ;;  %v3958_v41 = vld [vmem:[%s5151_s10 + $0x7d0] sm:$0xf] }
  0xbd   : > { %v3959_v42 = vld [vmem:[%s5151_s10 + $0x800] sm:$0xf]  ;;  %v3960_v43 = vld [vmem:[%s5151_s10 + $0x830] sm:$0xf]  ;;  %1112 = vst [vmem:[%s5155_s16 + $0xa4] sm:$0xf] %v3958_v41 }
  0xbe   : > { %1114 = vst [vmem:[%s5155_s16 + $0xa8] sm:$0xf] %v3959_v42  ;;  %1116 = vst [vmem:[%s5155_s16 + $0xac] sm:$0xf] %v3960_v43  ;;  %v3961_v44 = vld [vmem:[%s5151_s10 + $0x860] sm:$0xf] }
  0xbf   : > { %v3962_v45 = vld [vmem:[%s5151_s10 + $0x890] sm:$0xf]  ;;  %v3963_v46 = vld [vmem:[%s5151_s10 + $0x8c0] sm:$0xf]  ;;  %1118 = vst [vmem:[%s5155_s16 + $0xb0] sm:$0xf] %v3961_v44 }
  0xc0   : > { %1120 = vst [vmem:[%s5155_s16 + $0xb4] sm:$0xf] %v3962_v45  ;;  %1122 = vst [vmem:[%s5155_s16 + $0xb8] sm:$0xf] %v3963_v46  ;;  %v3964_v47 = vld [vmem:[%s5151_s10 + $0x8f0] sm:$0xf] }
  0xc1   : > { %v3965_v48 = vld [vmem:[%s5151_s10 + $0x920] sm:$0xf]  ;;  %v3966_v49 = vld [vmem:[%s5151_s10 + $0x950] sm:$0xf]  ;;  %1124 = vst [vmem:[%s5155_s16 + $0xbc] sm:$0xf] %v3964_v47 }
  0xc2   : > { %1126 = vst [vmem:[%s5155_s16 + $0xc0] sm:$0xf] %v3965_v48  ;;  %1128 = vst [vmem:[%s5155_s16 + $0xc4] sm:$0xf] %v3966_v49  ;;  %v3967_v50 = vld [vmem:[%s5151_s10 + $0x980] sm:$0xf] }
  0xc3   : > { %v3968_v51 = vld [vmem:[%s5151_s10 + $0x9b0] sm:$0xf]  ;;  %v3969_v52 = vld [vmem:[%s5151_s10 + $0x9e0] sm:$0xf]  ;;  %1130 = vst [vmem:[%s5155_s16 + $0xc8] sm:$0xf] %v3967_v50 }
  0xc4   : > { %1132 = vst [vmem:[%s5155_s16 + $0xcc] sm:$0xf] %v3968_v51  ;;  %1134 = vst [vmem:[%s5155_s16 + $0xd0] sm:$0xf] %v3969_v52  ;;  %v3970_v53 = vld [vmem:[%s5151_s10 + $0xa10] sm:$0xf] }
  0xc5   : > { %v3971_v54 = vld [vmem:[%s5151_s10 + $0xa40] sm:$0xf]  ;;  %v3972_v55 = vld [vmem:[%s5151_s10 + $0xa70] sm:$0xf]  ;;  %1136 = vst [vmem:[%s5155_s16 + $0xd4] sm:$0xf] %v3970_v53 }
  0xc6   : > { %1138 = vst [vmem:[%s5155_s16 + $0xd8] sm:$0xf] %v3971_v54  ;;  %1140 = vst [vmem:[%s5155_s16 + $0xdc] sm:$0xf] %v3972_v55  ;;  %v3973_v56 = vld [vmem:[%s5151_s10 + $0xaa0] sm:$0xf] }
  0xc7   : > { %v3974_v57 = vld [vmem:[%s5151_s10 + $0xad0] sm:$0xf]  ;;  %v3975_v58 = vld [vmem:[%s5151_s10 + $0xb00] sm:$0xf]  ;;  %1142 = vst [vmem:[%s5155_s16 + $0xe0] sm:$0xf] %v3973_v56 }
  0xc8   : > { %1144 = vst [vmem:[%s5155_s16 + $0xe4] sm:$0xf] %v3974_v57  ;;  %1146 = vst [vmem:[%s5155_s16 + $0xe8] sm:$0xf] %v3975_v58  ;;  %v3976_v59 = vld [vmem:[%s5151_s10 + $0xb30] sm:$0xf] }
  0xc9   : > { %v3977_v60 = vld [vmem:[%s5151_s10 + $0xb60] sm:$0xf]  ;;  %v3978_v61 = vld [vmem:[%s5151_s10 + $0xb90] sm:$0xf]  ;;  %1148 = vst [vmem:[%s5155_s16 + $0xec] sm:$0xf] %v3976_v59 }
  0xca   : > { %1150 = vst [vmem:[%s5155_s16 + $0xf0] sm:$0xf] %v3977_v60  ;;  %1152 = vst [vmem:[%s5155_s16 + $0xf4] sm:$0xf] %v3978_v61  ;;  %v3979_v62 = vld [vmem:[%s5151_s10 + $0xbc0] sm:$0xf] }
  0xcb   : > { %v3980_v63 = vld [vmem:[%s5151_s10 + $0xbf0] sm:$0xf]  ;;  %1154 = vst [vmem:[%s5155_s16 + $0xf8] sm:$0xf] %v3979_v62 }
  0xcc   : > { %1156 = vst [vmem:[%s5155_s16 + $0xfc] sm:$0xf] %v3980_v63 }
  0xcd PF: > { %p3981_p13 = scmp.ge.s32.totalorder %s4686_s13, 1  ;;  %p1338_p0 = scmp.lt.s32.totalorder %s4686_s13, 9 }
  0xcf   : > { %p1339_p1 = pnand %p3981_p13, %p1338_p0 }
  0xd0   : > { %s1345_s8 = sand.u32 (!%p1339_p1), 1, %s4662_s25   ;;  %s1352_s7 = sand.u32 (!%p1339_p1), 1, %s4654_s23  }
  0xd1   : > { %1342 = sbr.rel (%p1339_p1) target bundleno = 4081 (0xff1), region = 179  ;;  %s3982_s9 = sshll.u32 (!%p1339_p1), %s1345_s8, 8 }
  0xd2   : > { %s3983_s17 = sshll.u32 (!%p1339_p1), %s1352_s7, 8  ;;  %s1359_s30 = sand.u32 (!%p1339_p1), 1, %s4646_s21  }
  0xd3   : > { %p1433_p2 = scmp.lt.s32.totalorder (!%p1339_p1), %s4674_s28, 1  ;;  %s3984_s6 = sshll.u32 (!%p1339_p1), %s1359_s30, 8 }
  0xd4   : > { %p1443_p3 = scmp.lt.s32.totalorder (!%p1339_p1), %s4670_s27, 11  ;;  %s1446_s18 = sadd.s32 (!%p1339_p1), 4, %s4670_s27 }
  0xd5   : > { %s5752_s0 = sld [smem:[#allocation16_spill]] (!%p1339_p1)  ;;  %p1447_p4 = scmp.lt.s32.totalorder (!%p1339_p1), %s1446_s18, 11 }
  0xd6   : > { %s1451_s3 = sadd.s32 (!%p1339_p1), 8, %s4670_s27  ;;  %s3987_s4 = sshll.u32 (!%p1339_p1), %s4670_s27, 4 }
  0xd7   : > { %p1452_p5 = scmp.lt.s32.totalorder (!%p1339_p1), %s1451_s3, 11  ;;  %s5753_s23 = sld [smem:[#allocation20_spill]] (!%p1339_p1) }
  0xd8   : > { %s5781_s28 = smov (!%p1433_p2, %s4674_s28), 1  ;;  %s5783_s18 = smov (!%p1447_p4, %s1446_s18), 11 }
  0xd9   : > { %s5295_s19 = scalar_select %p1443_p3, %s4670_s27, 11 }
  0xda   : > { %s4144_s20 = sshll.u32 %s5781_s28, 5  ;;  %s5785_s3 = smov (!%p1452_p5, %s1451_s3), 11 }
  0xdb   : > { %s5305_s21 = scalar_lea.vmem %s5752_s0, %s4144_s20  ;;  %p1457_p6 = scmp.lt.s32.totalorder %s3987_s4, 63 }
  0xdc   : > { %s5754_s14 = sld [smem:[#allocation21_spill]]  ;;  %s5755_s29 = sld [smem:[#allocation26_spill]] }
  0xdd   : > { %s1449_s16 = scalar_lea.vmem %s5753_s23, %s5783_s18  ;;  %s5787_s4 = smov (!%p1457_p6, %s3987_s4), 63 }
  0xde   : > { %s4145_s26 = sshll.u32 %s5787_s4, 4  ;;  %s5756_s15 = sld [smem:[#allocation22_spill]] }
  0xdf   : > { %s5335_s10 = scalar_lea.vmem [#allocation3], %s3982_s9  ;;  %s5337_s23 = scalar_lea.vmem [#allocation4], %s3983_s17 }
  0xe0   : > { %s5339_s25 = scalar_lea.vmem [#allocation5], %s3984_s6  ;;  %p3992_p7 = scmp.ne.s32.totalorder %s4670_s27, 0 }
  0xe1   : > { %v4688_v0 = vmov (!%p3992_p7), 0.0  }
  0xe2   : > { %s1454_s7 = scalar_lea.vmem %s5754_s14, %s5785_s3  ;;  %s5328_s11 = scalar_lea.vmem %s5755_s29, %s4144_s20  ;;  %1473 = vst [vmem:[#allocation2] sm:$0xff] (!%p3992_p7), %v4688_v0  ;;  %1474 = vst [vmem:[#allocation2 + $0x8] sm:$0xff] (!%p3992_p7), %v4688_v0 }
  0xe3   : > { %1472 = sbr.rel (%p3992_p7) target bundleno = 234 (0xea), region = 195  ;;  %1475 = vst [vmem:[#allocation2 + $0x10] sm:$0xff] (!%p3992_p7), %v4688_v0  ;;  %1476 = vst [vmem:[#allocation2 + $0x18] sm:$0xff] (!%p3992_p7), %v4688_v0 }
  0xe4   : > { %s5333_s22 = scalar_lea.vmem %s5756_s15, %s4145_s26 }
  0xea PF: > { %v4438_v1 = vld [vmem:[%s5335_s10 + $0x40] sm:$0xff]   ;;  %v4442_v5 = vld [vmem:[%s5335_s10 + $0x48] sm:$0xff]   ;;  %v4446_v9 = vld [vmem:[%s5335_s10 + $0x50] sm:$0xff]   ;;  %vm4690_vm0 = vmmov 0   ;;  %s5757_s4 = scalar_lea.vmem %s5711_s5, %s5295_s19  ;;  %vm2524_vm1 = vcmask 261120   ;;  %s4691_s29 = smov 96  }
  0xeb   : > { %v4439_v2 = vld [vmem:[%s5335_s10 + $0xc0] sm:$0xff]   ;;  %4147 = vmatprep.subr.bf16.mxu0 %v4438_v1  ;;  %v4443_v6 = vld [vmem:[%s5335_s10 + $0xc8] sm:$0xff]   ;;  %v4447_v10 = vld [vmem:[%s5335_s10 + $0xd0] sm:$0xff]   ;;  %vm2587_vm2 = vcmask 1043456   ;;  %s5760_s3 = scalar_lea.vmem %s5707_s1, %s5781_s28  ;;  %vm2571_vm3 = vcmask 64512   ;;  %s4693_s28 = smov 64  }
  0xec   : > { %v4440_v3 = vld [vmem:[%s5335_s10] sm:$0xff]   ;;  %4169 = vmatprep.subr.bf16.mxu1 %v4439_v2  ;;  %v4444_v7 = vld [vmem:[%s5335_s10 + $0x8] sm:$0xff]   ;;  %v4448_v11 = vld [vmem:[%s5335_s10 + $0x10] sm:$0xff]   ;;  %s4694_s18 = smov 32   ;;  %p4141_p8 = scmp.ne.s32.totalorder %s4670_s27, 3 }
  0xed   : > { %v4441_v4 = vld [vmem:[%s5335_s10 + $0x80] sm:$0xff]   ;;  %4148 = vmatpush3.bf16.msra.mxu0 %v4440_v3  ;;  %v4445_v8 = vld [vmem:[%s5335_s10 + $0x88] sm:$0xff]   ;;  %v4449_v12 = vld [vmem:[%s5335_s10 + $0x90] sm:$0xff]   ;;  %s5761_s20 = sld [smem:[#allocation23_spill]] (!%p4141_p8)  ;;  %s5763_s30 = sld [smem:[#allocation25_spill]] (!%p4141_p8) }
  0xee   : > { %4170 = vmatpush3.bf16.msra.mxu1 %v4441_v4  ;;  %4149 = vmatprep.subr.bf16.mxu0 %v4442_v5  ;;  %v4450_v13 = vld [vmem:[%s5335_s10 + $0x58] sm:$0xff]   ;;  %v4454_v17 = vld [vmem:[%s5335_s10 + $0x60] sm:$0xff]   ;;  %v4458_v21 = vld [vmem:[%s5335_s10 + $0x68] sm:$0xff]  }
  0xef   : > { %4171 = vmatprep.subr.bf16.mxu1 %v4443_v6  ;;  %v4451_v14 = vld [vmem:[%s5335_s10 + $0xd8] sm:$0xff]   ;;  %v4455_v18 = vld [vmem:[%s5335_s10 + $0xe0] sm:$0xff]   ;;  %v4459_v22 = vld [vmem:[%s5335_s10 + $0xe8] sm:$0xff]  }
  0xf0   : > { %v4452_v15 = vld [vmem:[%s5335_s10 + $0x18] sm:$0xff]   ;;  %v4456_v19 = vld [vmem:[%s5335_s10 + $0x20] sm:$0xff]   ;;  %v4460_v23 = vld [vmem:[%s5335_s10 + $0x28] sm:$0xff]  }
  0xf1   : > { %4150 = vmatpush3.bf16.msra.mxu0 %v4444_v7  ;;  %v4453_v16 = vld [vmem:[%s5335_s10 + $0x98] sm:$0xff]   ;;  %v4457_v20 = vld [vmem:[%s5335_s10 + $0xa0] sm:$0xff]   ;;  %v4461_v24 = vld [vmem:[%s5335_s10 + $0xa8] sm:$0xff]  }
  0xf2   : > { %4172 = vmatpush3.bf16.msra.mxu1 %v4445_v8  ;;  %4151 = vmatprep.subr.bf16.mxu0 %v4446_v9  ;;  %v4462_v25 = vld [vmem:[%s5335_s10 + $0x70] sm:$0xff]   ;;  %v4466_v29 = vld [vmem:[%s5335_s10 + $0x78] sm:$0xff]   ;;  %v1478_v33 = vld [vmem:[%s5305_s21 + $0x8] sm:$0xff] }
  0xf3   : > { %4173 = vmatprep.subr.bf16.mxu1 %v4447_v10  ;;  %v4463_v26 = vld [vmem:[%s5335_s10 + $0xf0] sm:$0xff]   ;;  %v4467_v30 = vld [vmem:[%s5335_s10 + $0xf8] sm:$0xff]   ;;  %v1477_v35 = vld [vmem:[%s5305_s21] sm:$0xff]  ;;  %v5377_v36 = vpack.c.bf16 %v1478_v33, %v1478_v33 }
  0xf4   : > { %v4464_v27 = vld [vmem:[%s5335_s10 + $0x30] sm:$0xff]   ;;  %v4468_v31 = vld [vmem:[%s5335_s10 + $0x38] sm:$0xff]   ;;  %v5381_v38 = vpack.c.bf16 %v1477_v35, %v1477_v35  ;;  %v4470_v41 = vld [vmem:[%s5337_s23 + $0x40] sm:$0xff]  }
  0xf5   : > { %4152 = vmatpush3.bf16.msra.mxu0 %v4448_v11  ;;  %v4465_v28 = vld [vmem:[%s5335_s10 + $0xb0] sm:$0xff]   ;;  %v4469_v32 = vld [vmem:[%s5335_s10 + $0xb8] sm:$0xff]   ;;  %1781 = vmatprep.mubr.bf16.mxu0 %v5377_v36  ;;  %v4471_v42 = vld [vmem:[%s5337_s23 + $0xc0] sm:$0xff]  }
  0xf6   : > { %4174 = vmatpush3.bf16.msra.mxu1 %v4449_v12  ;;  %4153 = vmatprep.subr.bf16.mxu0 %v4450_v13  ;;  %v1480_v34 = vld [vmem:[%s5305_s21 + $0x18] sm:$0xff]  ;;  %v1479_v39 = vld [vmem:[%s5305_s21 + $0x10] sm:$0xff]  ;;  %v4472_v43 = vld [vmem:[%s5337_s23] sm:$0xff]  }
  0xf7   : > { %4175 = vmatprep.subr.bf16.mxu1 %v4451_v14  ;;  %v5379_v37 = vpack.c.bf16 %v1480_v34, %v1480_v34  ;;  %v5384_v40 = vpack.c.bf16 %v1479_v39, %v1479_v39  ;;  %v4473_v44 = vld [vmem:[%s5337_s23 + $0x80] sm:$0xff]   ;;  %v4474_v45 = vld [vmem:[%s5337_s23 + $0x48] sm:$0xff]   ;;  %v4478_v49 = vld [vmem:[%s5337_s23 + $0x50] sm:$0xff]  }
  0xf8   : > { %v4475_v46 = vld [vmem:[%s5337_s23 + $0xc8] sm:$0xff]   ;;  %v4479_v50 = vld [vmem:[%s5337_s23 + $0xd0] sm:$0xff]   ;;  %v4482_v53 = vld [vmem:[%s5337_s23 + $0x58] sm:$0xff]  }
  0xf9   : > { %4154 = vmatpush3.bf16.msra.mxu0 %v4452_v15  ;;  %1821 = vmatprep.mubr.bf16.mxu1 %v5379_v37  ;;  %v4476_v47 = vld [vmem:[%s5337_s23 + $0x8] sm:$0xff]   ;;  %v4480_v51 = vld [vmem:[%s5337_s23 + $0x10] sm:$0xff]   ;;  %v4483_v54 = vld [vmem:[%s5337_s23 + $0xd8] sm:$0xff]  }
  0xfa   : > { %4176 = vmatpush3.bf16.msra.mxu1 %v4453_v16  ;;  %4155 = vmatprep.subr.bf16.mxu0 %v4454_v17  ;;  %v4477_v48 = vld [vmem:[%s5337_s23 + $0x88] sm:$0xff]   ;;  %v4481_v52 = vld [vmem:[%s5337_s23 + $0x90] sm:$0xff]   ;;  %v4484_v55 = vld [vmem:[%s5337_s23 + $0x18] sm:$0xff]  }
  0xfb   : > { %4177 = vmatprep.subr.bf16.mxu1 %v4455_v18  ;;  %v4485_v56 = vld [vmem:[%s5337_s23 + $0x98] sm:$0xff]   ;;  %v4486_v57 = vld [vmem:[%s5337_s23 + $0x60] sm:$0xff]   ;;  %v4490_v61 = vld [vmem:[%s5337_s23 + $0x68] sm:$0xff]  }
  0xfc   : > { %v4487_v58 = vld [vmem:[%s5337_s23 + $0xe0] sm:$0xff]   ;;  %v4491_v62 = vld [vmem:[%s5337_s23 + $0xe8] sm:$0xff]   ;;  %v4494_v1 = vld [vmem:[%s5337_s23 + $0x70] sm:$0xff]  }
  0xfd   : > { %4156 = vmatpush3.bf16.msra.mxu0 %v4456_v19  ;;  %v4488_v59 = vld [vmem:[%s5337_s23 + $0x20] sm:$0xff]   ;;  %v4492_v63 = vld [vmem:[%s5337_s23 + $0x28] sm:$0xff]   ;;  %v4495_v2 = vld [vmem:[%s5337_s23 + $0xf0] sm:$0xff]  }
  0xfe   : > { %4178 = vmatpush3.bf16.msra.mxu1 %v4457_v20  ;;  %4157 = vmatprep.subr.bf16.mxu0 %v4458_v21  ;;  %v4489_v60 = vld [vmem:[%s5337_s23 + $0xa0] sm:$0xff]   ;;  %v4493_v0 = vld [vmem:[%s5337_s23 + $0xa8] sm:$0xff]   ;;  %v4496_v3 = vld [vmem:[%s5337_s23 + $0x30] sm:$0xff]  }
  0xff   : > { %4179 = vmatprep.subr.bf16.mxu1 %v4459_v22  ;;  %v4497_v4 = vld [vmem:[%s5337_s23 + $0xb0] sm:$0xff]   ;;  %v4498_v5 = vld [vmem:[%s5337_s23 + $0x78] sm:$0xff]   ;;  %v4502_v9 = vld [vmem:[%s5339_s25 + $0x40] sm:$0xff]  }
 0x100   : > { %v4499_v6 = vld [vmem:[%s5337_s23 + $0xf8] sm:$0xff]   ;;  %v4503_v10 = vld [vmem:[%s5339_s25] sm:$0xff]   ;;  %v4504_v11 = vld [vmem:[%s5339_s25 + $0x48] sm:$0xff]  }
 0x101   : > { %4158 = vmatpush3.bf16.msra.mxu0 %v4460_v23  ;;  %v4500_v7 = vld [vmem:[%s5337_s23 + $0x38] sm:$0xff]   ;;  %v4505_v12 = vld [vmem:[%s5339_s25 + $0x8] sm:$0xff]   ;;  %v4506_v13 = vld [vmem:[%s5339_s25 + $0xc0] sm:$0xff]  }
 0x102   : > { %4180 = vmatpush3.bf16.msra.mxu1 %v4461_v24  ;;  %4159 = vmatprep.subr.bf16.mxu0 %v4462_v25  ;;  %v4501_v8 = vld [vmem:[%s5337_s23 + $0xb8] sm:$0xff]   ;;  %v4507_v14 = vld [vmem:[%s5339_s25 + $0x50] sm:$0xff]   ;;  %v4508_v15 = vld [vmem:[%s5339_s25 + $0x80] sm:$0xff]  }
 0x103   : > { %4181 = vmatprep.subr.bf16.mxu1 %v4463_v26  ;;  %v4510_v16 = vld [vmem:[%s5339_s25 + $0xc8] sm:$0xff]   ;;  %v4509_v18 = vld [vmem:[%s5339_s25 + $0x10] sm:$0xff]   ;;  %v4511_v20 = vld [vmem:[%s5339_s25 + $0x58] sm:$0xff]  }
 0x104   : > { %v4512_v17 = vld [vmem:[%s5339_s25 + $0x88] sm:$0xff]   ;;  %v4514_v19 = vld [vmem:[%s5339_s25 + $0xd0] sm:$0xff]   ;;  %v4513_v22 = vld [vmem:[%s5339_s25 + $0x18] sm:$0xff]  }
 0x105   : > { %4160 = vmatpush3.bf16.msra.mxu0 %v4464_v27  ;;  %v4516_v21 = vld [vmem:[%s5339_s25 + $0x90] sm:$0xff]   ;;  %v4518_v23 = vld [vmem:[%s5339_s25 + $0xd8] sm:$0xff]   ;;  %v4515_v24 = vld [vmem:[%s5339_s25 + $0x60] sm:$0xff]  }
 0x106   : > { %4182 = vmatpush3.bf16.msra.mxu1 %v4465_v28  ;;  %4161 = vmatprep.subr.bf16.mxu0 %v4466_v29  ;;  %v4520_v25 = vld [vmem:[%s5339_s25 + $0x98] sm:$0xff]   ;;  %v4517_v26 = vld [vmem:[%s5339_s25 + $0x20] sm:$0xff]   ;;  %v4519_v28 = vld [vmem:[%s5339_s25 + $0x68] sm:$0xff]  }
 0x107   : > { %4183 = vmatprep.subr.bf16.mxu1 %v4467_v30  ;;  %v4522_v27 = vld [vmem:[%s5339_s25 + $0xe0] sm:$0xff]   ;;  %v4521_v30 = vld [vmem:[%s5339_s25 + $0x28] sm:$0xff]   ;;  %v4527_v35 = vld [vmem:[%s5339_s25 + $0x78] sm:$0xff]  }
 0x108   : > { %v4524_v29 = vld [vmem:[%s5339_s25 + $0xa0] sm:$0xff]   ;;  %v4526_v33 = vld [vmem:[%s5339_s25 + $0xe8] sm:$0xff]   ;;  %v4531_v39 = vld [vmem:[%s5339_s25 + $0xb0] sm:$0xff]  }
 0x109   : > { %4162 = vmatpush3.bf16.msra.mxu0 %v4468_v31  ;;  %v4523_v31 = vld [vmem:[%s5339_s25 + $0x70] sm:$0xff]   ;;  %v4528_v34 = vld [vmem:[%s5339_s25 + $0xa8] sm:$0xff]  }
 0x10a   : > { %4184 = vmatpush3.bf16.msra.mxu1 %v4469_v32  ;;  %4191 = vmatprep.subr.bf16.mxu0 %v4470_v41  ;;  %v4525_v32 = vld [vmem:[%s5339_s25 + $0x30] sm:$0xff]   ;;  %v4532_v41 = vld [vmem:[%s5339_s25 + $0xf8] sm:$0xff]  }
 0x10b   : > { %4213 = vmatprep.subr.bf16.mxu1 %v4471_v42  ;;  %v4533_v42 = vld [vmem:[%s5339_s25 + $0xb8] sm:$0xff]  }
 0x10c   : > { %1782 = vmatmul.mubr.bf16.vlgmr.msra.gmra.mrb[0].mxu0 %v5381_v38 }
 0x10d   : > { %1822 = vmatmul.mubr.bf16.vlgmr.msra.gmra.mrb[0].mxu1 %v5384_v40  ;;  %4192 = vmatpush3.bf16.msra.mxu0 %v4472_v43  ;;  %v4689_v43 = vmov 0.0  }
 0x10e   : > { %2124 = vmatprep.mubr.bf16.mxu0 %v5377_v36  ;;  %4214 = vmatpush3.bf16.msra.mxu1 %v4473_v44 }
 0x10f   : > { %2164 = vmatprep.mubr.bf16.mxu1 %v5379_v37  ;;  %4193 = vmatprep.subr.bf16.mxu0 %v4474_v45  ;;  %v3993_v45 = vld [vmem:[%s5757_s4] ss:$0 sm:$0xff] }
 0x110   : > { %4215 = vmatprep.subr.bf16.mxu1 %v4475_v46 }
 0x111   : > { %4194 = vmatpush3.bf16.msra.mxu0 %v4476_v47 }
 0x112   : > { %4216 = vmatpush3.bf16.msra.mxu1 %v4477_v48  ;;  %4195 = vmatprep.subr.bf16.mxu0 %v4478_v49 }
 0x113   : > { %4217 = vmatprep.subr.bf16.mxu1 %v4479_v50 }
 0x115   : > { %4196 = vmatpush3.bf16.msra.mxu0 %v4480_v51 }
 0x116   : > { %4218 = vmatpush3.bf16.msra.mxu1 %v4481_v52  ;;  %4197 = vmatprep.subr.bf16.mxu0 %v4482_v53 }
 0x117   : > { %4219 = vmatprep.subr.bf16.mxu1 %v4483_v54 }
 0x119   : > { %4198 = vmatpush3.bf16.msra.mxu0 %v4484_v55 }
 0x11a   : > { %4220 = vmatpush3.bf16.msra.mxu1 %v4485_v56  ;;  %4199 = vmatprep.subr.bf16.mxu0 %v4486_v57  ;;  %v4026_v57 = vld [vmem:[%s1449_s16] ss:$0 sm:$0xff]  ;;  %s5762_s16 = sld [smem:[#allocation24_spill]] (!%p4141_p8) }
 0x11b   : > { %4221 = vmatprep.subr.bf16.mxu1 %v4487_v58 }
 0x11d   : > { %4200 = vmatpush3.bf16.msra.mxu0 %v4488_v59 }
 0x11e   : > { %4222 = vmatpush3.bf16.msra.mxu1 %v4489_v60  ;;  %4201 = vmatprep.subr.bf16.mxu0 %v4490_v61 }
 0x11f   : > { %4223 = vmatprep.subr.bf16.mxu1 %v4491_v62 }
 0x121   : > { %4202 = vmatpush3.bf16.msra.mxu0 %v4492_v63 }
 0x122   : > { %4224 = vmatpush3.bf16.msra.mxu1 %v4493_v0  ;;  %4203 = vmatprep.subr.bf16.mxu0 %v4494_v1 }
 0x123   : > { %4225 = vmatprep.subr.bf16.mxu1 %v4495_v2 }
 0x125   : > { %4204 = vmatpush3.bf16.msra.mxu0 %v4496_v3 }
 0x126   : > { %4226 = vmatpush3.bf16.msra.mxu1 %v4497_v4  ;;  %4205 = vmatprep.subr.bf16.mxu0 %v4498_v5 }
 0x127   : > { %4227 = vmatprep.subr.bf16.mxu1 %v4499_v6 }
 0x129   : > { %4206 = vmatpush3.bf16.msra.mxu0 %v4500_v7 }
 0x12a   : > { %4228 = vmatpush3.bf16.msra.mxu1 %v4501_v8  ;;  %4235 = vmatprep.subr.bf16.mxu0 %v4502_v9 }
 0x12b   : > { %4257 = vmatprep.subr.bf16.mxu1 %v4506_v13 }
 0x12c   : > { %2125 = vmatmul.mubr.bf16.vlgmr.msra.gmra.mrb[4].mxu0 %v5381_v38 }
 0x12d   : > { %2165 = vmatmul.mubr.bf16.vlgmr.msra.gmra.mrb[4].mxu1 %v5384_v40  ;;  %2467 = vmatprep.mubr.bf16.mxu0 %v5377_v36  ;;  %v4529_v36 = vld [vmem:[%s5339_s25 + $0x38] sm:$0xff]  }
 0x12e   : > { %2507 = vmatprep.mubr.bf16.mxu1 %v5379_v37  ;;  %4236 = vmatpush3.bf16.msra.mxu0 %v4503_v10  ;;  %v4530_v37 = vld [vmem:[%s5339_s25 + $0xf0] sm:$0xff]  }
 0x12f   : > { %4237 = vmatprep.subr.bf16.mxu0 %v4504_v11  ;;  %4258 = vmatpush3.bf16.msra.mxu1 %v4508_v15  ;;  %v4059_v11 = vld [vmem:[%s1454_s7] ss:$0 sm:$0xff] }
 0x130   : > { %4259 = vmatprep.subr.bf16.mxu1 %v4510_v16 }
 0x132   : > { %4238 = vmatpush3.bf16.msra.mxu0 %v4505_v12 }
 0x133   : > { %4239 = vmatprep.subr.bf16.mxu0 %v4507_v14  ;;  %4260 = vmatpush3.bf16.msra.mxu1 %v4512_v17 }
 0x134   : > { %4261 = vmatprep.subr.bf16.mxu1 %v4514_v19 }
 0x136   : > { %4240 = vmatpush3.bf16.msra.mxu0 %v4509_v18 }
 0x137   : > { %4241 = vmatprep.subr.bf16.mxu0 %v4511_v20  ;;  %4262 = vmatpush3.bf16.msra.mxu1 %v4516_v21 }
 0x138   : > { %4263 = vmatprep.subr.bf16.mxu1 %v4518_v23 }
 0x13a   : > { %4242 = vmatpush3.bf16.msra.mxu0 %v4513_v22  ;;  %v5504_v22 = vld [vmem:[%s5760_s3] ss:$0 sm:$0xff] }
 0x13b   : > { %4243 = vmatprep.subr.bf16.mxu0 %v4515_v24  ;;  %4264 = vmatpush3.bf16.msra.mxu1 %v4520_v25 }
 0x13c   : > { %4265 = vmatprep.subr.bf16.mxu1 %v4522_v27 }
 0x13e   : > { %4244 = vmatpush3.bf16.msra.mxu0 %v4517_v26 }
 0x13f   : > { %4245 = vmatprep.subr.bf16.mxu0 %v4519_v28  ;;  %4266 = vmatpush3.bf16.msra.mxu1 %v4524_v29 }
 0x140   : > { %4267 = vmatprep.subr.bf16.mxu1 %v4526_v33 }
 0x142   : > { %4246 = vmatpush3.bf16.msra.mxu0 %v4521_v30 }
 0x143   : > { %4247 = vmatprep.subr.bf16.mxu0 %v4523_v31  ;;  %4268 = vmatpush3.bf16.msra.mxu1 %v4528_v34  ;;  %v4534_v34 = vld [vmem:[%s5333_s22] ss:$16 sps:$4 sm:$0xff]  }
 0x144   : > { %4269 = vmatprep.subr.bf16.mxu1 %v4530_v37  ;;  %v4542_v37 = vld [vmem:[%s5333_s22 + $0xc] ss:$16 sps:$4 sm:$0xff]  }
 0x146   : > { %4248 = vmatpush3.bf16.msra.mxu0 %v4525_v32 }
 0x147   : > { %4249 = vmatprep.subr.bf16.mxu0 %v4527_v35  ;;  %4270 = vmatpush3.bf16.msra.mxu1 %v4531_v39  ;;  %v4536_v35 = vld [vmem:[%s5333_s22 + $0x4] ss:$16 sps:$4 sm:$0xff]   ;;  %v4537_v39 = vld [vmem:[%s5333_s22 + $0x20] ss:$16 sps:$4 sm:$0xff]  }
 0x148   : > { %4271 = vmatprep.subr.bf16.mxu1 %v4532_v41 }
 0x14a   : > { %4250 = vmatpush3.bf16.msra.mxu0 %v4529_v36  ;;  %v4539_v36 = vld [vmem:[%s5333_s22 + $0x24] ss:$16 sps:$4 sm:$0xff]  }
 0x14b   : > { %4272 = vmatpush3.bf16.msra.mxu1 %v4533_v42  ;;  %4295 = vmatprep.subr.bf16.mxu0 %v4689_v43 }
 0x14c   : > { %4301 = vmatprep.subr.bf16.mxu1 %v4689_v43 }
 0x14d   : > { %2468 = vmatmul.mubr.bf16.vlgmr.msra.gmra.mrb[8].mxu0 %v5381_v38 }
 0x14e   : > { %2508 = vmatmul.mubr.bf16.vlgmr.msra.gmra.mrb[8].mxu1 %v5384_v40  ;;  %4297 = vmatprep.mubr.msk.bf16.mxu0 %vm4690_vm0, %v4689_v43 }
 0x14f   : > { %4303 = vmatprep.mubr.msk.bf16.mxu1 %vm4690_vm0, %v4689_v43 }
 0x1df   : > { %v4163_v38 = vpop.f32.mrb[0].mxu0 }
 0x1e0   : > { %v4185_v44 = vpop.f32.mrb[0].mxu1  ;;  %v4164_v46 = vpop.f32.mrb[1].mxu0 }
 0x1e1   : > { %v4186_v47 = vpop.f32.mrb[1].mxu1  ;;  %v4165_v48 = vadd.f32 %v4164_v46, %v4163_v38  ;;  %v4166_v40 = vpop.f32.mrb[2].mxu0  ;;  %v4545_v46 = vld [vmem:[%s5333_s22 + $0x2c] ss:$16 sps:$4 sm:$0xff]  }
 0x1e2   : > { %v4187_v49 = vadd.f32 %v4186_v47, %v4185_v44  ;;  %v4188_v50 = vpop.f32.mrb[2].mxu1  ;;  %v4167_v51 = vpop.f32.mrb[3].mxu0  ;;  %v4540_v44 = vld [vmem:[%s5333_s22 + $0x8] ss:$16 sps:$4 sm:$0xff]  }
 0x1e3   : > { %v4189_v52 = vpop.f32.mrb[3].mxu1  ;;  %v1784_v53 = vadd.f32 %v4165_v48, %v3993_v45  ;;  %v4543_v47 = vld [vmem:[%s5333_s22 + $0x28] ss:$16 sps:$4 sm:$0xff]   ;;  %v4692_v48 = vmov 0  }
 0x1e5   : > { %v1824_v54 = vadd.f32 %v4187_v49, %v1784_v53 }
 0x1e7   : > { %v5484_v6 = vpack.c.bf16 %v1824_v54, %v1824_v54 }
 0x1ff   : > { %v4207_v55 = vpop.f32.mrb[4].mxu0 }
 0x200   : > { %v4229_v56 = vpop.f32.mrb[4].mxu1  ;;  %v4208_v58 = vpop.f32.mrb[5].mxu0 }
 0x201   : > { %v4209_v59 = vadd.f32 %v4208_v58, %v4207_v55  ;;  %v4230_v60 = vpop.f32.mrb[5].mxu1  ;;  %v4210_v61 = vpop.f32.mrb[6].mxu0 }
 0x202   : > { %v4231_v62 = vadd.f32 %v4230_v60, %v4229_v56  ;;  %v4232_v63 = vpop.f32.mrb[6].mxu1  ;;  %v4211_v0 = vpop.f32.mrb[7].mxu0 }
 0x203   : > { %v2127_v1 = vadd.f32 %v4209_v59, %v4026_v57  ;;  %v4233_v2 = vpop.f32.mrb[7].mxu1 }
 0x205   : > { %v2167_v3 = vadd.f32 %v4231_v62, %v2127_v1 }
 0x207   : > { %v5478_v4 = vpack.c.bf16 %v2167_v3, %v2167_v3 }
 0x209   : > { %2781 = vrot.lane.b32.xlu1 %v5478_v4, %s4691_s29  ;;  %v2529_v5 = vsel %vm2524_vm1, %v5478_v4, 0 }
 0x20a   : > { %4296 = vmatpush3.bf16.xpose.msra.mxu0 %v2529_v5 }
 0x20b   : > { %2687 = vmatprep.subr.bf16.mxu0 %v4536_v35 }
 0x20d   : > { %2778 = vrot.lane.b32.xlu1 %v5484_v6, %s4691_s29 }
 0x211   : > { %4298 = vmatmul.mubr.msk.bf16.vlgmr.msra.gmra.mrb[12].mxu0 %vm2524_vm1, %v5484_v6 }
 0x212   : > { %2688 = vmatpush1.bf16.msra.mxu0 %v4534_v34  ;;  %2719 = vmatprep.mubr.bf16.mxu0 %v4692_v48 }
 0x213   : > { %2689 = vmatprep.subr.bf16.mxu0 %v4539_v36 }
 0x216   : > { %2690 = vmatpush1.bf16.msra.mxu0 %v4537_v39  ;;  %v2633_v39 = vld [vmem:[#allocation2 + $0x10] sm:$0xff] }
 0x217   : > { %4307 = vmatprep.subr.bf16.mxu0 %v4689_v43 }
 0x220   : > { %v4251_v7 = vpop.f32.mrb[8].mxu0 }
 0x221   : > { %v4252_v8 = vpop.f32.mrb[9].mxu0  ;;  %v4273_v14 = vpop.f32.mrb[8].mxu1 }
 0x222   : > { %v4253_v9 = vadd.f32 %v4252_v8, %v4251_v7  ;;  %v4254_v10 = vpop.f32.mrb[10].mxu0  ;;  %v4274_v15 = vpop.f32.mrb[9].mxu1 }
 0x223   : > { %v4255_v12 = vpop.f32.mrb[11].mxu0  ;;  %v4275_v16 = vadd.f32 %v4274_v15, %v4273_v14  ;;  %v4276_v17 = vpop.f32.mrb[10].mxu1  ;;  %v4546_v15 = vld [vmem:[%s5333_s22 + $0x40] ss:$16 sps:$4 sm:$0xff]  }
 0x224   : > { %v2470_v13 = vadd.f32 %v4253_v9, %v4059_v11  ;;  %v4277_v18 = vpop.f32.mrb[11].mxu1  ;;  %v4551_v17 = vld [vmem:[%s5333_s22 + $0x64] ss:$16 sps:$4 sm:$0xff]  }
 0x225   : > { %v4554_v18 = vld [vmem:[%s5333_s22 + $0x4c] ss:$16 sps:$4 sm:$0xff]  }
 0x226   : > { %v2510_v19 = vadd.f32 %v4275_v16, %v2470_v13  ;;  %v4548_v16 = vld [vmem:[%s5333_s22 + $0x44] ss:$16 sps:$4 sm:$0xff]  }
 0x228   : > { %v5495_v20 = vpack.c.bf16 %v2510_v19, %v2510_v19  ;;  %v4549_v19 = vld [vmem:[%s5333_s22 + $0x60] ss:$16 sps:$4 sm:$0xff]  }
 0x22a   : > { %v2589_v21 = vsel %vm2587_vm2, %v5495_v20, 0 }
 0x22b   : > { %4302 = vmatpush3.bf16.msra.mxu1 %v2589_v21 }
 0x22c   : > { %2728 = vmatprep.subr.bf16.mxu1 %v4542_v37  ;;  %v2631_v37 = vld [vmem:[#allocation2] sm:$0xff] }
 0x27b   : > { %v2782_v49 = vpop.permute.xlu1 %2781 }
 0x27c   : > { %v2787_v53 = vsel %vm2524_vm1, %v2782_v49, 0 }
 0x27f   : > { %v2779_v55 = vpop.permute.xlu1 %2778 }
 0x2e4   : > { %v2565_v23 = vpop.f32.mrb[12].mxu0 }
 0x2e5   : > { %v2566_v24 = vadd.f32 %v5504_v22, %v2565_v23  ;;  %v4299_v25 = vpop.f32.mrb[13].mxu0 }
 0x2e6   : > { %v2568_v26 = vpop.f32.mrb[14].mxu0  ;;  %v4552_v25 = vld [vmem:[%s5333_s22 + $0x48] ss:$16 sps:$4 sm:$0xff]  }
 0x2e7   : > { %v4300_v27 = vpop.f32.mrb[15].mxu0  ;;  %v2572_v28 = vsel %vm2571_vm3, %v2566_v24, -inf }
 0x2e8   : > { %2573 = vmax.xlane.f32.xlu0 %v2572_v28  ;;  %v4557_v27 = vld [vmem:[%s5333_s22 + $0x6c] ss:$16 sps:$4 sm:$0xff]   ;;  %v4555_v28 = vld [vmem:[%s5333_s22 + $0x68] ss:$16 sps:$4 sm:$0xff]  }
 0x375   : > { %v2574_v29 = vpop.xlane.xlu0 %2573 }
 0x376   : > { %v2575_v30 = vsub.f32 %v2566_v24, %v2574_v29 }
 0x378   : > { %v2576_v31 = vmul.f32 1.442695, %v2575_v30 }
 0x37a   : > { %4582 = vpow2.f32 %v2576_v31 }
 0x384   : > { %v4583_v32 = vpop.eup %4582 }
 0x385   : > { %v2578_v33 = vsel %vm2571_vm3, %v4583_v32, 0.0 }
 0x386   : > { %2579 = vadd.xlane.f32.xlu0 %v2578_v33 }
 0x413   : > { %v2580_v41 = vpop.xlane.xlu0 %2579 }
 0x414   : > { %4584 = vrcp.f32 %v2580_v41  ;;  %v2632_v41 = vld [vmem:[#allocation2 + $0x8] sm:$0xff] }
 0x41e   : > { %v4585_v42 = vpop.eup %4584 }
 0x41f   : > { %v2582_v38 = vmul.f32 %v4585_v42, %v4583_v32  ;;  %v2634_v42 = vld [vmem:[#allocation2 + $0x18] sm:$0xff] }
 0x421   : > { %v2583_v45 = vpack.c.bf16 %v2582_v38, %v2582_v38 }
 0x423   : > { %4304 = vmatmul.mubr.msk.bf16.vlgmr.msra.gmra.mrb[12].mxu1 %vm2571_vm3, %v2583_v45 }
 0x424   : > { %2729 = vmatpush1.bf16.msra.mxu1 %v4540_v44  ;;  %2760 = vmatprep.mubr.bf16.mxu1 %v4692_v48 }
 0x425   : > { %2730 = vmatprep.subr.bf16.mxu1 %v4545_v46 }
 0x428   : > { %2731 = vmatpush1.bf16.msra.mxu1 %v4543_v47 }
 0x429   : > { %4313 = vmatprep.subr.bf16.mxu1 %v4689_v43 }
 0x4f6   : > { %v2625_v40 = vpop.f32.mrb[12].mxu1 }
 0x4f7   : > { %v2635_v50 = vpack.c.bf16 %v2625_v40, %v2625_v40  ;;  %v4305_v51 = vpop.f32.mrb[13].mxu1 }
 0x4f8   : > { %v2628_v52 = vpop.f32.mrb[14].mxu1 }
 0x4f9   : > { %v4306_v54 = vpop.f32.mrb[15].mxu1  ;;  %4103 = vmatmul.mubr.msk.bf16.vlgmr.msra.gmra.mrb[16].mxu0 %vm2524_vm1, %v2635_v50  ;;  %4104 = vmatmul.mubr.msk.bf16.vlgmr.msra.gmra.mrb[16].mxu1 %vm2524_vm1, %v2635_v50 }
 0x4fa   : > { %4308 = vmatpush3.bf16.xpose.msra.mxu0 %v2787_v53  ;;  %4309 = vmatprep.mubr.msk.bf16.mxu0 %vm4690_vm0, %v4689_v43 }
 0x4fb   : > { %4315 = vmatprep.mubr.msk.bf16.mxu1 %vm4690_vm0, %v4689_v43  ;;  %2946 = vmatprep.subr.bf16.mxu0 %v4548_v16  ;;  %v4564_v16 = vld [vmem:[%s5333_s22 + $0x88] ss:$16 sps:$4 sm:$0xff]  }
 0x501   : > { %4310 = vmatmul.mubr.msk.bf16.vlgmr.msra.gmra.mrb[20].mxu0 %vm2524_vm1, %v2779_v55 }
 0x502   : > { %2978 = vmatprep.mubr.bf16.mxu0 %v4692_v48  ;;  %2947 = vmatpush1.bf16.msra.mxu0 %v4546_v15 }
 0x503   : > { %2948 = vmatprep.subr.bf16.mxu0 %v4551_v17 }
 0x506   : > { %2949 = vmatpush1.bf16.msra.mxu0 %v4549_v19  ;;  %v4567_v19 = vld [vmem:[%s5333_s22 + $0xa8] ss:$16 sps:$4 sm:$0xff]  }
 0x507   : > { %4319 = vmatprep.subr.bf16.mxu0 %v4689_v43 }
 0x5cc   : > { %v5531_v56 = vpop.f32.mrb[16].mxu0  ;;  %v5533_v57 = vpop.f32.mrb[16].mxu1 }
 0x5cd   : > { %v5535_v58 = vpop.f32.mrb[17].mxu0  ;;  %v5537_v59 = vpop.f32.mrb[17].mxu1  ;;  %v2769_v38 = vadd.f32 %v5531_v56, %v2631_v37  ;;  %v2771_v44 = vadd.f32 %v5533_v57, %v2633_v39 }
 0x5ce   : > { %v2725_v60 = vpop.f32.mrb[18].mxu0  ;;  %v2766_v61 = vpop.f32.mrb[18].mxu1  ;;  %v2770_v45 = vadd.f32 %v5535_v58, %v2632_v41  ;;  %v2772_v46 = vadd.f32 %v5537_v59, %v2634_v42 }
 0x5cf   : > { %v2726_v62 = vpop.f32.mrb[19].mxu0  ;;  %v2767_v63 = vpop.f32.mrb[19].mxu1 }
 0x5d4   : > { %v2823_v0 = vpop.f32.mrb[20].mxu0 }
 0x5d5   : > { %v2824_v1 = vadd.f32 %v5504_v22, %v2823_v0  ;;  %v4311_v2 = vpop.f32.mrb[21].mxu0 }
 0x5d6   : > { %v2826_v3 = vpop.f32.mrb[22].mxu0 }
 0x5d7   : > { %v4312_v5 = vpop.f32.mrb[23].mxu0  ;;  %v2829_v7 = vsel %vm2571_vm3, %v2824_v1, -inf }
 0x5d8   : > { %2830 = vmax.xlane.f32.xlu0 %v2829_v7 }
 0x5ee   : > { %2842 = vrot.lane.b32.xlu0 %v5495_v20, %s4691_s29 }
 0x5f2   : > { %3038 = vrot.lane.b32.xlu0 %v5478_v4, %s4693_s28 }
 0x5f6   : > { %3036 = vrot.lane.b32.xlu0 %v5484_v6, %s4693_s28 }
 0x665   : > { %v2831_v8 = vpop.xlane.xlu0 %2830 }
 0x666   : > { %v2832_v9 = vsub.f32 %v2824_v1, %v2831_v8  ;;  %v4558_v8 = vld [vmem:[%s5333_s22 + $0x80] ss:$16 sps:$4 sm:$0xff]  }
 0x668   : > { %v2833_v10 = vmul.f32 1.442695, %v2832_v9  ;;  %v4560_v9 = vld [vmem:[%s5333_s22 + $0x84] ss:$16 sps:$4 sm:$0xff]  }
 0x669   : > { %v2843_v11 = vpop.permute.xlu0 %2842 }
 0x66a   : > { %4586 = vpow2.f32 %v2833_v10  ;;  %v2848_v12 = vsel %vm2587_vm2, %v2843_v11, 0  ;;  %v4563_v10 = vld [vmem:[%s5333_s22 + $0xa4] ss:$16 sps:$4 sm:$0xff]   ;;  %v4561_v11 = vld [vmem:[%s5333_s22 + $0xa0] ss:$16 sps:$4 sm:$0xff]  }
 0x66b   : > { %4314 = vmatpush3.bf16.msra.mxu1 %v2848_v12 }
 0x66c   : > { %2987 = vmatprep.subr.bf16.mxu1 %v4554_v18  ;;  %v4569_v18 = vld [vmem:[%s5333_s22 + $0xac] ss:$16 sps:$4 sm:$0xff]  }
 0x66d   : > { %v3039_v29 = vpop.permute.xlu0 %3038 }
 0x66e   : > { %v3044_v34 = vsel %vm2524_vm1, %v3039_v29, 0 }
 0x671   : > { %v3037_v36 = vpop.permute.xlu0 %3036 }
 0x674   : > { %v4587_v13 = vpop.eup %4586 }
 0x675   : > { %v2835_v14 = vsel %vm2571_vm3, %v4587_v13, 0.0 }
 0x676   : > { %2836 = vadd.xlane.f32.xlu1 %v2835_v14 }
 0x703   : > { %v2837_v21 = vpop.xlane.xlu1 %2836 }
 0x704   : > { %4588 = vrcp.f32 %v2837_v21 }
 0x70e   : > { %v4589_v23 = vpop.eup %4588 }
 0x70f   : > { %v2839_v24 = vmul.f32 %v4589_v23, %v4587_v13  ;;  %v4566_v13 = vld [vmem:[%s5333_s22 + $0x8c] ss:$16 sps:$4 sm:$0xff]  }
 0x711   : > { %v2840_v26 = vpack.c.bf16 %v2839_v24, %v2839_v24 }
 0x713   : > { %4316 = vmatmul.mubr.msk.bf16.vlgmr.msra.gmra.mrb[20].mxu1 %vm2571_vm3, %v2840_v26 }
 0x714   : > { %2988 = vmatpush1.bf16.msra.mxu1 %v4552_v25  ;;  %3019 = vmatprep.mubr.bf16.mxu1 %v4692_v48 }
 0x715   : > { %2989 = vmatprep.subr.bf16.mxu1 %v4557_v27 }
 0x718   : > { %2990 = vmatpush1.bf16.msra.mxu1 %v4555_v28 }
 0x719   : > { %4325 = vmatprep.subr.bf16.mxu1 %v4689_v43 }
 0x7e6   : > { %v2884_v30 = vpop.f32.mrb[20].mxu1 }
 0x7e7   : > { %v2894_v31 = vpack.c.bf16 %v2884_v30, %v2884_v30  ;;  %v4317_v32 = vpop.f32.mrb[21].mxu1 }
 0x7e8   : > { %v2887_v33 = vpop.f32.mrb[22].mxu1 }
 0x7e9   : > { %v4318_v35 = vpop.f32.mrb[23].mxu1  ;;  %4115 = vmatmul.mubr.msk.bf16.vlgmr.msra.gmra.mrb[24].mxu0 %vm2524_vm1, %v2894_v31  ;;  %4116 = vmatmul.mubr.msk.bf16.vlgmr.msra.gmra.mrb[24].mxu1 %vm2524_vm1, %v2894_v31 }
 0x7ea   : > { %4320 = vmatpush3.bf16.xpose.msra.mxu0 %v3044_v34  ;;  %4321 = vmatprep.mubr.msk.bf16.mxu0 %vm4690_vm0, %v4689_v43 }
 0x7eb   : > { %4327 = vmatprep.mubr.msk.bf16.mxu1 %vm4690_vm0, %v4689_v43  ;;  %3202 = vmatprep.subr.bf16.mxu0 %v4560_v9 }
 0x7f1   : > { %4322 = vmatmul.mubr.msk.bf16.vlgmr.msra.gmra.mrb[28].mxu0 %vm2524_vm1, %v3037_v36 }
 0x7f2   : > { %3234 = vmatprep.mubr.bf16.mxu0 %v4692_v48  ;;  %3203 = vmatpush1.bf16.msra.mxu0 %v4558_v8 }
 0x7f3   : > { %3204 = vmatprep.subr.bf16.mxu0 %v4563_v10 }
 0x7f6   : > { %3205 = vmatpush1.bf16.msra.mxu0 %v4561_v11 }
 0x7f7   : > { %4331 = vmatprep.subr.bf16.mxu0 %v4689_v43 }
 0x8bc   : > { %v2980_v47 = vpop.f32.mrb[24].mxu0  ;;  %v3021_v49 = vpop.f32.mrb[24].mxu1 }
 0x8bd   : > { %v5574_v40 = vadd.f32 %v2980_v47, %v2769_v38  ;;  %v5576_v50 = vadd.f32 %v3021_v49, %v2771_v44  ;;  %v2982_v51 = vpop.f32.mrb[25].mxu0  ;;  %v3023_v52 = vpop.f32.mrb[25].mxu1 }
 0x8be   : > { %v5578_v53 = vadd.f32 %v2982_v51, %v2770_v45  ;;  %v5580_v54 = vadd.f32 %v3023_v52, %v2772_v46  ;;  %v2984_v55 = vpop.f32.mrb[26].mxu0  ;;  %v3025_v56 = vpop.f32.mrb[26].mxu1 }
 0x8bf   : > { %v2985_v60 = vpop.f32.mrb[27].mxu0  ;;  %v3026_v57 = vpop.f32.mrb[27].mxu1  ;;  %v4570_v55 = vld [vmem:[%s5333_s22 + $0xc0] ss:$16 sps:$4 sm:$0xff]   ;;  %v4572_v56 = vld [vmem:[%s5333_s22 + $0xc4] ss:$16 sps:$4 sm:$0xff]  }
 0x8c0   : > { %v4575_v60 = vld [vmem:[%s5333_s22 + $0xcc] ss:$16 sps:$4 sm:$0xff]   ;;  %v4578_v57 = vld [vmem:[%s5333_s22 + $0xe4] ss:$16 sps:$4 sm:$0xff]  }
 0x8c4   : > { %v3080_v61 = vpop.f32.mrb[28].mxu0 }
 0x8c5   : > { %v3081_v58 = vadd.f32 %v5504_v22, %v3080_v61  ;;  %v4323_v59 = vpop.f32.mrb[29].mxu0 }
 0x8c6   : > { %v3083_v62 = vpop.f32.mrb[30].mxu0 }
 0x8c7   : > { %v4324_v63 = vpop.f32.mrb[31].mxu0  ;;  %v3086_v0 = vsel %vm2571_vm3, %v3081_v58, -inf  ;;  %v4573_v62 = vld [vmem:[%s5333_s22 + $0xc8] ss:$16 sps:$4 sm:$0xff]  }
 0x8c8   : > { %3087 = vmax.xlane.f32.xlu0 %v3086_v0  ;;  %v4581_v0 = vld [vmem:[%s5333_s22 + $0xec] ss:$16 sps:$4 sm:$0xff]  }
 0x955   : > { %v3088_v1 = vpop.xlane.xlu0 %3087 }
 0x956   : > { %v3089_v2 = vsub.f32 %v3081_v58, %v3088_v1  ;;  %v4579_v1 = vld [vmem:[%s5333_s22 + $0xe8] ss:$16 sps:$4 sm:$0xff]  }
 0x958   : > { %v3090_v3 = vmul.f32 1.442695, %v3089_v2 }
 0x95a   : > { %4590 = vpow2.f32 %v3090_v3 }
 0x964   : > { %v4591_v5 = vpop.eup %4590 }
 0x965   : > { %v3092_v7 = vsel %vm2571_vm3, %v4591_v5, 0.0 }
 0x966   : > { %3093 = vadd.xlane.f32.xlu1 %v3092_v7 }
 0x977   : > { %3098 = vrot.lane.b32.xlu1 %v5495_v20, %s4693_s28 }
 0x97b   : > { %3294 = vrot.lane.b32.xlu1 %v5478_v4, %s4694_s18 }
 0x97f   : > { %3292 = vrot.lane.b32.xlu1 %v5484_v6, %s4694_s18 }
 0x9f3   : > { %v3094_v12 = vpop.xlane.xlu1 %3093 }
 0x9f4   : > { %4592 = vrcp.f32 %v3094_v12 }
 0x9f7   : > { %v3099_v4 = vpop.permute.xlu1 %3098 }
 0x9f8   : > { %v3104_v14 = vsel %vm2587_vm2, %v3099_v4, 0 }
 0x9f9   : > { %4326 = vmatpush3.bf16.msra.mxu1 %v3104_v14 }
 0x9fa   : > { %3243 = vmatprep.subr.bf16.mxu1 %v4566_v13 }
 0x9fb   : > { %v3295_v21 = vpop.permute.xlu1 %3294 }
 0x9fc   : > { %v3300_v27 = vsel %vm2524_vm1, %v3295_v21, 0  ;;  %v3556_v21 = vld [vmem:[%s5761_s20] sm:$0xf] (!%p4141_p8) }
 0x9fe   : > { %v4593_v6 = vpop.eup %4592 }
 0x9ff   : > { %v3096_v15 = vmul.f32 %v4593_v6, %v4591_v5  ;;  %v3293_v29 = vpop.permute.xlu1 %3292 }
 0xa01   : > { %v3097_v17 = vpack.c.bf16 %v3096_v15, %v3096_v15 }
 0xa03   : > { %4328 = vmatmul.mubr.msk.bf16.vlgmr.msra.gmra.mrb[28].mxu1 %vm2571_vm3, %v3097_v17 }
 0xa04   : > { %3244 = vmatpush1.bf16.msra.mxu1 %v4564_v16  ;;  %3275 = vmatprep.mubr.bf16.mxu1 %v4692_v48 }
 0xa05   : > { %3245 = vmatprep.subr.bf16.mxu1 %v4569_v18  ;;  %v3558_v18 = vlaneseq (!%p4141_p8) }
 0xa08   : > { %3246 = vmatpush1.bf16.msra.mxu1 %v4567_v19  ;;  %v3559_v19 = vshrl.u32 (!%p4141_p8), %v3558_v18, 7 }
 0xa09   : > { %4337 = vmatprep.subr.bf16.mxu1 %v4689_v43 }
 0xad6   : > { %v3140_v23 = vpop.f32.mrb[28].mxu1 }
 0xad7   : > { %v3150_v24 = vpack.c.bf16 %v3140_v23, %v3140_v23  ;;  %v4329_v25 = vpop.f32.mrb[29].mxu1 }
 0xad8   : > { %v3143_v26 = vpop.f32.mrb[30].mxu1  ;;  %v5641_v25 = vsub.s32 (!%p4141_p8), 1, %v3559_v19 }
 0xad9   : > { %v4330_v28 = vpop.f32.mrb[31].mxu1  ;;  %4127 = vmatmul.mubr.msk.bf16.vlgmr.msra.gmra.mrb[32].mxu0 %vm2524_vm1, %v3150_v24  ;;  %4128 = vmatmul.mubr.msk.bf16.vlgmr.msra.gmra.mrb[32].mxu1 %vm2524_vm1, %v3150_v24  ;;  %v5639_v24 = vsub.s32 (!%p4141_p8), 0, %v3559_v19  ;;  %v5643_v26 = vsub.s32 (!%p4141_p8), 2, %v3559_v19 }
 0xada   : > { %4332 = vmatpush3.bf16.xpose.msra.mxu0 %v3300_v27  ;;  %4333 = vmatprep.mubr.msk.bf16.mxu0 %vm4690_vm0, %v4689_v43  ;;  %v5645_v27 = vsub.s32 (!%p4141_p8), 3, %v3559_v19 }
 0xadb   : > { %4339 = vmatprep.mubr.msk.bf16.mxu1 %vm4690_vm0, %v4689_v43  ;;  %3458 = vmatprep.subr.bf16.mxu0 %v4572_v56 }
 0xae1   : > { %4334 = vmatmul.mubr.msk.bf16.vlgmr.msra.gmra.mrb[36].mxu0 %vm2524_vm1, %v3293_v29 }
 0xae2   : > { %3490 = vmatprep.mubr.bf16.mxu0 %v4692_v48  ;;  %3459 = vmatpush1.bf16.msra.mxu0 %v4570_v55 }
 0xae3   : > { %3460 = vmatprep.subr.bf16.mxu0 %v4578_v57 }
 0xbac   : > { %v3236_v30 = vpop.f32.mrb[32].mxu0  ;;  %v3277_v31 = vpop.f32.mrb[32].mxu1 }
 0xbad   : > { %v3284_v32 = vadd.f32 %v3236_v30, %v5574_v40  ;;  %v3286_v33 = vadd.f32 %v3277_v31, %v5576_v50  ;;  %v3238_v34 = vpop.f32.mrb[33].mxu0  ;;  %v3279_v35 = vpop.f32.mrb[33].mxu1  ;;  %v3561_v31 = vrot.slane (!%p4141_p8), %v3556_v21, %v5639_v24 }
 0xbae   : > { %v3285_v36 = vadd.f32 %v3238_v34, %v5578_v53  ;;  %v3287_v37 = vadd.f32 %v3279_v35, %v5580_v54  ;;  %v3240_v39 = vpop.f32.mrb[34].mxu0  ;;  %v3281_v41 = vpop.f32.mrb[34].mxu1  ;;  %v3573_v34 = vrot.slane (!%p4141_p8), %v3556_v21, %v5645_v27  ;;  %v3582_v35 = vld [vmem:[%s5305_s21] sm:$0xff] (!%p4141_p8) }
 0xbaf   : > { %v3241_v43 = vpop.f32.mrb[35].mxu0  ;;  %v3282_v42 = vpop.f32.mrb[35].mxu1 }
 0xbb4   : > { %v3336_v38 = vpop.f32.mrb[36].mxu0 }
 0xbb5   : > { %v3337_v44 = vadd.f32 %v5504_v22, %v3336_v38  ;;  %v4335_v45 = vpop.f32.mrb[37].mxu0  ;;  %v3585_v38 = vld [vmem:[%s5305_s21 + $0x18] sm:$0xff] (!%p4141_p8) }
 0xbb6   : > { %v3339_v46 = vpop.f32.mrb[38].mxu0 }
 0xbb7   : > { %v4336_v47 = vpop.f32.mrb[39].mxu0  ;;  %v3342_v49 = vsel %vm2571_vm3, %v3337_v44, -inf }
 0xbb8   : > { %3343 = vmax.xlane.f32.xlu0 %v3342_v49 }
 0xbce   : > { %3354 = vrot.lane.b32.xlu0 %v5495_v20, %s4694_s18  ;;  %v4576_v20 = vld [vmem:[%s5333_s22 + $0xe0] ss:$16 sps:$4 sm:$0xff]  }
 0xbcf   : > { %3461 = vmatpush1.bf16.msra.mxu0 %v4576_v20 }
 0xc45   : > { %v3344_v40 = vpop.xlane.xlu0 %3343 }
 0xc46   : > { %v3345_v50 = vsub.f32 %v3337_v44, %v3344_v40 }
 0xc48   : > { %v3346_v51 = vmul.f32 1.442695, %v3345_v50 }
 0xc49   : > { %v3355_v52 = vpop.permute.xlu0 %3354 }
 0xc4a   : > { %4594 = vpow2.f32 %v3346_v51  ;;  %v3360_v22 = vsel %vm2587_vm2, %v3355_v52, 0 }
 0xc4b   : > { %4338 = vmatpush3.bf16.msra.mxu1 %v3360_v22 }
 0xc4c   : > { %3499 = vmatprep.subr.bf16.mxu1 %v4575_v60 }
 0xc54   : > { %v4595_v53 = vpop.eup %4594 }
 0xc55   : > { %v3348_v54 = vsel %vm2571_vm3, %v4595_v53, 0.0 }
 0xc56   : > { %3349 = vadd.xlane.f32.xlu1 %v3348_v54 }
 0xce3   : > { %v3350_v61 = vpop.xlane.xlu1 %3349 }
 0xce4   : > { %4596 = vrcp.f32 %v3350_v61 }
 0xcee   : > { %v4597_v58 = vpop.eup %4596 }
 0xcef   : > { %v3352_v59 = vmul.f32 %v4597_v58, %v4595_v53 }
 0xcf1   : > { %v3353_v63 = vpack.c.bf16 %v3352_v59, %v3352_v59 }
 0xcf3   : > { %4340 = vmatmul.mubr.msk.bf16.vlgmr.msra.gmra.mrb[36].mxu1 %vm2571_vm3, %v3353_v63 }
 0xcf4   : > { %3500 = vmatpush1.bf16.msra.mxu1 %v4573_v62  ;;  %3531 = vmatprep.mubr.bf16.mxu1 %v4692_v48 }
 0xcf5   : > { %3501 = vmatprep.subr.bf16.mxu1 %v4581_v0 }
 0xcf8   : > { %3502 = vmatpush1.bf16.msra.mxu1 %v4579_v1  ;;  %v3617_v1 = vld [vmem:[%s5762_s16] sm:$0xf] (!%p4141_p8) }
 0xdc6   : > { %v3396_v2 = vpop.f32.mrb[36].mxu1 }
 0xdc7   : > { %v3406_v3 = vpack.c.bf16 %v3396_v2, %v3396_v2  ;;  %v4341_v5 = vpop.f32.mrb[37].mxu1  ;;  %v3643_v2 = vld [vmem:[%s5763_s30] sm:$0xf] (!%p4141_p8) }
 0xdc8   : > { %v3399_v7 = vpop.f32.mrb[38].mxu1  ;;  %v3626_v5 = vrot.slane (!%p4141_p8), %v3617_v1, %v5641_v25 }
 0xdc9   : > { %v4342_v8 = vpop.f32.mrb[39].mxu1  ;;  %4139 = vmatmul.mubr.msk.bf16.vlgmr.msra.gmra.mrb[40].mxu0 %vm2524_vm1, %v3406_v3  ;;  %4140 = vmatmul.mubr.msk.bf16.vlgmr.msra.gmra.mrb[40].mxu1 %vm2524_vm1, %v3406_v3  ;;  %v3622_v3 = vrot.slane (!%p4141_p8), %v3617_v1, %v5639_v24  ;;  %v3630_v7 = vrot.slane (!%p4141_p8), %v3617_v1, %v5643_v26 }
 0xdca   : > { %v3634_v8 = vrot.slane (!%p4141_p8), %v3617_v1, %v5645_v27 }
 0xe9a   : > { %3551 = sbr.rel (%p4141_p8) target bundleno = 4081 (0xff1), region = 199 }
 0xe9c   : > { %v3492_v9 = vpop.f32.mrb[40].mxu0  ;;  %v3533_v10 = vpop.f32.mrb[40].mxu1 }
 0xe9d   : > { %v3540_v11 = vadd.f32 %v3492_v9, %v3284_v32  ;;  %v3542_v12 = vadd.f32 %v3533_v10, %v3286_v33  ;;  %v3494_v13 = vpop.f32.mrb[41].mxu0  ;;  %v3535_v4 = vpop.f32.mrb[41].mxu1  ;;  %v3565_v32 = vrot.slane (!%p4141_p8), %v3556_v21, %v5641_v25  ;;  %v3569_v33 = vrot.slane (!%p4141_p8), %v3556_v21, %v5643_v26 }
 0xe9e   : > { %v3541_v14 = vadd.f32 %v3494_v13, %v3285_v36  ;;  %v3543_v6 = vadd.f32 %v3535_v4, %v3287_v37  ;;  %v3496_v48 = vpop.f32.mrb[42].mxu0  ;;  %v3537_v15 = vpop.f32.mrb[42].mxu1  ;;  %v3583_v36 = vld [vmem:[%s5305_s21 + $0x8] sm:$0xff] (!%p4141_p8)  ;;  %v3584_v37 = vld [vmem:[%s5305_s21 + $0x10] sm:$0xff] (!%p4141_p8)  ;;  %v3648_v10 = vrot.slane (!%p4141_p8), %v3643_v2, %v5639_v24  ;;  %v3660_v13 = vrot.slane (!%p4141_p8), %v3643_v2, %v5645_v27 }
 0xe9f   : > { %3544 = vst [vmem:[#allocation2] sm:$0xff] %v3540_v11  ;;  %3546 = vst [vmem:[#allocation2 + $0x10] sm:$0xff] %v3542_v12  ;;  %v3497_v16 = vpop.f32.mrb[43].mxu0  ;;  %v3538_v17 = vpop.f32.mrb[43].mxu1  ;;  %v3652_v11 = vrot.slane (!%p4141_p8), %v3643_v2, %v5641_v25  ;;  %v3656_v12 = vrot.slane (!%p4141_p8), %v3643_v2, %v5643_v26 }
 0xea0   : > { %3545 = vst [vmem:[#allocation2 + $0x8] sm:$0xff] %v3541_v14  ;;  %3547 = vst [vmem:[#allocation2 + $0x18] sm:$0xff] %v3543_v6 }
 0xea6   : > { %v3552_v23 = vld [vmem:[#allocation2] sm:$0xff]  ;;  %v3554_v29 = vld [vmem:[#allocation2 + $0x10] sm:$0xff] }
 0xea7   : > { %v3553_v28 = vld [vmem:[#allocation2 + $0x8] sm:$0xff]  ;;  %v3555_v30 = vld [vmem:[#allocation2 + $0x18] sm:$0xff]  ;;  %v3578_v39 = vadd.f32 %v3561_v31, %v3552_v23  ;;  %v3580_v43 = vadd.f32 %v3569_v33, %v3554_v29 }
 0xea8   : > { %v3579_v41 = vadd.f32 %v3565_v32, %v3553_v28  ;;  %v3581_v42 = vadd.f32 %v3573_v34, %v3555_v30 }
 0xea9   : > { %v3586_v44 = vadd.f32 %v3582_v35, %v3578_v39  ;;  %v3588_v46 = vadd.f32 %v3584_v37, %v3580_v43 }
 0xeaa   : > { %v3587_v45 = vadd.f32 %v3583_v36, %v3579_v41  ;;  %v3589_v47 = vadd.f32 %v3585_v38, %v3581_v42 }
 0xeac   : > { %v3590_v49 = vadd.f32 %v3587_v45, %v3586_v44 }
 0xeae   : > { %v3591_v40 = vadd.f32 %v3590_v49, %v3588_v46 }
 0xeb0   : > { %v3592_v50 = vadd.f32 %v3591_v40, %v3589_v47 }
 0xeb2   : > { %3593 = vadd.xlane.f32.xlu0 %v3592_v50 }
 0xf3f   : > { %v3594_v51 = vpop.xlane.xlu0 %3593 }
 0xf40   : > { %v3596_v52 = vmul.f32 0.001953125, %v3594_v51 }
 0xf42   : > { %v3597_v22 = vsub.f32 %v3586_v44, %v3596_v52  ;;  %v3598_v53 = vsub.f32 %v3587_v45, %v3596_v52  ;;  %v3599_v54 = vsub.f32 %v3588_v46, %v3596_v52  ;;  %v3600_v55 = vsub.f32 %v3589_v47, %v3596_v52 }
 0xf44   : > { %v3601_v56 = vmul.f32 %v3597_v22, %v3597_v22  ;;  %v3602_v60 = vmul.f32 %v3598_v53, %v3598_v53  ;;  %v3603_v57 = vmul.f32 %v3599_v54, %v3599_v54  ;;  %v3604_v61 = vmul.f32 %v3600_v55, %v3600_v55 }
 0xf46   : > { %v3605_v20 = vadd.f32 %v3602_v60, %v3601_v56 }
 0xf48   : > { %v3606_v58 = vadd.f32 %v3605_v20, %v3603_v57 }
 0xf4a   : > { %v3607_v59 = vadd.f32 %v3606_v58, %v3604_v61 }
 0xf4c   : > { %3608 = vadd.xlane.f32.xlu0 %v3607_v59 }
 0xfd9   : > { %v3609_v62 = vpop.xlane.xlu0 %3608 }
 0xfda   : > { %v3610_v63 = vmul.f32 0.001953125, %v3609_v62 }
 0xfdc   : > { %v3611_v0 = vadd.f32 1e-05, %v3610_v63 }
 0xfde   : > { %4598 = vrsqrt.f32 %v3611_v0 }
 0xfe8   : > { %v4599_v9 = vpop.eup %4598 }
 0xfe9   : > { %v3613_v4 = vmul.f32 %v4599_v9, %v3597_v22  ;;  %v3614_v14 = vmul.f32 %v4599_v9, %v3598_v53  ;;  %v3615_v6 = vmul.f32 %v4599_v9, %v3599_v54  ;;  %v3616_v48 = vmul.f32 %v4599_v9, %v3600_v55 }
 0xfeb   : > { %v3639_v15 = vmul.f32 %v3622_v3, %v3613_v4  ;;  %v3640_v16 = vmul.f32 %v3626_v5, %v3614_v14  ;;  %v3641_v17 = vmul.f32 %v3630_v7, %v3615_v6  ;;  %v3642_v18 = vmul.f32 %v3634_v8, %v3616_v48 }
 0xfed   : > { %v3665_v19 = vadd.f32 %v3648_v10, %v3639_v15  ;;  %v3666_v21 = vadd.f32 %v3652_v11, %v3640_v16  ;;  %v3667_v23 = vadd.f32 %v3656_v12, %v3641_v17  ;;  %v3668_v24 = vadd.f32 %v3660_v13, %v3642_v18 }
 0xfef   : > { %3669 = vst [vmem:[%s5328_s11] sm:$0xff] %v3665_v19  ;;  %3670 = vst [vmem:[%s5328_s11 + $0x8] sm:$0xff] %v3666_v21 }
 0xff0   : > { %3671 = vst [vmem:[%s5328_s11 + $0x10] sm:$0xff] %v3667_v23  ;;  %3672 = vst [vmem:[%s5328_s11 + $0x18] sm:$0xff] %v3668_v24 }
 0xff1 PF: > { %s22_s13 = sadd.s32 1, %s4686_s13   ;;  %s5764_s21 = sld [smem:[#allocation6_spill]] }
 0xff2   : > { %p19_p9 = scmp.ge.s32.totalorder %s22_s13, 10   ;;  %s5765_s22 = sld [smem:[#allocation15_spill]] }
 0xff3   : > { %s5766_s23 = sld [smem:[#allocation7_spill]]  ;;  %s5767_s24 = sld [smem:[#allocation14_spill]] }
 0xff4   : > { %s5768_s25 = sld [smem:[#allocation8_spill]]  ;;  %s5769_s26 = sld [smem:[#allocation13_spill]] }
 0xff5   : > { %s5770_s27 = sld [smem:[#allocation9_spill]]  ;;  %s5771_s28 = sld [smem:[#allocation10_spill]] }
 0xff6   : > { %s5772_s29 = sld [smem:[#allocation11_spill]]  ;;  %s5773_s30 = sld [smem:[#allocation12_spill]] }
 0xff7   :  { %21 = sbr.rel (!%p19_p9) target bundleno = 18 (0x12), region = 268 }

// kernel: frozen_v2_encoder_forward.17
= control target key start
LH: loop header
LB: loop body
LE: loop exit
PB: predicated region body
PF: predicated region fallthrough
CT: control target
= control target key end

     0   :  { %12 = vsyncpa [#allocation5], 0  ;;  %s3726_s24 = smov 0   ;;  %s3728_s25 = smov 0   ;;  %s4439_s0 = inlined_call_operand.vmem [shape: f32[16,512], index: 0, kind: input, shape index: {}]   ;;  %s4440_s1 = inlined_call_operand.vmem [shape: bf16[512,2048], index: 1, kind: input, shape index: {}]   ;;  %s4441_s2 = inlined_call_operand.vmem [shape: f32[1,2048], index: 2, kind: input, shape index: {}]   ;;  %s4442_s3 = inlined_call_operand.vmem [shape: bf16[2048,512], index: 3, kind: input, shape index: {}]   ;;  %s4443_s4 = inlined_call_operand.vmem [shape: f32[1,512], index: 4, kind: input, shape index: {}]   ;;  %s4444_s5 = inlined_call_operand.vmem [shape: f32[1,512], index: 5, kind: input, shape index: {}]   ;;  %s4445_s6 = inlined_call_operand.vmem [shape: f32[1,512], index: 6, kind: input, shape index: {}]   ;;  %s4446_s7 = inlined_call_operand.hbm [shape: f32[16,512], index: 7, kind: output, shape index: {}]  }
   0x1   :  { %s3730_s26 = smov 0   ;;  %s3732_s27 = smov 0  }
   0x2   :  { %s3734_s28 = smov 0  }
   0x3 LB: > { %s2873_s29 = sadd.s32 4294967295, %s3680_s28   ;;  %s27_s30 = sadd.s32 1, %s3676_s27  ;;  %s3680_s28 = sphi %s3734_s28, %s18_s28   ;;  %s3676_s27 = sphi %s3732_s27, %s4451_s27   ;;  %s3672_s26 = sphi %s3730_s26, %s4450_s26   ;;  %s3668_s25 = sphi %s3728_s25, %s4449_s25   ;;  %s3664_s24 = sphi %s3726_s24, %s4448_s24  }
   0x4   : > { %p28_p0 = scmp.ge.s32.totalorder %s27_s30, 4  ;;  %p70_p1 = scmp.ne.s32.totalorder %s3668_s25, %s3664_s24 }
   0x5   : > { %p71_p2 = scmp.eq.s32.totalorder %s3680_s28, 0  ;;  %s63_s9 = sadd.s32 1, %s3668_s25 }
   0x6   : > { %s4453_s30 = smov (%p28_p0, %s27_s30), 0  ;;  %p2876_p5 = scmp.ge.s32.totalorder %s3680_s28, 4 }
   0x7   : > { %p72_p3 = por %p71_p2, %p70_p1  ;;  %s60_s8 = ssub.s32 %s3676_s27, %s4453_s30 }
   0x8   : > { %p61_p4 = scmp.eq.s32.totalorder %s60_s8, 0  ;;  %256 = sbr.rel (%p2876_p5) target bundleno = 83 (0x53), region = 32 }
   0xa   : > { %s3762_s10 = scalar_select %p61_p4, %s3668_s25, %s63_s9  }
   0xf   : > { %259 = sbr.rel (!%p72_p3) target bundleno = 83 (0x53), region = 36  ;;  %s261_s11 = sand.u32 (%p72_p3), 1, %s3668_s25  }
  0x10   : > { %s3148_s12 = sshll.u32 (%p72_p3), %s3676_s27, 4  ;;  %s2877_s13 = sshll.u32 (%p72_p3), %s261_s11, 10 }
  0x11   : > { %s3770_s16 = scalar_lea.vmem (%p72_p3), %s4440_s1, %s3148_s12  ;;  %s3775_s17 = scalar_lea.vmem (%p72_p3), [#allocation3], %s2877_s13 }
  0x12   : > { %v279_v0 = vld [vmem:[%s3770_s16] sm:$0xff] (%p72_p3)  ;;  %v281_v1 = vld [vmem:[%s3770_s16 + $0x8] sm:$0xff] (%p72_p3) }
  0x13   : > { %v283_v2 = vld [vmem:[%s3770_s16 + $0x40] sm:$0xff] (%p72_p3)  ;;  %280 = vst [vmem:[%s3775_s17] sm:$0xff] (%p72_p3), %v279_v0  ;;  %282 = vst [vmem:[%s3775_s17 + $0x8] sm:$0xff] (%p72_p3), %v281_v1  ;;  %v285_v3 = vld [vmem:[%s3770_s16 + $0x48] sm:$0xff] (%p72_p3) }
  0x14   : > { %284 = vst [vmem:[%s3775_s17 + $0x10] sm:$0xff] (%p72_p3), %v283_v2  ;;  %v287_v4 = vld [vmem:[%s3770_s16 + $0x80] sm:$0xff] (%p72_p3)  ;;  %v289_v5 = vld [vmem:[%s3770_s16 + $0x88] sm:$0xff] (%p72_p3)  ;;  %286 = vst [vmem:[%s3775_s17 + $0x18] sm:$0xff] (%p72_p3), %v285_v3 }
  0x15   : > { %288 = vst [vmem:[%s3775_s17 + $0x20] sm:$0xff] (%p72_p3), %v287_v4  ;;  %290 = vst [vmem:[%s3775_s17 + $0x28] sm:$0xff] (%p72_p3), %v289_v5  ;;  %v291_v6 = vld [vmem:[%s3770_s16 + $0xc0] sm:$0xff] (%p72_p3)  ;;  %v293_v7 = vld [vmem:[%s3770_s16 + $0xc8] sm:$0xff] (%p72_p3) }
  0x16   : > { %v295_v8 = vld [vmem:[%s3770_s16 + $0x100] sm:$0xff]  ;;  %292 = vst [vmem:[%s3775_s17 + $0x30] sm:$0xff] %v291_v6  ;;  %294 = vst [vmem:[%s3775_s17 + $0x38] sm:$0xff] %v293_v7  ;;  %v297_v9 = vld [vmem:[%s3770_s16 + $0x108] sm:$0xff] }
  0x17   : > { %296 = vst [vmem:[%s3775_s17 + $0x40] sm:$0xff] %v295_v8  ;;  %v299_v10 = vld [vmem:[%s3770_s16 + $0x140] sm:$0xff]  ;;  %v301_v11 = vld [vmem:[%s3770_s16 + $0x148] sm:$0xff]  ;;  %298 = vst [vmem:[%s3775_s17 + $0x48] sm:$0xff] %v297_v9 }
  0x18   : > { %300 = vst [vmem:[%s3775_s17 + $0x50] sm:$0xff] %v299_v10  ;;  %302 = vst [vmem:[%s3775_s17 + $0x58] sm:$0xff] %v301_v11  ;;  %v303_v12 = vld [vmem:[%s3770_s16 + $0x180] sm:$0xff]  ;;  %v305_v13 = vld [vmem:[%s3770_s16 + $0x188] sm:$0xff] }
  0x19   : > { %v307_v14 = vld [vmem:[%s3770_s16 + $0x1c0] sm:$0xff]  ;;  %304 = vst [vmem:[%s3775_s17 + $0x60] sm:$0xff] %v303_v12  ;;  %306 = vst [vmem:[%s3775_s17 + $0x68] sm:$0xff] %v305_v13  ;;  %v309_v15 = vld [vmem:[%s3770_s16 + $0x1c8] sm:$0xff] }
  0x1a   : > { %308 = vst [vmem:[%s3775_s17 + $0x70] sm:$0xff] %v307_v14  ;;  %v311_v16 = vld [vmem:[%s3770_s16 + $0x200] sm:$0xff]  ;;  %v313_v17 = vld [vmem:[%s3770_s16 + $0x208] sm:$0xff]  ;;  %310 = vst [vmem:[%s3775_s17 + $0x78] sm:$0xff] %v309_v15 }
  0x1b   : > { %312 = vst [vmem:[%s3775_s17 + $0x80] sm:$0xff] %v311_v16  ;;  %314 = vst [vmem:[%s3775_s17 + $0x88] sm:$0xff] %v313_v17  ;;  %v315_v18 = vld [vmem:[%s3770_s16 + $0x240] sm:$0xff]  ;;  %v317_v19 = vld [vmem:[%s3770_s16 + $0x248] sm:$0xff] }
  0x1c   : > { %v319_v20 = vld [vmem:[%s3770_s16 + $0x280] sm:$0xff]  ;;  %316 = vst [vmem:[%s3775_s17 + $0x90] sm:$0xff] %v315_v18  ;;  %318 = vst [vmem:[%s3775_s17 + $0x98] sm:$0xff] %v317_v19  ;;  %v321_v21 = vld [vmem:[%s3770_s16 + $0x288] sm:$0xff] }
  0x1d   : > { %320 = vst [vmem:[%s3775_s17 + $0xa0] sm:$0xff] %v319_v20  ;;  %v323_v22 = vld [vmem:[%s3770_s16 + $0x2c0] sm:$0xff]  ;;  %v325_v23 = vld [vmem:[%s3770_s16 + $0x2c8] sm:$0xff]  ;;  %322 = vst [vmem:[%s3775_s17 + $0xa8] sm:$0xff] %v321_v21 }
  0x1e   : > { %324 = vst [vmem:[%s3775_s17 + $0xb0] sm:$0xff] %v323_v22  ;;  %326 = vst [vmem:[%s3775_s17 + $0xb8] sm:$0xff] %v325_v23  ;;  %v327_v24 = vld [vmem:[%s3770_s16 + $0x300] sm:$0xff]  ;;  %v329_v25 = vld [vmem:[%s3770_s16 + $0x308] sm:$0xff] }
  0x1f   : > { %v331_v26 = vld [vmem:[%s3770_s16 + $0x340] sm:$0xff]  ;;  %328 = vst [vmem:[%s3775_s17 + $0xc0] sm:$0xff] %v327_v24  ;;  %330 = vst [vmem:[%s3775_s17 + $0xc8] sm:$0xff] %v329_v25  ;;  %v333_v27 = vld [vmem:[%s3770_s16 + $0x348] sm:$0xff] }
  0x20   : > { %332 = vst [vmem:[%s3775_s17 + $0xd0] sm:$0xff] %v331_v26  ;;  %v335_v28 = vld [vmem:[%s3770_s16 + $0x380] sm:$0xff]  ;;  %v337_v29 = vld [vmem:[%s3770_s16 + $0x388] sm:$0xff]  ;;  %334 = vst [vmem:[%s3775_s17 + $0xd8] sm:$0xff] %v333_v27 }
  0x21   : > { %336 = vst [vmem:[%s3775_s17 + $0xe0] sm:$0xff] %v335_v28  ;;  %338 = vst [vmem:[%s3775_s17 + $0xe8] sm:$0xff] %v337_v29  ;;  %v339_v30 = vld [vmem:[%s3770_s16 + $0x3c0] sm:$0xff]  ;;  %v341_v31 = vld [vmem:[%s3770_s16 + $0x3c8] sm:$0xff] }
  0x22   : > { %v343_v32 = vld [vmem:[%s3770_s16 + $0x400] sm:$0xff]  ;;  %340 = vst [vmem:[%s3775_s17 + $0xf0] sm:$0xff] %v339_v30  ;;  %342 = vst [vmem:[%s3775_s17 + $0xf8] sm:$0xff] %v341_v31  ;;  %v345_v33 = vld [vmem:[%s3770_s16 + $0x408] sm:$0xff] }
  0x23   : > { %344 = vst [vmem:[%s3775_s17 + $0x100] sm:$0xff] %v343_v32  ;;  %v347_v34 = vld [vmem:[%s3770_s16 + $0x440] sm:$0xff]  ;;  %v349_v35 = vld [vmem:[%s3770_s16 + $0x448] sm:$0xff]  ;;  %346 = vst [vmem:[%s3775_s17 + $0x108] sm:$0xff] %v345_v33 }
  0x24   : > { %348 = vst [vmem:[%s3775_s17 + $0x110] sm:$0xff] %v347_v34  ;;  %350 = vst [vmem:[%s3775_s17 + $0x118] sm:$0xff] %v349_v35  ;;  %v351_v36 = vld [vmem:[%s3770_s16 + $0x480] sm:$0xff]  ;;  %v353_v37 = vld [vmem:[%s3770_s16 + $0x488] sm:$0xff] }
  0x25   : > { %v355_v38 = vld [vmem:[%s3770_s16 + $0x4c0] sm:$0xff]  ;;  %352 = vst [vmem:[%s3775_s17 + $0x120] sm:$0xff] %v351_v36  ;;  %354 = vst [vmem:[%s3775_s17 + $0x128] sm:$0xff] %v353_v37  ;;  %v357_v39 = vld [vmem:[%s3770_s16 + $0x4c8] sm:$0xff] }
  0x26   : > { %356 = vst [vmem:[%s3775_s17 + $0x130] sm:$0xff] %v355_v38  ;;  %v359_v40 = vld [vmem:[%s3770_s16 + $0x500] sm:$0xff]  ;;  %v361_v41 = vld [vmem:[%s3770_s16 + $0x508] sm:$0xff]  ;;  %358 = vst [vmem:[%s3775_s17 + $0x138] sm:$0xff] %v357_v39 }
  0x27   : > { %360 = vst [vmem:[%s3775_s17 + $0x140] sm:$0xff] %v359_v40  ;;  %362 = vst [vmem:[%s3775_s17 + $0x148] sm:$0xff] %v361_v41  ;;  %v363_v42 = vld [vmem:[%s3770_s16 + $0x540] sm:$0xff]  ;;  %v365_v43 = vld [vmem:[%s3770_s16 + $0x548] sm:$0xff] }
  0x28   : > { %v367_v44 = vld [vmem:[%s3770_s16 + $0x580] sm:$0xff]  ;;  %364 = vst [vmem:[%s3775_s17 + $0x150] sm:$0xff] %v363_v42  ;;  %366 = vst [vmem:[%s3775_s17 + $0x158] sm:$0xff] %v365_v43  ;;  %v369_v45 = vld [vmem:[%s3770_s16 + $0x588] sm:$0xff] }
  0x29   : > { %368 = vst [vmem:[%s3775_s17 + $0x160] sm:$0xff] %v367_v44  ;;  %v371_v46 = vld [vmem:[%s3770_s16 + $0x5c0] sm:$0xff]  ;;  %v373_v47 = vld [vmem:[%s3770_s16 + $0x5c8] sm:$0xff]  ;;  %370 = vst [vmem:[%s3775_s17 + $0x168] sm:$0xff] %v369_v45 }
  0x2a   : > { %372 = vst [vmem:[%s3775_s17 + $0x170] sm:$0xff] %v371_v46  ;;  %374 = vst [vmem:[%s3775_s17 + $0x178] sm:$0xff] %v373_v47  ;;  %v375_v48 = vld [vmem:[%s3770_s16 + $0x600] sm:$0xff]  ;;  %v377_v49 = vld [vmem:[%s3770_s16 + $0x608] sm:$0xff] }
  0x2b   : > { %v379_v50 = vld [vmem:[%s3770_s16 + $0x640] sm:$0xff]  ;;  %376 = vst [vmem:[%s3775_s17 + $0x180] sm:$0xff] %v375_v48  ;;  %378 = vst [vmem:[%s3775_s17 + $0x188] sm:$0xff] %v377_v49  ;;  %v381_v51 = vld [vmem:[%s3770_s16 + $0x648] sm:$0xff] }
  0x2c   : > { %380 = vst [vmem:[%s3775_s17 + $0x190] sm:$0xff] %v379_v50  ;;  %v383_v52 = vld [vmem:[%s3770_s16 + $0x680] sm:$0xff]  ;;  %v385_v53 = vld [vmem:[%s3770_s16 + $0x688] sm:$0xff]  ;;  %382 = vst [vmem:[%s3775_s17 + $0x198] sm:$0xff] %v381_v51 }
  0x2d   : > { %384 = vst [vmem:[%s3775_s17 + $0x1a0] sm:$0xff] %v383_v52  ;;  %386 = vst [vmem:[%s3775_s17 + $0x1a8] sm:$0xff] %v385_v53  ;;  %v387_v54 = vld [vmem:[%s3770_s16 + $0x6c0] sm:$0xff]  ;;  %v389_v55 = vld [vmem:[%s3770_s16 + $0x6c8] sm:$0xff] }
  0x2e   : > { %v391_v56 = vld [vmem:[%s3770_s16 + $0x700] sm:$0xff]  ;;  %388 = vst [vmem:[%s3775_s17 + $0x1b0] sm:$0xff] %v387_v54  ;;  %390 = vst [vmem:[%s3775_s17 + $0x1b8] sm:$0xff] %v389_v55  ;;  %v393_v57 = vld [vmem:[%s3770_s16 + $0x708] sm:$0xff] }
  0x2f   : > { %392 = vst [vmem:[%s3775_s17 + $0x1c0] sm:$0xff] %v391_v56  ;;  %v395_v58 = vld [vmem:[%s3770_s16 + $0x740] sm:$0xff]  ;;  %v397_v59 = vld [vmem:[%s3770_s16 + $0x748] sm:$0xff]  ;;  %394 = vst [vmem:[%s3775_s17 + $0x1c8] sm:$0xff] %v393_v57 }
  0x30   : > { %396 = vst [vmem:[%s3775_s17 + $0x1d0] sm:$0xff] %v395_v58  ;;  %398 = vst [vmem:[%s3775_s17 + $0x1d8] sm:$0xff] %v397_v59  ;;  %v399_v60 = vld [vmem:[%s3770_s16 + $0x780] sm:$0xff]  ;;  %v401_v61 = vld [vmem:[%s3770_s16 + $0x788] sm:$0xff] }
  0x31   : > { %v403_v62 = vld [vmem:[%s3770_s16 + $0x7c0] sm:$0xff]  ;;  %400 = vst [vmem:[%s3775_s17 + $0x1e0] sm:$0xff] %v399_v60  ;;  %402 = vst [vmem:[%s3775_s17 + $0x1e8] sm:$0xff] %v401_v61  ;;  %v405_v63 = vld [vmem:[%s3770_s16 + $0x7c8] sm:$0xff] }
  0x32   : > { %404 = vst [vmem:[%s3775_s17 + $0x1f0] sm:$0xff] %v403_v62  ;;  %v407_v0 = vld [vmem:[%s3770_s16 + $0x800] sm:$0xff]  ;;  %v409_v1 = vld [vmem:[%s3770_s16 + $0x808] sm:$0xff]  ;;  %406 = vst [vmem:[%s3775_s17 + $0x1f8] sm:$0xff] %v405_v63 }
  0x33   : > { %408 = vst [vmem:[%s3775_s17 + $0x200] sm:$0xff] %v407_v0  ;;  %410 = vst [vmem:[%s3775_s17 + $0x208] sm:$0xff] %v409_v1  ;;  %v411_v2 = vld [vmem:[%s3770_s16 + $0x840] sm:$0xff]  ;;  %v413_v3 = vld [vmem:[%s3770_s16 + $0x848] sm:$0xff] }
  0x34   : > { %v415_v4 = vld [vmem:[%s3770_s16 + $0x880] sm:$0xff]  ;;  %412 = vst [vmem:[%s3775_s17 + $0x210] sm:$0xff] %v411_v2  ;;  %414 = vst [vmem:[%s3775_s17 + $0x218] sm:$0xff] %v413_v3  ;;  %v417_v5 = vld [vmem:[%s3770_s16 + $0x888] sm:$0xff] }
  0x35   : > { %416 = vst [vmem:[%s3775_s17 + $0x220] sm:$0xff] %v415_v4  ;;  %v419_v6 = vld [vmem:[%s3770_s16 + $0x8c0] sm:$0xff]  ;;  %v421_v7 = vld [vmem:[%s3770_s16 + $0x8c8] sm:$0xff]  ;;  %418 = vst [vmem:[%s3775_s17 + $0x228] sm:$0xff] %v417_v5 }
  0x36   : > { %420 = vst [vmem:[%s3775_s17 + $0x230] sm:$0xff] %v419_v6  ;;  %422 = vst [vmem:[%s3775_s17 + $0x238] sm:$0xff] %v421_v7  ;;  %v423_v8 = vld [vmem:[%s3770_s16 + $0x900] sm:$0xff]  ;;  %v425_v9 = vld [vmem:[%s3770_s16 + $0x908] sm:$0xff] }
  0x37   : > { %v427_v10 = vld [vmem:[%s3770_s16 + $0x940] sm:$0xff]  ;;  %424 = vst [vmem:[%s3775_s17 + $0x240] sm:$0xff] %v423_v8  ;;  %426 = vst [vmem:[%s3775_s17 + $0x248] sm:$0xff] %v425_v9  ;;  %v429_v11 = vld [vmem:[%s3770_s16 + $0x948] sm:$0xff] }
  0x38   : > { %428 = vst [vmem:[%s3775_s17 + $0x250] sm:$0xff] %v427_v10  ;;  %v431_v12 = vld [vmem:[%s3770_s16 + $0x980] sm:$0xff]  ;;  %v433_v13 = vld [vmem:[%s3770_s16 + $0x988] sm:$0xff]  ;;  %430 = vst [vmem:[%s3775_s17 + $0x258] sm:$0xff] %v429_v11 }
  0x39   : > { %432 = vst [vmem:[%s3775_s17 + $0x260] sm:$0xff] %v431_v12  ;;  %434 = vst [vmem:[%s3775_s17 + $0x268] sm:$0xff] %v433_v13  ;;  %v435_v14 = vld [vmem:[%s3770_s16 + $0x9c0] sm:$0xff]  ;;  %v437_v15 = vld [vmem:[%s3770_s16 + $0x9c8] sm:$0xff] }
  0x3a   : > { %v439_v16 = vld [vmem:[%s3770_s16 + $0xa00] sm:$0xff]  ;;  %436 = vst [vmem:[%s3775_s17 + $0x270] sm:$0xff] %v435_v14  ;;  %438 = vst [vmem:[%s3775_s17 + $0x278] sm:$0xff] %v437_v15  ;;  %v441_v17 = vld [vmem:[%s3770_s16 + $0xa08] sm:$0xff] }
  0x3b   : > { %440 = vst [vmem:[%s3775_s17 + $0x280] sm:$0xff] %v439_v16  ;;  %v443_v18 = vld [vmem:[%s3770_s16 + $0xa40] sm:$0xff]  ;;  %v445_v19 = vld [vmem:[%s3770_s16 + $0xa48] sm:$0xff]  ;;  %442 = vst [vmem:[%s3775_s17 + $0x288] sm:$0xff] %v441_v17 }
  0x3c   : > { %444 = vst [vmem:[%s3775_s17 + $0x290] sm:$0xff] %v443_v18  ;;  %446 = vst [vmem:[%s3775_s17 + $0x298] sm:$0xff] %v445_v19  ;;  %v447_v20 = vld [vmem:[%s3770_s16 + $0xa80] sm:$0xff]  ;;  %v449_v21 = vld [vmem:[%s3770_s16 + $0xa88] sm:$0xff] }
  0x3d   : > { %v451_v22 = vld [vmem:[%s3770_s16 + $0xac0] sm:$0xff]  ;;  %448 = vst [vmem:[%s3775_s17 + $0x2a0] sm:$0xff] %v447_v20  ;;  %450 = vst [vmem:[%s3775_s17 + $0x2a8] sm:$0xff] %v449_v21  ;;  %v453_v23 = vld [vmem:[%s3770_s16 + $0xac8] sm:$0xff] }
  0x3e   : > { %452 = vst [vmem:[%s3775_s17 + $0x2b0] sm:$0xff] %v451_v22  ;;  %v455_v24 = vld [vmem:[%s3770_s16 + $0xb00] sm:$0xff]  ;;  %v457_v25 = vld [vmem:[%s3770_s16 + $0xb08] sm:$0xff]  ;;  %454 = vst [vmem:[%s3775_s17 + $0x2b8] sm:$0xff] %v453_v23 }
  0x3f   : > { %456 = vst [vmem:[%s3775_s17 + $0x2c0] sm:$0xff] %v455_v24  ;;  %458 = vst [vmem:[%s3775_s17 + $0x2c8] sm:$0xff] %v457_v25  ;;  %v459_v26 = vld [vmem:[%s3770_s16 + $0xb40] sm:$0xff]  ;;  %v461_v27 = vld [vmem:[%s3770_s16 + $0xb48] sm:$0xff] }
  0x40   : > { %v463_v28 = vld [vmem:[%s3770_s16 + $0xb80] sm:$0xff]  ;;  %460 = vst [vmem:[%s3775_s17 + $0x2d0] sm:$0xff] %v459_v26  ;;  %462 = vst [vmem:[%s3775_s17 + $0x2d8] sm:$0xff] %v461_v27  ;;  %v465_v29 = vld [vmem:[%s3770_s16 + $0xb88] sm:$0xff] }
  0x41   : > { %464 = vst [vmem:[%s3775_s17 + $0x2e0] sm:$0xff] %v463_v28  ;;  %v467_v30 = vld [vmem:[%s3770_s16 + $0xbc0] sm:$0xff]  ;;  %v469_v31 = vld [vmem:[%s3770_s16 + $0xbc8] sm:$0xff]  ;;  %466 = vst [vmem:[%s3775_s17 + $0x2e8] sm:$0xff] %v465_v29 }
  0x42   : > { %468 = vst [vmem:[%s3775_s17 + $0x2f0] sm:$0xff] %v467_v30  ;;  %470 = vst [vmem:[%s3775_s17 + $0x2f8] sm:$0xff] %v469_v31  ;;  %v471_v32 = vld [vmem:[%s3770_s16 + $0xc00] sm:$0xff]  ;;  %v473_v33 = vld [vmem:[%s3770_s16 + $0xc08] sm:$0xff] }
  0x43   : > { %v475_v34 = vld [vmem:[%s3770_s16 + $0xc40] sm:$0xff]  ;;  %472 = vst [vmem:[%s3775_s17 + $0x300] sm:$0xff] %v471_v32  ;;  %474 = vst [vmem:[%s3775_s17 + $0x308] sm:$0xff] %v473_v33  ;;  %v477_v35 = vld [vmem:[%s3770_s16 + $0xc48] sm:$0xff] }
  0x44   : > { %476 = vst [vmem:[%s3775_s17 + $0x310] sm:$0xff] %v475_v34  ;;  %v479_v36 = vld [vmem:[%s3770_s16 + $0xc80] sm:$0xff]  ;;  %v481_v37 = vld [vmem:[%s3770_s16 + $0xc88] sm:$0xff]  ;;  %478 = vst [vmem:[%s3775_s17 + $0x318] sm:$0xff] %v477_v35 }
  0x45   : > { %480 = vst [vmem:[%s3775_s17 + $0x320] sm:$0xff] %v479_v36  ;;  %482 = vst [vmem:[%s3775_s17 + $0x328] sm:$0xff] %v481_v37  ;;  %v483_v38 = vld [vmem:[%s3770_s16 + $0xcc0] sm:$0xff]  ;;  %v485_v39 = vld [vmem:[%s3770_s16 + $0xcc8] sm:$0xff] }
  0x46   : > { %v487_v40 = vld [vmem:[%s3770_s16 + $0xd00] sm:$0xff]  ;;  %484 = vst [vmem:[%s3775_s17 + $0x330] sm:$0xff] %v483_v38  ;;  %486 = vst [vmem:[%s3775_s17 + $0x338] sm:$0xff] %v485_v39  ;;  %v489_v41 = vld [vmem:[%s3770_s16 + $0xd08] sm:$0xff] }
  0x47   : > { %488 = vst [vmem:[%s3775_s17 + $0x340] sm:$0xff] %v487_v40  ;;  %v491_v42 = vld [vmem:[%s3770_s16 + $0xd40] sm:$0xff]  ;;  %v493_v43 = vld [vmem:[%s3770_s16 + $0xd48] sm:$0xff]  ;;  %490 = vst [vmem:[%s3775_s17 + $0x348] sm:$0xff] %v489_v41 }
  0x48   : > { %492 = vst [vmem:[%s3775_s17 + $0x350] sm:$0xff] %v491_v42  ;;  %494 = vst [vmem:[%s3775_s17 + $0x358] sm:$0xff] %v493_v43  ;;  %v495_v44 = vld [vmem:[%s3770_s16 + $0xd80] sm:$0xff]  ;;  %v497_v45 = vld [vmem:[%s3770_s16 + $0xd88] sm:$0xff] }
  0x49   : > { %v499_v46 = vld [vmem:[%s3770_s16 + $0xdc0] sm:$0xff]  ;;  %496 = vst [vmem:[%s3775_s17 + $0x360] sm:$0xff] %v495_v44  ;;  %498 = vst [vmem:[%s3775_s17 + $0x368] sm:$0xff] %v497_v45  ;;  %v501_v47 = vld [vmem:[%s3770_s16 + $0xdc8] sm:$0xff] }
  0x4a   : > { %500 = vst [vmem:[%s3775_s17 + $0x370] sm:$0xff] %v499_v46  ;;  %v503_v48 = vld [vmem:[%s3770_s16 + $0xe00] sm:$0xff]  ;;  %v505_v49 = vld [vmem:[%s3770_s16 + $0xe08] sm:$0xff]  ;;  %502 = vst [vmem:[%s3775_s17 + $0x378] sm:$0xff] %v501_v47 }
  0x4b   : > { %504 = vst [vmem:[%s3775_s17 + $0x380] sm:$0xff] %v503_v48  ;;  %506 = vst [vmem:[%s3775_s17 + $0x388] sm:$0xff] %v505_v49  ;;  %v507_v50 = vld [vmem:[%s3770_s16 + $0xe40] sm:$0xff]  ;;  %v509_v51 = vld [vmem:[%s3770_s16 + $0xe48] sm:$0xff] }
  0x4c   : > { %v511_v52 = vld [vmem:[%s3770_s16 + $0xe80] sm:$0xff]  ;;  %508 = vst [vmem:[%s3775_s17 + $0x390] sm:$0xff] %v507_v50  ;;  %510 = vst [vmem:[%s3775_s17 + $0x398] sm:$0xff] %v509_v51  ;;  %v513_v53 = vld [vmem:[%s3770_s16 + $0xe88] sm:$0xff] }
  0x4d   : > { %512 = vst [vmem:[%s3775_s17 + $0x3a0] sm:$0xff] %v511_v52  ;;  %v515_v54 = vld [vmem:[%s3770_s16 + $0xec0] sm:$0xff]  ;;  %v517_v55 = vld [vmem:[%s3770_s16 + $0xec8] sm:$0xff]  ;;  %514 = vst [vmem:[%s3775_s17 + $0x3a8] sm:$0xff] %v513_v53 }
  0x4e   : > { %516 = vst [vmem:[%s3775_s17 + $0x3b0] sm:$0xff] %v515_v54  ;;  %518 = vst [vmem:[%s3775_s17 + $0x3b8] sm:$0xff] %v517_v55  ;;  %v519_v56 = vld [vmem:[%s3770_s16 + $0xf00] sm:$0xff]  ;;  %v521_v57 = vld [vmem:[%s3770_s16 + $0xf08] sm:$0xff] }
  0x4f   : > { %v523_v58 = vld [vmem:[%s3770_s16 + $0xf40] sm:$0xff]  ;;  %520 = vst [vmem:[%s3775_s17 + $0x3c0] sm:$0xff] %v519_v56  ;;  %522 = vst [vmem:[%s3775_s17 + $0x3c8] sm:$0xff] %v521_v57  ;;  %v525_v59 = vld [vmem:[%s3770_s16 + $0xf48] sm:$0xff] }
  0x50   : > { %524 = vst [vmem:[%s3775_s17 + $0x3d0] sm:$0xff] %v523_v58  ;;  %v527_v60 = vld [vmem:[%s3770_s16 + $0xf80] sm:$0xff]  ;;  %v529_v61 = vld [vmem:[%s3770_s16 + $0xf88] sm:$0xff]  ;;  %526 = vst [vmem:[%s3775_s17 + $0x3d8] sm:$0xff] %v525_v59 }
  0x51   : > { %528 = vst [vmem:[%s3775_s17 + $0x3e0] sm:$0xff] %v527_v60  ;;  %530 = vst [vmem:[%s3775_s17 + $0x3e8] sm:$0xff] %v529_v61  ;;  %v531_v62 = vld [vmem:[%s3770_s16 + $0xfc0] sm:$0xff]  ;;  %v533_v63 = vld [vmem:[%s3770_s16 + $0xfc8] sm:$0xff] }
  0x52   : > { %532 = vst [vmem:[%s3775_s17 + $0x3f0] sm:$0xff] %v531_v62  ;;  %534 = vst [vmem:[%s3775_s17 + $0x3f8] sm:$0xff] %v533_v63 }
  0x53 PF: > { %p2880_p6 = scmp.ge.s32.totalorder %s3680_s28, 1  ;;  %p557_p7 = scmp.lt.s32.totalorder %s3680_s28, 5 }
  0x55   : > { %p558_p8 = pnand %p2880_p6, %p557_p7 }
  0x56   : > { %s564_s18 = sand.u32 (!%p558_p8), 1, %s3664_s24   ;;  %s2882_s19 = sshll.u32 (!%p558_p8), %s3672_s26, 2 }
  0x57   : > { %561 = sbr.rel (%p558_p8) target bundleno = 1101 (0x44d), region = 67  ;;  %s2881_s20 = sshll.u32 (!%p558_p8), %s564_s18, 10 }
  0x58   : > { %p615_p9 = scmp.lt.s32.totalorder (!%p558_p8), %s2882_s19, 15  ;;  %s2883_s21 = sshll.u32 (!%p558_p8), %s3672_s26, 6 }
  0x59   : > { %p620_p10 = scmp.lt.s32.totalorder (!%p558_p8), %s2883_s21, 255  ;;  %s4046_s24 = scalar_lea.vmem (!%p558_p8), [#allocation3], %s2881_s20 }
  0x5a   : > { %p2886_p11 = scmp.ne.s32.totalorder (!%p558_p8), %s3672_s26, 0 }
  0x5e   : > { %s4455_s19 = smov (!%p615_p9, %s2882_s19), 15  ;;  %s4457_s21 = smov (!%p620_p10, %s2883_s21), 255 }
  0x5f   : > { %s617_s8 = scalar_lea.vmem %s4441_s2, %s4455_s19  ;;  %s3149_s9 = sshll.u32 %s4457_s21, 4  ;;  %v3682_v0 = vmov (!%p2886_p11), 0.0  }
  0x60   : > { %s4044_s13 = scalar_lea.vmem %s4442_s3, %s3149_s9  ;;  %630 = sbr.rel (%p2886_p11) target bundleno = 103 (0x67), region = 75  ;;  %631 = vst [vmem:[#allocation2] sm:$0xff] (!%p2886_p11), %v3682_v0  ;;  %632 = vst [vmem:[#allocation2 + $0x8] sm:$0xff] (!%p2886_p11), %v3682_v0 }
  0x61   : > { %633 = vst [vmem:[#allocation2 + $0x10] sm:$0xff] (!%p2886_p11), %v3682_v0  ;;  %634 = vst [vmem:[#allocation2 + $0x18] sm:$0xff] (!%p2886_p11), %v3682_v0 }
  0x62   : > { %635 = vst [vmem:[#allocation2 + $0x20] sm:$0xff] (!%p2886_p11), %v3682_v0  ;;  %636 = vst [vmem:[#allocation2 + $0x28] sm:$0xff] (!%p2886_p11), %v3682_v0 }
  0x63   : > { %637 = vst [vmem:[#allocation2 + $0x30] sm:$0xff] (!%p2886_p11), %v3682_v0  ;;  %638 = vst [vmem:[#allocation2 + $0x38] sm:$0xff] (!%p2886_p11), %v3682_v0 }
  0x67 PF: > { %v3224_v1 = vld [vmem:[%s4046_s24 + $0x4] ss:$16 sps:$4 sm:$0xff]   ;;  %v3226_v2 = vld [vmem:[%s4046_s24 + $0xc] ss:$16 sps:$4 sm:$0xff]   ;;  %v3228_v3 = vld [vmem:[%s4046_s24] ss:$16 sps:$4 sm:$0xff]  }
  0x68   : > { %1441 = vmatprep.subr.bf16.mxu0 %v3224_v1  ;;  %v3229_v4 = vld [vmem:[%s4046_s24 + $0x8] ss:$16 sps:$4 sm:$0xff]   ;;  %1527 = vmatprep.subr.bf16.mxu1 %v3226_v2  ;;  %v3230_v5 = vld [vmem:[%s4046_s24 + $0x24] ss:$16 sps:$4 sm:$0xff]   ;;  %v3232_v6 = vld [vmem:[%s4046_s24 + $0x2c] ss:$16 sps:$4 sm:$0xff]  }
  0x69   : > { %1442 = vmatpush1.bf16.msra.mxu0 %v3228_v3  ;;  %1528 = vmatpush1.bf16.msra.mxu1 %v3229_v4  ;;  %v3234_v7 = vld [vmem:[%s4046_s24 + $0x20] ss:$16 sps:$4 sm:$0xff]   ;;  %v3235_v8 = vld [vmem:[%s4046_s24 + $0x28] ss:$16 sps:$4 sm:$0xff]   ;;  %v3236_v9 = vld [vmem:[%s4046_s24 + $0x44] ss:$16 sps:$4 sm:$0xff]  }
  0x6a   : > { %1443 = vmatprep.subr.bf16.mxu0 %v3230_v5  ;;  %1529 = vmatprep.subr.bf16.mxu1 %v3232_v6  ;;  %v3238_v10 = vld [vmem:[%s4046_s24 + $0x4c] ss:$16 sps:$4 sm:$0xff]   ;;  %v3240_v11 = vld [vmem:[%s4046_s24 + $0x40] ss:$16 sps:$4 sm:$0xff]   ;;  %v3241_v12 = vld [vmem:[%s4046_s24 + $0x48] ss:$16 sps:$4 sm:$0xff]  }
  0x6b   : > { %v3242_v13 = vld [vmem:[%s4046_s24 + $0x64] ss:$16 sps:$4 sm:$0xff]   ;;  %v3244_v14 = vld [vmem:[%s4046_s24 + $0x6c] ss:$16 sps:$4 sm:$0xff]   ;;  %v3246_v15 = vld [vmem:[%s4046_s24 + $0x60] ss:$16 sps:$4 sm:$0xff]  }
  0x6c   : > { %v3247_v16 = vld [vmem:[%s4046_s24 + $0x68] ss:$16 sps:$4 sm:$0xff]   ;;  %v3248_v17 = vld [vmem:[%s4046_s24 + $0x84] ss:$16 sps:$4 sm:$0xff]   ;;  %v3250_v18 = vld [vmem:[%s4046_s24 + $0x8c] ss:$16 sps:$4 sm:$0xff]  }
  0x6d   : > { %1444 = vmatpush1.bf16.msra.mxu0 %v3234_v7  ;;  %1530 = vmatpush1.bf16.msra.mxu1 %v3235_v8  ;;  %v3252_v19 = vld [vmem:[%s4046_s24 + $0x80] ss:$16 sps:$4 sm:$0xff]   ;;  %v3253_v20 = vld [vmem:[%s4046_s24 + $0x88] ss:$16 sps:$4 sm:$0xff]   ;;  %v3254_v21 = vld [vmem:[%s4046_s24 + $0xa4] ss:$16 sps:$4 sm:$0xff]  }
  0x6e   : > { %1445 = vmatprep.subr.bf16.mxu0 %v3236_v9  ;;  %1531 = vmatprep.subr.bf16.mxu1 %v3238_v10  ;;  %v3256_v22 = vld [vmem:[%s4046_s24 + $0xac] ss:$16 sps:$4 sm:$0xff]   ;;  %v3258_v23 = vld [vmem:[%s4046_s24 + $0xa0] ss:$16 sps:$4 sm:$0xff]   ;;  %v3259_v24 = vld [vmem:[%s4046_s24 + $0xa8] ss:$16 sps:$4 sm:$0xff]  }
  0x6f   : > { %v3260_v25 = vld [vmem:[%s4046_s24 + $0xc4] ss:$16 sps:$4 sm:$0xff]   ;;  %v3262_v26 = vld [vmem:[%s4046_s24 + $0xcc] ss:$16 sps:$4 sm:$0xff]   ;;  %v3264_v27 = vld [vmem:[%s4046_s24 + $0xc0] ss:$16 sps:$4 sm:$0xff]  }
  0x70   : > { %v3265_v28 = vld [vmem:[%s4046_s24 + $0xc8] ss:$16 sps:$4 sm:$0xff]   ;;  %v3266_v29 = vld [vmem:[%s4046_s24 + $0xe4] ss:$16 sps:$4 sm:$0xff]   ;;  %v3268_v30 = vld [vmem:[%s4046_s24 + $0xec] ss:$16 sps:$4 sm:$0xff]  }
  0x71   : > { %1446 = vmatpush1.bf16.msra.mxu0 %v3240_v11  ;;  %1532 = vmatpush1.bf16.msra.mxu1 %v3241_v12  ;;  %v3270_v31 = vld [vmem:[%s4046_s24 + $0xe0] ss:$16 sps:$4 sm:$0xff]   ;;  %v3271_v32 = vld [vmem:[%s4046_s24 + $0xe8] ss:$16 sps:$4 sm:$0xff]   ;;  %v3272_v33 = vld [vmem:[%s4046_s24 + $0x104] ss:$16 sps:$4 sm:$0xff]  }
  0x72   : > { %1447 = vmatprep.subr.bf16.mxu0 %v3242_v13  ;;  %1533 = vmatprep.subr.bf16.mxu1 %v3244_v14  ;;  %v3274_v34 = vld [vmem:[%s4046_s24 + $0x10c] ss:$16 sps:$4 sm:$0xff]   ;;  %v3276_v35 = vld [vmem:[%s4046_s24 + $0x100] ss:$16 sps:$4 sm:$0xff]   ;;  %v3277_v36 = vld [vmem:[%s4046_s24 + $0x108] ss:$16 sps:$4 sm:$0xff]  }
  0x73   : > { %v3278_v37 = vld [vmem:[%s4046_s24 + $0x124] ss:$16 sps:$4 sm:$0xff]   ;;  %v3280_v38 = vld [vmem:[%s4046_s24 + $0x12c] ss:$16 sps:$4 sm:$0xff]   ;;  %v3282_v39 = vld [vmem:[%s4046_s24 + $0x120] ss:$16 sps:$4 sm:$0xff]  }
  0x74   : > { %v3283_v40 = vld [vmem:[%s4046_s24 + $0x128] ss:$16 sps:$4 sm:$0xff]   ;;  %v3284_v41 = vld [vmem:[%s4046_s24 + $0x144] ss:$16 sps:$4 sm:$0xff]   ;;  %v3286_v42 = vld [vmem:[%s4046_s24 + $0x14c] ss:$16 sps:$4 sm:$0xff]  }
  0x75   : > { %1448 = vmatpush1.bf16.msra.mxu0 %v3246_v15  ;;  %1534 = vmatpush1.bf16.msra.mxu1 %v3247_v16  ;;  %v3288_v43 = vld [vmem:[%s4046_s24 + $0x140] ss:$16 sps:$4 sm:$0xff]   ;;  %v3289_v44 = vld [vmem:[%s4046_s24 + $0x148] ss:$16 sps:$4 sm:$0xff]   ;;  %v3290_v45 = vld [vmem:[%s4046_s24 + $0x164] ss:$16 sps:$4 sm:$0xff]  }
  0x76   : > { %1449 = vmatprep.subr.bf16.mxu0 %v3248_v17  ;;  %1535 = vmatprep.subr.bf16.mxu1 %v3250_v18  ;;  %v3292_v46 = vld [vmem:[%s4046_s24 + $0x16c] ss:$16 sps:$4 sm:$0xff]   ;;  %v3294_v49 = vld [vmem:[%s4046_s24 + $0x160] ss:$16 sps:$4 sm:$0xff]   ;;  %v3295_v50 = vld [vmem:[%s4046_s24 + $0x168] ss:$16 sps:$4 sm:$0xff]  }
  0x77   : > { %v640_v47 = vld [vmem:[%s4439_s0 + $0x8] sm:$0xff]  ;;  %v3296_v52 = vld [vmem:[%s4046_s24 + $0x184] ss:$16 sps:$4 sm:$0xff]   ;;  %v3300_v54 = vld [vmem:[%s4046_s24 + $0x180] ss:$16 sps:$4 sm:$0xff]   ;;  %p3143_p12 = scmp.ne.s32.totalorder %s3672_s26, 3 }
  0x78   : > { %v644_v48 = vld [vmem:[%s4439_s0 + $0x28] sm:$0xff]  ;;  %v3302_v56 = vld [vmem:[%s4046_s24 + $0x1a4] ss:$16 sps:$4 sm:$0xff]   ;;  %v3306_v58 = vld [vmem:[%s4046_s24 + $0x1a0] ss:$16 sps:$4 sm:$0xff]  }
  0x79   : > { %1450 = vmatpush1.bf16.msra.mxu0 %v3252_v19  ;;  %1536 = vmatpush1.bf16.msra.mxu1 %v3253_v20  ;;  %v648_v51 = vpack.c.bf16 %v644_v48, %v640_v47  ;;  %v3298_v53 = vld [vmem:[%s4046_s24 + $0x18c] ss:$16 sps:$4 sm:$0xff]   ;;  %v3301_v55 = vld [vmem:[%s4046_s24 + $0x188] ss:$16 sps:$4 sm:$0xff]   ;;  %v3308_v60 = vld [vmem:[%s4046_s24 + $0x1c4] ss:$16 sps:$4 sm:$0xff]  }
  0x7a   : > { %1451 = vmatprep.subr.bf16.mxu0 %v3254_v21  ;;  %1537 = vmatprep.subr.bf16.mxu1 %v3256_v22  ;;  %v3304_v57 = vld [vmem:[%s4046_s24 + $0x1ac] ss:$16 sps:$4 sm:$0xff]   ;;  %v3307_v59 = vld [vmem:[%s4046_s24 + $0x1a8] ss:$16 sps:$4 sm:$0xff]   ;;  %v3312_v62 = vld [vmem:[%s4046_s24 + $0x1c0] ss:$16 sps:$4 sm:$0xff]  }
  0x7b   : > { %1473 = vmatprep.mubr.bf16.mxu0 %v648_v51  ;;  %1559 = vmatprep.mubr.bf16.mxu1 %v648_v51  ;;  %v3310_v61 = vld [vmem:[%s4046_s24 + $0x1cc] ss:$16 sps:$4 sm:$0xff]   ;;  %v3313_v63 = vld [vmem:[%s4046_s24 + $0x1c8] ss:$16 sps:$4 sm:$0xff]   ;;  %v3314_v0 = vld [vmem:[%s4046_s24 + $0x1e4] ss:$16 sps:$4 sm:$0xff]  }
  0x7c   : > { %v3316_v1 = vld [vmem:[%s4046_s24 + $0x1ec] ss:$16 sps:$4 sm:$0xff]   ;;  %v3318_v2 = vld [vmem:[%s4046_s24 + $0x1e0] ss:$16 sps:$4 sm:$0xff]   ;;  %v3319_v3 = vld [vmem:[%s4046_s24 + $0x1e8] ss:$16 sps:$4 sm:$0xff]  }
  0x7d   : > { %1452 = vmatpush1.bf16.msra.mxu0 %v3258_v23  ;;  %1538 = vmatpush1.bf16.msra.mxu1 %v3259_v24  ;;  %v3322_v4 = vld [vmem:[%s4046_s24 + $0x204] ss:$16 sps:$4 sm:$0xff]   ;;  %v3325_v7 = vld [vmem:[%s4046_s24 + $0x20c] ss:$16 sps:$4 sm:$0xff]   ;;  %v3320_v8 = vld [vmem:[%s4046_s24 + $0x200] ss:$16 sps:$4 sm:$0xff]  }
  0x7e   : > { %1453 = vmatprep.subr.bf16.mxu0 %v3260_v25  ;;  %1539 = vmatprep.subr.bf16.mxu1 %v3262_v26  ;;  %v639_v5 = vld [vmem:[%s4439_s0] sm:$0xff]  ;;  %v3323_v9 = vld [vmem:[%s4046_s24 + $0x208] ss:$16 sps:$4 sm:$0xff]   ;;  %v3331_v12 = vld [vmem:[%s4046_s24 + $0x22c] ss:$16 sps:$4 sm:$0xff]  }
  0x7f   : > { %v643_v6 = vld [vmem:[%s4439_s0 + $0x20] sm:$0xff]  ;;  %v3329_v14 = vld [vmem:[%s4046_s24 + $0x228] ss:$16 sps:$4 sm:$0xff]   ;;  %v3337_v16 = vld [vmem:[%s4046_s24 + $0x24c] ss:$16 sps:$4 sm:$0xff]  }
  0x80   : > { %v647_v10 = vpack.c.bf16 %v643_v6, %v639_v5  ;;  %v3328_v11 = vld [vmem:[%s4046_s24 + $0x224] ss:$16 sps:$4 sm:$0xff]   ;;  %v3326_v13 = vld [vmem:[%s4046_s24 + $0x220] ss:$16 sps:$4 sm:$0xff]   ;;  %v3335_v18 = vld [vmem:[%s4046_s24 + $0x248] ss:$16 sps:$4 sm:$0xff]  }
  0x81   : > { %1454 = vmatpush1.bf16.msra.mxu0 %v3264_v27  ;;  %1540 = vmatpush1.bf16.msra.mxu1 %v3265_v28  ;;  %v3334_v15 = vld [vmem:[%s4046_s24 + $0x244] ss:$16 sps:$4 sm:$0xff]   ;;  %v3332_v17 = vld [vmem:[%s4046_s24 + $0x240] ss:$16 sps:$4 sm:$0xff]   ;;  %v3343_v20 = vld [vmem:[%s4046_s24 + $0x26c] ss:$16 sps:$4 sm:$0xff]  }
  0x82   : > { %1455 = vmatprep.subr.bf16.mxu0 %v3266_v29  ;;  %1541 = vmatprep.subr.bf16.mxu1 %v3268_v30  ;;  %v3340_v19 = vld [vmem:[%s4046_s24 + $0x264] ss:$16 sps:$4 sm:$0xff]   ;;  %v3338_v21 = vld [vmem:[%s4046_s24 + $0x260] ss:$16 sps:$4 sm:$0xff]   ;;  %v3341_v22 = vld [vmem:[%s4046_s24 + $0x268] ss:$16 sps:$4 sm:$0xff]  }
  0x83   : > { %v3346_v23 = vld [vmem:[%s4046_s24 + $0x284] ss:$16 sps:$4 sm:$0xff]   ;;  %v3349_v24 = vld [vmem:[%s4046_s24 + $0x28c] ss:$16 sps:$4 sm:$0xff]   ;;  %v3344_v25 = vld [vmem:[%s4046_s24 + $0x280] ss:$16 sps:$4 sm:$0xff]  }
  0x84   : > { %v3347_v26 = vld [vmem:[%s4046_s24 + $0x288] ss:$16 sps:$4 sm:$0xff]   ;;  %v3352_v27 = vld [vmem:[%s4046_s24 + $0x2a4] ss:$16 sps:$4 sm:$0xff]   ;;  %v3355_v28 = vld [vmem:[%s4046_s24 + $0x2ac] ss:$16 sps:$4 sm:$0xff]  }
  0x85   : > { %1456 = vmatpush1.bf16.msra.mxu0 %v3270_v31  ;;  %1542 = vmatpush1.bf16.msra.mxu1 %v3271_v32  ;;  %v3350_v29 = vld [vmem:[%s4046_s24 + $0x2a0] ss:$16 sps:$4 sm:$0xff]   ;;  %v3353_v30 = vld [vmem:[%s4046_s24 + $0x2a8] ss:$16 sps:$4 sm:$0xff]   ;;  %v3358_v31 = vld [vmem:[%s4046_s24 + $0x2c4] ss:$16 sps:$4 sm:$0xff]  }
  0x86   : > { %1457 = vmatprep.subr.bf16.mxu0 %v3272_v33  ;;  %1543 = vmatprep.subr.bf16.mxu1 %v3274_v34  ;;  %v3361_v32 = vld [vmem:[%s4046_s24 + $0x2cc] ss:$16 sps:$4 sm:$0xff]   ;;  %v3356_v34 = vld [vmem:[%s4046_s24 + $0x2c0] ss:$16 sps:$4 sm:$0xff]   ;;  %v3407_v5 = vld [vmem:[%s4046_s24 + $0x3c8] ss:$16 sps:$4 sm:$0xff]  }
  0x87   : > { %v642_v33 = vld [vmem:[%s4439_s0 + $0x18] sm:$0xff]  ;;  %v3374_v48 = vld [vmem:[%s4046_s24 + $0x320] ss:$16 sps:$4 sm:$0xff]   ;;  %v3412_v6 = vld [vmem:[%s4046_s24 + $0x3e4] ss:$16 sps:$4 sm:$0xff]  }
  0x88   : > { %v3379_v47 = vld [vmem:[%s4046_s24 + $0x32c] ss:$16 sps:$4 sm:$0xff]  }
  0x89   : > { %1458 = vmatpush1.bf16.msra.mxu0 %v3276_v35  ;;  %1544 = vmatpush1.bf16.msra.mxu1 %v3277_v36  ;;  %v3359_v35 = vld [vmem:[%s4046_s24 + $0x2c8] ss:$16 sps:$4 sm:$0xff]   ;;  %v3385_v51 = vld [vmem:[%s4046_s24 + $0x34c] ss:$16 sps:$4 sm:$0xff]  }
  0x8a   : > { %1459 = vmatprep.subr.bf16.mxu0 %v3278_v37  ;;  %1545 = vmatprep.subr.bf16.mxu1 %v3280_v38  ;;  %v646_v36 = vld [vmem:[%s4439_s0 + $0x38] sm:$0xff]  ;;  %v3364_v37 = vld [vmem:[%s4046_s24 + $0x2e4] ss:$16 sps:$4 sm:$0xff]  }
  0x8b   : > { %v650_v38 = vpack.c.bf16 %v646_v36, %v642_v33  ;;  %v3448_v33 = vld [vmem:[%s4044_s13 + $0xa4] ss:$16 sps:$4 sm:$0xff]   ;;  %v3449_v36 = vld [vmem:[%s4044_s13 + $0xa8] ss:$16 sps:$4 sm:$0xff]  }
  0x8d   : > { %1460 = vmatpush1.bf16.msra.mxu0 %v3282_v39  ;;  %1546 = vmatpush1.bf16.msra.mxu1 %v3283_v40  ;;  %v3367_v39 = vld [vmem:[%s4046_s24 + $0x2ec] ss:$16 sps:$4 sm:$0xff]   ;;  %v3362_v40 = vld [vmem:[%s4046_s24 + $0x2e0] ss:$16 sps:$4 sm:$0xff]  }
  0x8e   : > { %1461 = vmatprep.subr.bf16.mxu0 %v3284_v41  ;;  %1547 = vmatprep.subr.bf16.mxu1 %v3286_v42  ;;  %v3365_v41 = vld [vmem:[%s4046_s24 + $0x2e8] ss:$16 sps:$4 sm:$0xff]   ;;  %v3370_v42 = vld [vmem:[%s4046_s24 + $0x304] ss:$16 sps:$4 sm:$0xff]  }
  0x91   : > { %1462 = vmatpush1.bf16.msra.mxu0 %v3288_v43  ;;  %1548 = vmatpush1.bf16.msra.mxu1 %v3289_v44  ;;  %v3373_v43 = vld [vmem:[%s4046_s24 + $0x30c] ss:$16 sps:$4 sm:$0xff]   ;;  %v3368_v44 = vld [vmem:[%s4046_s24 + $0x300] ss:$16 sps:$4 sm:$0xff]  }
  0x92   : > { %1463 = vmatprep.subr.bf16.mxu0 %v3290_v45  ;;  %1549 = vmatprep.subr.bf16.mxu1 %v3292_v46  ;;  %v3371_v45 = vld [vmem:[%s4046_s24 + $0x308] ss:$16 sps:$4 sm:$0xff]   ;;  %v3376_v46 = vld [vmem:[%s4046_s24 + $0x324] ss:$16 sps:$4 sm:$0xff]  }
  0x95   : > { %1464 = vmatpush1.bf16.msra.mxu0 %v3294_v49  ;;  %1550 = vmatpush1.bf16.msra.mxu1 %v3295_v50  ;;  %v3377_v49 = vld [vmem:[%s4046_s24 + $0x328] ss:$16 sps:$4 sm:$0xff]   ;;  %v3382_v50 = vld [vmem:[%s4046_s24 + $0x344] ss:$16 sps:$4 sm:$0xff]  }
  0x96   : > { %1465 = vmatprep.subr.bf16.mxu0 %v3296_v52  ;;  %1551 = vmatprep.subr.bf16.mxu1 %v3298_v53  ;;  %v3380_v52 = vld [vmem:[%s4046_s24 + $0x340] ss:$16 sps:$4 sm:$0xff]   ;;  %v3383_v53 = vld [vmem:[%s4046_s24 + $0x348] ss:$16 sps:$4 sm:$0xff]  }
  0x99   : > { %1466 = vmatpush1.bf16.msra.mxu0 %v3300_v54  ;;  %1552 = vmatpush1.bf16.msra.mxu1 %v3301_v55  ;;  %v3388_v54 = vld [vmem:[%s4046_s24 + $0x364] ss:$16 sps:$4 sm:$0xff]   ;;  %v3391_v55 = vld [vmem:[%s4046_s24 + $0x36c] ss:$16 sps:$4 sm:$0xff]  }
  0x9a   : > { %1467 = vmatprep.subr.bf16.mxu0 %v3302_v56  ;;  %1553 = vmatprep.subr.bf16.mxu1 %v3304_v57  ;;  %v3386_v56 = vld [vmem:[%s4046_s24 + $0x360] ss:$16 sps:$4 sm:$0xff]   ;;  %v3389_v57 = vld [vmem:[%s4046_s24 + $0x368] ss:$16 sps:$4 sm:$0xff]  }
  0x9d   : > { %1468 = vmatpush1.bf16.msra.mxu0 %v3306_v58  ;;  %1554 = vmatpush1.bf16.msra.mxu1 %v3307_v59  ;;  %v3394_v58 = vld [vmem:[%s4046_s24 + $0x384] ss:$16 sps:$4 sm:$0xff]   ;;  %v3397_v59 = vld [vmem:[%s4046_s24 + $0x38c] ss:$16 sps:$4 sm:$0xff]  }
  0x9e   : > { %1469 = vmatprep.subr.bf16.mxu0 %v3308_v60  ;;  %1555 = vmatprep.subr.bf16.mxu1 %v3310_v61  ;;  %v3392_v60 = vld [vmem:[%s4046_s24 + $0x380] ss:$16 sps:$4 sm:$0xff]   ;;  %v3395_v61 = vld [vmem:[%s4046_s24 + $0x388] ss:$16 sps:$4 sm:$0xff]  }
  0xa1   : > { %1470 = vmatpush1.bf16.msra.mxu0 %v3312_v62  ;;  %1556 = vmatpush1.bf16.msra.mxu1 %v3313_v63  ;;  %v3400_v62 = vld [vmem:[%s4046_s24 + $0x3a4] ss:$16 sps:$4 sm:$0xff]   ;;  %v3403_v63 = vld [vmem:[%s4046_s24 + $0x3ac] ss:$16 sps:$4 sm:$0xff]  }
  0xa2   : > { %1471 = vmatprep.subr.bf16.mxu0 %v3314_v0  ;;  %1557 = vmatprep.subr.bf16.mxu1 %v3316_v1  ;;  %v3398_v0 = vld [vmem:[%s4046_s24 + $0x3a0] ss:$16 sps:$4 sm:$0xff]   ;;  %v3401_v1 = vld [vmem:[%s4046_s24 + $0x3a8] ss:$16 sps:$4 sm:$0xff]  }
  0xa5   : > { %1472 = vmatpush1.bf16.msra.mxu0 %v3318_v2  ;;  %1558 = vmatpush1.bf16.msra.mxu1 %v3319_v3  ;;  %v3406_v2 = vld [vmem:[%s4046_s24 + $0x3c4] ss:$16 sps:$4 sm:$0xff]   ;;  %v3409_v3 = vld [vmem:[%s4046_s24 + $0x3cc] ss:$16 sps:$4 sm:$0xff]  }
  0xa6   : > { %1484 = vmatprep.subr.bf16.mxu0 %v3322_v4  ;;  %1570 = vmatprep.subr.bf16.mxu1 %v3325_v7  ;;  %v3404_v4 = vld [vmem:[%s4046_s24 + $0x3c0] ss:$16 sps:$4 sm:$0xff]   ;;  %v3415_v7 = vld [vmem:[%s4046_s24 + $0x3ec] ss:$16 sps:$4 sm:$0xff]  }
  0xa8   : > { %1474 = vmatmul.mubr.bf16.vlgmr.msra.gmra.mrb[0].mxu0 %v647_v10  ;;  %1560 = vmatmul.mubr.bf16.vlgmr.msra.gmra.mrb[0].mxu1 %v647_v10  ;;  %v641_v10 = vld [vmem:[%s4439_s0 + $0x10] sm:$0xff] }
  0xa9   : > { %1485 = vmatpush1.bf16.msra.mxu0 %v3320_v8  ;;  %1571 = vmatpush1.bf16.msra.mxu1 %v3323_v9  ;;  %v3410_v8 = vld [vmem:[%s4046_s24 + $0x3e0] ss:$16 sps:$4 sm:$0xff]   ;;  %v3413_v9 = vld [vmem:[%s4046_s24 + $0x3e8] ss:$16 sps:$4 sm:$0xff]  }
  0xaa   : > { %1486 = vmatprep.subr.bf16.mxu0 %v3328_v11  ;;  %1572 = vmatprep.subr.bf16.mxu1 %v3331_v12  ;;  %v645_v11 = vld [vmem:[%s4439_s0 + $0x30] sm:$0xff] }
  0xab   : > { %1516 = vmatprep.mubr.bf16.mxu0 %v650_v38  ;;  %1602 = vmatprep.mubr.bf16.mxu1 %v650_v38  ;;  %v3418_v12 = vld [vmem:[%s4044_s13 + $0x4] ss:$16 sps:$4 sm:$0xff]   ;;  %v3457_v38 = vld [vmem:[%s4044_s13 + $0xcc] ss:$16 sps:$4 sm:$0xff]  }
  0xad   : > { %1487 = vmatpush1.bf16.msra.mxu0 %v3326_v13  ;;  %1573 = vmatpush1.bf16.msra.mxu1 %v3329_v14  ;;  %v3421_v13 = vld [vmem:[%s4044_s13 + $0xc] ss:$16 sps:$4 sm:$0xff]   ;;  %v3416_v14 = vld [vmem:[%s4044_s13] ss:$16 sps:$4 sm:$0xff]  }
  0xae   : > { %1488 = vmatprep.subr.bf16.mxu0 %v3334_v15  ;;  %1574 = vmatprep.subr.bf16.mxu1 %v3337_v16  ;;  %v3419_v15 = vld [vmem:[%s4044_s13 + $0x8] ss:$16 sps:$4 sm:$0xff]   ;;  %v649_v16 = vpack.c.bf16 %v645_v11, %v641_v10  ;;  %v3511_v10 = vld [vmem:[%s4044_s13 + $0x1ec] ss:$16 sps:$4 sm:$0xff]   ;;  %v3506_v11 = vld [vmem:[%s4044_s13 + $0x1e0] ss:$16 sps:$4 sm:$0xff]  }
  0xb1   : > { %1489 = vmatpush1.bf16.msra.mxu0 %v3332_v17  ;;  %1575 = vmatpush1.bf16.msra.mxu1 %v3335_v18  ;;  %v3424_v17 = vld [vmem:[%s4044_s13 + $0x24] ss:$16 sps:$4 sm:$0xff]   ;;  %v3427_v18 = vld [vmem:[%s4044_s13 + $0x2c] ss:$16 sps:$4 sm:$0xff]  }
  0xb2   : > { %1490 = vmatprep.subr.bf16.mxu0 %v3340_v19  ;;  %1576 = vmatprep.subr.bf16.mxu1 %v3343_v20  ;;  %v3422_v19 = vld [vmem:[%s4044_s13 + $0x20] ss:$16 sps:$4 sm:$0xff]   ;;  %v3425_v20 = vld [vmem:[%s4044_s13 + $0x28] ss:$16 sps:$4 sm:$0xff]  }
  0xb5   : > { %1491 = vmatpush1.bf16.msra.mxu0 %v3338_v21  ;;  %1577 = vmatpush1.bf16.msra.mxu1 %v3341_v22  ;;  %v3430_v21 = vld [vmem:[%s4044_s13 + $0x44] ss:$16 sps:$4 sm:$0xff]   ;;  %v3433_v22 = vld [vmem:[%s4044_s13 + $0x4c] ss:$16 sps:$4 sm:$0xff]  }
  0xb6   : > { %1492 = vmatprep.subr.bf16.mxu0 %v3346_v23  ;;  %1578 = vmatprep.subr.bf16.mxu1 %v3349_v24  ;;  %v3428_v23 = vld [vmem:[%s4044_s13 + $0x40] ss:$16 sps:$4 sm:$0xff]   ;;  %v3431_v24 = vld [vmem:[%s4044_s13 + $0x48] ss:$16 sps:$4 sm:$0xff]  }
  0xb9   : > { %1493 = vmatpush1.bf16.msra.mxu0 %v3344_v25  ;;  %1579 = vmatpush1.bf16.msra.mxu1 %v3347_v26  ;;  %v3436_v25 = vld [vmem:[%s4044_s13 + $0x64] ss:$16 sps:$4 sm:$0xff]   ;;  %v3439_v26 = vld [vmem:[%s4044_s13 + $0x6c] ss:$16 sps:$4 sm:$0xff]  }
  0xba   : > { %1494 = vmatprep.subr.bf16.mxu0 %v3352_v27  ;;  %1580 = vmatprep.subr.bf16.mxu1 %v3355_v28  ;;  %v3434_v27 = vld [vmem:[%s4044_s13 + $0x60] ss:$16 sps:$4 sm:$0xff]   ;;  %v3437_v28 = vld [vmem:[%s4044_s13 + $0x68] ss:$16 sps:$4 sm:$0xff]  }
  0xbd   : > { %1495 = vmatpush1.bf16.msra.mxu0 %v3350_v29  ;;  %1581 = vmatpush1.bf16.msra.mxu1 %v3353_v30  ;;  %v3442_v29 = vld [vmem:[%s4044_s13 + $0x84] ss:$16 sps:$4 sm:$0xff]   ;;  %v3445_v30 = vld [vmem:[%s4044_s13 + $0x8c] ss:$16 sps:$4 sm:$0xff]  }
  0xbe   : > { %1496 = vmatprep.subr.bf16.mxu0 %v3358_v31  ;;  %1582 = vmatprep.subr.bf16.mxu1 %v3361_v32  ;;  %v3440_v31 = vld [vmem:[%s4044_s13 + $0x80] ss:$16 sps:$4 sm:$0xff]   ;;  %v3443_v32 = vld [vmem:[%s4044_s13 + $0x88] ss:$16 sps:$4 sm:$0xff]  }
  0xc1   : > { %1497 = vmatpush1.bf16.msra.mxu0 %v3356_v34  ;;  %1583 = vmatpush1.bf16.msra.mxu1 %v3359_v35  ;;  %v3451_v34 = vld [vmem:[%s4044_s13 + $0xac] ss:$16 sps:$4 sm:$0xff]   ;;  %v3446_v35 = vld [vmem:[%s4044_s13 + $0xa0] ss:$16 sps:$4 sm:$0xff]  }
  0xc2   : > { %1498 = vmatprep.subr.bf16.mxu0 %v3364_v37  ;;  %1584 = vmatprep.subr.bf16.mxu1 %v3367_v39  ;;  %v3454_v37 = vld [vmem:[%s4044_s13 + $0xc4] ss:$16 sps:$4 sm:$0xff]   ;;  %v3452_v39 = vld [vmem:[%s4044_s13 + $0xc0] ss:$16 sps:$4 sm:$0xff]  }
  0xc5   : > { %1499 = vmatpush1.bf16.msra.mxu0 %v3362_v40  ;;  %1585 = vmatpush1.bf16.msra.mxu1 %v3365_v41  ;;  %v3455_v40 = vld [vmem:[%s4044_s13 + $0xc8] ss:$16 sps:$4 sm:$0xff]   ;;  %v3460_v41 = vld [vmem:[%s4044_s13 + $0xe4] ss:$16 sps:$4 sm:$0xff]  }
  0xc6   : > { %1500 = vmatprep.subr.bf16.mxu0 %v3370_v42  ;;  %1586 = vmatprep.subr.bf16.mxu1 %v3373_v43  ;;  %v3463_v42 = vld [vmem:[%s4044_s13 + $0xec] ss:$16 sps:$4 sm:$0xff]   ;;  %v3458_v43 = vld [vmem:[%s4044_s13 + $0xe0] ss:$16 sps:$4 sm:$0xff]  }
  0xc9   : > { %1501 = vmatpush1.bf16.msra.mxu0 %v3368_v44  ;;  %1587 = vmatpush1.bf16.msra.mxu1 %v3371_v45  ;;  %v3461_v44 = vld [vmem:[%s4044_s13 + $0xe8] ss:$16 sps:$4 sm:$0xff]   ;;  %v3466_v45 = vld [vmem:[%s4044_s13 + $0x104] ss:$16 sps:$4 sm:$0xff]  }
  0xca   : > { %1502 = vmatprep.subr.bf16.mxu0 %v3376_v46  ;;  %1588 = vmatprep.subr.bf16.mxu1 %v3379_v47  ;;  %v3469_v46 = vld [vmem:[%s4044_s13 + $0x10c] ss:$16 sps:$4 sm:$0xff]   ;;  %v3464_v47 = vld [vmem:[%s4044_s13 + $0x100] ss:$16 sps:$4 sm:$0xff]  }
  0xcd   : > { %1503 = vmatpush1.bf16.msra.mxu0 %v3374_v48  ;;  %1589 = vmatpush1.bf16.msra.mxu1 %v3377_v49  ;;  %v3467_v48 = vld [vmem:[%s4044_s13 + $0x108] ss:$16 sps:$4 sm:$0xff]   ;;  %v3472_v49 = vld [vmem:[%s4044_s13 + $0x124] ss:$16 sps:$4 sm:$0xff]  }
  0xce   : > { %1504 = vmatprep.subr.bf16.mxu0 %v3382_v50  ;;  %1590 = vmatprep.subr.bf16.mxu1 %v3385_v51  ;;  %v3475_v50 = vld [vmem:[%s4044_s13 + $0x12c] ss:$16 sps:$4 sm:$0xff]   ;;  %v3470_v51 = vld [vmem:[%s4044_s13 + $0x120] ss:$16 sps:$4 sm:$0xff]  }
  0xd1   : > { %1505 = vmatpush1.bf16.msra.mxu0 %v3380_v52  ;;  %1591 = vmatpush1.bf16.msra.mxu1 %v3383_v53  ;;  %v3473_v52 = vld [vmem:[%s4044_s13 + $0x128] ss:$16 sps:$4 sm:$0xff]   ;;  %v3478_v53 = vld [vmem:[%s4044_s13 + $0x144] ss:$16 sps:$4 sm:$0xff]  }
  0xd2   : > { %1506 = vmatprep.subr.bf16.mxu0 %v3388_v54  ;;  %1592 = vmatprep.subr.bf16.mxu1 %v3391_v55  ;;  %v3481_v54 = vld [vmem:[%s4044_s13 + $0x14c] ss:$16 sps:$4 sm:$0xff]   ;;  %v3476_v55 = vld [vmem:[%s4044_s13 + $0x140] ss:$16 sps:$4 sm:$0xff]  }
  0xd5   : > { %1507 = vmatpush1.bf16.msra.mxu0 %v3386_v56  ;;  %1593 = vmatpush1.bf16.msra.mxu1 %v3389_v57  ;;  %v3479_v56 = vld [vmem:[%s4044_s13 + $0x148] ss:$16 sps:$4 sm:$0xff]   ;;  %v3484_v57 = vld [vmem:[%s4044_s13 + $0x164] ss:$16 sps:$4 sm:$0xff]  }
  0xd6   : > { %1508 = vmatprep.subr.bf16.mxu0 %v3394_v58  ;;  %1594 = vmatprep.subr.bf16.mxu1 %v3397_v59  ;;  %v3487_v58 = vld [vmem:[%s4044_s13 + $0x16c] ss:$16 sps:$4 sm:$0xff]   ;;  %v3482_v59 = vld [vmem:[%s4044_s13 + $0x160] ss:$16 sps:$4 sm:$0xff]  }
  0xd9   : > { %1509 = vmatpush1.bf16.msra.mxu0 %v3392_v60  ;;  %1595 = vmatpush1.bf16.msra.mxu1 %v3395_v61  ;;  %v3485_v60 = vld [vmem:[%s4044_s13 + $0x168] ss:$16 sps:$4 sm:$0xff]   ;;  %v3490_v61 = vld [vmem:[%s4044_s13 + $0x184] ss:$16 sps:$4 sm:$0xff]  }
  0xda   : > { %1510 = vmatprep.subr.bf16.mxu0 %v3400_v62  ;;  %1596 = vmatprep.subr.bf16.mxu1 %v3403_v63  ;;  %v3493_v62 = vld [vmem:[%s4044_s13 + $0x18c] ss:$16 sps:$4 sm:$0xff]   ;;  %v3488_v63 = vld [vmem:[%s4044_s13 + $0x180] ss:$16 sps:$4 sm:$0xff]  }
  0xdd   : > { %1511 = vmatpush1.bf16.msra.mxu0 %v3398_v0  ;;  %1597 = vmatpush1.bf16.msra.mxu1 %v3401_v1  ;;  %v3491_v0 = vld [vmem:[%s4044_s13 + $0x188] ss:$16 sps:$4 sm:$0xff]   ;;  %v3496_v1 = vld [vmem:[%s4044_s13 + $0x1a4] ss:$16 sps:$4 sm:$0xff]  }
  0xde   : > { %1512 = vmatprep.subr.bf16.mxu0 %v3406_v2  ;;  %1598 = vmatprep.subr.bf16.mxu1 %v3409_v3  ;;  %v3499_v2 = vld [vmem:[%s4044_s13 + $0x1ac] ss:$16 sps:$4 sm:$0xff]   ;;  %v3494_v3 = vld [vmem:[%s4044_s13 + $0x1a0] ss:$16 sps:$4 sm:$0xff]  }
  0xe1   : > { %1513 = vmatpush1.bf16.msra.mxu0 %v3404_v4  ;;  %1599 = vmatpush1.bf16.msra.mxu1 %v3407_v5  ;;  %v3497_v4 = vld [vmem:[%s4044_s13 + $0x1a8] ss:$16 sps:$4 sm:$0xff]   ;;  %v3502_v5 = vld [vmem:[%s4044_s13 + $0x1c4] ss:$16 sps:$4 sm:$0xff]  }
  0xe2   : > { %1514 = vmatprep.subr.bf16.mxu0 %v3412_v6  ;;  %1600 = vmatprep.subr.bf16.mxu1 %v3415_v7  ;;  %v3505_v6 = vld [vmem:[%s4044_s13 + $0x1cc] ss:$16 sps:$4 sm:$0xff]   ;;  %v3500_v7 = vld [vmem:[%s4044_s13 + $0x1c0] ss:$16 sps:$4 sm:$0xff]  }
  0xe5   : > { %1515 = vmatpush1.bf16.msra.mxu0 %v3410_v8  ;;  %1601 = vmatpush1.bf16.msra.mxu1 %v3413_v9  ;;  %v3503_v8 = vld [vmem:[%s4044_s13 + $0x1c8] ss:$16 sps:$4 sm:$0xff]   ;;  %v3508_v9 = vld [vmem:[%s4044_s13 + $0x1e4] ss:$16 sps:$4 sm:$0xff]  }
  0xe6   : > { %2401 = vmatprep.subr.bf16.mxu0 %v3418_v12  ;;  %2487 = vmatprep.subr.bf16.mxu1 %v3421_v13  ;;  %v3509_v12 = vld [vmem:[%s4044_s13 + $0x1e8] ss:$16 sps:$4 sm:$0xff]   ;;  %v3514_v13 = vld [vmem:[%s4044_s13 + $0x204] ss:$16 sps:$4 sm:$0xff]  }
  0xe8   : > { %1517 = vmatmul.mubr.bf16.vlgmr.msra.gmra.mrb[0].mxu0 %v649_v16  ;;  %1603 = vmatmul.mubr.bf16.vlgmr.msra.gmra.mrb[0].mxu1 %v649_v16 }
  0xe9   : > { %2402 = vmatpush1.bf16.msra.mxu0 %v3416_v14  ;;  %2488 = vmatpush1.bf16.msra.mxu1 %v3419_v15  ;;  %v3517_v14 = vld [vmem:[%s4044_s13 + $0x20c] ss:$16 sps:$4 sm:$0xff]   ;;  %v781_v15 = vlaneseq }
  0xea   : > { %2403 = vmatprep.subr.bf16.mxu0 %v3424_v17  ;;  %2489 = vmatprep.subr.bf16.mxu1 %v3427_v18 }
  0xeb   : > { %v782_v16 = vshrl.u32 %v781_v15, 7  ;;  %v3551_v15 = vld [vmem:[%s4044_s13 + $0x2c8] ss:$16 sps:$4 sm:$0xff]  }
  0xed   : > { %2404 = vmatpush1.bf16.msra.mxu0 %v3422_v19  ;;  %2490 = vmatpush1.bf16.msra.mxu1 %v3425_v20  ;;  %v4267_v17 = vsub.s32 0, %v782_v16  ;;  %v4269_v18 = vsub.s32 2, %v782_v16  ;;  %v779_v19 = vld [vmem:[%s617_s8] sm:$0xf]  ;;  %v4276_v20 = vsub.s32 1, %v782_v16 }
  0xee   : > { %2405 = vmatprep.subr.bf16.mxu0 %v3430_v21  ;;  %2491 = vmatprep.subr.bf16.mxu1 %v3433_v22  ;;  %v4278_v21 = vsub.s32 3, %v782_v16  ;;  %v3556_v16 = vld [vmem:[%s4044_s13 + $0x2e4] ss:$16 sps:$4 sm:$0xff]  }
  0xef   : > { %v784_v22 = vrot.slane %v779_v19, %v4267_v17 }
  0xf1   : > { %2406 = vmatpush1.bf16.msra.mxu0 %v3428_v23  ;;  %2492 = vmatpush1.bf16.msra.mxu1 %v3431_v24  ;;  %v792_v23 = vrot.slane %v779_v19, %v4269_v18  ;;  %v788_v24 = vrot.slane %v779_v19, %v4276_v20 }
  0xf2   : > { %2407 = vmatprep.subr.bf16.mxu0 %v3436_v25  ;;  %2493 = vmatprep.subr.bf16.mxu1 %v3439_v26  ;;  %v796_v25 = vrot.slane %v779_v19, %v4278_v21  ;;  %v3559_v19 = vld [vmem:[%s4044_s13 + $0x2ec] ss:$16 sps:$4 sm:$0xff]  }
  0xf5   : > { %2408 = vmatpush1.bf16.msra.mxu0 %v3434_v27  ;;  %2494 = vmatpush1.bf16.msra.mxu1 %v3437_v28 }
  0xf6   : > { %2409 = vmatprep.subr.bf16.mxu0 %v3442_v29  ;;  %2495 = vmatprep.subr.bf16.mxu1 %v3445_v30 }
  0xf9   : > { %2410 = vmatpush1.bf16.msra.mxu0 %v3440_v31  ;;  %2496 = vmatpush1.bf16.msra.mxu1 %v3443_v32 }
  0xfa   : > { %2411 = vmatprep.subr.bf16.mxu0 %v3448_v33  ;;  %2497 = vmatprep.subr.bf16.mxu1 %v3451_v34 }
  0xfd   : > { %2412 = vmatpush1.bf16.msra.mxu0 %v3446_v35  ;;  %2498 = vmatpush1.bf16.msra.mxu1 %v3449_v36 }
  0xfe   : > { %2413 = vmatprep.subr.bf16.mxu0 %v3454_v37  ;;  %2499 = vmatprep.subr.bf16.mxu1 %v3457_v38 }
 0x101   : > { %2414 = vmatpush1.bf16.msra.mxu0 %v3452_v39  ;;  %2500 = vmatpush1.bf16.msra.mxu1 %v3455_v40 }
 0x102   : > { %2415 = vmatprep.subr.bf16.mxu0 %v3460_v41  ;;  %2501 = vmatprep.subr.bf16.mxu1 %v3463_v42 }
 0x105   : > { %2416 = vmatpush1.bf16.msra.mxu0 %v3458_v43  ;;  %2502 = vmatpush1.bf16.msra.mxu1 %v3461_v44 }
 0x106   : > { %2417 = vmatprep.subr.bf16.mxu0 %v3466_v45  ;;  %2503 = vmatprep.subr.bf16.mxu1 %v3469_v46 }
 0x109   : > { %2418 = vmatpush1.bf16.msra.mxu0 %v3464_v47  ;;  %2504 = vmatpush1.bf16.msra.mxu1 %v3467_v48 }
 0x10a   : > { %2419 = vmatprep.subr.bf16.mxu0 %v3472_v49  ;;  %2505 = vmatprep.subr.bf16.mxu1 %v3475_v50 }
 0x10d   : > { %2420 = vmatpush1.bf16.msra.mxu0 %v3470_v51  ;;  %2506 = vmatpush1.bf16.msra.mxu1 %v3473_v52 }
 0x10e   : > { %2421 = vmatprep.subr.bf16.mxu0 %v3478_v53  ;;  %2507 = vmatprep.subr.bf16.mxu1 %v3481_v54  ;;  %v3512_v54 = vld [vmem:[%s4044_s13 + $0x200] ss:$16 sps:$4 sm:$0xff]  }
 0x111   : > { %2422 = vmatpush1.bf16.msra.mxu0 %v3476_v55  ;;  %2508 = vmatpush1.bf16.msra.mxu1 %v3479_v56  ;;  %v3515_v55 = vld [vmem:[%s4044_s13 + $0x208] ss:$16 sps:$4 sm:$0xff]   ;;  %v3520_v56 = vld [vmem:[%s4044_s13 + $0x224] ss:$16 sps:$4 sm:$0xff]  }
 0x112   : > { %2423 = vmatprep.subr.bf16.mxu0 %v3484_v57  ;;  %2509 = vmatprep.subr.bf16.mxu1 %v3487_v58  ;;  %v3523_v57 = vld [vmem:[%s4044_s13 + $0x22c] ss:$16 sps:$4 sm:$0xff]   ;;  %v3518_v58 = vld [vmem:[%s4044_s13 + $0x220] ss:$16 sps:$4 sm:$0xff]  }
 0x115   : > { %2424 = vmatpush1.bf16.msra.mxu0 %v3482_v59  ;;  %2510 = vmatpush1.bf16.msra.mxu1 %v3485_v60  ;;  %v3521_v59 = vld [vmem:[%s4044_s13 + $0x228] ss:$16 sps:$4 sm:$0xff]   ;;  %v3526_v60 = vld [vmem:[%s4044_s13 + $0x244] ss:$16 sps:$4 sm:$0xff]  }
 0x116   : > { %2425 = vmatprep.subr.bf16.mxu0 %v3490_v61  ;;  %2511 = vmatprep.subr.bf16.mxu1 %v3493_v62  ;;  %v3529_v61 = vld [vmem:[%s4044_s13 + $0x24c] ss:$16 sps:$4 sm:$0xff]   ;;  %v3524_v62 = vld [vmem:[%s4044_s13 + $0x240] ss:$16 sps:$4 sm:$0xff]  }
 0x119   : > { %2426 = vmatpush1.bf16.msra.mxu0 %v3488_v63  ;;  %2512 = vmatpush1.bf16.msra.mxu1 %v3491_v0  ;;  %v3527_v63 = vld [vmem:[%s4044_s13 + $0x248] ss:$16 sps:$4 sm:$0xff]   ;;  %v3532_v0 = vld [vmem:[%s4044_s13 + $0x264] ss:$16 sps:$4 sm:$0xff]  }
 0x11a   : > { %2427 = vmatprep.subr.bf16.mxu0 %v3496_v1  ;;  %2513 = vmatprep.subr.bf16.mxu1 %v3499_v2  ;;  %v3535_v1 = vld [vmem:[%s4044_s13 + $0x26c] ss:$16 sps:$4 sm:$0xff]   ;;  %v3530_v2 = vld [vmem:[%s4044_s13 + $0x260] ss:$16 sps:$4 sm:$0xff]  }
 0x11d   : > { %2428 = vmatpush1.bf16.msra.mxu0 %v3494_v3  ;;  %2514 = vmatpush1.bf16.msra.mxu1 %v3497_v4  ;;  %v3533_v3 = vld [vmem:[%s4044_s13 + $0x268] ss:$16 sps:$4 sm:$0xff]   ;;  %v3538_v4 = vld [vmem:[%s4044_s13 + $0x284] ss:$16 sps:$4 sm:$0xff]  }
 0x11e   : > { %2429 = vmatprep.subr.bf16.mxu0 %v3502_v5  ;;  %2515 = vmatprep.subr.bf16.mxu1 %v3505_v6  ;;  %v3541_v5 = vld [vmem:[%s4044_s13 + $0x28c] ss:$16 sps:$4 sm:$0xff]   ;;  %v3536_v6 = vld [vmem:[%s4044_s13 + $0x280] ss:$16 sps:$4 sm:$0xff]  }
 0x121   : > { %2430 = vmatpush1.bf16.msra.mxu0 %v3500_v7  ;;  %2516 = vmatpush1.bf16.msra.mxu1 %v3503_v8  ;;  %v3539_v7 = vld [vmem:[%s4044_s13 + $0x288] ss:$16 sps:$4 sm:$0xff]   ;;  %v3544_v8 = vld [vmem:[%s4044_s13 + $0x2a4] ss:$16 sps:$4 sm:$0xff]  }
 0x122   : > { %2431 = vmatprep.subr.bf16.mxu0 %v3508_v9  ;;  %2517 = vmatprep.subr.bf16.mxu1 %v3511_v10  ;;  %v3547_v9 = vld [vmem:[%s4044_s13 + $0x2ac] ss:$16 sps:$4 sm:$0xff]   ;;  %v3542_v10 = vld [vmem:[%s4044_s13 + $0x2a0] ss:$16 sps:$4 sm:$0xff]  }
 0x125   : > { %2432 = vmatpush1.bf16.msra.mxu0 %v3506_v11  ;;  %2518 = vmatpush1.bf16.msra.mxu1 %v3509_v12  ;;  %v3545_v11 = vld [vmem:[%s4044_s13 + $0x2a8] ss:$16 sps:$4 sm:$0xff]   ;;  %v3550_v12 = vld [vmem:[%s4044_s13 + $0x2c4] ss:$16 sps:$4 sm:$0xff]  }
 0x126   : > { %2444 = vmatprep.subr.bf16.mxu0 %v3514_v13  ;;  %2530 = vmatprep.subr.bf16.mxu1 %v3517_v14  ;;  %v3553_v13 = vld [vmem:[%s4044_s13 + $0x2cc] ss:$16 sps:$4 sm:$0xff]   ;;  %v3548_v14 = vld [vmem:[%s4044_s13 + $0x2c0] ss:$16 sps:$4 sm:$0xff]  }
 0x1bb   : > { %v1518_v26 = vpop.f32.mrb[0].mxu0  ;;  %v1604_v27 = vpop.f32.mrb[0].mxu1 }
 0x1bc   : > { %v3150_v28 = vadd.f32 %v1518_v26, %v784_v22  ;;  %v3154_v29 = vadd.f32 %v1604_v27, %v792_v23  ;;  %v1520_v30 = vpop.f32.mrb[1].mxu0  ;;  %v1606_v31 = vpop.f32.mrb[1].mxu1  ;;  %v3560_v26 = vld [vmem:[%s4044_s13 + $0x300] ss:$16 sps:$4 sm:$0xff]   ;;  %v3563_v27 = vld [vmem:[%s4044_s13 + $0x308] ss:$16 sps:$4 sm:$0xff]  }
 0x1bd   : > { %v3151_v32 = vadd.f32 %v1520_v30, %v788_v24  ;;  %v3155_v33 = vadd.f32 %v1606_v31, %v796_v25  ;;  %v1522_v34 = vpop.f32.mrb[2].mxu0  ;;  %v1608_v35 = vpop.f32.mrb[2].mxu1  ;;  %v3566_v30 = vld [vmem:[%s4044_s13 + $0x320] ss:$16 sps:$4 sm:$0xff]   ;;  %v3569_v31 = vld [vmem:[%s4044_s13 + $0x328] ss:$16 sps:$4 sm:$0xff]  }
 0x1be   : > { %v3152_v36 = vadd.f32 %v1522_v34, %v784_v22  ;;  %v3156_v37 = vadd.f32 %v1608_v35, %v792_v23  ;;  %v1524_v38 = vpop.f32.mrb[3].mxu0  ;;  %v1610_v39 = vpop.f32.mrb[3].mxu1  ;;  %v1613_v42 = vmax.f32 %v3150_v28, 0.0  ;;  %v1615_v43 = vmax.f32 %v3154_v29, 0.0  ;;  %v3554_v22 = vld [vmem:[%s4044_s13 + $0x2e0] ss:$16 sps:$4 sm:$0xff]  }
 0x1bf   : > { %v3153_v40 = vadd.f32 %v1524_v38, %v788_v24  ;;  %v3157_v41 = vadd.f32 %v1610_v39, %v796_v25  ;;  %v1614_v46 = vmax.f32 %v3151_v32, 0.0  ;;  %v1616_v47 = vmax.f32 %v3155_v33, 0.0  ;;  %v3557_v23 = vld [vmem:[%s4044_s13 + $0x2e8] ss:$16 sps:$4 sm:$0xff]   ;;  %v3562_v24 = vld [vmem:[%s4044_s13 + $0x304] ss:$16 sps:$4 sm:$0xff]  }
 0x1c0   : > { %v1617_v44 = vmax.f32 %v3152_v36, 0.0  ;;  %v1619_v45 = vmax.f32 %v3156_v37, 0.0  ;;  %v3565_v25 = vld [vmem:[%s4044_s13 + $0x30c] ss:$16 sps:$4 sm:$0xff]   ;;  %v3568_v28 = vld [vmem:[%s4044_s13 + $0x324] ss:$16 sps:$4 sm:$0xff]  }
 0x1c1   : > { %v1618_v48 = vmax.f32 %v3153_v40, 0.0  ;;  %v1620_v49 = vmax.f32 %v3157_v41, 0.0  ;;  %v3571_v29 = vld [vmem:[%s4044_s13 + $0x32c] ss:$16 sps:$4 sm:$0xff]   ;;  %v3574_v32 = vld [vmem:[%s4044_s13 + $0x344] ss:$16 sps:$4 sm:$0xff]  }
 0x1c2   : > { %v1629_v50 = vpack.c.bf16 %v1617_v44, %v1613_v42  ;;  %v4284_v51 = vpack.c.bf16 %v1619_v45, %v1615_v43  ;;  %v3577_v33 = vld [vmem:[%s4044_s13 + $0x34c] ss:$16 sps:$4 sm:$0xff]   ;;  %v3572_v34 = vld [vmem:[%s4044_s13 + $0x340] ss:$16 sps:$4 sm:$0xff]   ;;  %v3575_v35 = vld [vmem:[%s4044_s13 + $0x348] ss:$16 sps:$4 sm:$0xff]  }
 0x1c3   : > { %v1630_v52 = vpack.c.bf16 %v1618_v48, %v1614_v46  ;;  %v1632_v53 = vpack.c.bf16 %v1620_v49, %v1616_v47  ;;  %v3580_v36 = vld [vmem:[%s4044_s13 + $0x364] ss:$16 sps:$4 sm:$0xff]   ;;  %v3583_v37 = vld [vmem:[%s4044_s13 + $0x36c] ss:$16 sps:$4 sm:$0xff]   ;;  %v3578_v38 = vld [vmem:[%s4044_s13 + $0x360] ss:$16 sps:$4 sm:$0xff]  }
 0x1c4   : > { %v3581_v39 = vld [vmem:[%s4044_s13 + $0x368] ss:$16 sps:$4 sm:$0xff]   ;;  %v3586_v40 = vld [vmem:[%s4044_s13 + $0x384] ss:$16 sps:$4 sm:$0xff]   ;;  %v3589_v41 = vld [vmem:[%s4044_s13 + $0x38c] ss:$16 sps:$4 sm:$0xff]  }
 0x1c5   : > { %2433 = vmatprep.mubr.bf16.mxu0 %v1630_v52  ;;  %2519 = vmatprep.mubr.bf16.mxu1 %v1630_v52  ;;  %v3584_v42 = vld [vmem:[%s4044_s13 + $0x380] ss:$16 sps:$4 sm:$0xff]   ;;  %v3587_v43 = vld [vmem:[%s4044_s13 + $0x388] ss:$16 sps:$4 sm:$0xff]   ;;  %v3592_v44 = vld [vmem:[%s4044_s13 + $0x3a4] ss:$16 sps:$4 sm:$0xff]  }
 0x1c6   : > { %2434 = vmatmul.mubr.bf16.vlgmr.msra.gmra.mrb[4].mxu0 %v1629_v50  ;;  %2520 = vmatmul.mubr.bf16.vlgmr.msra.gmra.mrb[4].mxu1 %v1629_v50  ;;  %v3595_v45 = vld [vmem:[%s4044_s13 + $0x3ac] ss:$16 sps:$4 sm:$0xff]   ;;  %v3590_v46 = vld [vmem:[%s4044_s13 + $0x3a0] ss:$16 sps:$4 sm:$0xff]   ;;  %v3593_v47 = vld [vmem:[%s4044_s13 + $0x3a8] ss:$16 sps:$4 sm:$0xff]  }
 0x1c7   : > { %2445 = vmatpush1.bf16.msra.mxu0 %v3512_v54  ;;  %2531 = vmatpush1.bf16.msra.mxu1 %v3515_v55  ;;  %v3598_v48 = vld [vmem:[%s4044_s13 + $0x3c4] ss:$16 sps:$4 sm:$0xff]   ;;  %v3601_v49 = vld [vmem:[%s4044_s13 + $0x3cc] ss:$16 sps:$4 sm:$0xff]   ;;  %v3596_v50 = vld [vmem:[%s4044_s13 + $0x3c0] ss:$16 sps:$4 sm:$0xff]  }
 0x1c8   : > { %2476 = vmatprep.mubr.bf16.mxu0 %v1632_v53  ;;  %2562 = vmatprep.mubr.bf16.mxu1 %v1632_v53  ;;  %v3599_v52 = vld [vmem:[%s4044_s13 + $0x3c8] ss:$16 sps:$4 sm:$0xff]   ;;  %v3604_v53 = vld [vmem:[%s4044_s13 + $0x3e4] ss:$16 sps:$4 sm:$0xff]   ;;  %v3607_v54 = vld [vmem:[%s4044_s13 + $0x3ec] ss:$16 sps:$4 sm:$0xff]  }
 0x1c9   : > { %2446 = vmatprep.subr.bf16.mxu0 %v3520_v56  ;;  %2532 = vmatprep.subr.bf16.mxu1 %v3523_v57  ;;  %v3602_v55 = vld [vmem:[%s4044_s13 + $0x3e0] ss:$16 sps:$4 sm:$0xff]   ;;  %v3605_v56 = vld [vmem:[%s4044_s13 + $0x3e8] ss:$16 sps:$4 sm:$0xff]  }
 0x1ca   : > { %v1621_v57 = vld [vmem:[#allocation2] sm:$0xff] }
 0x1cb   : > { %2447 = vmatpush1.bf16.msra.mxu0 %v3518_v58  ;;  %2533 = vmatpush1.bf16.msra.mxu1 %v3521_v59  ;;  %v1623_v58 = vld [vmem:[#allocation2 + $0x10] sm:$0xff]  ;;  %v1622_v59 = vld [vmem:[#allocation2 + $0x8] sm:$0xff] }
 0x1cc   : > { %2448 = vmatprep.subr.bf16.mxu0 %v3526_v60  ;;  %2534 = vmatprep.subr.bf16.mxu1 %v3529_v61  ;;  %v1624_v60 = vld [vmem:[#allocation2 + $0x18] sm:$0xff] }
 0x1cf   : > { %2449 = vmatpush1.bf16.msra.mxu0 %v3524_v62  ;;  %2535 = vmatpush1.bf16.msra.mxu1 %v3527_v63  ;;  %v1625_v63 = vld [vmem:[#allocation2 + $0x20] sm:$0xff] }
 0x1d0   : > { %2450 = vmatprep.subr.bf16.mxu0 %v3532_v0  ;;  %2536 = vmatprep.subr.bf16.mxu1 %v3535_v1  ;;  %v1627_v0 = vld [vmem:[#allocation2 + $0x30] sm:$0xff] }
 0x1d3   : > { %2451 = vmatpush1.bf16.msra.mxu0 %v3530_v2  ;;  %2537 = vmatpush1.bf16.msra.mxu1 %v3533_v3 }
 0x1d4   : > { %2452 = vmatprep.subr.bf16.mxu0 %v3538_v4  ;;  %2538 = vmatprep.subr.bf16.mxu1 %v3541_v5  ;;  %v1626_v5 = vld [vmem:[#allocation2 + $0x28] sm:$0xff] }
 0x1d7   : > { %2453 = vmatpush1.bf16.msra.mxu0 %v3536_v6  ;;  %2539 = vmatpush1.bf16.msra.mxu1 %v3539_v7  ;;  %v1628_v6 = vld [vmem:[#allocation2 + $0x38] sm:$0xff] }
 0x1d8   : > { %2454 = vmatprep.subr.bf16.mxu0 %v3544_v8  ;;  %2540 = vmatprep.subr.bf16.mxu1 %v3547_v9 }
 0x1db   : > { %2455 = vmatpush1.bf16.msra.mxu0 %v3542_v10  ;;  %2541 = vmatpush1.bf16.msra.mxu1 %v3545_v11 }
 0x1dc   : > { %2456 = vmatprep.subr.bf16.mxu0 %v3550_v12  ;;  %2542 = vmatprep.subr.bf16.mxu1 %v3553_v13 }
 0x1df   : > { %2457 = vmatpush1.bf16.msra.mxu0 %v3548_v14  ;;  %2543 = vmatpush1.bf16.msra.mxu1 %v3551_v15 }
 0x1e0   : > { %2458 = vmatprep.subr.bf16.mxu0 %v3556_v16  ;;  %2544 = vmatprep.subr.bf16.mxu1 %v3559_v19 }
 0x1e3   : > { %2459 = vmatpush1.bf16.msra.mxu0 %v3554_v22  ;;  %2545 = vmatpush1.bf16.msra.mxu1 %v3557_v23 }
 0x1e4   : > { %2460 = vmatprep.subr.bf16.mxu0 %v3562_v24  ;;  %2546 = vmatprep.subr.bf16.mxu1 %v3565_v25  ;;  %v2601_v24 = vld [vmem:[%s4443_s4] sm:$0xf] (!%p3143_p12) }
 0x1e5   : > { %v2606_v25 = vrot.slane (!%p3143_p12), %v2601_v24, %v4267_v17 }
 0x1e7   : > { %2461 = vmatpush1.bf16.msra.mxu0 %v3560_v26  ;;  %2547 = vmatpush1.bf16.msra.mxu1 %v3563_v27  ;;  %v2610_v26 = vrot.slane (!%p3143_p12), %v2601_v24, %v4276_v20  ;;  %v2614_v27 = vrot.slane (!%p3143_p12), %v2601_v24, %v4269_v18 }
 0x1e8   : > { %2462 = vmatprep.subr.bf16.mxu0 %v3568_v28  ;;  %2548 = vmatprep.subr.bf16.mxu1 %v3571_v29  ;;  %v2618_v28 = vrot.slane (!%p3143_p12), %v2601_v24, %v4278_v21  ;;  %v2631_v29 = vld [vmem:[%s4439_s0] sm:$0xff] (!%p3143_p12) }
 0x1eb   : > { %2463 = vmatpush1.bf16.msra.mxu0 %v3566_v30  ;;  %2549 = vmatpush1.bf16.msra.mxu1 %v3569_v31  ;;  %v2632_v30 = vld [vmem:[%s4439_s0 + $0x8] sm:$0xff] (!%p3143_p12)  ;;  %v2633_v31 = vld [vmem:[%s4439_s0 + $0x10] sm:$0xff] (!%p3143_p12) }
 0x1ec   : > { %2464 = vmatprep.subr.bf16.mxu0 %v3574_v32  ;;  %2550 = vmatprep.subr.bf16.mxu1 %v3577_v33 }
 0x1ef   : > { %2465 = vmatpush1.bf16.msra.mxu0 %v3572_v34  ;;  %2551 = vmatpush1.bf16.msra.mxu1 %v3575_v35 }
 0x1f0   : > { %2466 = vmatprep.subr.bf16.mxu0 %v3580_v36  ;;  %2552 = vmatprep.subr.bf16.mxu1 %v3583_v37 }
 0x1f3   : > { %2467 = vmatpush1.bf16.msra.mxu0 %v3578_v38  ;;  %2553 = vmatpush1.bf16.msra.mxu1 %v3581_v39 }
 0x1f4   : > { %2468 = vmatprep.subr.bf16.mxu0 %v3586_v40  ;;  %2554 = vmatprep.subr.bf16.mxu1 %v3589_v41  ;;  %v2635_v40 = vld [vmem:[%s4439_s0 + $0x20] sm:$0xff] (!%p3143_p12)  ;;  %v2636_v41 = vld [vmem:[%s4439_s0 + $0x28] sm:$0xff] (!%p3143_p12) }
 0x1f7   : > { %2469 = vmatpush1.bf16.msra.mxu0 %v3584_v42  ;;  %2555 = vmatpush1.bf16.msra.mxu1 %v3587_v43  ;;  %v2634_v42 = vld [vmem:[%s4439_s0 + $0x18] sm:$0xff] (!%p3143_p12) }
 0x1f8   : > { %2470 = vmatprep.subr.bf16.mxu0 %v3592_v44  ;;  %2556 = vmatprep.subr.bf16.mxu1 %v3595_v45 }
 0x1fb   : > { %2471 = vmatpush1.bf16.msra.mxu0 %v3590_v46  ;;  %2557 = vmatpush1.bf16.msra.mxu1 %v3593_v47  ;;  %v2637_v46 = vld [vmem:[%s4439_s0 + $0x30] sm:$0xff] (!%p3143_p12) }
 0x1fc   : > { %2472 = vmatprep.subr.bf16.mxu0 %v3598_v48  ;;  %2558 = vmatprep.subr.bf16.mxu1 %v3601_v49 }
 0x1ff   : > { %2473 = vmatpush1.bf16.msra.mxu0 %v3596_v50  ;;  %2559 = vmatpush1.bf16.msra.mxu1 %v3599_v52  ;;  %v2638_v52 = vld [vmem:[%s4439_s0 + $0x38] sm:$0xff] (!%p3143_p12) }
 0x200   : > { %2474 = vmatprep.subr.bf16.mxu0 %v3604_v53  ;;  %2560 = vmatprep.subr.bf16.mxu1 %v3607_v54 }
 0x203   : > { %2475 = vmatpush1.bf16.msra.mxu0 %v3602_v55  ;;  %2561 = vmatpush1.bf16.msra.mxu1 %v3605_v56 }
 0x206   : > { %2477 = vmatmul.mubr.bf16.vlgmr.msra.gmra.mrb[4].mxu0 %v4284_v51  ;;  %2563 = vmatmul.mubr.bf16.vlgmr.msra.gmra.mrb[4].mxu1 %v4284_v51 }
 0x2d9   : > { %v2478_v61 = vpop.f32.mrb[4].mxu0  ;;  %v2564_v62 = vpop.f32.mrb[4].mxu1  ;;  %2592 = sbr.rel (%p3143_p12) target bundleno = 1075 (0x433), region = 79 }
 0x2da   : > { %v2573_v1 = vadd.f32 %v2478_v61, %v1621_v57  ;;  %v2575_v2 = vadd.f32 %v2564_v62, %v1623_v58  ;;  %v2480_v3 = vpop.f32.mrb[5].mxu0  ;;  %v2566_v4 = vpop.f32.mrb[5].mxu1 }
 0x2db   : > { %v2574_v7 = vadd.f32 %v2480_v3, %v1622_v59  ;;  %v2576_v8 = vadd.f32 %v2566_v4, %v1624_v60  ;;  %v2482_v9 = vpop.f32.mrb[6].mxu0  ;;  %v2568_v10 = vpop.f32.mrb[6].mxu1 }
 0x2dc   : > { %2581 = vst [vmem:[#allocation2] sm:$0xff] %v2573_v1  ;;  %2583 = vst [vmem:[#allocation2 + $0x10] sm:$0xff] %v2575_v2  ;;  %v2577_v51 = vadd.f32 %v2482_v9, %v1625_v63  ;;  %v2579_v11 = vadd.f32 %v2568_v10, %v1627_v0  ;;  %v2484_v12 = vpop.f32.mrb[7].mxu0  ;;  %v2570_v13 = vpop.f32.mrb[7].mxu1 }
 0x2dd   : > { %2582 = vst [vmem:[#allocation2 + $0x8] sm:$0xff] %v2574_v7  ;;  %2584 = vst [vmem:[#allocation2 + $0x18] sm:$0xff] %v2576_v8  ;;  %v2578_v14 = vadd.f32 %v2484_v12, %v1626_v5  ;;  %v2580_v15 = vadd.f32 %v2570_v13, %v1628_v6 }
 0x2de   : > { %2585 = vst [vmem:[#allocation2 + $0x20] sm:$0xff] %v2577_v51  ;;  %2587 = vst [vmem:[#allocation2 + $0x30] sm:$0xff] %v2579_v11 }
 0x2df   : > { %2586 = vst [vmem:[#allocation2 + $0x28] sm:$0xff] %v2578_v14  ;;  %2588 = vst [vmem:[#allocation2 + $0x38] sm:$0xff] %v2580_v15 }
 0x2e3   : > { %v2593_v16 = vld [vmem:[#allocation2] sm:$0xff]  ;;  %v2595_v22 = vld [vmem:[#allocation2 + $0x10] sm:$0xff] }
 0x2e4   : > { %v2594_v19 = vld [vmem:[#allocation2 + $0x8] sm:$0xff]  ;;  %v2596_v23 = vld [vmem:[#allocation2 + $0x18] sm:$0xff]  ;;  %v2623_v35 = vadd.f32 %v2606_v25, %v2593_v16  ;;  %v2625_v37 = vadd.f32 %v2614_v27, %v2595_v22 }
 0x2e5   : > { %v2597_v32 = vld [vmem:[#allocation2 + $0x20] sm:$0xff]  ;;  %v2599_v34 = vld [vmem:[#allocation2 + $0x30] sm:$0xff]  ;;  %v2624_v36 = vadd.f32 %v2610_v26, %v2594_v19  ;;  %v2626_v38 = vadd.f32 %v2618_v28, %v2596_v23 }
 0x2e6   : > { %v2598_v33 = vld [vmem:[#allocation2 + $0x28] sm:$0xff]  ;;  %v2600_v39 = vld [vmem:[#allocation2 + $0x38] sm:$0xff]  ;;  %v2627_v43 = vadd.f32 %v2606_v25, %v2597_v32  ;;  %v2629_v45 = vadd.f32 %v2614_v27, %v2599_v34  ;;  %v2639_v47 = vadd.f32 %v2631_v29, %v2623_v35  ;;  %v2641_v49 = vadd.f32 %v2633_v31, %v2625_v37  ;;  %v2700_v35 = vld [vmem:[%s4444_s5] sm:$0xf] }
 0x2e7   : > { %v2628_v44 = vadd.f32 %v2610_v26, %v2598_v33  ;;  %v2640_v48 = vadd.f32 %v2632_v30, %v2624_v36  ;;  %v2630_v50 = vadd.f32 %v2618_v28, %v2600_v39  ;;  %v2642_v56 = vadd.f32 %v2634_v42, %v2626_v38  ;;  %v2730_v36 = vld [vmem:[%s4445_s6] sm:$0xf] }
 0x2e8   : > { %v2643_v53 = vadd.f32 %v2635_v40, %v2627_v43  ;;  %v2645_v55 = vadd.f32 %v2637_v46, %v2629_v45  ;;  %v2705_v37 = vrot.slane %v2700_v35, %v4267_v17  ;;  %v2709_v38 = vrot.slane %v2700_v35, %v4276_v20 }
 0x2e9   : > { %v2644_v54 = vadd.f32 %v2636_v41, %v2628_v44  ;;  %v2647_v57 = vadd.f32 %v2640_v48, %v2639_v47  ;;  %v2646_v60 = vadd.f32 %v2638_v52, %v2630_v50  ;;  %v2713_v39 = vrot.slane %v2700_v35, %v4269_v18 }
 0x2ea   : > { %v2717_v40 = vrot.slane %v2700_v35, %v4278_v21  ;;  %v2735_v42 = vrot.slane %v2730_v36, %v4267_v17  ;;  %v2739_v43 = vrot.slane %v2730_v36, %v4276_v20  ;;  %v2743_v44 = vrot.slane %v2730_v36, %v4269_v18 }
 0x2eb   : > { %v2652_v58 = vadd.f32 %v2644_v54, %v2643_v53  ;;  %v2648_v59 = vadd.f32 %v2647_v57, %v2641_v49  ;;  %v2747_v45 = vrot.slane %v2730_v36, %v4278_v21 }
 0x2ed   : > { %v2653_v61 = vadd.f32 %v2652_v58, %v2645_v55  ;;  %v2649_v62 = vadd.f32 %v2648_v59, %v2642_v56 }
 0x2ef   : > { %2650 = vadd.xlane.f32.xlu0 %v2649_v62  ;;  %v2654_v63 = vadd.f32 %v2653_v61, %v2646_v60 }
 0x2f3   : > { %2655 = vadd.xlane.f32.xlu0 %v2654_v63 }
 0x37c   : > { %v2651_v0 = vpop.xlane.xlu0 %2650 }
 0x37d   : > { %v2658_v1 = vmul.f32 0.001953125, %v2651_v0 }
 0x37f   : > { %v2660_v2 = vsub.f32 %v2639_v47, %v2658_v1  ;;  %v2661_v3 = vsub.f32 %v2640_v48, %v2658_v1  ;;  %v2662_v4 = vsub.f32 %v2641_v49, %v2658_v1  ;;  %v2663_v6 = vsub.f32 %v2642_v56, %v2658_v1 }
 0x380   : > { %v2656_v5 = vpop.xlane.xlu0 %2655 }
 0x381   : > { %v2659_v7 = vmul.f32 0.001953125, %v2656_v5  ;;  %v2668_v8 = vmul.f32 %v2660_v2, %v2660_v2  ;;  %v2669_v9 = vmul.f32 %v2661_v3, %v2661_v3  ;;  %v2670_v10 = vmul.f32 %v2662_v4, %v2662_v4 }
 0x382   : > { %v2671_v14 = vmul.f32 %v2663_v6, %v2663_v6 }
 0x383   : > { %v2664_v51 = vsub.f32 %v2643_v53, %v2659_v7  ;;  %v2665_v11 = vsub.f32 %v2644_v54, %v2659_v7  ;;  %v2676_v12 = vadd.f32 %v2669_v9, %v2668_v8  ;;  %v2666_v13 = vsub.f32 %v2645_v55, %v2659_v7 }
 0x384   : > { %v2667_v16 = vsub.f32 %v2646_v60, %v2659_v7 }
 0x385   : > { %v2677_v15 = vadd.f32 %v2676_v12, %v2670_v10  ;;  %v2672_v19 = vmul.f32 %v2664_v51, %v2664_v51  ;;  %v2673_v22 = vmul.f32 %v2665_v11, %v2665_v11  ;;  %v2674_v24 = vmul.f32 %v2666_v13, %v2666_v13 }
 0x386   : > { %v2675_v26 = vmul.f32 %v2667_v16, %v2667_v16 }
 0x387   : > { %v2678_v23 = vadd.f32 %v2677_v15, %v2671_v14  ;;  %v2681_v25 = vadd.f32 %v2673_v22, %v2672_v19 }
 0x389   : > { %2679 = vadd.xlane.f32.xlu1 %v2678_v23  ;;  %v2682_v27 = vadd.f32 %v2681_v25, %v2674_v24 }
 0x38b   : > { %v2683_v28 = vadd.f32 %v2682_v27, %v2675_v26 }
 0x38d   : > { %2684 = vadd.xlane.f32.xlu1 %v2683_v28 }
 0x416   : > { %v2680_v29 = vpop.xlane.xlu1 %2679 }
 0x417   : > { %v2686_v30 = vmul.f32 0.001953125, %v2680_v29 }
 0x419   : > { %v2688_v31 = vadd.f32 1e-05, %v2686_v30 }
 0x41a   : > { %v2685_v32 = vpop.xlane.xlu1 %2684 }
 0x41b   : > { %3608 = vrsqrt.f32 %v2688_v31  ;;  %v2687_v33 = vmul.f32 0.001953125, %v2685_v32 }
 0x41d   : > { %v2689_v34 = vadd.f32 1e-05, %v2687_v33 }
 0x41f   : > { %3610 = vrsqrt.f32 %v2689_v34 }
 0x425   : > { %v3609_v41 = vpop.eup %3608 }
 0x426   : > { %v2692_v46 = vmul.f32 %v3609_v41, %v2660_v2  ;;  %v2693_v47 = vmul.f32 %v3609_v41, %v2661_v3  ;;  %v2694_v48 = vmul.f32 %v3609_v41, %v2662_v4  ;;  %v2695_v49 = vmul.f32 %v3609_v41, %v2663_v6 }
 0x428   : > { %v2722_v50 = vmul.f32 %v2705_v37, %v2692_v46  ;;  %v2723_v52 = vmul.f32 %v2709_v38, %v2693_v47  ;;  %v2724_v53 = vmul.f32 %v2713_v39, %v2694_v48  ;;  %v2725_v54 = vmul.f32 %v2717_v40, %v2695_v49 }
 0x429   : > { %v3611_v55 = vpop.eup %3610 }
 0x42a   : > { %v2752_v56 = vadd.f32 %v2735_v42, %v2722_v50  ;;  %v2753_v57 = vadd.f32 %v2739_v43, %v2723_v52  ;;  %v2754_v58 = vadd.f32 %v2743_v44, %v2724_v53  ;;  %v2755_v59 = vadd.f32 %v2747_v45, %v2725_v54 }
 0x42b   : > { %v2696_v17 = vmul.f32 %v3611_v55, %v2664_v51  ;;  %v2697_v60 = vmul.f32 %v3611_v55, %v2665_v11  ;;  %v2698_v20 = vmul.f32 %v3611_v55, %v2666_v13  ;;  %v2699_v61 = vmul.f32 %v3611_v55, %v2667_v16 }
 0x42c   : > { %2760 = vst [vmem:[#allocation4] sm:$0xff] %v2752_v56  ;;  %2761 = vst [vmem:[#allocation4 + $0x8] sm:$0xff] %v2753_v57 }
 0x42d   : > { %2762 = vst [vmem:[#allocation4 + $0x10] sm:$0xff] %v2754_v58  ;;  %2763 = vst [vmem:[#allocation4 + $0x18] sm:$0xff] %v2755_v59  ;;  %v2726_v18 = vmul.f32 %v2705_v37, %v2696_v17  ;;  %v2727_v21 = vmul.f32 %v2709_v38, %v2697_v60  ;;  %v2728_v62 = vmul.f32 %v2713_v39, %v2698_v20 }
 0x42e   : > { %v2729_v63 = vmul.f32 %v2717_v40, %v2699_v61 }
 0x42f   : > { %v2756_v0 = vadd.f32 %v2735_v42, %v2726_v18  ;;  %v2757_v1 = vadd.f32 %v2739_v43, %v2727_v21  ;;  %v2758_v2 = vadd.f32 %v2743_v44, %v2728_v62 }
 0x430   : > { %v2759_v3 = vadd.f32 %v2747_v45, %v2729_v63 }
 0x431   : > { %2764 = vst [vmem:[#allocation4 + $0x20] sm:$0xff] %v2756_v0  ;;  %2765 = vst [vmem:[#allocation4 + $0x28] sm:$0xff] %v2757_v1 }
 0x432   : > { %2766 = vst [vmem:[#allocation4 + $0x30] sm:$0xff] %v2758_v2  ;;  %2767 = vst [vmem:[#allocation4 + $0x38] sm:$0xff] %v2759_v3 }
 0x433 PF: > { %p4398_p13 = scmp.eq.s32.totalorder %s2873_s29, 3  ;;  %s3683_s22 = smov [#allocation4]  }
 0x434   : > { %s2778_s23 = sshll.u32 %s3683_s22, 4  ;;  %s2779_s23 = int_to_ptr.vmem [resolvable:$true] %s2778_s23 }
 0x435   : > { %s3612_s9 = scalar_lea.vmem %s2779_s23, 1024  ;;  %p3619_p3 = scmp.lt.s32.totalorder %s2779_s23, %s2779_s23 }
 0x436   : > { %p3613_p0 = scmp.ne.s32.totalorder %s2779_s23, %s3612_s9  ;;  %p3620_p4 = scmp.lt.s32.totalorder %s3612_s9, %s3612_s9 }
 0x438   : > { %p3614_p1 = pnand %p3613_p0, %p4398_p13  ;;  %p3621_p5 = por %p3620_p4, %p3619_p3 }
 0x43a   : > { %p3615_p2 = pneg %p3614_p1 }
 0x43c   : > { %p3622_p6 = pnand %p3621_p5, %p3615_p2 }
 0x43e   : > { %3625 = shalt.err (!%p3622_p6)
}
 0x43f   : > { %s3626_s29 = scalar_lea.hbm %s4446_s7, 1024 }
 0x440   : > { %p3627_p7 = scmp.ne.s32.totalorder %s4446_s7, %s3626_s29  ;;  %p3632_p10 = scmp.lt.u32.totalorder %s3626_s29, %s4446_s7 }
 0x442   : > { %p3628_p8 = pnand %p3627_p7, %p4398_p13 }
 0x444   : > { %p3629_p9 = pneg %p3628_p8 }
 0x446   : > { %p3634_p11 = pnand %p3632_p10, %p3629_p9 }
 0x448   : > { %3637 = shalt.err (!%p3634_p11)
}
 0x449   : > { %s3684_s24 = smov 512   ;;  %s3685_s18 = smov 32  }
 0x44a   : > { %3175 = dma.vmem_to_hbm [thread:$0]  (%p4398_p13), %s2779_s23, 1024, %s4446_s7, [#allocation5], %s3684_s24, %s3684_s24, %s3685_s18  }
 0x44b   : > { %3659 = dma.done.wait (%p4398_p13), [#allocation5], 1024  }
 0x44c   : > { %3661 = vsyncadd (%p4398_p13), [#allocation5], 4294966272 }
 0x44d PF: > { %s18_s28 = sadd.s32 1, %s3680_s28   ;;  %s4448_s24 = smov %s3668_s25 }
 0x44e   : > { %p15_p12 = scmp.ge.s32.totalorder %s18_s28, 6   ;;  %s4449_s25 = smov %s3762_s10 }
 0x44f   : > { %s4450_s26 = smov %s3676_s27  ;;  %s4451_s27 = smov %s4453_s30 }
 0x450   :  { %17 = sbr.rel (!%p15_p12) target bundleno = 3 (0x3), region = 121 }
 0x457   :  { %2794 = vsyncpa [#allocation5], 1 }
 0x458   :  { %2796 = vsyncpa [#allocation5 + $0x1], 1 }

</bundles_post_ra>
